<compile_context>
chip_gen: v7x
topology: tpu7x:2x2x1
jax: 0.10.0
libtpu: 0.0.40
codegen_flags: <defaults>
</compile_context>

<pallas_src>
import functools

import jax
import jax.numpy as jnp
from jax.experimental import pallas as pl
from jax.experimental.pallas import tpu as pltpu


def _round_up(x, m):
    return (x + m - 1) // m * m


def _lane_mod(lane, m):
    if m & (m - 1) == 0:            # power of two -> cheap bitwise path
        return jnp.bitwise_and(lane, m - 1)
    return lane % m


def _fused_kernel(x_ref, w1_ref, b1_ref, w2_ref, b2_ref, o_ref,
                  xpad_ref, h1_ref,
                  *, C1, C2, D, H, W, Q, OFF):
    HW = H * W

    # ---- lane masks for the kw = 0 / 2 shifted contributions (hoisted) ----
    lane = jax.lax.broadcasted_iota(jnp.int32, (1, HW), 1)
    col = _lane_mod(lane, W)                 # output column index per lane
    left_ok = col != 0                       # kw=0 tap invalid at w == 0
    right_ok = col != (W - 1)                # kw=2 tap invalid at w == W-1

    # ---- re-zero ONLY the halo / slack regions every grid step ----
    # (scratch persists across grid steps; interiors are fully overwritten each
    #  step.  Do NOT gate this on program_id()==0: with dimension_semantics
    #  ("parallel",) a TensorCore may never execute step 0.)
    def zero_halos(ref, rows):
        z_strip = jnp.zeros((rows, OFF), jnp.float32)
        z_plane = jnp.zeros((rows, HW), jnp.float32)
        tail = Q - OFF - HW
        z_tail = jnp.zeros((rows, tail), jnp.float32) if tail > 0 else None
        for p in range(D + 2):
            base = p * Q
            ref[:, base:base + OFF] = z_strip                  # h = -1 halo row + slack
            if z_tail is not None:
                ref[:, base + OFF + HW:base + Q] = z_tail      # h = H halo row + slack
        for p in (0, D + 1):                                   # d = -1 / d = D halo planes
            base = p * Q + OFF
            ref[:, base:base + HW] = z_plane

    zero_halos(xpad_ref, xpad_ref.shape[0])
    zero_halos(h1_ref, C1)

    # ---- stage the (unpadded) input into the padded flat layout (aligned) ----
    for d in range(D):
        base = (d + 1) * Q + OFF
        xpad_ref[:, base:base + HW] = x_ref[0, :, d, :]

    # ---- one output plane of a 3x3x3 conv, kw-decomposed ----
    def conv_plane(src_ref, w_ref, bias, cout, d):
        acc = None
        for kd in range(3):
            for kh in range(3):
                g = kd * 3 + kh
                off = (d + kd) * Q + (kh - 1) * W + OFF
                slab = src_ref[:, off:off + HW]           # (cin, HW) center-column view
                part = jnp.dot(w_ref[g], slab,            # (3*cout, cin) @ (cin, HW)
                               preferred_element_type=jnp.float32)
                acc = part if acc is None else acc + part
        y0 = acc[0:cout]              # kw = 0 weight group
        y1 = acc[cout:2 * cout]       # kw = 1 (center)
        y2 = acc[2 * cout:3 * cout]   # kw = 2
        y = (y1
             + jnp.where(left_ok, pltpu.roll(y0, 1, axis=1), 0.0)
             + jnp.where(right_ok, pltpu.roll(y2, HW - 1, axis=1), 0.0))
        return jnp.maximum(y + bias, 0.0)                 # bias + ReLU

    # ---- conv1 + ReLU -> padded h1 scratch (stays in VMEM, aligned stores) ----
    b1 = b1_ref[...]
    for d in range(D):
        base = (d + 1) * Q + OFF
        h1_ref[:, base:base + HW] = conv_plane(xpad_ref, w1_ref, b1, C1, d)

    # ---- conv2 + ReLU -> lane-dense output; permute(0,2,1,3,4) is the layout ----
    b2 = b2_ref[...]
    for d in range(D):
        o_ref[0, d] = conv_plane(h1_ref, w2_ref, b2, C2, d)


@jax.jit
def time_to_channel_3dconvnet(x_ncdhw, w1, b1, w2, b2):
    """Forward pass of TimeToChannel3DConvNet.

    x_ncdhw: (B, Cin, D, H, W)              PyTorch NCDHW input
    w1: (16, Cin, 3, 3, 3), b1: (16,)       conv1
    w2: (depth, 16, 3, 3, 3), b2: (depth,)  conv2
    returns (B, D, depth, H, W) == PyTorch output after permute(0, 2, 1, 3, 4)
    """
    B, Cin, D, H, W = x_ncdhw.shape
    C1 = w1.shape[0]
    C2 = w2.shape[0]
    HW = H * W

    OFF = _round_up(W, 128)                 # 128-aligned interior offset (>= W of halo room)
    Q = _round_up(OFF + (H + 1) * W, 128)   # padded-plane stride (plane + halos fit inside)
    FLAT = (D + 2) * Q                      # D real planes + 2 depth-halo planes
    # TODO(synk): for large H*W*D (e.g. the module default 10x256x256) tile the depth /
    # lane range per grid step so the h1 scratch stays under the VMEM budget.

    x2d = x_ncdhw.reshape(B, Cin, D, HW).astype(jnp.float32)   # free reshape only

    def fold_weight_groups(w):
        # (Cout, Cin, 3, 3, 3) -> (9, 3*Cout, Cin): group g = kd*3 + kh,
        # rows [kw*Cout:(kw+1)*Cout] hold w[:, :, kd, kh, kw].
        cout, cin = w.shape[0], w.shape[1]
        wt = jnp.transpose(w, (2, 3, 4, 0, 1))       # (kd, kh, kw, cout, cin)
        return wt.reshape(9, 3 * cout, cin).astype(jnp.float32)

    w1g = fold_weight_groups(w1)                     # (9, 3*C1, Cin)
    w2g = fold_weight_groups(w2)                     # (9, 3*C2, C1)
    b1c = b1.reshape(C1, 1).astype(jnp.float32)
    b2c = b2.reshape(C2, 1).astype(jnp.float32)

    kernel = functools.partial(
        _fused_kernel, C1=C1, C2=C2, D=D, H=H, W=W, Q=Q, OFF=OFF)

    out = pl.pallas_call(
        kernel,
        out_shape=jax.ShapeDtypeStruct((B, D, C2, HW), jnp.float32),
        grid_spec=pltpu.PrefetchScalarGridSpec(
            num_scalar_prefetch=0,
            grid=(B,),
            in_specs=[
                pl.BlockSpec((1, Cin, D, HW), lambda b: (b, 0, 0, 0)),
                pl.BlockSpec((9, 3 * C1, Cin), lambda b: (0, 0, 0)),
                pl.BlockSpec((C1, 1), lambda b: (0, 0)),
                pl.BlockSpec((9, 3 * C2, C1), lambda b: (0, 0, 0)),
                pl.BlockSpec((C2, 1), lambda b: (0, 0)),
            ],
            out_specs=pl.BlockSpec((1, D, C2, HW), lambda b: (b, 0, 0, 0)),
            scratch_shapes=[
                pltpu.VMEM((Cin, FLAT), jnp.float32),   # padded conv1 input
                pltpu.VMEM((C1, FLAT), jnp.float32),    # padded conv1 output (conv2 input)
            ],
        ),
        compiler_params=pltpu.CompilerParams(
            dimension_semantics=("parallel",)),
    )(x2d, w1g, b1c, w2g, b2c)

    # Free contiguous reshape: (B, D, C2, H*W) -> (B, D, C2, H, W)
    return out.reshape(B, D, C2, H, W)


def _ref_forward(x_ncdhw, w1, b1, w2, b2):
    """Pure-JAX reference (XLA conv, highest precision) for correctness checking."""
    def conv(x, w, b):
        y = jax.lax.conv_general_dilated(
            x, w, window_strides=(1, 1, 1),
            padding=((1, 1), (1, 1), (1, 1)),
            dimension_numbers=("NCDHW", "OIDHW", "NCDHW"),
            precision=jax.lax.Precision.HIGHEST)
        return jnp.maximum(y + b[None, :, None, None, None], 0.0)
    y = conv(conv(x_ncdhw, w1, b1), w2, b2)
    return jnp.transpose(y, (0, 2, 1, 3, 4))


if __name__ == "__main__":
    # Small shapes consistent with the module: batch=2, in_channels=3, time D=6,
    # H=W=16, conv1 out=16, conv2 out ("depth" arg) = 8.
    B, Cin, D, H, W = 2, 3, 6, 16, 16
    C1, depth = 16, 8

    key = jax.random.PRNGKey(0)
    kx, kw1, kb1, kw2, kb2 = jax.random.split(key, 5)
    x = jax.random.normal(kx, (B, Cin, D, H, W), jnp.float32)
    w1 = jax.random.normal(kw1, (C1, Cin, 3, 3, 3), jnp.float32) * 0.1
    b1 = jax.random.normal(kb1, (C1,), jnp.float32) * 0.1
    w2 = jax.random.normal(kw2, (depth, C1, 3, 3, 3), jnp.float32) * 0.1
    b2 = jax.random.normal(kb2, (depth,), jnp.float32) * 0.1

    out = jax.block_until_ready(time_to_channel_3dconvnet(x, w1, b1, w2, b2))
    assert out.shape == (B, D, depth, H, W), out.shape

    ref = _ref_forward(x, w1, b1, w2, b2)
    max_err = float(jnp.max(jnp.abs(out - ref)))
    # Tolerance allows for MXU default-precision multiplies (f32 accumulate).
    assert max_err < 1e-2, f"max abs err {max_err}"

    print("KERNEL_OK")
</pallas_src>

<mosaic_0001>
module attributes {stable_mosaic.version = 11 : i64} {
  func.func @_fused_kernel(%arg0: i32, %arg1: memref<1x3x6x256xf32, #tpu.memory_space<vmem>>, %arg2: memref<9x48x3xf32, #tpu.memory_space<vmem>>, %arg3: memref<16x1xf32, #tpu.memory_space<vmem>>, %arg4: memref<9x24x16xf32, #tpu.memory_space<vmem>>, %arg5: memref<8x1xf32, #tpu.memory_space<vmem>>, %arg6: memref<1x6x8x256xf32, #tpu.memory_space<vmem>>, %arg7: memref<3x4096xf32, #tpu.memory_space<vmem>>, %arg8: memref<16x4096xf32, #tpu.memory_space<vmem>>) attributes {dimension_semantics = [#tpu.dimension_semantics<parallel>], iteration_bounds = array<i64: 2>, scalar_prefetch = 0 : i64, scratch_operands = 2 : i64, tpu.core_type = #tpu.core_type<tc>, window_params = [{transform_indices = @transform_0, window_bounds = array<i64: 1, 3, 6, 256>}, {pipeline_mode = #tpu.pipeline_mode<synchronous>, transform_indices = @transform_1, window_bounds = array<i64: 9, 48, 3>}, {pipeline_mode = #tpu.pipeline_mode<synchronous>, transform_indices = @transform_2, window_bounds = array<i64: 16, 1>}, {pipeline_mode = #tpu.pipeline_mode<synchronous>, transform_indices = @transform_3, window_bounds = array<i64: 9, 24, 16>}, {pipeline_mode = #tpu.pipeline_mode<synchronous>, transform_indices = @transform_4, window_bounds = array<i64: 8, 1>}, {transform_indices = @transform_5, window_bounds = array<i64: 1, 6, 8, 256>}]} {
    %0 = tpu.iota {dimensions = array<i32: 1>} : vector<1x256xi32>
    %c15_i32 = arith.constant 15 : i32
    %1 = vector.broadcast %c15_i32 : i32 to vector<1x256xi32>
    %2 = arith.andi %0, %1 : vector<1x256xi32>
    %c0_i32 = arith.constant 0 : i32
    %3 = vector.broadcast %c0_i32 : i32 to vector<1x256xi32>
    %4 = arith.cmpi ne, %2, %3 : vector<1x256xi32>
    %c15_i32_0 = arith.constant 15 : i32
    %5 = vector.broadcast %c15_i32_0 : i32 to vector<1x256xi32>
    %6 = arith.cmpi ne, %2, %5 : vector<1x256xi32>
    %cst = arith.constant 0.000000e+00 : f32
    %7 = vector.broadcast %cst : f32 to vector<3x128xf32>
    %cst_1 = arith.constant 0.000000e+00 : f32
    %8 = vector.broadcast %cst_1 : f32 to vector<3x256xf32>
    %cst_2 = arith.constant 0.000000e+00 : f32
    %9 = vector.broadcast %cst_2 : f32 to vector<3x128xf32>
    %c0 = arith.constant 0 : index
    %c0_3 = arith.constant 0 : index
    %10 = vector.load %arg7[%c0, %c0_3] : memref<3x4096xf32, #tpu.memory_space<vmem>>, vector<3x128xf32>
    tpu.vector_store %arg7[%c0, %c0_3], %7 {strides = array<i32>} : memref<3x4096xf32, #tpu.memory_space<vmem>>, vector<3x128xf32>,
    %c0_4 = arith.constant 0 : index
    %c384 = arith.constant 384 : index
    %11 = vector.load %arg7[%c0_4, %c384] : memref<3x4096xf32, #tpu.memory_space<vmem>>, vector<3x128xf32>
    tpu.vector_store %arg7[%c0_4, %c384], %9 {strides = array<i32>} : memref<3x4096xf32, #tpu.memory_space<vmem>>, vector<3x128xf32>,
    %c0_5 = arith.constant 0 : index
    %c512 = arith.constant 512 : index
    %12 = vector.load %arg7[%c0_5, %c512] : memref<3x4096xf32, #tpu.memory_space<vmem>>, vector<3x128xf32>
    tpu.vector_store %arg7[%c0_5, %c512], %7 {strides = array<i32>} : memref<3x4096xf32, #tpu.memory_space<vmem>>, vector<3x128xf32>,
    %c0_6 = arith.constant 0 : index
    %c896 = arith.constant 896 : index
    %13 = vector.load %arg7[%c0_6, %c896] : memref<3x4096xf32, #tpu.memory_space<vmem>>, vector<3x128xf32>
    tpu.vector_store %arg7[%c0_6, %c896], %9 {strides = array<i32>} : memref<3x4096xf32, #tpu.memory_space<vmem>>, vector<3x128xf32>,
    %c0_7 = arith.constant 0 : index
    %c1024 = arith.constant 1024 : index
    %14 = vector.load %arg7[%c0_7, %c1024] : memref<3x4096xf32, #tpu.memory_space<vmem>>, vector<3x128xf32>
    tpu.vector_store %arg7[%c0_7, %c1024], %7 {strides = array<i32>} : memref<3x4096xf32, #tpu.memory_space<vmem>>, vector<3x128xf32>,
    %c0_8 = arith.constant 0 : index
    %c1408 = arith.constant 1408 : index
    %15 = vector.load %arg7[%c0_8, %c1408] : memref<3x4096xf32, #tpu.memory_space<vmem>>, vector<3x128xf32>
    tpu.vector_store %arg7[%c0_8, %c1408], %9 {strides = array<i32>} : memref<3x4096xf32, #tpu.memory_space<vmem>>, vector<3x128xf32>,
    %c0_9 = arith.constant 0 : index
    %c1536 = arith.constant 1536 : index
    %16 = vector.load %arg7[%c0_9, %c1536] : memref<3x4096xf32, #tpu.memory_space<vmem>>, vector<3x128xf32>
    tpu.vector_store %arg7[%c0_9, %c1536], %7 {strides = array<i32>} : memref<3x4096xf32, #tpu.memory_space<vmem>>, vector<3x128xf32>,
    %c0_10 = arith.constant 0 : index
    %c1920 = arith.constant 1920 : index
    %17 = vector.load %arg7[%c0_10, %c1920] : memref<3x4096xf32, #tpu.memory_space<vmem>>, vector<3x128xf32>
    tpu.vector_store %arg7[%c0_10, %c1920], %9 {strides = array<i32>} : memref<3x4096xf32, #tpu.memory_space<vmem>>, vector<3x128xf32>,
    %c0_11 = arith.constant 0 : index
    %c2048 = arith.constant 2048 : index
    %18 = vector.load %arg7[%c0_11, %c2048] : memref<3x4096xf32, #tpu.memory_space<vmem>>, vector<3x128xf32>
    tpu.vector_store %arg7[%c0_11, %c2048], %7 {strides = array<i32>} : memref<3x4096xf32, #tpu.memory_space<vmem>>, vector<3x128xf32>,
    %c0_12 = arith.constant 0 : index
    %c2432 = arith.constant 2432 : index
    %19 = vector.load %arg7[%c0_12, %c2432] : memref<3x4096xf32, #tpu.memory_space<vmem>>, vector<3x128xf32>
    tpu.vector_store %arg7[%c0_12, %c2432], %9 {strides = array<i32>} : memref<3x4096xf32, #tpu.memory_space<vmem>>, vector<3x128xf32>,
    %c0_13 = arith.constant 0 : index
    %c2560 = arith.constant 2560 : index
    %20 = vector.load %arg7[%c0_13, %c2560] : memref<3x4096xf32, #tpu.memory_space<vmem>>, vector<3x128xf32>
    tpu.vector_store %arg7[%c0_13, %c2560], %7 {strides = array<i32>} : memref<3x4096xf32, #tpu.memory_space<vmem>>, vector<3x128xf32>,
    %c0_14 = arith.constant 0 : index
    %c2944 = arith.constant 2944 : index
    %21 = vector.load %arg7[%c0_14, %c2944] : memref<3x4096xf32, #tpu.memory_space<vmem>>, vector<3x128xf32>
    tpu.vector_store %arg7[%c0_14, %c2944], %9 {strides = array<i32>} : memref<3x4096xf32, #tpu.memory_space<vmem>>, vector<3x128xf32>,
    %c0_15 = arith.constant 0 : index
    %c3072 = arith.constant 3072 : index
    %22 = vector.load %arg7[%c0_15, %c3072] : memref<3x4096xf32, #tpu.memory_space<vmem>>, vector<3x128xf32>
    tpu.vector_store %arg7[%c0_15, %c3072], %7 {strides = array<i32>} : memref<3x4096xf32, #tpu.memory_space<vmem>>, vector<3x128xf32>,
    %c0_16 = arith.constant 0 : index
    %c3456 = arith.constant 3456 : index
    %23 = vector.load %arg7[%c0_16, %c3456] : memref<3x4096xf32, #tpu.memory_space<vmem>>, vector<3x128xf32>
    tpu.vector_store %arg7[%c0_16, %c3456], %9 {strides = array<i32>} : memref<3x4096xf32, #tpu.memory_space<vmem>>, vector<3x128xf32>,
    %c0_17 = arith.constant 0 : index
    %c3584 = arith.constant 3584 : index
    %24 = vector.load %arg7[%c0_17, %c3584] : memref<3x4096xf32, #tpu.memory_space<vmem>>, vector<3x128xf32>
    tpu.vector_store %arg7[%c0_17, %c3584], %7 {strides = array<i32>} : memref<3x4096xf32, #tpu.memory_space<vmem>>, vector<3x128xf32>,
    %c0_18 = arith.constant 0 : index
    %c3968 = arith.constant 3968 : index
    %25 = vector.load %arg7[%c0_18, %c3968] : memref<3x4096xf32, #tpu.memory_space<vmem>>, vector<3x128xf32>
    tpu.vector_store %arg7[%c0_18, %c3968], %9 {strides = array<i32>} : memref<3x4096xf32, #tpu.memory_space<vmem>>, vector<3x128xf32>,
    %c0_19 = arith.constant 0 : index
    %c128 = arith.constant 128 : index
    %26 = vector.load %arg7[%c0_19, %c128] : memref<3x4096xf32, #tpu.memory_space<vmem>>, vector<3x256xf32>
    tpu.vector_store %arg7[%c0_19, %c128], %8 {strides = array<i32>} : memref<3x4096xf32, #tpu.memory_space<vmem>>, vector<3x256xf32>,
    %c0_20 = arith.constant 0 : index
    %c3712 = arith.constant 3712 : index
    %27 = vector.load %arg7[%c0_20, %c3712] : memref<3x4096xf32, #tpu.memory_space<vmem>>, vector<3x256xf32>
    tpu.vector_store %arg7[%c0_20, %c3712], %8 {strides = array<i32>} : memref<3x4096xf32, #tpu.memory_space<vmem>>, vector<3x256xf32>,
    %cst_21 = arith.constant 0.000000e+00 : f32
    %28 = vector.broadcast %cst_21 : f32 to vector<16x128xf32>
    %cst_22 = arith.constant 0.000000e+00 : f32
    %29 = vector.broadcast %cst_22 : f32 to vector<16x256xf32>
    %cst_23 = arith.constant 0.000000e+00 : f32
    %30 = vector.broadcast %cst_23 : f32 to vector<16x128xf32>
    %c0_24 = arith.constant 0 : index
    %c0_25 = arith.constant 0 : index
    %31 = vector.load %arg8[%c0_24, %c0_25] : memref<16x4096xf32, #tpu.memory_space<vmem>>, vector<16x128xf32>
    tpu.vector_store %arg8[%c0_24, %c0_25], %28 {strides = array<i32>} : memref<16x4096xf32, #tpu.memory_space<vmem>>, vector<16x128xf32>,
    %c0_26 = arith.constant 0 : index
    %c384_27 = arith.constant 384 : index
    %32 = vector.load %arg8[%c0_26, %c384_27] : memref<16x4096xf32, #tpu.memory_space<vmem>>, vector<16x128xf32>
    tpu.vector_store %arg8[%c0_26, %c384_27], %30 {strides = array<i32>} : memref<16x4096xf32, #tpu.memory_space<vmem>>, vector<16x128xf32>,
    %c0_28 = arith.constant 0 : index
    %c512_29 = arith.constant 512 : index
    %33 = vector.load %arg8[%c0_28, %c512_29] : memref<16x4096xf32, #tpu.memory_space<vmem>>, vector<16x128xf32>
    tpu.vector_store %arg8[%c0_28, %c512_29], %28 {strides = array<i32>} : memref<16x4096xf32, #tpu.memory_space<vmem>>, vector<16x128xf32>,
    %c0_30 = arith.constant 0 : index
    %c896_31 = arith.constant 896 : index
    %34 = vector.load %arg8[%c0_30, %c896_31] : memref<16x4096xf32, #tpu.memory_space<vmem>>, vector<16x128xf32>
    tpu.vector_store %arg8[%c0_30, %c896_31], %30 {strides = array<i32>} : memref<16x4096xf32, #tpu.memory_space<vmem>>, vector<16x128xf32>,
    %c0_32 = arith.constant 0 : index
    %c1024_33 = arith.constant 1024 : index
    %35 = vector.load %arg8[%c0_32, %c1024_33] : memref<16x4096xf32, #tpu.memory_space<vmem>>, vector<16x128xf32>
    tpu.vector_store %arg8[%c0_32, %c1024_33], %28 {strides = array<i32>} : memref<16x4096xf32, #tpu.memory_space<vmem>>, vector<16x128xf32>,
    %c0_34 = arith.constant 0 : index
    %c1408_35 = arith.constant 1408 : index
    %36 = vector.load %arg8[%c0_34, %c1408_35] : memref<16x4096xf32, #tpu.memory_space<vmem>>, vector<16x128xf32>
    tpu.vector_store %arg8[%c0_34, %c1408_35], %30 {strides = array<i32>} : memref<16x4096xf32, #tpu.memory_space<vmem>>, vector<16x128xf32>,
    %c0_36 = arith.constant 0 : index
    %c1536_37 = arith.constant 1536 : index
    %37 = vector.load %arg8[%c0_36, %c1536_37] : memref<16x4096xf32, #tpu.memory_space<vmem>>, vector<16x128xf32>
    tpu.vector_store %arg8[%c0_36, %c1536_37], %28 {strides = array<i32>} : memref<16x4096xf32, #tpu.memory_space<vmem>>, vector<16x128xf32>,
    %c0_38 = arith.constant 0 : index
    %c1920_39 = arith.constant 1920 : index
    %38 = vector.load %arg8[%c0_38, %c1920_39] : memref<16x4096xf32, #tpu.memory_space<vmem>>, vector<16x128xf32>
    tpu.vector_store %arg8[%c0_38, %c1920_39], %30 {strides = array<i32>} : memref<16x4096xf32, #tpu.memory_space<vmem>>, vector<16x128xf32>,
    %c0_40 = arith.constant 0 : index
    %c2048_41 = arith.constant 2048 : index
    %39 = vector.load %arg8[%c0_40, %c2048_41] : memref<16x4096xf32, #tpu.memory_space<vmem>>, vector<16x128xf32>
    tpu.vector_store %arg8[%c0_40, %c2048_41], %28 {strides = array<i32>} : memref<16x4096xf32, #tpu.memory_space<vmem>>, vector<16x128xf32>,
    %c0_42 = arith.constant 0 : index
    %c2432_43 = arith.constant 2432 : index
    %40 = vector.load %arg8[%c0_42, %c2432_43] : memref<16x4096xf32, #tpu.memory_space<vmem>>, vector<16x128xf32>
    tpu.vector_store %arg8[%c0_42, %c2432_43], %30 {strides = array<i32>} : memref<16x4096xf32, #tpu.memory_space<vmem>>, vector<16x128xf32>,
    %c0_44 = arith.constant 0 : index
    %c2560_45 = arith.constant 2560 : index
    %41 = vector.load %arg8[%c0_44, %c2560_45] : memref<16x4096xf32, #tpu.memory_space<vmem>>, vector<16x128xf32>
    tpu.vector_store %arg8[%c0_44, %c2560_45], %28 {strides = array<i32>} : memref<16x4096xf32, #tpu.memory_space<vmem>>, vector<16x128xf32>,
    %c0_46 = arith.constant 0 : index
    %c2944_47 = arith.constant 2944 : index
    %42 = vector.load %arg8[%c0_46, %c2944_47] : memref<16x4096xf32, #tpu.memory_space<vmem>>, vector<16x128xf32>
    tpu.vector_store %arg8[%c0_46, %c2944_47], %30 {strides = array<i32>} : memref<16x4096xf32, #tpu.memory_space<vmem>>, vector<16x128xf32>,
    %c0_48 = arith.constant 0 : index
    %c3072_49 = arith.constant 3072 : index
    %43 = vector.load %arg8[%c0_48, %c3072_49] : memref<16x4096xf32, #tpu.memory_space<vmem>>, vector<16x128xf32>
    tpu.vector_store %arg8[%c0_48, %c3072_49], %28 {strides = array<i32>} : memref<16x4096xf32, #tpu.memory_space<vmem>>, vector<16x128xf32>,
    %c0_50 = arith.constant 0 : index
    %c3456_51 = arith.constant 3456 : index
    %44 = vector.load %arg8[%c0_50, %c3456_51] : memref<16x4096xf32, #tpu.memory_space<vmem>>, vector<16x128xf32>
    tpu.vector_store %arg8[%c0_50, %c3456_51], %30 {strides = array<i32>} : memref<16x4096xf32, #tpu.memory_space<vmem>>, vector<16x128xf32>,
    %c0_52 = arith.constant 0 : index
    %c3584_53 = arith.constant 3584 : index
    %45 = vector.load %arg8[%c0_52, %c3584_53] : memref<16x4096xf32, #tpu.memory_space<vmem>>, vector<16x128xf32>
    tpu.vector_store %arg8[%c0_52, %c3584_53], %28 {strides = array<i32>} : memref<16x4096xf32, #tpu.memory_space<vmem>>, vector<16x128xf32>,
    %c0_54 = arith.constant 0 : index
    %c3968_55 = arith.constant 3968 : index
    %46 = vector.load %arg8[%c0_54, %c3968_55] : memref<16x4096xf32, #tpu.memory_space<vmem>>, vector<16x128xf32>
    tpu.vector_store %arg8[%c0_54, %c3968_55], %30 {strides = array<i32>} : memref<16x4096xf32, #tpu.memory_space<vmem>>, vector<16x128xf32>,
    %c0_56 = arith.constant 0 : index
    %c128_57 = arith.constant 128 : index
    %47 = vector.load %arg8[%c0_56, %c128_57] : memref<16x4096xf32, #tpu.memory_space<vmem>>, vector<16x256xf32>
    tpu.vector_store %arg8[%c0_56, %c128_57], %29 {strides = array<i32>} : memref<16x4096xf32, #tpu.memory_space<vmem>>, vector<16x256xf32>,
    %c0_58 = arith.constant 0 : index
    %c3712_59 = arith.constant 3712 : index
    %48 = vector.load %arg8[%c0_58, %c3712_59] : memref<16x4096xf32, #tpu.memory_space<vmem>>, vector<16x256xf32>
    tpu.vector_store %arg8[%c0_58, %c3712_59], %29 {strides = array<i32>} : memref<16x4096xf32, #tpu.memory_space<vmem>>, vector<16x256xf32>,
    %c0_60 = arith.constant 0 : index
    %c0_61 = arith.constant 0 : index
    %c0_62 = arith.constant 0 : index
    %c0_63 = arith.constant 0 : index
    %49 = vector.load %arg1[%c0_60, %c0_61, %c0_62, %c0_63] : memref<1x3x6x256xf32, #tpu.memory_space<vmem>>, vector<1x3x1x256xf32>
    %50 = vector.shape_cast %49 : vector<1x3x1x256xf32> to vector<3x256xf32>
    %c0_64 = arith.constant 0 : index
    %c640 = arith.constant 640 : index
    %51 = vector.load %arg7[%c0_64, %c640] : memref<3x4096xf32, #tpu.memory_space<vmem>>, vector<3x256xf32>
    tpu.vector_store %arg7[%c0_64, %c640], %50 {strides = array<i32>} : memref<3x4096xf32, #tpu.memory_space<vmem>>, vector<3x256xf32>,
    %c0_65 = arith.constant 0 : index
    %c0_66 = arith.constant 0 : index
    %c1 = arith.constant 1 : index
    %c0_67 = arith.constant 0 : index
    %52 = vector.load %arg1[%c0_65, %c0_66, %c1, %c0_67] : memref<1x3x6x256xf32, #tpu.memory_space<vmem>>, vector<1x3x1x256xf32>
    %53 = vector.shape_cast %52 : vector<1x3x1x256xf32> to vector<3x256xf32>
    %c0_68 = arith.constant 0 : index
    %c1152 = arith.constant 1152 : index
    %54 = vector.load %arg7[%c0_68, %c1152] : memref<3x4096xf32, #tpu.memory_space<vmem>>, vector<3x256xf32>
    tpu.vector_store %arg7[%c0_68, %c1152], %53 {strides = array<i32>} : memref<3x4096xf32, #tpu.memory_space<vmem>>, vector<3x256xf32>,
    %c0_69 = arith.constant 0 : index
    %c0_70 = arith.constant 0 : index
    %c2 = arith.constant 2 : index
    %c0_71 = arith.constant 0 : index
    %55 = vector.load %arg1[%c0_69, %c0_70, %c2, %c0_71] : memref<1x3x6x256xf32, #tpu.memory_space<vmem>>, vector<1x3x1x256xf32>
    %56 = vector.shape_cast %55 : vector<1x3x1x256xf32> to vector<3x256xf32>
    %c0_72 = arith.constant 0 : index
    %c1664 = arith.constant 1664 : index
    %57 = vector.load %arg7[%c0_72, %c1664] : memref<3x4096xf32, #tpu.memory_space<vmem>>, vector<3x256xf32>
    tpu.vector_store %arg7[%c0_72, %c1664], %56 {strides = array<i32>} : memref<3x4096xf32, #tpu.memory_space<vmem>>, vector<3x256xf32>,
    %c0_73 = arith.constant 0 : index
    %c0_74 = arith.constant 0 : index
    %c3 = arith.constant 3 : index
    %c0_75 = arith.constant 0 : index
    %58 = vector.load %arg1[%c0_73, %c0_74, %c3, %c0_75] : memref<1x3x6x256xf32, #tpu.memory_space<vmem>>, vector<1x3x1x256xf32>
    %59 = vector.shape_cast %58 : vector<1x3x1x256xf32> to vector<3x256xf32>
    %c0_76 = arith.constant 0 : index
    %c2176 = arith.constant 2176 : index
    %60 = vector.load %arg7[%c0_76, %c2176] : memref<3x4096xf32, #tpu.memory_space<vmem>>, vector<3x256xf32>
    tpu.vector_store %arg7[%c0_76, %c2176], %59 {strides = array<i32>} : memref<3x4096xf32, #tpu.memory_space<vmem>>, vector<3x256xf32>,
    %c0_77 = arith.constant 0 : index
    %c0_78 = arith.constant 0 : index
    %c4 = arith.constant 4 : index
    %c0_79 = arith.constant 0 : index
    %61 = vector.load %arg1[%c0_77, %c0_78, %c4, %c0_79] : memref<1x3x6x256xf32, #tpu.memory_space<vmem>>, vector<1x3x1x256xf32>
    %62 = vector.shape_cast %61 : vector<1x3x1x256xf32> to vector<3x256xf32>
    %c0_80 = arith.constant 0 : index
    %c2688 = arith.constant 2688 : index
    %63 = vector.load %arg7[%c0_80, %c2688] : memref<3x4096xf32, #tpu.memory_space<vmem>>, vector<3x256xf32>
    tpu.vector_store %arg7[%c0_80, %c2688], %62 {strides = array<i32>} : memref<3x4096xf32, #tpu.memory_space<vmem>>, vector<3x256xf32>,
    %c0_81 = arith.constant 0 : index
    %c0_82 = arith.constant 0 : index
    %c5 = arith.constant 5 : index
    %c0_83 = arith.constant 0 : index
    %64 = vector.load %arg1[%c0_81, %c0_82, %c5, %c0_83] : memref<1x3x6x256xf32, #tpu.memory_space<vmem>>, vector<1x3x1x256xf32>
    %65 = vector.shape_cast %64 : vector<1x3x1x256xf32> to vector<3x256xf32>
    %c0_84 = arith.constant 0 : index
    %c3200 = arith.constant 3200 : index
    %66 = vector.load %arg7[%c0_84, %c3200] : memref<3x4096xf32, #tpu.memory_space<vmem>>, vector<3x256xf32>
    tpu.vector_store %arg7[%c0_84, %c3200], %65 {strides = array<i32>} : memref<3x4096xf32, #tpu.memory_space<vmem>>, vector<3x256xf32>,
    %c0_85 = arith.constant 0 : index
    %c0_86 = arith.constant 0 : index
    %67 = vector.load %arg3[%c0_85, %c0_86] : memref<16x1xf32, #tpu.memory_space<vmem>>, vector<16x1xf32>
    %c0_87 = arith.constant 0 : index
    %c112 = arith.constant 112 : index
    %68 = vector.load %arg7[%c0_87, %c112] : memref<3x4096xf32, #tpu.memory_space<vmem>>, vector<3x256xf32>
    %c0_88 = arith.constant 0 : index
    %c0_89 = arith.constant 0 : index
    %c0_90 = arith.constant 0 : index
    %69 = vector.load %arg2[%c0_88, %c0_89, %c0_90] : memref<9x48x3xf32, #tpu.memory_space<vmem>>, vector<1x48x3xf32>
    %70 = vector.shape_cast %69 : vector<1x48x3xf32> to vector<48x3xf32>
    %cst_91 = arith.constant dense<0.000000e+00> : vector<48x256xf32>
    %71 = tpu.matmul %70, %68, %cst_91 {dimension_numbers = #tpu.dot_dimension_numbers<[1], [0], [0], [1], [0, 0, 1, 1], [], []>} : vector<48x3xf32>, vector<3x256xf32>, vector<48x256xf32> -> vector<48x256xf32>
    %c0_92 = arith.constant 0 : index
    %c128_93 = arith.constant 128 : index
    %72 = vector.load %arg7[%c0_92, %c128_93] : memref<3x4096xf32, #tpu.memory_space<vmem>>, vector<3x256xf32>
    %c1_94 = arith.constant 1 : index
    %c0_95 = arith.constant 0 : index
    %c0_96 = arith.constant 0 : index
    %73 = vector.load %arg2[%c1_94, %c0_95, %c0_96] : memref<9x48x3xf32, #tpu.memory_space<vmem>>, vector<1x48x3xf32>
    %74 = vector.shape_cast %73 : vector<1x48x3xf32> to vector<48x3xf32>
    %cst_97 = arith.constant dense<0.000000e+00> : vector<48x256xf32>
    %75 = tpu.matmul %74, %72, %cst_97 {dimension_numbers = #tpu.dot_dimension_numbers<[1], [0], [0], [1], [0, 0, 1, 1], [], []>} : vector<48x3xf32>, vector<3x256xf32>, vector<48x256xf32> -> vector<48x256xf32>
    %76 = arith.addf %71, %75 : vector<48x256xf32>
    %c0_98 = arith.constant 0 : index
    %c144 = arith.constant 144 : index
    %77 = vector.load %arg7[%c0_98, %c144] : memref<3x4096xf32, #tpu.memory_space<vmem>>, vector<3x256xf32>
    %c2_99 = arith.constant 2 : index
    %c0_100 = arith.constant 0 : index
    %c0_101 = arith.constant 0 : index
    %78 = vector.load %arg2[%c2_99, %c0_100, %c0_101] : memref<9x48x3xf32, #tpu.memory_space<vmem>>, vector<1x48x3xf32>
    %79 = vector.shape_cast %78 : vector<1x48x3xf32> to vector<48x3xf32>
    %cst_102 = arith.constant dense<0.000000e+00> : vector<48x256xf32>
    %80 = tpu.matmul %79, %77, %cst_102 {dimension_numbers = #tpu.dot_dimension_numbers<[1], [0], [0], [1], [0, 0, 1, 1], [], []>} : vector<48x3xf32>, vector<3x256xf32>, vector<48x256xf32> -> vector<48x256xf32>
    %81 = arith.addf %76, %80 : vector<48x256xf32>
    %c0_103 = arith.constant 0 : index
    %c624 = arith.constant 624 : index
    %82 = vector.load %arg7[%c0_103, %c624] : memref<3x4096xf32, #tpu.memory_space<vmem>>, vector<3x256xf32>
    %c3_104 = arith.constant 3 : index
    %c0_105 = arith.constant 0 : index
    %c0_106 = arith.constant 0 : index
    %83 = vector.load %arg2[%c3_104, %c0_105, %c0_106] : memref<9x48x3xf32, #tpu.memory_space<vmem>>, vector<1x48x3xf32>
    %84 = vector.shape_cast %83 : vector<1x48x3xf32> to vector<48x3xf32>
    %cst_107 = arith.constant dense<0.000000e+00> : vector<48x256xf32>
    %85 = tpu.matmul %84, %82, %cst_107 {dimension_numbers = #tpu.dot_dimension_numbers<[1], [0], [0], [1], [0, 0, 1, 1], [], []>} : vector<48x3xf32>, vector<3x256xf32>, vector<48x256xf32> -> vector<48x256xf32>
    %86 = arith.addf %81, %85 : vector<48x256xf32>
    %c0_108 = arith.constant 0 : index
    %c640_109 = arith.constant 640 : index
    %87 = vector.load %arg7[%c0_108, %c640_109] : memref<3x4096xf32, #tpu.memory_space<vmem>>, vector<3x256xf32>
    %c4_110 = arith.constant 4 : index
    %c0_111 = arith.constant 0 : index
    %c0_112 = arith.constant 0 : index
    %88 = vector.load %arg2[%c4_110, %c0_111, %c0_112] : memref<9x48x3xf32, #tpu.memory_space<vmem>>, vector<1x48x3xf32>
    %89 = vector.shape_cast %88 : vector<1x48x3xf32> to vector<48x3xf32>
    %cst_113 = arith.constant dense<0.000000e+00> : vector<48x256xf32>
    %90 = tpu.matmul %89, %87, %cst_113 {dimension_numbers = #tpu.dot_dimension_numbers<[1], [0], [0], [1], [0, 0, 1, 1], [], []>} : vector<48x3xf32>, vector<3x256xf32>, vector<48x256xf32> -> vector<48x256xf32>
    %91 = arith.addf %86, %90 : vector<48x256xf32>
    %c0_114 = arith.constant 0 : index
    %c656 = arith.constant 656 : index
    %92 = vector.load %arg7[%c0_114, %c656] : memref<3x4096xf32, #tpu.memory_space<vmem>>, vector<3x256xf32>
    %c5_115 = arith.constant 5 : index
    %c0_116 = arith.constant 0 : index
    %c0_117 = arith.constant 0 : index
    %93 = vector.load %arg2[%c5_115, %c0_116, %c0_117] : memref<9x48x3xf32, #tpu.memory_space<vmem>>, vector<1x48x3xf32>
    %94 = vector.shape_cast %93 : vector<1x48x3xf32> to vector<48x3xf32>
    %cst_118 = arith.constant dense<0.000000e+00> : vector<48x256xf32>
    %95 = tpu.matmul %94, %92, %cst_118 {dimension_numbers = #tpu.dot_dimension_numbers<[1], [0], [0], [1], [0, 0, 1, 1], [], []>} : vector<48x3xf32>, vector<3x256xf32>, vector<48x256xf32> -> vector<48x256xf32>
    %96 = arith.addf %91, %95 : vector<48x256xf32>
    %c0_119 = arith.constant 0 : index
    %c1136 = arith.constant 1136 : index
    %97 = vector.load %arg7[%c0_119, %c1136] : memref<3x4096xf32, #tpu.memory_space<vmem>>, vector<3x256xf32>
    %c6 = arith.constant 6 : index
    %c0_120 = arith.constant 0 : index
    %c0_121 = arith.constant 0 : index
    %98 = vector.load %arg2[%c6, %c0_120, %c0_121] : memref<9x48x3xf32, #tpu.memory_space<vmem>>, vector<1x48x3xf32>
    %99 = vector.shape_cast %98 : vector<1x48x3xf32> to vector<48x3xf32>
    %cst_122 = arith.constant dense<0.000000e+00> : vector<48x256xf32>
    %100 = tpu.matmul %99, %97, %cst_122 {dimension_numbers = #tpu.dot_dimension_numbers<[1], [0], [0], [1], [0, 0, 1, 1], [], []>} : vector<48x3xf32>, vector<3x256xf32>, vector<48x256xf32> -> vector<48x256xf32>
    %101 = arith.addf %96, %100 : vector<48x256xf32>
    %c0_123 = arith.constant 0 : index
    %c1152_124 = arith.constant 1152 : index
    %102 = vector.load %arg7[%c0_123, %c1152_124] : memref<3x4096xf32, #tpu.memory_space<vmem>>, vector<3x256xf32>
    %c7 = arith.constant 7 : index
    %c0_125 = arith.constant 0 : index
    %c0_126 = arith.constant 0 : index
    %103 = vector.load %arg2[%c7, %c0_125, %c0_126] : memref<9x48x3xf32, #tpu.memory_space<vmem>>, vector<1x48x3xf32>
    %104 = vector.shape_cast %103 : vector<1x48x3xf32> to vector<48x3xf32>
    %cst_127 = arith.constant dense<0.000000e+00> : vector<48x256xf32>
    %105 = tpu.matmul %104, %102, %cst_127 {dimension_numbers = #tpu.dot_dimension_numbers<[1], [0], [0], [1], [0, 0, 1, 1], [], []>} : vector<48x3xf32>, vector<3x256xf32>, vector<48x256xf32> -> vector<48x256xf32>
    %106 = arith.addf %101, %105 : vector<48x256xf32>
    %c0_128 = arith.constant 0 : index
    %c1168 = arith.constant 1168 : index
    %107 = vector.load %arg7[%c0_128, %c1168] : memref<3x4096xf32, #tpu.memory_space<vmem>>, vector<3x256xf32>
    %c8 = arith.constant 8 : index
    %c0_129 = arith.constant 0 : index
    %c0_130 = arith.constant 0 : index
    %108 = vector.load %arg2[%c8, %c0_129, %c0_130] : memref<9x48x3xf32, #tpu.memory_space<vmem>>, vector<1x48x3xf32>
    %109 = vector.shape_cast %108 : vector<1x48x3xf32> to vector<48x3xf32>
    %cst_131 = arith.constant dense<0.000000e+00> : vector<48x256xf32>
    %110 = tpu.matmul %109, %107, %cst_131 {dimension_numbers = #tpu.dot_dimension_numbers<[1], [0], [0], [1], [0, 0, 1, 1], [], []>} : vector<48x3xf32>, vector<3x256xf32>, vector<48x256xf32> -> vector<48x256xf32>
    %111 = arith.addf %106, %110 : vector<48x256xf32>
    %112 = vector.extract_strided_slice %111 {offsets = [0, 0], sizes = [16, 256], strides = [1, 1]} : vector<48x256xf32> to vector<16x256xf32>
    %113 = vector.extract_strided_slice %111 {offsets = [16, 0], sizes = [16, 256], strides = [1, 1]} : vector<48x256xf32> to vector<16x256xf32>
    %114 = vector.extract_strided_slice %111 {offsets = [32, 0], sizes = [16, 256], strides = [1, 1]} : vector<48x256xf32> to vector<16x256xf32>
    %c1_i32 = arith.constant 1 : i32
    %115 = tpu.dynamic_rotate %112 by %c1_i32 dim 1 : vector<16x256xf32>, i32 -> vector<16x256xf32>
    %cst_132 = arith.constant 0.000000e+00 : f32
    %116 = vector.shape_cast %4 : vector<1x256xi1> to vector<1x256xi1>
    %117 = vector.broadcast %116 : vector<1x256xi1> to vector<16x256xi1>
    %118 = vector.broadcast %cst_132 : f32 to vector<16x256xf32>
    %119 = arith.select %117, %115, %118 : vector<16x256xi1>, vector<16x256xf32>
    %120 = arith.addf %113, %119 : vector<16x256xf32>
    %c255_i32 = arith.constant 255 : i32
    %121 = tpu.dynamic_rotate %114 by %c255_i32 dim 1 : vector<16x256xf32>, i32 -> vector<16x256xf32>
    %cst_133 = arith.constant 0.000000e+00 : f32
    %122 = vector.shape_cast %6 : vector<1x256xi1> to vector<1x256xi1>
    %123 = vector.broadcast %122 : vector<1x256xi1> to vector<16x256xi1>
    %124 = vector.broadcast %cst_133 : f32 to vector<16x256xf32>
    %125 = arith.select %123, %121, %124 : vector<16x256xi1>, vector<16x256xf32>
    %126 = arith.addf %120, %125 : vector<16x256xf32>
    %127 = vector.broadcast %67 : vector<16x1xf32> to vector<16x256xf32>
    %128 = arith.addf %126, %127 : vector<16x256xf32>
    %cst_134 = arith.constant 0.000000e+00 : f32
    %129 = vector.broadcast %cst_134 : f32 to vector<16x256xf32>
    %130 = arith.maximumf %128, %129 : vector<16x256xf32>
    %c0_135 = arith.constant 0 : index
    %c640_136 = arith.constant 640 : index
    %131 = vector.load %arg8[%c0_135, %c640_136] : memref<16x4096xf32, #tpu.memory_space<vmem>>, vector<16x256xf32>
    tpu.vector_store %arg8[%c0_135, %c640_136], %130 {strides = array<i32>} : memref<16x4096xf32, #tpu.memory_space<vmem>>, vector<16x256xf32>,
    %c0_137 = arith.constant 0 : index
    %c624_138 = arith.constant 624 : index
    %132 = vector.load %arg7[%c0_137, %c624_138] : memref<3x4096xf32, #tpu.memory_space<vmem>>, vector<3x256xf32>
    %c0_139 = arith.constant 0 : index
    %c0_140 = arith.constant 0 : index
    %c0_141 = arith.constant 0 : index
    %133 = vector.load %arg2[%c0_139, %c0_140, %c0_141] : memref<9x48x3xf32, #tpu.memory_space<vmem>>, vector<1x48x3xf32>
    %134 = vector.shape_cast %133 : vector<1x48x3xf32> to vector<48x3xf32>
    %cst_142 = arith.constant dense<0.000000e+00> : vector<48x256xf32>
    %135 = tpu.matmul %134, %132, %cst_142 {dimension_numbers = #tpu.dot_dimension_numbers<[1], [0], [0], [1], [0, 0, 1, 1], [], []>} : vector<48x3xf32>, vector<3x256xf32>, vector<48x256xf32> -> vector<48x256xf32>
    %c0_143 = arith.constant 0 : index
    %c640_144 = arith.constant 640 : index
    %136 = vector.load %arg7[%c0_143, %c640_144] : memref<3x4096xf32, #tpu.memory_space<vmem>>, vector<3x256xf32>
    %c1_145 = arith.constant 1 : index
    %c0_146 = arith.constant 0 : index
    %c0_147 = arith.constant 0 : index
    %137 = vector.load %arg2[%c1_145, %c0_146, %c0_147] : memref<9x48x3xf32, #tpu.memory_space<vmem>>, vector<1x48x3xf32>
    %138 = vector.shape_cast %137 : vector<1x48x3xf32> to vector<48x3xf32>
    %cst_148 = arith.constant dense<0.000000e+00> : vector<48x256xf32>
    %139 = tpu.matmul %138, %136, %cst_148 {dimension_numbers = #tpu.dot_dimension_numbers<[1], [0], [0], [1], [0, 0, 1, 1], [], []>} : vector<48x3xf32>, vector<3x256xf32>, vector<48x256xf32> -> vector<48x256xf32>
    %140 = arith.addf %135, %139 : vector<48x256xf32>
    %c0_149 = arith.constant 0 : index
    %c656_150 = arith.constant 656 : index
    %141 = vector.load %arg7[%c0_149, %c656_150] : memref<3x4096xf32, #tpu.memory_space<vmem>>, vector<3x256xf32>
    %c2_151 = arith.constant 2 : index
    %c0_152 = arith.constant 0 : index
    %c0_153 = arith.constant 0 : index
    %142 = vector.load %arg2[%c2_151, %c0_152, %c0_153] : memref<9x48x3xf32, #tpu.memory_space<vmem>>, vector<1x48x3xf32>
    %143 = vector.shape_cast %142 : vector<1x48x3xf32> to vector<48x3xf32>
    %cst_154 = arith.constant dense<0.000000e+00> : vector<48x256xf32>
    %144 = tpu.matmul %143, %141, %cst_154 {dimension_numbers = #tpu.dot_dimension_numbers<[1], [0], [0], [1], [0, 0, 1, 1], [], []>} : vector<48x3xf32>, vector<3x256xf32>, vector<48x256xf32> -> vector<48x256xf32>
    %145 = arith.addf %140, %144 : vector<48x256xf32>
    %c0_155 = arith.constant 0 : index
    %c1136_156 = arith.constant 1136 : index
    %146 = vector.load %arg7[%c0_155, %c1136_156] : memref<3x4096xf32, #tpu.memory_space<vmem>>, vector<3x256xf32>
    %c3_157 = arith.constant 3 : index
    %c0_158 = arith.constant 0 : index
    %c0_159 = arith.constant 0 : index
    %147 = vector.load %arg2[%c3_157, %c0_158, %c0_159] : memref<9x48x3xf32, #tpu.memory_space<vmem>>, vector<1x48x3xf32>
    %148 = vector.shape_cast %147 : vector<1x48x3xf32> to vector<48x3xf32>
    %cst_160 = arith.constant dense<0.000000e+00> : vector<48x256xf32>
    %149 = tpu.matmul %148, %146, %cst_160 {dimension_numbers = #tpu.dot_dimension_numbers<[1], [0], [0], [1], [0, 0, 1, 1], [], []>} : vector<48x3xf32>, vector<3x256xf32>, vector<48x256xf32> -> vector<48x256xf32>
    %150 = arith.addf %145, %149 : vector<48x256xf32>
    %c0_161 = arith.constant 0 : index
    %c1152_162 = arith.constant 1152 : index
    %151 = vector.load %arg7[%c0_161, %c1152_162] : memref<3x4096xf32, #tpu.memory_space<vmem>>, vector<3x256xf32>
    %c4_163 = arith.constant 4 : index
    %c0_164 = arith.constant 0 : index
    %c0_165 = arith.constant 0 : index
    %152 = vector.load %arg2[%c4_163, %c0_164, %c0_165] : memref<9x48x3xf32, #tpu.memory_space<vmem>>, vector<1x48x3xf32>
    %153 = vector.shape_cast %152 : vector<1x48x3xf32> to vector<48x3xf32>
    %cst_166 = arith.constant dense<0.000000e+00> : vector<48x256xf32>
    %154 = tpu.matmul %153, %151, %cst_166 {dimension_numbers = #tpu.dot_dimension_numbers<[1], [0], [0], [1], [0, 0, 1, 1], [], []>} : vector<48x3xf32>, vector<3x256xf32>, vector<48x256xf32> -> vector<48x256xf32>
    %155 = arith.addf %150, %154 : vector<48x256xf32>
    %c0_167 = arith.constant 0 : index
    %c1168_168 = arith.constant 1168 : index
    %156 = vector.load %arg7[%c0_167, %c1168_168] : memref<3x4096xf32, #tpu.memory_space<vmem>>, vector<3x256xf32>
    %c5_169 = arith.constant 5 : index
    %c0_170 = arith.constant 0 : index
    %c0_171 = arith.constant 0 : index
    %157 = vector.load %arg2[%c5_169, %c0_170, %c0_171] : memref<9x48x3xf32, #tpu.memory_space<vmem>>, vector<1x48x3xf32>
    %158 = vector.shape_cast %157 : vector<1x48x3xf32> to vector<48x3xf32>
    %cst_172 = arith.constant dense<0.000000e+00> : vector<48x256xf32>
    %159 = tpu.matmul %158, %156, %cst_172 {dimension_numbers = #tpu.dot_dimension_numbers<[1], [0], [0], [1], [0, 0, 1, 1], [], []>} : vector<48x3xf32>, vector<3x256xf32>, vector<48x256xf32> -> vector<48x256xf32>
    %160 = arith.addf %155, %159 : vector<48x256xf32>
    %c0_173 = arith.constant 0 : index
    %c1648 = arith.constant 1648 : index
    %161 = vector.load %arg7[%c0_173, %c1648] : memref<3x4096xf32, #tpu.memory_space<vmem>>, vector<3x256xf32>
    %c6_174 = arith.constant 6 : index
    %c0_175 = arith.constant 0 : index
    %c0_176 = arith.constant 0 : index
    %162 = vector.load %arg2[%c6_174, %c0_175, %c0_176] : memref<9x48x3xf32, #tpu.memory_space<vmem>>, vector<1x48x3xf32>
    %163 = vector.shape_cast %162 : vector<1x48x3xf32> to vector<48x3xf32>
    %cst_177 = arith.constant dense<0.000000e+00> : vector<48x256xf32>
    %164 = tpu.matmul %163, %161, %cst_177 {dimension_numbers = #tpu.dot_dimension_numbers<[1], [0], [0], [1], [0, 0, 1, 1], [], []>} : vector<48x3xf32>, vector<3x256xf32>, vector<48x256xf32> -> vector<48x256xf32>
    %165 = arith.addf %160, %164 : vector<48x256xf32>
    %c0_178 = arith.constant 0 : index
    %c1664_179 = arith.constant 1664 : index
    %166 = vector.load %arg7[%c0_178, %c1664_179] : memref<3x4096xf32, #tpu.memory_space<vmem>>, vector<3x256xf32>
    %c7_180 = arith.constant 7 : index
    %c0_181 = arith.constant 0 : index
    %c0_182 = arith.constant 0 : index
    %167 = vector.load %arg2[%c7_180, %c0_181, %c0_182] : memref<9x48x3xf32, #tpu.memory_space<vmem>>, vector<1x48x3xf32>
    %168 = vector.shape_cast %167 : vector<1x48x3xf32> to vector<48x3xf32>
    %cst_183 = arith.constant dense<0.000000e+00> : vector<48x256xf32>
    %169 = tpu.matmul %168, %166, %cst_183 {dimension_numbers = #tpu.dot_dimension_numbers<[1], [0], [0], [1], [0, 0, 1, 1], [], []>} : vector<48x3xf32>, vector<3x256xf32>, vector<48x256xf32> -> vector<48x256xf32>
    %170 = arith.addf %165, %169 : vector<48x256xf32>
    %c0_184 = arith.constant 0 : index
    %c1680 = arith.constant 1680 : index
    %171 = vector.load %arg7[%c0_184, %c1680] : memref<3x4096xf32, #tpu.memory_space<vmem>>, vector<3x256xf32>
    %c8_185 = arith.constant 8 : index
    %c0_186 = arith.constant 0 : index
    %c0_187 = arith.constant 0 : index
    %172 = vector.load %arg2[%c8_185, %c0_186, %c0_187] : memref<9x48x3xf32, #tpu.memory_space<vmem>>, vector<1x48x3xf32>
    %173 = vector.shape_cast %172 : vector<1x48x3xf32> to vector<48x3xf32>
    %cst_188 = arith.constant dense<0.000000e+00> : vector<48x256xf32>
    %174 = tpu.matmul %173, %171, %cst_188 {dimension_numbers = #tpu.dot_dimension_numbers<[1], [0], [0], [1], [0, 0, 1, 1], [], []>} : vector<48x3xf32>, vector<3x256xf32>, vector<48x256xf32> -> vector<48x256xf32>
    %175 = arith.addf %170, %174 : vector<48x256xf32>
    %176 = vector.extract_strided_slice %175 {offsets = [0, 0], sizes = [16, 256], strides = [1, 1]} : vector<48x256xf32> to vector<16x256xf32>
    %177 = vector.extract_strided_slice %175 {offsets = [16, 0], sizes = [16, 256], strides = [1, 1]} : vector<48x256xf32> to vector<16x256xf32>
    %178 = vector.extract_strided_slice %175 {offsets = [32, 0], sizes = [16, 256], strides = [1, 1]} : vector<48x256xf32> to vector<16x256xf32>
    %c1_i32_189 = arith.constant 1 : i32
    %179 = tpu.dynamic_rotate %176 by %c1_i32_189 dim 1 : vector<16x256xf32>, i32 -> vector<16x256xf32>
    %cst_190 = arith.constant 0.000000e+00 : f32
    %180 = vector.shape_cast %4 : vector<1x256xi1> to vector<1x256xi1>
    %181 = vector.broadcast %180 : vector<1x256xi1> to vector<16x256xi1>
    %182 = vector.broadcast %cst_190 : f32 to vector<16x256xf32>
    %183 = arith.select %181, %179, %182 : vector<16x256xi1>, vector<16x256xf32>
    %184 = arith.addf %177, %183 : vector<16x256xf32>
    %c255_i32_191 = arith.constant 255 : i32
    %185 = tpu.dynamic_rotate %178 by %c255_i32_191 dim 1 : vector<16x256xf32>, i32 -> vector<16x256xf32>
    %cst_192 = arith.constant 0.000000e+00 : f32
    %186 = vector.shape_cast %6 : vector<1x256xi1> to vector<1x256xi1>
    %187 = vector.broadcast %186 : vector<1x256xi1> to vector<16x256xi1>
    %188 = vector.broadcast %cst_192 : f32 to vector<16x256xf32>
    %189 = arith.select %187, %185, %188 : vector<16x256xi1>, vector<16x256xf32>
    %190 = arith.addf %184, %189 : vector<16x256xf32>
    %191 = vector.broadcast %67 : vector<16x1xf32> to vector<16x256xf32>
    %192 = arith.addf %190, %191 : vector<16x256xf32>
    %cst_193 = arith.constant 0.000000e+00 : f32
    %193 = vector.broadcast %cst_193 : f32 to vector<16x256xf32>
    %194 = arith.maximumf %192, %193 : vector<16x256xf32>
    %c0_194 = arith.constant 0 : index
    %c1152_195 = arith.constant 1152 : index
    %195 = vector.load %arg8[%c0_194, %c1152_195] : memref<16x4096xf32, #tpu.memory_space<vmem>>, vector<16x256xf32>
    tpu.vector_store %arg8[%c0_194, %c1152_195], %194 {strides = array<i32>} : memref<16x4096xf32, #tpu.memory_space<vmem>>, vector<16x256xf32>,
    %c0_196 = arith.constant 0 : index
    %c1136_197 = arith.constant 1136 : index
    %196 = vector.load %arg7[%c0_196, %c1136_197] : memref<3x4096xf32, #tpu.memory_space<vmem>>, vector<3x256xf32>
    %c0_198 = arith.constant 0 : index
    %c0_199 = arith.constant 0 : index
    %c0_200 = arith.constant 0 : index
    %197 = vector.load %arg2[%c0_198, %c0_199, %c0_200] : memref<9x48x3xf32, #tpu.memory_space<vmem>>, vector<1x48x3xf32>
    %198 = vector.shape_cast %197 : vector<1x48x3xf32> to vector<48x3xf32>
    %cst_201 = arith.constant dense<0.000000e+00> : vector<48x256xf32>
    %199 = tpu.matmul %198, %196, %cst_201 {dimension_numbers = #tpu.dot_dimension_numbers<[1], [0], [0], [1], [0, 0, 1, 1], [], []>} : vector<48x3xf32>, vector<3x256xf32>, vector<48x256xf32> -> vector<48x256xf32>
    %c0_202 = arith.constant 0 : index
    %c1152_203 = arith.constant 1152 : index
    %200 = vector.load %arg7[%c0_202, %c1152_203] : memref<3x4096xf32, #tpu.memory_space<vmem>>, vector<3x256xf32>
    %c1_204 = arith.constant 1 : index
    %c0_205 = arith.constant 0 : index
    %c0_206 = arith.constant 0 : index
    %201 = vector.load %arg2[%c1_204, %c0_205, %c0_206] : memref<9x48x3xf32, #tpu.memory_space<vmem>>, vector<1x48x3xf32>
    %202 = vector.shape_cast %201 : vector<1x48x3xf32> to vector<48x3xf32>
    %cst_207 = arith.constant dense<0.000000e+00> : vector<48x256xf32>
    %203 = tpu.matmul %202, %200, %cst_207 {dimension_numbers = #tpu.dot_dimension_numbers<[1], [0], [0], [1], [0, 0, 1, 1], [], []>} : vector<48x3xf32>, vector<3x256xf32>, vector<48x256xf32> -> vector<48x256xf32>
    %204 = arith.addf %199, %203 : vector<48x256xf32>
    %c0_208 = arith.constant 0 : index
    %c1168_209 = arith.constant 1168 : index
    %205 = vector.load %arg7[%c0_208, %c1168_209] : memref<3x4096xf32, #tpu.memory_space<vmem>>, vector<3x256xf32>
    %c2_210 = arith.constant 2 : index
    %c0_211 = arith.constant 0 : index
    %c0_212 = arith.constant 0 : index
    %206 = vector.load %arg2[%c2_210, %c0_211, %c0_212] : memref<9x48x3xf32, #tpu.memory_space<vmem>>, vector<1x48x3xf32>
    %207 = vector.shape_cast %206 : vector<1x48x3xf32> to vector<48x3xf32>
    %cst_213 = arith.constant dense<0.000000e+00> : vector<48x256xf32>
    %208 = tpu.matmul %207, %205, %cst_213 {dimension_numbers = #tpu.dot_dimension_numbers<[1], [0], [0], [1], [0, 0, 1, 1], [], []>} : vector<48x3xf32>, vector<3x256xf32>, vector<48x256xf32> -> vector<48x256xf32>
    %209 = arith.addf %204, %208 : vector<48x256xf32>
    %c0_214 = arith.constant 0 : index
    %c1648_215 = arith.constant 1648 : index
    %210 = vector.load %arg7[%c0_214, %c1648_215] : memref<3x4096xf32, #tpu.memory_space<vmem>>, vector<3x256xf32>
    %c3_216 = arith.constant 3 : index
    %c0_217 = arith.constant 0 : index
    %c0_218 = arith.constant 0 : index
    %211 = vector.load %arg2[%c3_216, %c0_217, %c0_218] : memref<9x48x3xf32, #tpu.memory_space<vmem>>, vector<1x48x3xf32>
    %212 = vector.shape_cast %211 : vector<1x48x3xf32> to vector<48x3xf32>
    %cst_219 = arith.constant dense<0.000000e+00> : vector<48x256xf32>
    %213 = tpu.matmul %212, %210, %cst_219 {dimension_numbers = #tpu.dot_dimension_numbers<[1], [0], [0], [1], [0, 0, 1, 1], [], []>} : vector<48x3xf32>, vector<3x256xf32>, vector<48x256xf32> -> vector<48x256xf32>
    %214 = arith.addf %209, %213 : vector<48x256xf32>
    %c0_220 = arith.constant 0 : index
    %c1664_221 = arith.constant 1664 : index
    %215 = vector.load %arg7[%c0_220, %c1664_221] : memref<3x4096xf32, #tpu.memory_space<vmem>>, vector<3x256xf32>
    %c4_222 = arith.constant 4 : index
    %c0_223 = arith.constant 0 : index
    %c0_224 = arith.constant 0 : index
    %216 = vector.load %arg2[%c4_222, %c0_223, %c0_224] : memref<9x48x3xf32, #tpu.memory_space<vmem>>, vector<1x48x3xf32>
    %217 = vector.shape_cast %216 : vector<1x48x3xf32> to vector<48x3xf32>
    %cst_225 = arith.constant dense<0.000000e+00> : vector<48x256xf32>
    %218 = tpu.matmul %217, %215, %cst_225 {dimension_numbers = #tpu.dot_dimension_numbers<[1], [0], [0], [1], [0, 0, 1, 1], [], []>} : vector<48x3xf32>, vector<3x256xf32>, vector<48x256xf32> -> vector<48x256xf32>
    %219 = arith.addf %214, %218 : vector<48x256xf32>
    %c0_226 = arith.constant 0 : index
    %c1680_227 = arith.constant 1680 : index
    %220 = vector.load %arg7[%c0_226, %c1680_227] : memref<3x4096xf32, #tpu.memory_space<vmem>>, vector<3x256xf32>
    %c5_228 = arith.constant 5 : index
    %c0_229 = arith.constant 0 : index
    %c0_230 = arith.constant 0 : index
    %221 = vector.load %arg2[%c5_228, %c0_229, %c0_230] : memref<9x48x3xf32, #tpu.memory_space<vmem>>, vector<1x48x3xf32>
    %222 = vector.shape_cast %221 : vector<1x48x3xf32> to vector<48x3xf32>
    %cst_231 = arith.constant dense<0.000000e+00> : vector<48x256xf32>
    %223 = tpu.matmul %222, %220, %cst_231 {dimension_numbers = #tpu.dot_dimension_numbers<[1], [0], [0], [1], [0, 0, 1, 1], [], []>} : vector<48x3xf32>, vector<3x256xf32>, vector<48x256xf32> -> vector<48x256xf32>
    %224 = arith.addf %219, %223 : vector<48x256xf32>
    %c0_232 = arith.constant 0 : index
    %c2160 = arith.constant 2160 : index
    %225 = vector.load %arg7[%c0_232, %c2160] : memref<3x4096xf32, #tpu.memory_space<vmem>>, vector<3x256xf32>
    %c6_233 = arith.constant 6 : index
    %c0_234 = arith.constant 0 : index
    %c0_235 = arith.constant 0 : index
    %226 = vector.load %arg2[%c6_233, %c0_234, %c0_235] : memref<9x48x3xf32, #tpu.memory_space<vmem>>, vector<1x48x3xf32>
    %227 = vector.shape_cast %226 : vector<1x48x3xf32> to vector<48x3xf32>
    %cst_236 = arith.constant dense<0.000000e+00> : vector<48x256xf32>
    %228 = tpu.matmul %227, %225, %cst_236 {dimension_numbers = #tpu.dot_dimension_numbers<[1], [0], [0], [1], [0, 0, 1, 1], [], []>} : vector<48x3xf32>, vector<3x256xf32>, vector<48x256xf32> -> vector<48x256xf32>
    %229 = arith.addf %224, %228 : vector<48x256xf32>
    %c0_237 = arith.constant 0 : index
    %c2176_238 = arith.constant 2176 : index
    %230 = vector.load %arg7[%c0_237, %c2176_238] : memref<3x4096xf32, #tpu.memory_space<vmem>>, vector<3x256xf32>
    %c7_239 = arith.constant 7 : index
    %c0_240 = arith.constant 0 : index
    %c0_241 = arith.constant 0 : index
    %231 = vector.load %arg2[%c7_239, %c0_240, %c0_241] : memref<9x48x3xf32, #tpu.memory_space<vmem>>, vector<1x48x3xf32>
    %232 = vector.shape_cast %231 : vector<1x48x3xf32> to vector<48x3xf32>
    %cst_242 = arith.constant dense<0.000000e+00> : vector<48x256xf32>
    %233 = tpu.matmul %232, %230, %cst_242 {dimension_numbers = #tpu.dot_dimension_numbers<[1], [0], [0], [1], [0, 0, 1, 1], [], []>} : vector<48x3xf32>, vector<3x256xf32>, vector<48x256xf32> -> vector<48x256xf32>
    %234 = arith.addf %229, %233 : vector<48x256xf32>
    %c0_243 = arith.constant 0 : index
    %c2192 = arith.constant 2192 : index
    %235 = vector.load %arg7[%c0_243, %c2192] : memref<3x4096xf32, #tpu.memory_space<vmem>>, vector<3x256xf32>
    %c8_244 = arith.constant 8 : index
    %c0_245 = arith.constant 0 : index
    %c0_246 = arith.constant 0 : index
    %236 = vector.load %arg2[%c8_244, %c0_245, %c0_246] : memref<9x48x3xf32, #tpu.memory_space<vmem>>, vector<1x48x3xf32>
    %237 = vector.shape_cast %236 : vector<1x48x3xf32> to vector<48x3xf32>
    %cst_247 = arith.constant dense<0.000000e+00> : vector<48x256xf32>
    %238 = tpu.matmul %237, %235, %cst_247 {dimension_numbers = #tpu.dot_dimension_numbers<[1], [0], [0], [1], [0, 0, 1, 1], [], []>} : vector<48x3xf32>, vector<3x256xf32>, vector<48x256xf32> -> vector<48x256xf32>
    %239 = arith.addf %234, %238 : vector<48x256xf32>
    %240 = vector.extract_strided_slice %239 {offsets = [0, 0], sizes = [16, 256], strides = [1, 1]} : vector<48x256xf32> to vector<16x256xf32>
    %241 = vector.extract_strided_slice %239 {offsets = [16, 0], sizes = [16, 256], strides = [1, 1]} : vector<48x256xf32> to vector<16x256xf32>
    %242 = vector.extract_strided_slice %239 {offsets = [32, 0], sizes = [16, 256], strides = [1, 1]} : vector<48x256xf32> to vector<16x256xf32>
    %c1_i32_248 = arith.constant 1 : i32
    %243 = tpu.dynamic_rotate %240 by %c1_i32_248 dim 1 : vector<16x256xf32>, i32 -> vector<16x256xf32>
    %cst_249 = arith.constant 0.000000e+00 : f32
    %244 = vector.shape_cast %4 : vector<1x256xi1> to vector<1x256xi1>
    %245 = vector.broadcast %244 : vector<1x256xi1> to vector<16x256xi1>
    %246 = vector.broadcast %cst_249 : f32 to vector<16x256xf32>
    %247 = arith.select %245, %243, %246 : vector<16x256xi1>, vector<16x256xf32>
    %248 = arith.addf %241, %247 : vector<16x256xf32>
    %c255_i32_250 = arith.constant 255 : i32
    %249 = tpu.dynamic_rotate %242 by %c255_i32_250 dim 1 : vector<16x256xf32>, i32 -> vector<16x256xf32>
    %cst_251 = arith.constant 0.000000e+00 : f32
    %250 = vector.shape_cast %6 : vector<1x256xi1> to vector<1x256xi1>
    %251 = vector.broadcast %250 : vector<1x256xi1> to vector<16x256xi1>
    %252 = vector.broadcast %cst_251 : f32 to vector<16x256xf32>
    %253 = arith.select %251, %249, %252 : vector<16x256xi1>, vector<16x256xf32>
    %254 = arith.addf %248, %253 : vector<16x256xf32>
    %255 = vector.broadcast %67 : vector<16x1xf32> to vector<16x256xf32>
    %256 = arith.addf %254, %255 : vector<16x256xf32>
    %cst_252 = arith.constant 0.000000e+00 : f32
    %257 = vector.broadcast %cst_252 : f32 to vector<16x256xf32>
    %258 = arith.maximumf %256, %257 : vector<16x256xf32>
    %c0_253 = arith.constant 0 : index
    %c1664_254 = arith.constant 1664 : index
    %259 = vector.load %arg8[%c0_253, %c1664_254] : memref<16x4096xf32, #tpu.memory_space<vmem>>, vector<16x256xf32>
    tpu.vector_store %arg8[%c0_253, %c1664_254], %258 {strides = array<i32>} : memref<16x4096xf32, #tpu.memory_space<vmem>>, vector<16x256xf32>,
    %c0_255 = arith.constant 0 : index
    %c1648_256 = arith.constant 1648 : index
    %260 = vector.load %arg7[%c0_255, %c1648_256] : memref<3x4096xf32, #tpu.memory_space<vmem>>, vector<3x256xf32>
    %c0_257 = arith.constant 0 : index
    %c0_258 = arith.constant 0 : index
    %c0_259 = arith.constant 0 : index
    %261 = vector.load %arg2[%c0_257, %c0_258, %c0_259] : memref<9x48x3xf32, #tpu.memory_space<vmem>>, vector<1x48x3xf32>
    %262 = vector.shape_cast %261 : vector<1x48x3xf32> to vector<48x3xf32>
    %cst_260 = arith.constant dense<0.000000e+00> : vector<48x256xf32>
    %263 = tpu.matmul %262, %260, %cst_260 {dimension_numbers = #tpu.dot_dimension_numbers<[1], [0], [0], [1], [0, 0, 1, 1], [], []>} : vector<48x3xf32>, vector<3x256xf32>, vector<48x256xf32> -> vector<48x256xf32>
    %c0_261 = arith.constant 0 : index
    %c1664_262 = arith.constant 1664 : index
    %264 = vector.load %arg7[%c0_261, %c1664_262] : memref<3x4096xf32, #tpu.memory_space<vmem>>, vector<3x256xf32>
    %c1_263 = arith.constant 1 : index
    %c0_264 = arith.constant 0 : index
    %c0_265 = arith.constant 0 : index
    %265 = vector.load %arg2[%c1_263, %c0_264, %c0_265] : memref<9x48x3xf32, #tpu.memory_space<vmem>>, vector<1x48x3xf32>
    %266 = vector.shape_cast %265 : vector<1x48x3xf32> to vector<48x3xf32>
    %cst_266 = arith.constant dense<0.000000e+00> : vector<48x256xf32>
    %267 = tpu.matmul %266, %264, %cst_266 {dimension_numbers = #tpu.dot_dimension_numbers<[1], [0], [0], [1], [0, 0, 1, 1], [], []>} : vector<48x3xf32>, vector<3x256xf32>, vector<48x256xf32> -> vector<48x256xf32>
    %268 = arith.addf %263, %267 : vector<48x256xf32>
    %c0_267 = arith.constant 0 : index
    %c1680_268 = arith.constant 1680 : index
    %269 = vector.load %arg7[%c0_267, %c1680_268] : memref<3x4096xf32, #tpu.memory_space<vmem>>, vector<3x256xf32>
    %c2_269 = arith.constant 2 : index
    %c0_270 = arith.constant 0 : index
    %c0_271 = arith.constant 0 : index
    %270 = vector.load %arg2[%c2_269, %c0_270, %c0_271] : memref<9x48x3xf32, #tpu.memory_space<vmem>>, vector<1x48x3xf32>
    %271 = vector.shape_cast %270 : vector<1x48x3xf32> to vector<48x3xf32>
    %cst_272 = arith.constant dense<0.000000e+00> : vector<48x256xf32>
    %272 = tpu.matmul %271, %269, %cst_272 {dimension_numbers = #tpu.dot_dimension_numbers<[1], [0], [0], [1], [0, 0, 1, 1], [], []>} : vector<48x3xf32>, vector<3x256xf32>, vector<48x256xf32> -> vector<48x256xf32>
    %273 = arith.addf %268, %272 : vector<48x256xf32>
    %c0_273 = arith.constant 0 : index
    %c2160_274 = arith.constant 2160 : index
    %274 = vector.load %arg7[%c0_273, %c2160_274] : memref<3x4096xf32, #tpu.memory_space<vmem>>, vector<3x256xf32>
    %c3_275 = arith.constant 3 : index
    %c0_276 = arith.constant 0 : index
    %c0_277 = arith.constant 0 : index
    %275 = vector.load %arg2[%c3_275, %c0_276, %c0_277] : memref<9x48x3xf32, #tpu.memory_space<vmem>>, vector<1x48x3xf32>
    %276 = vector.shape_cast %275 : vector<1x48x3xf32> to vector<48x3xf32>
    %cst_278 = arith.constant dense<0.000000e+00> : vector<48x256xf32>
    %277 = tpu.matmul %276, %274, %cst_278 {dimension_numbers = #tpu.dot_dimension_numbers<[1], [0], [0], [1], [0, 0, 1, 1], [], []>} : vector<48x3xf32>, vector<3x256xf32>, vector<48x256xf32> -> vector<48x256xf32>
    %278 = arith.addf %273, %277 : vector<48x256xf32>
    %c0_279 = arith.constant 0 : index
    %c2176_280 = arith.constant 2176 : index
    %279 = vector.load %arg7[%c0_279, %c2176_280] : memref<3x4096xf32, #tpu.memory_space<vmem>>, vector<3x256xf32>
    %c4_281 = arith.constant 4 : index
    %c0_282 = arith.constant 0 : index
    %c0_283 = arith.constant 0 : index
    %280 = vector.load %arg2[%c4_281, %c0_282, %c0_283] : memref<9x48x3xf32, #tpu.memory_space<vmem>>, vector<1x48x3xf32>
    %281 = vector.shape_cast %280 : vector<1x48x3xf32> to vector<48x3xf32>
    %cst_284 = arith.constant dense<0.000000e+00> : vector<48x256xf32>
    %282 = tpu.matmul %281, %279, %cst_284 {dimension_numbers = #tpu.dot_dimension_numbers<[1], [0], [0], [1], [0, 0, 1, 1], [], []>} : vector<48x3xf32>, vector<3x256xf32>, vector<48x256xf32> -> vector<48x256xf32>
    %283 = arith.addf %278, %282 : vector<48x256xf32>
    %c0_285 = arith.constant 0 : index
    %c2192_286 = arith.constant 2192 : index
    %284 = vector.load %arg7[%c0_285, %c2192_286] : memref<3x4096xf32, #tpu.memory_space<vmem>>, vector<3x256xf32>
    %c5_287 = arith.constant 5 : index
    %c0_288 = arith.constant 0 : index
    %c0_289 = arith.constant 0 : index
    %285 = vector.load %arg2[%c5_287, %c0_288, %c0_289] : memref<9x48x3xf32, #tpu.memory_space<vmem>>, vector<1x48x3xf32>
    %286 = vector.shape_cast %285 : vector<1x48x3xf32> to vector<48x3xf32>
    %cst_290 = arith.constant dense<0.000000e+00> : vector<48x256xf32>
    %287 = tpu.matmul %286, %284, %cst_290 {dimension_numbers = #tpu.dot_dimension_numbers<[1], [0], [0], [1], [0, 0, 1, 1], [], []>} : vector<48x3xf32>, vector<3x256xf32>, vector<48x256xf32> -> vector<48x256xf32>
    %288 = arith.addf %283, %287 : vector<48x256xf32>
    %c0_291 = arith.constant 0 : index
    %c2672 = arith.constant 2672 : index
    %289 = vector.load %arg7[%c0_291, %c2672] : memref<3x4096xf32, #tpu.memory_space<vmem>>, vector<3x256xf32>
    %c6_292 = arith.constant 6 : index
    %c0_293 = arith.constant 0 : index
    %c0_294 = arith.constant 0 : index
    %290 = vector.load %arg2[%c6_292, %c0_293, %c0_294] : memref<9x48x3xf32, #tpu.memory_space<vmem>>, vector<1x48x3xf32>
    %291 = vector.shape_cast %290 : vector<1x48x3xf32> to vector<48x3xf32>
    %cst_295 = arith.constant dense<0.000000e+00> : vector<48x256xf32>
    %292 = tpu.matmul %291, %289, %cst_295 {dimension_numbers = #tpu.dot_dimension_numbers<[1], [0], [0], [1], [0, 0, 1, 1], [], []>} : vector<48x3xf32>, vector<3x256xf32>, vector<48x256xf32> -> vector<48x256xf32>
    %293 = arith.addf %288, %292 : vector<48x256xf32>
    %c0_296 = arith.constant 0 : index
    %c2688_297 = arith.constant 2688 : index
    %294 = vector.load %arg7[%c0_296, %c2688_297] : memref<3x4096xf32, #tpu.memory_space<vmem>>, vector<3x256xf32>
    %c7_298 = arith.constant 7 : index
    %c0_299 = arith.constant 0 : index
    %c0_300 = arith.constant 0 : index
    %295 = vector.load %arg2[%c7_298, %c0_299, %c0_300] : memref<9x48x3xf32, #tpu.memory_space<vmem>>, vector<1x48x3xf32>
    %296 = vector.shape_cast %295 : vector<1x48x3xf32> to vector<48x3xf32>
    %cst_301 = arith.constant dense<0.000000e+00> : vector<48x256xf32>
    %297 = tpu.matmul %296, %294, %cst_301 {dimension_numbers = #tpu.dot_dimension_numbers<[1], [0], [0], [1], [0, 0, 1, 1], [], []>} : vector<48x3xf32>, vector<3x256xf32>, vector<48x256xf32> -> vector<48x256xf32>
    %298 = arith.addf %293, %297 : vector<48x256xf32>
    %c0_302 = arith.constant 0 : index
    %c2704 = arith.constant 2704 : index
    %299 = vector.load %arg7[%c0_302, %c2704] : memref<3x4096xf32, #tpu.memory_space<vmem>>, vector<3x256xf32>
    %c8_303 = arith.constant 8 : index
    %c0_304 = arith.constant 0 : index
    %c0_305 = arith.constant 0 : index
    %300 = vector.load %arg2[%c8_303, %c0_304, %c0_305] : memref<9x48x3xf32, #tpu.memory_space<vmem>>, vector<1x48x3xf32>
    %301 = vector.shape_cast %300 : vector<1x48x3xf32> to vector<48x3xf32>
    %cst_306 = arith.constant dense<0.000000e+00> : vector<48x256xf32>
    %302 = tpu.matmul %301, %299, %cst_306 {dimension_numbers = #tpu.dot_dimension_numbers<[1], [0], [0], [1], [0, 0, 1, 1], [], []>} : vector<48x3xf32>, vector<3x256xf32>, vector<48x256xf32> -> vector<48x256xf32>
    %303 = arith.addf %298, %302 : vector<48x256xf32>
    %304 = vector.extract_strided_slice %303 {offsets = [0, 0], sizes = [16, 256], strides = [1, 1]} : vector<48x256xf32> to vector<16x256xf32>
    %305 = vector.extract_strided_slice %303 {offsets = [16, 0], sizes = [16, 256], strides = [1, 1]} : vector<48x256xf32> to vector<16x256xf32>
    %306 = vector.extract_strided_slice %303 {offsets = [32, 0], sizes = [16, 256], strides = [1, 1]} : vector<48x256xf32> to vector<16x256xf32>
    %c1_i32_307 = arith.constant 1 : i32
    %307 = tpu.dynamic_rotate %304 by %c1_i32_307 dim 1 : vector<16x256xf32>, i32 -> vector<16x256xf32>
    %cst_308 = arith.constant 0.000000e+00 : f32
    %308 = vector.shape_cast %4 : vector<1x256xi1> to vector<1x256xi1>
    %309 = vector.broadcast %308 : vector<1x256xi1> to vector<16x256xi1>
    %310 = vector.broadcast %cst_308 : f32 to vector<16x256xf32>
    %311 = arith.select %309, %307, %310 : vector<16x256xi1>, vector<16x256xf32>
    %312 = arith.addf %305, %311 : vector<16x256xf32>
    %c255_i32_309 = arith.constant 255 : i32
    %313 = tpu.dynamic_rotate %306 by %c255_i32_309 dim 1 : vector<16x256xf32>, i32 -> vector<16x256xf32>
    %cst_310 = arith.constant 0.000000e+00 : f32
    %314 = vector.shape_cast %6 : vector<1x256xi1> to vector<1x256xi1>
    %315 = vector.broadcast %314 : vector<1x256xi1> to vector<16x256xi1>
    %316 = vector.broadcast %cst_310 : f32 to vector<16x256xf32>
    %317 = arith.select %315, %313, %316 : vector<16x256xi1>, vector<16x256xf32>
    %318 = arith.addf %312, %317 : vector<16x256xf32>
    %319 = vector.broadcast %67 : vector<16x1xf32> to vector<16x256xf32>
    %320 = arith.addf %318, %319 : vector<16x256xf32>
    %cst_311 = arith.constant 0.000000e+00 : f32
    %321 = vector.broadcast %cst_311 : f32 to vector<16x256xf32>
    %322 = arith.maximumf %320, %321 : vector<16x256xf32>
    %c0_312 = arith.constant 0 : index
    %c2176_313 = arith.constant 2176 : index
    %323 = vector.load %arg8[%c0_312, %c2176_313] : memref<16x4096xf32, #tpu.memory_space<vmem>>, vector<16x256xf32>
    tpu.vector_store %arg8[%c0_312, %c2176_313], %322 {strides = array<i32>} : memref<16x4096xf32, #tpu.memory_space<vmem>>, vector<16x256xf32>,
    %c0_314 = arith.constant 0 : index
    %c2160_315 = arith.constant 2160 : index
    %324 = vector.load %arg7[%c0_314, %c2160_315] : memref<3x4096xf32, #tpu.memory_space<vmem>>, vector<3x256xf32>
    %c0_316 = arith.constant 0 : index
    %c0_317 = arith.constant 0 : index
    %c0_318 = arith.constant 0 : index
    %325 = vector.load %arg2[%c0_316, %c0_317, %c0_318] : memref<9x48x3xf32, #tpu.memory_space<vmem>>, vector<1x48x3xf32>
    %326 = vector.shape_cast %325 : vector<1x48x3xf32> to vector<48x3xf32>
    %cst_319 = arith.constant dense<0.000000e+00> : vector<48x256xf32>
    %327 = tpu.matmul %326, %324, %cst_319 {dimension_numbers = #tpu.dot_dimension_numbers<[1], [0], [0], [1], [0, 0, 1, 1], [], []>} : vector<48x3xf32>, vector<3x256xf32>, vector<48x256xf32> -> vector<48x256xf32>
    %c0_320 = arith.constant 0 : index
    %c2176_321 = arith.constant 2176 : index
    %328 = vector.load %arg7[%c0_320, %c2176_321] : memref<3x4096xf32, #tpu.memory_space<vmem>>, vector<3x256xf32>
    %c1_322 = arith.constant 1 : index
    %c0_323 = arith.constant 0 : index
    %c0_324 = arith.constant 0 : index
    %329 = vector.load %arg2[%c1_322, %c0_323, %c0_324] : memref<9x48x3xf32, #tpu.memory_space<vmem>>, vector<1x48x3xf32>
    %330 = vector.shape_cast %329 : vector<1x48x3xf32> to vector<48x3xf32>
    %cst_325 = arith.constant dense<0.000000e+00> : vector<48x256xf32>
    %331 = tpu.matmul %330, %328, %cst_325 {dimension_numbers = #tpu.dot_dimension_numbers<[1], [0], [0], [1], [0, 0, 1, 1], [], []>} : vector<48x3xf32>, vector<3x256xf32>, vector<48x256xf32> -> vector<48x256xf32>
    %332 = arith.addf %327, %331 : vector<48x256xf32>
    %c0_326 = arith.constant 0 : index
    %c2192_327 = arith.constant 2192 : index
    %333 = vector.load %arg7[%c0_326, %c2192_327] : memref<3x4096xf32, #tpu.memory_space<vmem>>, vector<3x256xf32>
    %c2_328 = arith.constant 2 : index
    %c0_329 = arith.constant 0 : index
    %c0_330 = arith.constant 0 : index
    %334 = vector.load %arg2[%c2_328, %c0_329, %c0_330] : memref<9x48x3xf32, #tpu.memory_space<vmem>>, vector<1x48x3xf32>
    %335 = vector.shape_cast %334 : vector<1x48x3xf32> to vector<48x3xf32>
    %cst_331 = arith.constant dense<0.000000e+00> : vector<48x256xf32>
    %336 = tpu.matmul %335, %333, %cst_331 {dimension_numbers = #tpu.dot_dimension_numbers<[1], [0], [0], [1], [0, 0, 1, 1], [], []>} : vector<48x3xf32>, vector<3x256xf32>, vector<48x256xf32> -> vector<48x256xf32>
    %337 = arith.addf %332, %336 : vector<48x256xf32>
    %c0_332 = arith.constant 0 : index
    %c2672_333 = arith.constant 2672 : index
    %338 = vector.load %arg7[%c0_332, %c2672_333] : memref<3x4096xf32, #tpu.memory_space<vmem>>, vector<3x256xf32>
    %c3_334 = arith.constant 3 : index
    %c0_335 = arith.constant 0 : index
    %c0_336 = arith.constant 0 : index
    %339 = vector.load %arg2[%c3_334, %c0_335, %c0_336] : memref<9x48x3xf32, #tpu.memory_space<vmem>>, vector<1x48x3xf32>
    %340 = vector.shape_cast %339 : vector<1x48x3xf32> to vector<48x3xf32>
    %cst_337 = arith.constant dense<0.000000e+00> : vector<48x256xf32>
    %341 = tpu.matmul %340, %338, %cst_337 {dimension_numbers = #tpu.dot_dimension_numbers<[1], [0], [0], [1], [0, 0, 1, 1], [], []>} : vector<48x3xf32>, vector<3x256xf32>, vector<48x256xf32> -> vector<48x256xf32>
    %342 = arith.addf %337, %341 : vector<48x256xf32>
    %c0_338 = arith.constant 0 : index
    %c2688_339 = arith.constant 2688 : index
    %343 = vector.load %arg7[%c0_338, %c2688_339] : memref<3x4096xf32, #tpu.memory_space<vmem>>, vector<3x256xf32>
    %c4_340 = arith.constant 4 : index
    %c0_341 = arith.constant 0 : index
    %c0_342 = arith.constant 0 : index
    %344 = vector.load %arg2[%c4_340, %c0_341, %c0_342] : memref<9x48x3xf32, #tpu.memory_space<vmem>>, vector<1x48x3xf32>
    %345 = vector.shape_cast %344 : vector<1x48x3xf32> to vector<48x3xf32>
    %cst_343 = arith.constant dense<0.000000e+00> : vector<48x256xf32>
    %346 = tpu.matmul %345, %343, %cst_343 {dimension_numbers = #tpu.dot_dimension_numbers<[1], [0], [0], [1], [0, 0, 1, 1], [], []>} : vector<48x3xf32>, vector<3x256xf32>, vector<48x256xf32> -> vector<48x256xf32>
    %347 = arith.addf %342, %346 : vector<48x256xf32>
    %c0_344 = arith.constant 0 : index
    %c2704_345 = arith.constant 2704 : index
    %348 = vector.load %arg7[%c0_344, %c2704_345] : memref<3x4096xf32, #tpu.memory_space<vmem>>, vector<3x256xf32>
    %c5_346 = arith.constant 5 : index
    %c0_347 = arith.constant 0 : index
    %c0_348 = arith.constant 0 : index
    %349 = vector.load %arg2[%c5_346, %c0_347, %c0_348] : memref<9x48x3xf32, #tpu.memory_space<vmem>>, vector<1x48x3xf32>
    %350 = vector.shape_cast %349 : vector<1x48x3xf32> to vector<48x3xf32>
    %cst_349 = arith.constant dense<0.000000e+00> : vector<48x256xf32>
    %351 = tpu.matmul %350, %348, %cst_349 {dimension_numbers = #tpu.dot_dimension_numbers<[1], [0], [0], [1], [0, 0, 1, 1], [], []>} : vector<48x3xf32>, vector<3x256xf32>, vector<48x256xf32> -> vector<48x256xf32>
    %352 = arith.addf %347, %351 : vector<48x256xf32>
    %c0_350 = arith.constant 0 : index
    %c3184 = arith.constant 3184 : index
    %353 = vector.load %arg7[%c0_350, %c3184] : memref<3x4096xf32, #tpu.memory_space<vmem>>, vector<3x256xf32>
    %c6_351 = arith.constant 6 : index
    %c0_352 = arith.constant 0 : index
    %c0_353 = arith.constant 0 : index
    %354 = vector.load %arg2[%c6_351, %c0_352, %c0_353] : memref<9x48x3xf32, #tpu.memory_space<vmem>>, vector<1x48x3xf32>
    %355 = vector.shape_cast %354 : vector<1x48x3xf32> to vector<48x3xf32>
    %cst_354 = arith.constant dense<0.000000e+00> : vector<48x256xf32>
    %356 = tpu.matmul %355, %353, %cst_354 {dimension_numbers = #tpu.dot_dimension_numbers<[1], [0], [0], [1], [0, 0, 1, 1], [], []>} : vector<48x3xf32>, vector<3x256xf32>, vector<48x256xf32> -> vector<48x256xf32>
    %357 = arith.addf %352, %356 : vector<48x256xf32>
    %c0_355 = arith.constant 0 : index
    %c3200_356 = arith.constant 3200 : index
    %358 = vector.load %arg7[%c0_355, %c3200_356] : memref<3x4096xf32, #tpu.memory_space<vmem>>, vector<3x256xf32>
    %c7_357 = arith.constant 7 : index
    %c0_358 = arith.constant 0 : index
    %c0_359 = arith.constant 0 : index
    %359 = vector.load %arg2[%c7_357, %c0_358, %c0_359] : memref<9x48x3xf32, #tpu.memory_space<vmem>>, vector<1x48x3xf32>
    %360 = vector.shape_cast %359 : vector<1x48x3xf32> to vector<48x3xf32>
    %cst_360 = arith.constant dense<0.000000e+00> : vector<48x256xf32>
    %361 = tpu.matmul %360, %358, %cst_360 {dimension_numbers = #tpu.dot_dimension_numbers<[1], [0], [0], [1], [0, 0, 1, 1], [], []>} : vector<48x3xf32>, vector<3x256xf32>, vector<48x256xf32> -> vector<48x256xf32>
    %362 = arith.addf %357, %361 : vector<48x256xf32>
    %c0_361 = arith.constant 0 : index
    %c3216 = arith.constant 3216 : index
    %363 = vector.load %arg7[%c0_361, %c3216] : memref<3x4096xf32, #tpu.memory_space<vmem>>, vector<3x256xf32>
    %c8_362 = arith.constant 8 : index
    %c0_363 = arith.constant 0 : index
    %c0_364 = arith.constant 0 : index
    %364 = vector.load %arg2[%c8_362, %c0_363, %c0_364] : memref<9x48x3xf32, #tpu.memory_space<vmem>>, vector<1x48x3xf32>
    %365 = vector.shape_cast %364 : vector<1x48x3xf32> to vector<48x3xf32>
    %cst_365 = arith.constant dense<0.000000e+00> : vector<48x256xf32>
    %366 = tpu.matmul %365, %363, %cst_365 {dimension_numbers = #tpu.dot_dimension_numbers<[1], [0], [0], [1], [0, 0, 1, 1], [], []>} : vector<48x3xf32>, vector<3x256xf32>, vector<48x256xf32> -> vector<48x256xf32>
    %367 = arith.addf %362, %366 : vector<48x256xf32>
    %368 = vector.extract_strided_slice %367 {offsets = [0, 0], sizes = [16, 256], strides = [1, 1]} : vector<48x256xf32> to vector<16x256xf32>
    %369 = vector.extract_strided_slice %367 {offsets = [16, 0], sizes = [16, 256], strides = [1, 1]} : vector<48x256xf32> to vector<16x256xf32>
    %370 = vector.extract_strided_slice %367 {offsets = [32, 0], sizes = [16, 256], strides = [1, 1]} : vector<48x256xf32> to vector<16x256xf32>
    %c1_i32_366 = arith.constant 1 : i32
    %371 = tpu.dynamic_rotate %368 by %c1_i32_366 dim 1 : vector<16x256xf32>, i32 -> vector<16x256xf32>
    %cst_367 = arith.constant 0.000000e+00 : f32
    %372 = vector.shape_cast %4 : vector<1x256xi1> to vector<1x256xi1>
    %373 = vector.broadcast %372 : vector<1x256xi1> to vector<16x256xi1>
    %374 = vector.broadcast %cst_367 : f32 to vector<16x256xf32>
    %375 = arith.select %373, %371, %374 : vector<16x256xi1>, vector<16x256xf32>
    %376 = arith.addf %369, %375 : vector<16x256xf32>
    %c255_i32_368 = arith.constant 255 : i32
    %377 = tpu.dynamic_rotate %370 by %c255_i32_368 dim 1 : vector<16x256xf32>, i32 -> vector<16x256xf32>
    %cst_369 = arith.constant 0.000000e+00 : f32
    %378 = vector.shape_cast %6 : vector<1x256xi1> to vector<1x256xi1>
    %379 = vector.broadcast %378 : vector<1x256xi1> to vector<16x256xi1>
    %380 = vector.broadcast %cst_369 : f32 to vector<16x256xf32>
    %381 = arith.select %379, %377, %380 : vector<16x256xi1>, vector<16x256xf32>
    %382 = arith.addf %376, %381 : vector<16x256xf32>
    %383 = vector.broadcast %67 : vector<16x1xf32> to vector<16x256xf32>
    %384 = arith.addf %382, %383 : vector<16x256xf32>
    %cst_370 = arith.constant 0.000000e+00 : f32
    %385 = vector.broadcast %cst_370 : f32 to vector<16x256xf32>
    %386 = arith.maximumf %384, %385 : vector<16x256xf32>
    %c0_371 = arith.constant 0 : index
    %c2688_372 = arith.constant 2688 : index
    %387 = vector.load %arg8[%c0_371, %c2688_372] : memref<16x4096xf32, #tpu.memory_space<vmem>>, vector<16x256xf32>
    tpu.vector_store %arg8[%c0_371, %c2688_372], %386 {strides = array<i32>} : memref<16x4096xf32, #tpu.memory_space<vmem>>, vector<16x256xf32>,
    %c0_373 = arith.constant 0 : index
    %c2672_374 = arith.constant 2672 : index
    %388 = vector.load %arg7[%c0_373, %c2672_374] : memref<3x4096xf32, #tpu.memory_space<vmem>>, vector<3x256xf32>
    %c0_375 = arith.constant 0 : index
    %c0_376 = arith.constant 0 : index
    %c0_377 = arith.constant 0 : index
    %389 = vector.load %arg2[%c0_375, %c0_376, %c0_377] : memref<9x48x3xf32, #tpu.memory_space<vmem>>, vector<1x48x3xf32>
    %390 = vector.shape_cast %389 : vector<1x48x3xf32> to vector<48x3xf32>
    %cst_378 = arith.constant dense<0.000000e+00> : vector<48x256xf32>
    %391 = tpu.matmul %390, %388, %cst_378 {dimension_numbers = #tpu.dot_dimension_numbers<[1], [0], [0], [1], [0, 0, 1, 1], [], []>} : vector<48x3xf32>, vector<3x256xf32>, vector<48x256xf32> -> vector<48x256xf32>
    %c0_379 = arith.constant 0 : index
    %c2688_380 = arith.constant 2688 : index
    %392 = vector.load %arg7[%c0_379, %c2688_380] : memref<3x4096xf32, #tpu.memory_space<vmem>>, vector<3x256xf32>
    %c1_381 = arith.constant 1 : index
    %c0_382 = arith.constant 0 : index
    %c0_383 = arith.constant 0 : index
    %393 = vector.load %arg2[%c1_381, %c0_382, %c0_383] : memref<9x48x3xf32, #tpu.memory_space<vmem>>, vector<1x48x3xf32>
    %394 = vector.shape_cast %393 : vector<1x48x3xf32> to vector<48x3xf32>
    %cst_384 = arith.constant dense<0.000000e+00> : vector<48x256xf32>
    %395 = tpu.matmul %394, %392, %cst_384 {dimension_numbers = #tpu.dot_dimension_numbers<[1], [0], [0], [1], [0, 0, 1, 1], [], []>} : vector<48x3xf32>, vector<3x256xf32>, vector<48x256xf32> -> vector<48x256xf32>
    %396 = arith.addf %391, %395 : vector<48x256xf32>
    %c0_385 = arith.constant 0 : index
    %c2704_386 = arith.constant 2704 : index
    %397 = vector.load %arg7[%c0_385, %c2704_386] : memref<3x4096xf32, #tpu.memory_space<vmem>>, vector<3x256xf32>
    %c2_387 = arith.constant 2 : index
    %c0_388 = arith.constant 0 : index
    %c0_389 = arith.constant 0 : index
    %398 = vector.load %arg2[%c2_387, %c0_388, %c0_389] : memref<9x48x3xf32, #tpu.memory_space<vmem>>, vector<1x48x3xf32>
    %399 = vector.shape_cast %398 : vector<1x48x3xf32> to vector<48x3xf32>
    %cst_390 = arith.constant dense<0.000000e+00> : vector<48x256xf32>
    %400 = tpu.matmul %399, %397, %cst_390 {dimension_numbers = #tpu.dot_dimension_numbers<[1], [0], [0], [1], [0, 0, 1, 1], [], []>} : vector<48x3xf32>, vector<3x256xf32>, vector<48x256xf32> -> vector<48x256xf32>
    %401 = arith.addf %396, %400 : vector<48x256xf32>
    %c0_391 = arith.constant 0 : index
    %c3184_392 = arith.constant 3184 : index
    %402 = vector.load %arg7[%c0_391, %c3184_392] : memref<3x4096xf32, #tpu.memory_space<vmem>>, vector<3x256xf32>
    %c3_393 = arith.constant 3 : index
    %c0_394 = arith.constant 0 : index
    %c0_395 = arith.constant 0 : index
    %403 = vector.load %arg2[%c3_393, %c0_394, %c0_395] : memref<9x48x3xf32, #tpu.memory_space<vmem>>, vector<1x48x3xf32>
    %404 = vector.shape_cast %403 : vector<1x48x3xf32> to vector<48x3xf32>
    %cst_396 = arith.constant dense<0.000000e+00> : vector<48x256xf32>
    %405 = tpu.matmul %404, %402, %cst_396 {dimension_numbers = #tpu.dot_dimension_numbers<[1], [0], [0], [1], [0, 0, 1, 1], [], []>} : vector<48x3xf32>, vector<3x256xf32>, vector<48x256xf32> -> vector<48x256xf32>
    %406 = arith.addf %401, %405 : vector<48x256xf32>
    %c0_397 = arith.constant 0 : index
    %c3200_398 = arith.constant 3200 : index
    %407 = vector.load %arg7[%c0_397, %c3200_398] : memref<3x4096xf32, #tpu.memory_space<vmem>>, vector<3x256xf32>
    %c4_399 = arith.constant 4 : index
    %c0_400 = arith.constant 0 : index
    %c0_401 = arith.constant 0 : index
    %408 = vector.load %arg2[%c4_399, %c0_400, %c0_401] : memref<9x48x3xf32, #tpu.memory_space<vmem>>, vector<1x48x3xf32>
    %409 = vector.shape_cast %408 : vector<1x48x3xf32> to vector<48x3xf32>
    %cst_402 = arith.constant dense<0.000000e+00> : vector<48x256xf32>
    %410 = tpu.matmul %409, %407, %cst_402 {dimension_numbers = #tpu.dot_dimension_numbers<[1], [0], [0], [1], [0, 0, 1, 1], [], []>} : vector<48x3xf32>, vector<3x256xf32>, vector<48x256xf32> -> vector<48x256xf32>
    %411 = arith.addf %406, %410 : vector<48x256xf32>
    %c0_403 = arith.constant 0 : index
    %c3216_404 = arith.constant 3216 : index
    %412 = vector.load %arg7[%c0_403, %c3216_404] : memref<3x4096xf32, #tpu.memory_space<vmem>>, vector<3x256xf32>
    %c5_405 = arith.constant 5 : index
    %c0_406 = arith.constant 0 : index
    %c0_407 = arith.constant 0 : index
    %413 = vector.load %arg2[%c5_405, %c0_406, %c0_407] : memref<9x48x3xf32, #tpu.memory_space<vmem>>, vector<1x48x3xf32>
    %414 = vector.shape_cast %413 : vector<1x48x3xf32> to vector<48x3xf32>
    %cst_408 = arith.constant dense<0.000000e+00> : vector<48x256xf32>
    %415 = tpu.matmul %414, %412, %cst_408 {dimension_numbers = #tpu.dot_dimension_numbers<[1], [0], [0], [1], [0, 0, 1, 1], [], []>} : vector<48x3xf32>, vector<3x256xf32>, vector<48x256xf32> -> vector<48x256xf32>
    %416 = arith.addf %411, %415 : vector<48x256xf32>
    %c0_409 = arith.constant 0 : index
    %c3696 = arith.constant 3696 : index
    %417 = vector.load %arg7[%c0_409, %c3696] : memref<3x4096xf32, #tpu.memory_space<vmem>>, vector<3x256xf32>
    %c6_410 = arith.constant 6 : index
    %c0_411 = arith.constant 0 : index
    %c0_412 = arith.constant 0 : index
    %418 = vector.load %arg2[%c6_410, %c0_411, %c0_412] : memref<9x48x3xf32, #tpu.memory_space<vmem>>, vector<1x48x3xf32>
    %419 = vector.shape_cast %418 : vector<1x48x3xf32> to vector<48x3xf32>
    %cst_413 = arith.constant dense<0.000000e+00> : vector<48x256xf32>
    %420 = tpu.matmul %419, %417, %cst_413 {dimension_numbers = #tpu.dot_dimension_numbers<[1], [0], [0], [1], [0, 0, 1, 1], [], []>} : vector<48x3xf32>, vector<3x256xf32>, vector<48x256xf32> -> vector<48x256xf32>
    %421 = arith.addf %416, %420 : vector<48x256xf32>
    %c0_414 = arith.constant 0 : index
    %c3712_415 = arith.constant 3712 : index
    %422 = vector.load %arg7[%c0_414, %c3712_415] : memref<3x4096xf32, #tpu.memory_space<vmem>>, vector<3x256xf32>
    %c7_416 = arith.constant 7 : index
    %c0_417 = arith.constant 0 : index
    %c0_418 = arith.constant 0 : index
    %423 = vector.load %arg2[%c7_416, %c0_417, %c0_418] : memref<9x48x3xf32, #tpu.memory_space<vmem>>, vector<1x48x3xf32>
    %424 = vector.shape_cast %423 : vector<1x48x3xf32> to vector<48x3xf32>
    %cst_419 = arith.constant dense<0.000000e+00> : vector<48x256xf32>
    %425 = tpu.matmul %424, %422, %cst_419 {dimension_numbers = #tpu.dot_dimension_numbers<[1], [0], [0], [1], [0, 0, 1, 1], [], []>} : vector<48x3xf32>, vector<3x256xf32>, vector<48x256xf32> -> vector<48x256xf32>
    %426 = arith.addf %421, %425 : vector<48x256xf32>
    %c0_420 = arith.constant 0 : index
    %c3728 = arith.constant 3728 : index
    %427 = vector.load %arg7[%c0_420, %c3728] : memref<3x4096xf32, #tpu.memory_space<vmem>>, vector<3x256xf32>
    %c8_421 = arith.constant 8 : index
    %c0_422 = arith.constant 0 : index
    %c0_423 = arith.constant 0 : index
    %428 = vector.load %arg2[%c8_421, %c0_422, %c0_423] : memref<9x48x3xf32, #tpu.memory_space<vmem>>, vector<1x48x3xf32>
    %429 = vector.shape_cast %428 : vector<1x48x3xf32> to vector<48x3xf32>
    %cst_424 = arith.constant dense<0.000000e+00> : vector<48x256xf32>
    %430 = tpu.matmul %429, %427, %cst_424 {dimension_numbers = #tpu.dot_dimension_numbers<[1], [0], [0], [1], [0, 0, 1, 1], [], []>} : vector<48x3xf32>, vector<3x256xf32>, vector<48x256xf32> -> vector<48x256xf32>
    %431 = arith.addf %426, %430 : vector<48x256xf32>
    %432 = vector.extract_strided_slice %431 {offsets = [0, 0], sizes = [16, 256], strides = [1, 1]} : vector<48x256xf32> to vector<16x256xf32>
    %433 = vector.extract_strided_slice %431 {offsets = [16, 0], sizes = [16, 256], strides = [1, 1]} : vector<48x256xf32> to vector<16x256xf32>
    %434 = vector.extract_strided_slice %431 {offsets = [32, 0], sizes = [16, 256], strides = [1, 1]} : vector<48x256xf32> to vector<16x256xf32>
    %c1_i32_425 = arith.constant 1 : i32
    %435 = tpu.dynamic_rotate %432 by %c1_i32_425 dim 1 : vector<16x256xf32>, i32 -> vector<16x256xf32>
    %cst_426 = arith.constant 0.000000e+00 : f32
    %436 = vector.shape_cast %4 : vector<1x256xi1> to vector<1x256xi1>
    %437 = vector.broadcast %436 : vector<1x256xi1> to vector<16x256xi1>
    %438 = vector.broadcast %cst_426 : f32 to vector<16x256xf32>
    %439 = arith.select %437, %435, %438 : vector<16x256xi1>, vector<16x256xf32>
    %440 = arith.addf %433, %439 : vector<16x256xf32>
    %c255_i32_427 = arith.constant 255 : i32
    %441 = tpu.dynamic_rotate %434 by %c255_i32_427 dim 1 : vector<16x256xf32>, i32 -> vector<16x256xf32>
    %cst_428 = arith.constant 0.000000e+00 : f32
    %442 = vector.shape_cast %6 : vector<1x256xi1> to vector<1x256xi1>
    %443 = vector.broadcast %442 : vector<1x256xi1> to vector<16x256xi1>
    %444 = vector.broadcast %cst_428 : f32 to vector<16x256xf32>
    %445 = arith.select %443, %441, %444 : vector<16x256xi1>, vector<16x256xf32>
    %446 = arith.addf %440, %445 : vector<16x256xf32>
    %447 = vector.broadcast %67 : vector<16x1xf32> to vector<16x256xf32>
    %448 = arith.addf %446, %447 : vector<16x256xf32>
    %cst_429 = arith.constant 0.000000e+00 : f32
    %449 = vector.broadcast %cst_429 : f32 to vector<16x256xf32>
    %450 = arith.maximumf %448, %449 : vector<16x256xf32>
    %c0_430 = arith.constant 0 : index
    %c3200_431 = arith.constant 3200 : index
    %451 = vector.load %arg8[%c0_430, %c3200_431] : memref<16x4096xf32, #tpu.memory_space<vmem>>, vector<16x256xf32>
    tpu.vector_store %arg8[%c0_430, %c3200_431], %450 {strides = array<i32>} : memref<16x4096xf32, #tpu.memory_space<vmem>>, vector<16x256xf32>,
    %c0_432 = arith.constant 0 : index
    %c0_433 = arith.constant 0 : index
    %452 = vector.load %arg5[%c0_432, %c0_433] : memref<8x1xf32, #tpu.memory_space<vmem>>, vector<8x1xf32>
    %c0_434 = arith.constant 0 : index
    %c112_435 = arith.constant 112 : index
    %453 = vector.load %arg8[%c0_434, %c112_435] : memref<16x4096xf32, #tpu.memory_space<vmem>>, vector<16x256xf32>
    %c0_436 = arith.constant 0 : index
    %c0_437 = arith.constant 0 : index
    %c0_438 = arith.constant 0 : index
    %454 = vector.load %arg4[%c0_436, %c0_437, %c0_438] : memref<9x24x16xf32, #tpu.memory_space<vmem>>, vector<1x24x16xf32>
    %455 = vector.shape_cast %454 : vector<1x24x16xf32> to vector<24x16xf32>
    %cst_439 = arith.constant dense<0.000000e+00> : vector<24x256xf32>
    %456 = tpu.matmul %455, %453, %cst_439 {dimension_numbers = #tpu.dot_dimension_numbers<[1], [0], [0], [1], [0, 0, 1, 1], [], []>} : vector<24x16xf32>, vector<16x256xf32>, vector<24x256xf32> -> vector<24x256xf32>
    %c0_440 = arith.constant 0 : index
    %c128_441 = arith.constant 128 : index
    %457 = vector.load %arg8[%c0_440, %c128_441] : memref<16x4096xf32, #tpu.memory_space<vmem>>, vector<16x256xf32>
    %c1_442 = arith.constant 1 : index
    %c0_443 = arith.constant 0 : index
    %c0_444 = arith.constant 0 : index
    %458 = vector.load %arg4[%c1_442, %c0_443, %c0_444] : memref<9x24x16xf32, #tpu.memory_space<vmem>>, vector<1x24x16xf32>
    %459 = vector.shape_cast %458 : vector<1x24x16xf32> to vector<24x16xf32>
    %cst_445 = arith.constant dense<0.000000e+00> : vector<24x256xf32>
    %460 = tpu.matmul %459, %457, %cst_445 {dimension_numbers = #tpu.dot_dimension_numbers<[1], [0], [0], [1], [0, 0, 1, 1], [], []>} : vector<24x16xf32>, vector<16x256xf32>, vector<24x256xf32> -> vector<24x256xf32>
    %461 = arith.addf %456, %460 : vector<24x256xf32>
    %c0_446 = arith.constant 0 : index
    %c144_447 = arith.constant 144 : index
    %462 = vector.load %arg8[%c0_446, %c144_447] : memref<16x4096xf32, #tpu.memory_space<vmem>>, vector<16x256xf32>
    %c2_448 = arith.constant 2 : index
    %c0_449 = arith.constant 0 : index
    %c0_450 = arith.constant 0 : index
    %463 = vector.load %arg4[%c2_448, %c0_449, %c0_450] : memref<9x24x16xf32, #tpu.memory_space<vmem>>, vector<1x24x16xf32>
    %464 = vector.shape_cast %463 : vector<1x24x16xf32> to vector<24x16xf32>
    %cst_451 = arith.constant dense<0.000000e+00> : vector<24x256xf32>
    %465 = tpu.matmul %464, %462, %cst_451 {dimension_numbers = #tpu.dot_dimension_numbers<[1], [0], [0], [1], [0, 0, 1, 1], [], []>} : vector<24x16xf32>, vector<16x256xf32>, vector<24x256xf32> -> vector<24x256xf32>
    %466 = arith.addf %461, %465 : vector<24x256xf32>
    %c0_452 = arith.constant 0 : index
    %c624_453 = arith.constant 624 : index
    %467 = vector.load %arg8[%c0_452, %c624_453] : memref<16x4096xf32, #tpu.memory_space<vmem>>, vector<16x256xf32>
    %c3_454 = arith.constant 3 : index
    %c0_455 = arith.constant 0 : index
    %c0_456 = arith.constant 0 : index
    %468 = vector.load %arg4[%c3_454, %c0_455, %c0_456] : memref<9x24x16xf32, #tpu.memory_space<vmem>>, vector<1x24x16xf32>
    %469 = vector.shape_cast %468 : vector<1x24x16xf32> to vector<24x16xf32>
    %cst_457 = arith.constant dense<0.000000e+00> : vector<24x256xf32>
    %470 = tpu.matmul %469, %467, %cst_457 {dimension_numbers = #tpu.dot_dimension_numbers<[1], [0], [0], [1], [0, 0, 1, 1], [], []>} : vector<24x16xf32>, vector<16x256xf32>, vector<24x256xf32> -> vector<24x256xf32>
    %471 = arith.addf %466, %470 : vector<24x256xf32>
    %c0_458 = arith.constant 0 : index
    %c640_459 = arith.constant 640 : index
    %472 = vector.load %arg8[%c0_458, %c640_459] : memref<16x4096xf32, #tpu.memory_space<vmem>>, vector<16x256xf32>
    %c4_460 = arith.constant 4 : index
    %c0_461 = arith.constant 0 : index
    %c0_462 = arith.constant 0 : index
    %473 = vector.load %arg4[%c4_460, %c0_461, %c0_462] : memref<9x24x16xf32, #tpu.memory_space<vmem>>, vector<1x24x16xf32>
    %474 = vector.shape_cast %473 : vector<1x24x16xf32> to vector<24x16xf32>
    %cst_463 = arith.constant dense<0.000000e+00> : vector<24x256xf32>
    %475 = tpu.matmul %474, %472, %cst_463 {dimension_numbers = #tpu.dot_dimension_numbers<[1], [0], [0], [1], [0, 0, 1, 1], [], []>} : vector<24x16xf32>, vector<16x256xf32>, vector<24x256xf32> -> vector<24x256xf32>
    %476 = arith.addf %471, %475 : vector<24x256xf32>
    %c0_464 = arith.constant 0 : index
    %c656_465 = arith.constant 656 : index
    %477 = vector.load %arg8[%c0_464, %c656_465] : memref<16x4096xf32, #tpu.memory_space<vmem>>, vector<16x256xf32>
    %c5_466 = arith.constant 5 : index
    %c0_467 = arith.constant 0 : index
    %c0_468 = arith.constant 0 : index
    %478 = vector.load %arg4[%c5_466, %c0_467, %c0_468] : memref<9x24x16xf32, #tpu.memory_space<vmem>>, vector<1x24x16xf32>
    %479 = vector.shape_cast %478 : vector<1x24x16xf32> to vector<24x16xf32>
    %cst_469 = arith.constant dense<0.000000e+00> : vector<24x256xf32>
    %480 = tpu.matmul %479, %477, %cst_469 {dimension_numbers = #tpu.dot_dimension_numbers<[1], [0], [0], [1], [0, 0, 1, 1], [], []>} : vector<24x16xf32>, vector<16x256xf32>, vector<24x256xf32> -> vector<24x256xf32>
    %481 = arith.addf %476, %480 : vector<24x256xf32>
    %c0_470 = arith.constant 0 : index
    %c1136_471 = arith.constant 1136 : index
    %482 = vector.load %arg8[%c0_470, %c1136_471] : memref<16x4096xf32, #tpu.memory_space<vmem>>, vector<16x256xf32>
    %c6_472 = arith.constant 6 : index
    %c0_473 = arith.constant 0 : index
    %c0_474 = arith.constant 0 : index
    %483 = vector.load %arg4[%c6_472, %c0_473, %c0_474] : memref<9x24x16xf32, #tpu.memory_space<vmem>>, vector<1x24x16xf32>
    %484 = vector.shape_cast %483 : vector<1x24x16xf32> to vector<24x16xf32>
    %cst_475 = arith.constant dense<0.000000e+00> : vector<24x256xf32>
    %485 = tpu.matmul %484, %482, %cst_475 {dimension_numbers = #tpu.dot_dimension_numbers<[1], [0], [0], [1], [0, 0, 1, 1], [], []>} : vector<24x16xf32>, vector<16x256xf32>, vector<24x256xf32> -> vector<24x256xf32>
    %486 = arith.addf %481, %485 : vector<24x256xf32>
    %c0_476 = arith.constant 0 : index
    %c1152_477 = arith.constant 1152 : index
    %487 = vector.load %arg8[%c0_476, %c1152_477] : memref<16x4096xf32, #tpu.memory_space<vmem>>, vector<16x256xf32>
    %c7_478 = arith.constant 7 : index
    %c0_479 = arith.constant 0 : index
    %c0_480 = arith.constant 0 : index
    %488 = vector.load %arg4[%c7_478, %c0_479, %c0_480] : memref<9x24x16xf32, #tpu.memory_space<vmem>>, vector<1x24x16xf32>
    %489 = vector.shape_cast %488 : vector<1x24x16xf32> to vector<24x16xf32>
    %cst_481 = arith.constant dense<0.000000e+00> : vector<24x256xf32>
    %490 = tpu.matmul %489, %487, %cst_481 {dimension_numbers = #tpu.dot_dimension_numbers<[1], [0], [0], [1], [0, 0, 1, 1], [], []>} : vector<24x16xf32>, vector<16x256xf32>, vector<24x256xf32> -> vector<24x256xf32>
    %491 = arith.addf %486, %490 : vector<24x256xf32>
    %c0_482 = arith.constant 0 : index
    %c1168_483 = arith.constant 1168 : index
    %492 = vector.load %arg8[%c0_482, %c1168_483] : memref<16x4096xf32, #tpu.memory_space<vmem>>, vector<16x256xf32>
    %c8_484 = arith.constant 8 : index
    %c0_485 = arith.constant 0 : index
    %c0_486 = arith.constant 0 : index
    %493 = vector.load %arg4[%c8_484, %c0_485, %c0_486] : memref<9x24x16xf32, #tpu.memory_space<vmem>>, vector<1x24x16xf32>
    %494 = vector.shape_cast %493 : vector<1x24x16xf32> to vector<24x16xf32>
    %cst_487 = arith.constant dense<0.000000e+00> : vector<24x256xf32>
    %495 = tpu.matmul %494, %492, %cst_487 {dimension_numbers = #tpu.dot_dimension_numbers<[1], [0], [0], [1], [0, 0, 1, 1], [], []>} : vector<24x16xf32>, vector<16x256xf32>, vector<24x256xf32> -> vector<24x256xf32>
    %496 = arith.addf %491, %495 : vector<24x256xf32>
    %497 = vector.extract_strided_slice %496 {offsets = [0, 0], sizes = [8, 256], strides = [1, 1]} : vector<24x256xf32> to vector<8x256xf32>
    %498 = vector.extract_strided_slice %496 {offsets = [8, 0], sizes = [8, 256], strides = [1, 1]} : vector<24x256xf32> to vector<8x256xf32>
    %499 = vector.extract_strided_slice %496 {offsets = [16, 0], sizes = [8, 256], strides = [1, 1]} : vector<24x256xf32> to vector<8x256xf32>
    %c1_i32_488 = arith.constant 1 : i32
    %500 = tpu.dynamic_rotate %497 by %c1_i32_488 dim 1 : vector<8x256xf32>, i32 -> vector<8x256xf32>
    %cst_489 = arith.constant 0.000000e+00 : f32
    %501 = vector.shape_cast %4 : vector<1x256xi1> to vector<1x256xi1>
    %502 = vector.broadcast %501 : vector<1x256xi1> to vector<8x256xi1>
    %503 = vector.broadcast %cst_489 : f32 to vector<8x256xf32>
    %504 = arith.select %502, %500, %503 : vector<8x256xi1>, vector<8x256xf32>
    %505 = arith.addf %498, %504 : vector<8x256xf32>
    %c255_i32_490 = arith.constant 255 : i32
    %506 = tpu.dynamic_rotate %499 by %c255_i32_490 dim 1 : vector<8x256xf32>, i32 -> vector<8x256xf32>
    %cst_491 = arith.constant 0.000000e+00 : f32
    %507 = vector.shape_cast %6 : vector<1x256xi1> to vector<1x256xi1>
    %508 = vector.broadcast %507 : vector<1x256xi1> to vector<8x256xi1>
    %509 = vector.broadcast %cst_491 : f32 to vector<8x256xf32>
    %510 = arith.select %508, %506, %509 : vector<8x256xi1>, vector<8x256xf32>
    %511 = arith.addf %505, %510 : vector<8x256xf32>
    %512 = vector.broadcast %452 : vector<8x1xf32> to vector<8x256xf32>
    %513 = arith.addf %511, %512 : vector<8x256xf32>
    %cst_492 = arith.constant 0.000000e+00 : f32
    %514 = vector.broadcast %cst_492 : f32 to vector<8x256xf32>
    %515 = arith.maximumf %513, %514 : vector<8x256xf32>
    %c0_493 = arith.constant 0 : index
    %c0_494 = arith.constant 0 : index
    %c0_495 = arith.constant 0 : index
    %c0_496 = arith.constant 0 : index
    %516 = vector.load %arg6[%c0_493, %c0_494, %c0_495, %c0_496] : memref<1x6x8x256xf32, #tpu.memory_space<vmem>>, vector<1x1x8x256xf32>
    %517 = vector.shape_cast %516 : vector<1x1x8x256xf32> to vector<8x256xf32>
    %518 = vector.shape_cast %515 : vector<8x256xf32> to vector<1x1x8x256xf32>
    tpu.vector_store %arg6[%c0_493, %c0_494, %c0_495, %c0_496], %518 {strides = array<i32>} : memref<1x6x8x256xf32, #tpu.memory_space<vmem>>, vector<1x1x8x256xf32>,
    %c0_497 = arith.constant 0 : index
    %c624_498 = arith.constant 624 : index
    %519 = vector.load %arg8[%c0_497, %c624_498] : memref<16x4096xf32, #tpu.memory_space<vmem>>, vector<16x256xf32>
    %c0_499 = arith.constant 0 : index
    %c0_500 = arith.constant 0 : index
    %c0_501 = arith.constant 0 : index
    %520 = vector.load %arg4[%c0_499, %c0_500, %c0_501] : memref<9x24x16xf32, #tpu.memory_space<vmem>>, vector<1x24x16xf32>
    %521 = vector.shape_cast %520 : vector<1x24x16xf32> to vector<24x16xf32>
    %cst_502 = arith.constant dense<0.000000e+00> : vector<24x256xf32>
    %522 = tpu.matmul %521, %519, %cst_502 {dimension_numbers = #tpu.dot_dimension_numbers<[1], [0], [0], [1], [0, 0, 1, 1], [], []>} : vector<24x16xf32>, vector<16x256xf32>, vector<24x256xf32> -> vector<24x256xf32>
    %c0_503 = arith.constant 0 : index
    %c640_504 = arith.constant 640 : index
    %523 = vector.load %arg8[%c0_503, %c640_504] : memref<16x4096xf32, #tpu.memory_space<vmem>>, vector<16x256xf32>
    %c1_505 = arith.constant 1 : index
    %c0_506 = arith.constant 0 : index
    %c0_507 = arith.constant 0 : index
    %524 = vector.load %arg4[%c1_505, %c0_506, %c0_507] : memref<9x24x16xf32, #tpu.memory_space<vmem>>, vector<1x24x16xf32>
    %525 = vector.shape_cast %524 : vector<1x24x16xf32> to vector<24x16xf32>
    %cst_508 = arith.constant dense<0.000000e+00> : vector<24x256xf32>
    %526 = tpu.matmul %525, %523, %cst_508 {dimension_numbers = #tpu.dot_dimension_numbers<[1], [0], [0], [1], [0, 0, 1, 1], [], []>} : vector<24x16xf32>, vector<16x256xf32>, vector<24x256xf32> -> vector<24x256xf32>
    %527 = arith.addf %522, %526 : vector<24x256xf32>
    %c0_509 = arith.constant 0 : index
    %c656_510 = arith.constant 656 : index
    %528 = vector.load %arg8[%c0_509, %c656_510] : memref<16x4096xf32, #tpu.memory_space<vmem>>, vector<16x256xf32>
    %c2_511 = arith.constant 2 : index
    %c0_512 = arith.constant 0 : index
    %c0_513 = arith.constant 0 : index
    %529 = vector.load %arg4[%c2_511, %c0_512, %c0_513] : memref<9x24x16xf32, #tpu.memory_space<vmem>>, vector<1x24x16xf32>
    %530 = vector.shape_cast %529 : vector<1x24x16xf32> to vector<24x16xf32>
    %cst_514 = arith.constant dense<0.000000e+00> : vector<24x256xf32>
    %531 = tpu.matmul %530, %528, %cst_514 {dimension_numbers = #tpu.dot_dimension_numbers<[1], [0], [0], [1], [0, 0, 1, 1], [], []>} : vector<24x16xf32>, vector<16x256xf32>, vector<24x256xf32> -> vector<24x256xf32>
    %532 = arith.addf %527, %531 : vector<24x256xf32>
    %c0_515 = arith.constant 0 : index
    %c1136_516 = arith.constant 1136 : index
    %533 = vector.load %arg8[%c0_515, %c1136_516] : memref<16x4096xf32, #tpu.memory_space<vmem>>, vector<16x256xf32>
    %c3_517 = arith.constant 3 : index
    %c0_518 = arith.constant 0 : index
    %c0_519 = arith.constant 0 : index
    %534 = vector.load %arg4[%c3_517, %c0_518, %c0_519] : memref<9x24x16xf32, #tpu.memory_space<vmem>>, vector<1x24x16xf32>
    %535 = vector.shape_cast %534 : vector<1x24x16xf32> to vector<24x16xf32>
    %cst_520 = arith.constant dense<0.000000e+00> : vector<24x256xf32>
    %536 = tpu.matmul %535, %533, %cst_520 {dimension_numbers = #tpu.dot_dimension_numbers<[1], [0], [0], [1], [0, 0, 1, 1], [], []>} : vector<24x16xf32>, vector<16x256xf32>, vector<24x256xf32> -> vector<24x256xf32>
    %537 = arith.addf %532, %536 : vector<24x256xf32>
    %c0_521 = arith.constant 0 : index
    %c1152_522 = arith.constant 1152 : index
    %538 = vector.load %arg8[%c0_521, %c1152_522] : memref<16x4096xf32, #tpu.memory_space<vmem>>, vector<16x256xf32>
    %c4_523 = arith.constant 4 : index
    %c0_524 = arith.constant 0 : index
    %c0_525 = arith.constant 0 : index
    %539 = vector.load %arg4[%c4_523, %c0_524, %c0_525] : memref<9x24x16xf32, #tpu.memory_space<vmem>>, vector<1x24x16xf32>
    %540 = vector.shape_cast %539 : vector<1x24x16xf32> to vector<24x16xf32>
    %cst_526 = arith.constant dense<0.000000e+00> : vector<24x256xf32>
    %541 = tpu.matmul %540, %538, %cst_526 {dimension_numbers = #tpu.dot_dimension_numbers<[1], [0], [0], [1], [0, 0, 1, 1], [], []>} : vector<24x16xf32>, vector<16x256xf32>, vector<24x256xf32> -> vector<24x256xf32>
    %542 = arith.addf %537, %541 : vector<24x256xf32>
    %c0_527 = arith.constant 0 : index
    %c1168_528 = arith.constant 1168 : index
    %543 = vector.load %arg8[%c0_527, %c1168_528] : memref<16x4096xf32, #tpu.memory_space<vmem>>, vector<16x256xf32>
    %c5_529 = arith.constant 5 : index
    %c0_530 = arith.constant 0 : index
    %c0_531 = arith.constant 0 : index
    %544 = vector.load %arg4[%c5_529, %c0_530, %c0_531] : memref<9x24x16xf32, #tpu.memory_space<vmem>>, vector<1x24x16xf32>
    %545 = vector.shape_cast %544 : vector<1x24x16xf32> to vector<24x16xf32>
    %cst_532 = arith.constant dense<0.000000e+00> : vector<24x256xf32>
    %546 = tpu.matmul %545, %543, %cst_532 {dimension_numbers = #tpu.dot_dimension_numbers<[1], [0], [0], [1], [0, 0, 1, 1], [], []>} : vector<24x16xf32>, vector<16x256xf32>, vector<24x256xf32> -> vector<24x256xf32>
    %547 = arith.addf %542, %546 : vector<24x256xf32>
    %c0_533 = arith.constant 0 : index
    %c1648_534 = arith.constant 1648 : index
    %548 = vector.load %arg8[%c0_533, %c1648_534] : memref<16x4096xf32, #tpu.memory_space<vmem>>, vector<16x256xf32>
    %c6_535 = arith.constant 6 : index
    %c0_536 = arith.constant 0 : index
    %c0_537 = arith.constant 0 : index
    %549 = vector.load %arg4[%c6_535, %c0_536, %c0_537] : memref<9x24x16xf32, #tpu.memory_space<vmem>>, vector<1x24x16xf32>
    %550 = vector.shape_cast %549 : vector<1x24x16xf32> to vector<24x16xf32>
    %cst_538 = arith.constant dense<0.000000e+00> : vector<24x256xf32>
    %551 = tpu.matmul %550, %548, %cst_538 {dimension_numbers = #tpu.dot_dimension_numbers<[1], [0], [0], [1], [0, 0, 1, 1], [], []>} : vector<24x16xf32>, vector<16x256xf32>, vector<24x256xf32> -> vector<24x256xf32>
    %552 = arith.addf %547, %551 : vector<24x256xf32>
    %c0_539 = arith.constant 0 : index
    %c1664_540 = arith.constant 1664 : index
    %553 = vector.load %arg8[%c0_539, %c1664_540] : memref<16x4096xf32, #tpu.memory_space<vmem>>, vector<16x256xf32>
    %c7_541 = arith.constant 7 : index
    %c0_542 = arith.constant 0 : index
    %c0_543 = arith.constant 0 : index
    %554 = vector.load %arg4[%c7_541, %c0_542, %c0_543] : memref<9x24x16xf32, #tpu.memory_space<vmem>>, vector<1x24x16xf32>
    %555 = vector.shape_cast %554 : vector<1x24x16xf32> to vector<24x16xf32>
    %cst_544 = arith.constant dense<0.000000e+00> : vector<24x256xf32>
    %556 = tpu.matmul %555, %553, %cst_544 {dimension_numbers = #tpu.dot_dimension_numbers<[1], [0], [0], [1], [0, 0, 1, 1], [], []>} : vector<24x16xf32>, vector<16x256xf32>, vector<24x256xf32> -> vector<24x256xf32>
    %557 = arith.addf %552, %556 : vector<24x256xf32>
    %c0_545 = arith.constant 0 : index
    %c1680_546 = arith.constant 1680 : index
    %558 = vector.load %arg8[%c0_545, %c1680_546] : memref<16x4096xf32, #tpu.memory_space<vmem>>, vector<16x256xf32>
    %c8_547 = arith.constant 8 : index
    %c0_548 = arith.constant 0 : index
    %c0_549 = arith.constant 0 : index
    %559 = vector.load %arg4[%c8_547, %c0_548, %c0_549] : memref<9x24x16xf32, #tpu.memory_space<vmem>>, vector<1x24x16xf32>
    %560 = vector.shape_cast %559 : vector<1x24x16xf32> to vector<24x16xf32>
    %cst_550 = arith.constant dense<0.000000e+00> : vector<24x256xf32>
    %561 = tpu.matmul %560, %558, %cst_550 {dimension_numbers = #tpu.dot_dimension_numbers<[1], [0], [0], [1], [0, 0, 1, 1], [], []>} : vector<24x16xf32>, vector<16x256xf32>, vector<24x256xf32> -> vector<24x256xf32>
    %562 = arith.addf %557, %561 : vector<24x256xf32>
    %563 = vector.extract_strided_slice %562 {offsets = [0, 0], sizes = [8, 256], strides = [1, 1]} : vector<24x256xf32> to vector<8x256xf32>
    %564 = vector.extract_strided_slice %562 {offsets = [8, 0], sizes = [8, 256], strides = [1, 1]} : vector<24x256xf32> to vector<8x256xf32>
    %565 = vector.extract_strided_slice %562 {offsets = [16, 0], sizes = [8, 256], strides = [1, 1]} : vector<24x256xf32> to vector<8x256xf32>
    %c1_i32_551 = arith.constant 1 : i32
    %566 = tpu.dynamic_rotate %563 by %c1_i32_551 dim 1 : vector<8x256xf32>, i32 -> vector<8x256xf32>
    %cst_552 = arith.constant 0.000000e+00 : f32
    %567 = vector.shape_cast %4 : vector<1x256xi1> to vector<1x256xi1>
    %568 = vector.broadcast %567 : vector<1x256xi1> to vector<8x256xi1>
    %569 = vector.broadcast %cst_552 : f32 to vector<8x256xf32>
    %570 = arith.select %568, %566, %569 : vector<8x256xi1>, vector<8x256xf32>
    %571 = arith.addf %564, %570 : vector<8x256xf32>
    %c255_i32_553 = arith.constant 255 : i32
    %572 = tpu.dynamic_rotate %565 by %c255_i32_553 dim 1 : vector<8x256xf32>, i32 -> vector<8x256xf32>
    %cst_554 = arith.constant 0.000000e+00 : f32
    %573 = vector.shape_cast %6 : vector<1x256xi1> to vector<1x256xi1>
    %574 = vector.broadcast %573 : vector<1x256xi1> to vector<8x256xi1>
    %575 = vector.broadcast %cst_554 : f32 to vector<8x256xf32>
    %576 = arith.select %574, %572, %575 : vector<8x256xi1>, vector<8x256xf32>
    %577 = arith.addf %571, %576 : vector<8x256xf32>
    %578 = vector.broadcast %452 : vector<8x1xf32> to vector<8x256xf32>
    %579 = arith.addf %577, %578 : vector<8x256xf32>
    %cst_555 = arith.constant 0.000000e+00 : f32
    %580 = vector.broadcast %cst_555 : f32 to vector<8x256xf32>
    %581 = arith.maximumf %579, %580 : vector<8x256xf32>
    %c0_556 = arith.constant 0 : index
    %c1_557 = arith.constant 1 : index
    %c0_558 = arith.constant 0 : index
    %c0_559 = arith.constant 0 : index
    %582 = vector.load %arg6[%c0_556, %c1_557, %c0_558, %c0_559] : memref<1x6x8x256xf32, #tpu.memory_space<vmem>>, vector<1x1x8x256xf32>
    %583 = vector.shape_cast %582 : vector<1x1x8x256xf32> to vector<8x256xf32>
    %584 = vector.shape_cast %581 : vector<8x256xf32> to vector<1x1x8x256xf32>
    tpu.vector_store %arg6[%c0_556, %c1_557, %c0_558, %c0_559], %584 {strides = array<i32>} : memref<1x6x8x256xf32, #tpu.memory_space<vmem>>, vector<1x1x8x256xf32>,
    %c0_560 = arith.constant 0 : index
    %c1136_561 = arith.constant 1136 : index
    %585 = vector.load %arg8[%c0_560, %c1136_561] : memref<16x4096xf32, #tpu.memory_space<vmem>>, vector<16x256xf32>
    %c0_562 = arith.constant 0 : index
    %c0_563 = arith.constant 0 : index
    %c0_564 = arith.constant 0 : index
    %586 = vector.load %arg4[%c0_562, %c0_563, %c0_564] : memref<9x24x16xf32, #tpu.memory_space<vmem>>, vector<1x24x16xf32>
    %587 = vector.shape_cast %586 : vector<1x24x16xf32> to vector<24x16xf32>
    %cst_565 = arith.constant dense<0.000000e+00> : vector<24x256xf32>
    %588 = tpu.matmul %587, %585, %cst_565 {dimension_numbers = #tpu.dot_dimension_numbers<[1], [0], [0], [1], [0, 0, 1, 1], [], []>} : vector<24x16xf32>, vector<16x256xf32>, vector<24x256xf32> -> vector<24x256xf32>
    %c0_566 = arith.constant 0 : index
    %c1152_567 = arith.constant 1152 : index
    %589 = vector.load %arg8[%c0_566, %c1152_567] : memref<16x4096xf32, #tpu.memory_space<vmem>>, vector<16x256xf32>
    %c1_568 = arith.constant 1 : index
    %c0_569 = arith.constant 0 : index
    %c0_570 = arith.constant 0 : index
    %590 = vector.load %arg4[%c1_568, %c0_569, %c0_570] : memref<9x24x16xf32, #tpu.memory_space<vmem>>, vector<1x24x16xf32>
    %591 = vector.shape_cast %590 : vector<1x24x16xf32> to vector<24x16xf32>
    %cst_571 = arith.constant dense<0.000000e+00> : vector<24x256xf32>
    %592 = tpu.matmul %591, %589, %cst_571 {dimension_numbers = #tpu.dot_dimension_numbers<[1], [0], [0], [1], [0, 0, 1, 1], [], []>} : vector<24x16xf32>, vector<16x256xf32>, vector<24x256xf32> -> vector<24x256xf32>
    %593 = arith.addf %588, %592 : vector<24x256xf32>
    %c0_572 = arith.constant 0 : index
    %c1168_573 = arith.constant 1168 : index
    %594 = vector.load %arg8[%c0_572, %c1168_573] : memref<16x4096xf32, #tpu.memory_space<vmem>>, vector<16x256xf32>
    %c2_574 = arith.constant 2 : index
    %c0_575 = arith.constant 0 : index
    %c0_576 = arith.constant 0 : index
    %595 = vector.load %arg4[%c2_574, %c0_575, %c0_576] : memref<9x24x16xf32, #tpu.memory_space<vmem>>, vector<1x24x16xf32>
    %596 = vector.shape_cast %595 : vector<1x24x16xf32> to vector<24x16xf32>
    %cst_577 = arith.constant dense<0.000000e+00> : vector<24x256xf32>
    %597 = tpu.matmul %596, %594, %cst_577 {dimension_numbers = #tpu.dot_dimension_numbers<[1], [0], [0], [1], [0, 0, 1, 1], [], []>} : vector<24x16xf32>, vector<16x256xf32>, vector<24x256xf32> -> vector<24x256xf32>
    %598 = arith.addf %593, %597 : vector<24x256xf32>
    %c0_578 = arith.constant 0 : index
    %c1648_579 = arith.constant 1648 : index
    %599 = vector.load %arg8[%c0_578, %c1648_579] : memref<16x4096xf32, #tpu.memory_space<vmem>>, vector<16x256xf32>
    %c3_580 = arith.constant 3 : index
    %c0_581 = arith.constant 0 : index
    %c0_582 = arith.constant 0 : index
    %600 = vector.load %arg4[%c3_580, %c0_581, %c0_582] : memref<9x24x16xf32, #tpu.memory_space<vmem>>, vector<1x24x16xf32>
    %601 = vector.shape_cast %600 : vector<1x24x16xf32> to vector<24x16xf32>
    %cst_583 = arith.constant dense<0.000000e+00> : vector<24x256xf32>
    %602 = tpu.matmul %601, %599, %cst_583 {dimension_numbers = #tpu.dot_dimension_numbers<[1], [0], [0], [1], [0, 0, 1, 1], [], []>} : vector<24x16xf32>, vector<16x256xf32>, vector<24x256xf32> -> vector<24x256xf32>
    %603 = arith.addf %598, %602 : vector<24x256xf32>
    %c0_584 = arith.constant 0 : index
    %c1664_585 = arith.constant 1664 : index
    %604 = vector.load %arg8[%c0_584, %c1664_585] : memref<16x4096xf32, #tpu.memory_space<vmem>>, vector<16x256xf32>
    %c4_586 = arith.constant 4 : index
    %c0_587 = arith.constant 0 : index
    %c0_588 = arith.constant 0 : index
    %605 = vector.load %arg4[%c4_586, %c0_587, %c0_588] : memref<9x24x16xf32, #tpu.memory_space<vmem>>, vector<1x24x16xf32>
    %606 = vector.shape_cast %605 : vector<1x24x16xf32> to vector<24x16xf32>
    %cst_589 = arith.constant dense<0.000000e+00> : vector<24x256xf32>
    %607 = tpu.matmul %606, %604, %cst_589 {dimension_numbers = #tpu.dot_dimension_numbers<[1], [0], [0], [1], [0, 0, 1, 1], [], []>} : vector<24x16xf32>, vector<16x256xf32>, vector<24x256xf32> -> vector<24x256xf32>
    %608 = arith.addf %603, %607 : vector<24x256xf32>
    %c0_590 = arith.constant 0 : index
    %c1680_591 = arith.constant 1680 : index
    %609 = vector.load %arg8[%c0_590, %c1680_591] : memref<16x4096xf32, #tpu.memory_space<vmem>>, vector<16x256xf32>
    %c5_592 = arith.constant 5 : index
    %c0_593 = arith.constant 0 : index
    %c0_594 = arith.constant 0 : index
    %610 = vector.load %arg4[%c5_592, %c0_593, %c0_594] : memref<9x24x16xf32, #tpu.memory_space<vmem>>, vector<1x24x16xf32>
    %611 = vector.shape_cast %610 : vector<1x24x16xf32> to vector<24x16xf32>
    %cst_595 = arith.constant dense<0.000000e+00> : vector<24x256xf32>
    %612 = tpu.matmul %611, %609, %cst_595 {dimension_numbers = #tpu.dot_dimension_numbers<[1], [0], [0], [1], [0, 0, 1, 1], [], []>} : vector<24x16xf32>, vector<16x256xf32>, vector<24x256xf32> -> vector<24x256xf32>
    %613 = arith.addf %608, %612 : vector<24x256xf32>
    %c0_596 = arith.constant 0 : index
    %c2160_597 = arith.constant 2160 : index
    %614 = vector.load %arg8[%c0_596, %c2160_597] : memref<16x4096xf32, #tpu.memory_space<vmem>>, vector<16x256xf32>
    %c6_598 = arith.constant 6 : index
    %c0_599 = arith.constant 0 : index
    %c0_600 = arith.constant 0 : index
    %615 = vector.load %arg4[%c6_598, %c0_599, %c0_600] : memref<9x24x16xf32, #tpu.memory_space<vmem>>, vector<1x24x16xf32>
    %616 = vector.shape_cast %615 : vector<1x24x16xf32> to vector<24x16xf32>
    %cst_601 = arith.constant dense<0.000000e+00> : vector<24x256xf32>
    %617 = tpu.matmul %616, %614, %cst_601 {dimension_numbers = #tpu.dot_dimension_numbers<[1], [0], [0], [1], [0, 0, 1, 1], [], []>} : vector<24x16xf32>, vector<16x256xf32>, vector<24x256xf32> -> vector<24x256xf32>
    %618 = arith.addf %613, %617 : vector<24x256xf32>
    %c0_602 = arith.constant 0 : index
    %c2176_603 = arith.constant 2176 : index
    %619 = vector.load %arg8[%c0_602, %c2176_603] : memref<16x4096xf32, #tpu.memory_space<vmem>>, vector<16x256xf32>
    %c7_604 = arith.constant 7 : index
    %c0_605 = arith.constant 0 : index
    %c0_606 = arith.constant 0 : index
    %620 = vector.load %arg4[%c7_604, %c0_605, %c0_606] : memref<9x24x16xf32, #tpu.memory_space<vmem>>, vector<1x24x16xf32>
    %621 = vector.shape_cast %620 : vector<1x24x16xf32> to vector<24x16xf32>
    %cst_607 = arith.constant dense<0.000000e+00> : vector<24x256xf32>
    %622 = tpu.matmul %621, %619, %cst_607 {dimension_numbers = #tpu.dot_dimension_numbers<[1], [0], [0], [1], [0, 0, 1, 1], [], []>} : vector<24x16xf32>, vector<16x256xf32>, vector<24x256xf32> -> vector<24x256xf32>
    %623 = arith.addf %618, %622 : vector<24x256xf32>
    %c0_608 = arith.constant 0 : index
    %c2192_609 = arith.constant 2192 : index
    %624 = vector.load %arg8[%c0_608, %c2192_609] : memref<16x4096xf32, #tpu.memory_space<vmem>>, vector<16x256xf32>
    %c8_610 = arith.constant 8 : index
    %c0_611 = arith.constant 0 : index
    %c0_612 = arith.constant 0 : index
    %625 = vector.load %arg4[%c8_610, %c0_611, %c0_612] : memref<9x24x16xf32, #tpu.memory_space<vmem>>, vector<1x24x16xf32>
    %626 = vector.shape_cast %625 : vector<1x24x16xf32> to vector<24x16xf32>
    %cst_613 = arith.constant dense<0.000000e+00> : vector<24x256xf32>
    %627 = tpu.matmul %626, %624, %cst_613 {dimension_numbers = #tpu.dot_dimension_numbers<[1], [0], [0], [1], [0, 0, 1, 1], [], []>} : vector<24x16xf32>, vector<16x256xf32>, vector<24x256xf32> -> vector<24x256xf32>
    %628 = arith.addf %623, %627 : vector<24x256xf32>
    %629 = vector.extract_strided_slice %628 {offsets = [0, 0], sizes = [8, 256], strides = [1, 1]} : vector<24x256xf32> to vector<8x256xf32>
    %630 = vector.extract_strided_slice %628 {offsets = [8, 0], sizes = [8, 256], strides = [1, 1]} : vector<24x256xf32> to vector<8x256xf32>
    %631 = vector.extract_strided_slice %628 {offsets = [16, 0], sizes = [8, 256], strides = [1, 1]} : vector<24x256xf32> to vector<8x256xf32>
    %c1_i32_614 = arith.constant 1 : i32
    %632 = tpu.dynamic_rotate %629 by %c1_i32_614 dim 1 : vector<8x256xf32>, i32 -> vector<8x256xf32>
    %cst_615 = arith.constant 0.000000e+00 : f32
    %633 = vector.shape_cast %4 : vector<1x256xi1> to vector<1x256xi1>
    %634 = vector.broadcast %633 : vector<1x256xi1> to vector<8x256xi1>
    %635 = vector.broadcast %cst_615 : f32 to vector<8x256xf32>
    %636 = arith.select %634, %632, %635 : vector<8x256xi1>, vector<8x256xf32>
    %637 = arith.addf %630, %636 : vector<8x256xf32>
    %c255_i32_616 = arith.constant 255 : i32
    %638 = tpu.dynamic_rotate %631 by %c255_i32_616 dim 1 : vector<8x256xf32>, i32 -> vector<8x256xf32>
    %cst_617 = arith.constant 0.000000e+00 : f32
    %639 = vector.shape_cast %6 : vector<1x256xi1> to vector<1x256xi1>
    %640 = vector.broadcast %639 : vector<1x256xi1> to vector<8x256xi1>
    %641 = vector.broadcast %cst_617 : f32 to vector<8x256xf32>
    %642 = arith.select %640, %638, %641 : vector<8x256xi1>, vector<8x256xf32>
    %643 = arith.addf %637, %642 : vector<8x256xf32>
    %644 = vector.broadcast %452 : vector<8x1xf32> to vector<8x256xf32>
    %645 = arith.addf %643, %644 : vector<8x256xf32>
    %cst_618 = arith.constant 0.000000e+00 : f32
    %646 = vector.broadcast %cst_618 : f32 to vector<8x256xf32>
    %647 = arith.maximumf %645, %646 : vector<8x256xf32>
    %c0_619 = arith.constant 0 : index
    %c2_620 = arith.constant 2 : index
    %c0_621 = arith.constant 0 : index
    %c0_622 = arith.constant 0 : index
    %648 = vector.load %arg6[%c0_619, %c2_620, %c0_621, %c0_622] : memref<1x6x8x256xf32, #tpu.memory_space<vmem>>, vector<1x1x8x256xf32>
    %649 = vector.shape_cast %648 : vector<1x1x8x256xf32> to vector<8x256xf32>
    %650 = vector.shape_cast %647 : vector<8x256xf32> to vector<1x1x8x256xf32>
    tpu.vector_store %arg6[%c0_619, %c2_620, %c0_621, %c0_622], %650 {strides = array<i32>} : memref<1x6x8x256xf32, #tpu.memory_space<vmem>>, vector<1x1x8x256xf32>,
    %c0_623 = arith.constant 0 : index
    %c1648_624 = arith.constant 1648 : index
    %651 = vector.load %arg8[%c0_623, %c1648_624] : memref<16x4096xf32, #tpu.memory_space<vmem>>, vector<16x256xf32>
    %c0_625 = arith.constant 0 : index
    %c0_626 = arith.constant 0 : index
    %c0_627 = arith.constant 0 : index
    %652 = vector.load %arg4[%c0_625, %c0_626, %c0_627] : memref<9x24x16xf32, #tpu.memory_space<vmem>>, vector<1x24x16xf32>
    %653 = vector.shape_cast %652 : vector<1x24x16xf32> to vector<24x16xf32>
    %cst_628 = arith.constant dense<0.000000e+00> : vector<24x256xf32>
    %654 = tpu.matmul %653, %651, %cst_628 {dimension_numbers = #tpu.dot_dimension_numbers<[1], [0], [0], [1], [0, 0, 1, 1], [], []>} : vector<24x16xf32>, vector<16x256xf32>, vector<24x256xf32> -> vector<24x256xf32>
    %c0_629 = arith.constant 0 : index
    %c1664_630 = arith.constant 1664 : index
    %655 = vector.load %arg8[%c0_629, %c1664_630] : memref<16x4096xf32, #tpu.memory_space<vmem>>, vector<16x256xf32>
    %c1_631 = arith.constant 1 : index
    %c0_632 = arith.constant 0 : index
    %c0_633 = arith.constant 0 : index
    %656 = vector.load %arg4[%c1_631, %c0_632, %c0_633] : memref<9x24x16xf32, #tpu.memory_space<vmem>>, vector<1x24x16xf32>
    %657 = vector.shape_cast %656 : vector<1x24x16xf32> to vector<24x16xf32>
    %cst_634 = arith.constant dense<0.000000e+00> : vector<24x256xf32>
    %658 = tpu.matmul %657, %655, %cst_634 {dimension_numbers = #tpu.dot_dimension_numbers<[1], [0], [0], [1], [0, 0, 1, 1], [], []>} : vector<24x16xf32>, vector<16x256xf32>, vector<24x256xf32> -> vector<24x256xf32>
    %659 = arith.addf %654, %658 : vector<24x256xf32>
    %c0_635 = arith.constant 0 : index
    %c1680_636 = arith.constant 1680 : index
    %660 = vector.load %arg8[%c0_635, %c1680_636] : memref<16x4096xf32, #tpu.memory_space<vmem>>, vector<16x256xf32>
    %c2_637 = arith.constant 2 : index
    %c0_638 = arith.constant 0 : index
    %c0_639 = arith.constant 0 : index
    %661 = vector.load %arg4[%c2_637, %c0_638, %c0_639] : memref<9x24x16xf32, #tpu.memory_space<vmem>>, vector<1x24x16xf32>
    %662 = vector.shape_cast %661 : vector<1x24x16xf32> to vector<24x16xf32>
    %cst_640 = arith.constant dense<0.000000e+00> : vector<24x256xf32>
    %663 = tpu.matmul %662, %660, %cst_640 {dimension_numbers = #tpu.dot_dimension_numbers<[1], [0], [0], [1], [0, 0, 1, 1], [], []>} : vector<24x16xf32>, vector<16x256xf32>, vector<24x256xf32> -> vector<24x256xf32>
    %664 = arith.addf %659, %663 : vector<24x256xf32>
    %c0_641 = arith.constant 0 : index
    %c2160_642 = arith.constant 2160 : index
    %665 = vector.load %arg8[%c0_641, %c2160_642] : memref<16x4096xf32, #tpu.memory_space<vmem>>, vector<16x256xf32>
    %c3_643 = arith.constant 3 : index
    %c0_644 = arith.constant 0 : index
    %c0_645 = arith.constant 0 : index
    %666 = vector.load %arg4[%c3_643, %c0_644, %c0_645] : memref<9x24x16xf32, #tpu.memory_space<vmem>>, vector<1x24x16xf32>
    %667 = vector.shape_cast %666 : vector<1x24x16xf32> to vector<24x16xf32>
    %cst_646 = arith.constant dense<0.000000e+00> : vector<24x256xf32>
    %668 = tpu.matmul %667, %665, %cst_646 {dimension_numbers = #tpu.dot_dimension_numbers<[1], [0], [0], [1], [0, 0, 1, 1], [], []>} : vector<24x16xf32>, vector<16x256xf32>, vector<24x256xf32> -> vector<24x256xf32>
    %669 = arith.addf %664, %668 : vector<24x256xf32>
    %c0_647 = arith.constant 0 : index
    %c2176_648 = arith.constant 2176 : index
    %670 = vector.load %arg8[%c0_647, %c2176_648] : memref<16x4096xf32, #tpu.memory_space<vmem>>, vector<16x256xf32>
    %c4_649 = arith.constant 4 : index
    %c0_650 = arith.constant 0 : index
    %c0_651 = arith.constant 0 : index
    %671 = vector.load %arg4[%c4_649, %c0_650, %c0_651] : memref<9x24x16xf32, #tpu.memory_space<vmem>>, vector<1x24x16xf32>
    %672 = vector.shape_cast %671 : vector<1x24x16xf32> to vector<24x16xf32>
    %cst_652 = arith.constant dense<0.000000e+00> : vector<24x256xf32>
    %673 = tpu.matmul %672, %670, %cst_652 {dimension_numbers = #tpu.dot_dimension_numbers<[1], [0], [0], [1], [0, 0, 1, 1], [], []>} : vector<24x16xf32>, vector<16x256xf32>, vector<24x256xf32> -> vector<24x256xf32>
    %674 = arith.addf %669, %673 : vector<24x256xf32>
    %c0_653 = arith.constant 0 : index
    %c2192_654 = arith.constant 2192 : index
    %675 = vector.load %arg8[%c0_653, %c2192_654] : memref<16x4096xf32, #tpu.memory_space<vmem>>, vector<16x256xf32>
    %c5_655 = arith.constant 5 : index
    %c0_656 = arith.constant 0 : index
    %c0_657 = arith.constant 0 : index
    %676 = vector.load %arg4[%c5_655, %c0_656, %c0_657] : memref<9x24x16xf32, #tpu.memory_space<vmem>>, vector<1x24x16xf32>
    %677 = vector.shape_cast %676 : vector<1x24x16xf32> to vector<24x16xf32>
    %cst_658 = arith.constant dense<0.000000e+00> : vector<24x256xf32>
    %678 = tpu.matmul %677, %675, %cst_658 {dimension_numbers = #tpu.dot_dimension_numbers<[1], [0], [0], [1], [0, 0, 1, 1], [], []>} : vector<24x16xf32>, vector<16x256xf32>, vector<24x256xf32> -> vector<24x256xf32>
    %679 = arith.addf %674, %678 : vector<24x256xf32>
    %c0_659 = arith.constant 0 : index
    %c2672_660 = arith.constant 2672 : index
    %680 = vector.load %arg8[%c0_659, %c2672_660] : memref<16x4096xf32, #tpu.memory_space<vmem>>, vector<16x256xf32>
    %c6_661 = arith.constant 6 : index
    %c0_662 = arith.constant 0 : index
    %c0_663 = arith.constant 0 : index
    %681 = vector.load %arg4[%c6_661, %c0_662, %c0_663] : memref<9x24x16xf32, #tpu.memory_space<vmem>>, vector<1x24x16xf32>
    %682 = vector.shape_cast %681 : vector<1x24x16xf32> to vector<24x16xf32>
    %cst_664 = arith.constant dense<0.000000e+00> : vector<24x256xf32>
    %683 = tpu.matmul %682, %680, %cst_664 {dimension_numbers = #tpu.dot_dimension_numbers<[1], [0], [0], [1], [0, 0, 1, 1], [], []>} : vector<24x16xf32>, vector<16x256xf32>, vector<24x256xf32> -> vector<24x256xf32>
    %684 = arith.addf %679, %683 : vector<24x256xf32>
    %c0_665 = arith.constant 0 : index
    %c2688_666 = arith.constant 2688 : index
    %685 = vector.load %arg8[%c0_665, %c2688_666] : memref<16x4096xf32, #tpu.memory_space<vmem>>, vector<16x256xf32>
    %c7_667 = arith.constant 7 : index
    %c0_668 = arith.constant 0 : index
    %c0_669 = arith.constant 0 : index
    %686 = vector.load %arg4[%c7_667, %c0_668, %c0_669] : memref<9x24x16xf32, #tpu.memory_space<vmem>>, vector<1x24x16xf32>
    %687 = vector.shape_cast %686 : vector<1x24x16xf32> to vector<24x16xf32>
    %cst_670 = arith.constant dense<0.000000e+00> : vector<24x256xf32>
    %688 = tpu.matmul %687, %685, %cst_670 {dimension_numbers = #tpu.dot_dimension_numbers<[1], [0], [0], [1], [0, 0, 1, 1], [], []>} : vector<24x16xf32>, vector<16x256xf32>, vector<24x256xf32> -> vector<24x256xf32>
    %689 = arith.addf %684, %688 : vector<24x256xf32>
    %c0_671 = arith.constant 0 : index
    %c2704_672 = arith.constant 2704 : index
    %690 = vector.load %arg8[%c0_671, %c2704_672] : memref<16x4096xf32, #tpu.memory_space<vmem>>, vector<16x256xf32>
    %c8_673 = arith.constant 8 : index
    %c0_674 = arith.constant 0 : index
    %c0_675 = arith.constant 0 : index
    %691 = vector.load %arg4[%c8_673, %c0_674, %c0_675] : memref<9x24x16xf32, #tpu.memory_space<vmem>>, vector<1x24x16xf32>
    %692 = vector.shape_cast %691 : vector<1x24x16xf32> to vector<24x16xf32>
    %cst_676 = arith.constant dense<0.000000e+00> : vector<24x256xf32>
    %693 = tpu.matmul %692, %690, %cst_676 {dimension_numbers = #tpu.dot_dimension_numbers<[1], [0], [0], [1], [0, 0, 1, 1], [], []>} : vector<24x16xf32>, vector<16x256xf32>, vector<24x256xf32> -> vector<24x256xf32>
    %694 = arith.addf %689, %693 : vector<24x256xf32>
    %695 = vector.extract_strided_slice %694 {offsets = [0, 0], sizes = [8, 256], strides = [1, 1]} : vector<24x256xf32> to vector<8x256xf32>
    %696 = vector.extract_strided_slice %694 {offsets = [8, 0], sizes = [8, 256], strides = [1, 1]} : vector<24x256xf32> to vector<8x256xf32>
    %697 = vector.extract_strided_slice %694 {offsets = [16, 0], sizes = [8, 256], strides = [1, 1]} : vector<24x256xf32> to vector<8x256xf32>
    %c1_i32_677 = arith.constant 1 : i32
    %698 = tpu.dynamic_rotate %695 by %c1_i32_677 dim 1 : vector<8x256xf32>, i32 -> vector<8x256xf32>
    %cst_678 = arith.constant 0.000000e+00 : f32
    %699 = vector.shape_cast %4 : vector<1x256xi1> to vector<1x256xi1>
    %700 = vector.broadcast %699 : vector<1x256xi1> to vector<8x256xi1>
    %701 = vector.broadcast %cst_678 : f32 to vector<8x256xf32>
    %702 = arith.select %700, %698, %701 : vector<8x256xi1>, vector<8x256xf32>
    %703 = arith.addf %696, %702 : vector<8x256xf32>
    %c255_i32_679 = arith.constant 255 : i32
    %704 = tpu.dynamic_rotate %697 by %c255_i32_679 dim 1 : vector<8x256xf32>, i32 -> vector<8x256xf32>
    %cst_680 = arith.constant 0.000000e+00 : f32
    %705 = vector.shape_cast %6 : vector<1x256xi1> to vector<1x256xi1>
    %706 = vector.broadcast %705 : vector<1x256xi1> to vector<8x256xi1>
    %707 = vector.broadcast %cst_680 : f32 to vector<8x256xf32>
    %708 = arith.select %706, %704, %707 : vector<8x256xi1>, vector<8x256xf32>
    %709 = arith.addf %703, %708 : vector<8x256xf32>
    %710 = vector.broadcast %452 : vector<8x1xf32> to vector<8x256xf32>
    %711 = arith.addf %709, %710 : vector<8x256xf32>
    %cst_681 = arith.constant 0.000000e+00 : f32
    %712 = vector.broadcast %cst_681 : f32 to vector<8x256xf32>
    %713 = arith.maximumf %711, %712 : vector<8x256xf32>
    %c0_682 = arith.constant 0 : index
    %c3_683 = arith.constant 3 : index
    %c0_684 = arith.constant 0 : index
    %c0_685 = arith.constant 0 : index
    %714 = vector.load %arg6[%c0_682, %c3_683, %c0_684, %c0_685] : memref<1x6x8x256xf32, #tpu.memory_space<vmem>>, vector<1x1x8x256xf32>
    %715 = vector.shape_cast %714 : vector<1x1x8x256xf32> to vector<8x256xf32>
    %716 = vector.shape_cast %713 : vector<8x256xf32> to vector<1x1x8x256xf32>
    tpu.vector_store %arg6[%c0_682, %c3_683, %c0_684, %c0_685], %716 {strides = array<i32>} : memref<1x6x8x256xf32, #tpu.memory_space<vmem>>, vector<1x1x8x256xf32>,
    %c0_686 = arith.constant 0 : index
    %c2160_687 = arith.constant 2160 : index
    %717 = vector.load %arg8[%c0_686, %c2160_687] : memref<16x4096xf32, #tpu.memory_space<vmem>>, vector<16x256xf32>
    %c0_688 = arith.constant 0 : index
    %c0_689 = arith.constant 0 : index
    %c0_690 = arith.constant 0 : index
    %718 = vector.load %arg4[%c0_688, %c0_689, %c0_690] : memref<9x24x16xf32, #tpu.memory_space<vmem>>, vector<1x24x16xf32>
    %719 = vector.shape_cast %718 : vector<1x24x16xf32> to vector<24x16xf32>
    %cst_691 = arith.constant dense<0.000000e+00> : vector<24x256xf32>
    %720 = tpu.matmul %719, %717, %cst_691 {dimension_numbers = #tpu.dot_dimension_numbers<[1], [0], [0], [1], [0, 0, 1, 1], [], []>} : vector<24x16xf32>, vector<16x256xf32>, vector<24x256xf32> -> vector<24x256xf32>
    %c0_692 = arith.constant 0 : index
    %c2176_693 = arith.constant 2176 : index
    %721 = vector.load %arg8[%c0_692, %c2176_693] : memref<16x4096xf32, #tpu.memory_space<vmem>>, vector<16x256xf32>
    %c1_694 = arith.constant 1 : index
    %c0_695 = arith.constant 0 : index
    %c0_696 = arith.constant 0 : index
    %722 = vector.load %arg4[%c1_694, %c0_695, %c0_696] : memref<9x24x16xf32, #tpu.memory_space<vmem>>, vector<1x24x16xf32>
    %723 = vector.shape_cast %722 : vector<1x24x16xf32> to vector<24x16xf32>
    %cst_697 = arith.constant dense<0.000000e+00> : vector<24x256xf32>
    %724 = tpu.matmul %723, %721, %cst_697 {dimension_numbers = #tpu.dot_dimension_numbers<[1], [0], [0], [1], [0, 0, 1, 1], [], []>} : vector<24x16xf32>, vector<16x256xf32>, vector<24x256xf32> -> vector<24x256xf32>
    %725 = arith.addf %720, %724 : vector<24x256xf32>
    %c0_698 = arith.constant 0 : index
    %c2192_699 = arith.constant 2192 : index
    %726 = vector.load %arg8[%c0_698, %c2192_699] : memref<16x4096xf32, #tpu.memory_space<vmem>>, vector<16x256xf32>
    %c2_700 = arith.constant 2 : index
    %c0_701 = arith.constant 0 : index
    %c0_702 = arith.constant 0 : index
    %727 = vector.load %arg4[%c2_700, %c0_701, %c0_702] : memref<9x24x16xf32, #tpu.memory_space<vmem>>, vector<1x24x16xf32>
    %728 = vector.shape_cast %727 : vector<1x24x16xf32> to vector<24x16xf32>
    %cst_703 = arith.constant dense<0.000000e+00> : vector<24x256xf32>
    %729 = tpu.matmul %728, %726, %cst_703 {dimension_numbers = #tpu.dot_dimension_numbers<[1], [0], [0], [1], [0, 0, 1, 1], [], []>} : vector<24x16xf32>, vector<16x256xf32>, vector<24x256xf32> -> vector<24x256xf32>
    %730 = arith.addf %725, %729 : vector<24x256xf32>
    %c0_704 = arith.constant 0 : index
    %c2672_705 = arith.constant 2672 : index
    %731 = vector.load %arg8[%c0_704, %c2672_705] : memref<16x4096xf32, #tpu.memory_space<vmem>>, vector<16x256xf32>
    %c3_706 = arith.constant 3 : index
    %c0_707 = arith.constant 0 : index
    %c0_708 = arith.constant 0 : index
    %732 = vector.load %arg4[%c3_706, %c0_707, %c0_708] : memref<9x24x16xf32, #tpu.memory_space<vmem>>, vector<1x24x16xf32>
    %733 = vector.shape_cast %732 : vector<1x24x16xf32> to vector<24x16xf32>
    %cst_709 = arith.constant dense<0.000000e+00> : vector<24x256xf32>
    %734 = tpu.matmul %733, %731, %cst_709 {dimension_numbers = #tpu.dot_dimension_numbers<[1], [0], [0], [1], [0, 0, 1, 1], [], []>} : vector<24x16xf32>, vector<16x256xf32>, vector<24x256xf32> -> vector<24x256xf32>
    %735 = arith.addf %730, %734 : vector<24x256xf32>
    %c0_710 = arith.constant 0 : index
    %c2688_711 = arith.constant 2688 : index
    %736 = vector.load %arg8[%c0_710, %c2688_711] : memref<16x4096xf32, #tpu.memory_space<vmem>>, vector<16x256xf32>
    %c4_712 = arith.constant 4 : index
    %c0_713 = arith.constant 0 : index
    %c0_714 = arith.constant 0 : index
    %737 = vector.load %arg4[%c4_712, %c0_713, %c0_714] : memref<9x24x16xf32, #tpu.memory_space<vmem>>, vector<1x24x16xf32>
    %738 = vector.shape_cast %737 : vector<1x24x16xf32> to vector<24x16xf32>
    %cst_715 = arith.constant dense<0.000000e+00> : vector<24x256xf32>
    %739 = tpu.matmul %738, %736, %cst_715 {dimension_numbers = #tpu.dot_dimension_numbers<[1], [0], [0], [1], [0, 0, 1, 1], [], []>} : vector<24x16xf32>, vector<16x256xf32>, vector<24x256xf32> -> vector<24x256xf32>
    %740 = arith.addf %735, %739 : vector<24x256xf32>
    %c0_716 = arith.constant 0 : index
    %c2704_717 = arith.constant 2704 : index
    %741 = vector.load %arg8[%c0_716, %c2704_717] : memref<16x4096xf32, #tpu.memory_space<vmem>>, vector<16x256xf32>
    %c5_718 = arith.constant 5 : index
    %c0_719 = arith.constant 0 : index
    %c0_720 = arith.constant 0 : index
    %742 = vector.load %arg4[%c5_718, %c0_719, %c0_720] : memref<9x24x16xf32, #tpu.memory_space<vmem>>, vector<1x24x16xf32>
    %743 = vector.shape_cast %742 : vector<1x24x16xf32> to vector<24x16xf32>
    %cst_721 = arith.constant dense<0.000000e+00> : vector<24x256xf32>
    %744 = tpu.matmul %743, %741, %cst_721 {dimension_numbers = #tpu.dot_dimension_numbers<[1], [0], [0], [1], [0, 0, 1, 1], [], []>} : vector<24x16xf32>, vector<16x256xf32>, vector<24x256xf32> -> vector<24x256xf32>
    %745 = arith.addf %740, %744 : vector<24x256xf32>
    %c0_722 = arith.constant 0 : index
    %c3184_723 = arith.constant 3184 : index
    %746 = vector.load %arg8[%c0_722, %c3184_723] : memref<16x4096xf32, #tpu.memory_space<vmem>>, vector<16x256xf32>
    %c6_724 = arith.constant 6 : index
    %c0_725 = arith.constant 0 : index
    %c0_726 = arith.constant 0 : index
    %747 = vector.load %arg4[%c6_724, %c0_725, %c0_726] : memref<9x24x16xf32, #tpu.memory_space<vmem>>, vector<1x24x16xf32>
    %748 = vector.shape_cast %747 : vector<1x24x16xf32> to vector<24x16xf32>
    %cst_727 = arith.constant dense<0.000000e+00> : vector<24x256xf32>
    %749 = tpu.matmul %748, %746, %cst_727 {dimension_numbers = #tpu.dot_dimension_numbers<[1], [0], [0], [1], [0, 0, 1, 1], [], []>} : vector<24x16xf32>, vector<16x256xf32>, vector<24x256xf32> -> vector<24x256xf32>
    %750 = arith.addf %745, %749 : vector<24x256xf32>
    %c0_728 = arith.constant 0 : index
    %c3200_729 = arith.constant 3200 : index
    %751 = vector.load %arg8[%c0_728, %c3200_729] : memref<16x4096xf32, #tpu.memory_space<vmem>>, vector<16x256xf32>
    %c7_730 = arith.constant 7 : index
    %c0_731 = arith.constant 0 : index
    %c0_732 = arith.constant 0 : index
    %752 = vector.load %arg4[%c7_730, %c0_731, %c0_732] : memref<9x24x16xf32, #tpu.memory_space<vmem>>, vector<1x24x16xf32>
    %753 = vector.shape_cast %752 : vector<1x24x16xf32> to vector<24x16xf32>
    %cst_733 = arith.constant dense<0.000000e+00> : vector<24x256xf32>
    %754 = tpu.matmul %753, %751, %cst_733 {dimension_numbers = #tpu.dot_dimension_numbers<[1], [0], [0], [1], [0, 0, 1, 1], [], []>} : vector<24x16xf32>, vector<16x256xf32>, vector<24x256xf32> -> vector<24x256xf32>
    %755 = arith.addf %750, %754 : vector<24x256xf32>
    %c0_734 = arith.constant 0 : index
    %c3216_735 = arith.constant 3216 : index
    %756 = vector.load %arg8[%c0_734, %c3216_735] : memref<16x4096xf32, #tpu.memory_space<vmem>>, vector<16x256xf32>
    %c8_736 = arith.constant 8 : index
    %c0_737 = arith.constant 0 : index
    %c0_738 = arith.constant 0 : index
    %757 = vector.load %arg4[%c8_736, %c0_737, %c0_738] : memref<9x24x16xf32, #tpu.memory_space<vmem>>, vector<1x24x16xf32>
    %758 = vector.shape_cast %757 : vector<1x24x16xf32> to vector<24x16xf32>
    %cst_739 = arith.constant dense<0.000000e+00> : vector<24x256xf32>
    %759 = tpu.matmul %758, %756, %cst_739 {dimension_numbers = #tpu.dot_dimension_numbers<[1], [0], [0], [1], [0, 0, 1, 1], [], []>} : vector<24x16xf32>, vector<16x256xf32>, vector<24x256xf32> -> vector<24x256xf32>
    %760 = arith.addf %755, %759 : vector<24x256xf32>
    %761 = vector.extract_strided_slice %760 {offsets = [0, 0], sizes = [8, 256], strides = [1, 1]} : vector<24x256xf32> to vector<8x256xf32>
    %762 = vector.extract_strided_slice %760 {offsets = [8, 0], sizes = [8, 256], strides = [1, 1]} : vector<24x256xf32> to vector<8x256xf32>
    %763 = vector.extract_strided_slice %760 {offsets = [16, 0], sizes = [8, 256], strides = [1, 1]} : vector<24x256xf32> to vector<8x256xf32>
    %c1_i32_740 = arith.constant 1 : i32
    %764 = tpu.dynamic_rotate %761 by %c1_i32_740 dim 1 : vector<8x256xf32>, i32 -> vector<8x256xf32>
    %cst_741 = arith.constant 0.000000e+00 : f32
    %765 = vector.shape_cast %4 : vector<1x256xi1> to vector<1x256xi1>
    %766 = vector.broadcast %765 : vector<1x256xi1> to vector<8x256xi1>
    %767 = vector.broadcast %cst_741 : f32 to vector<8x256xf32>
    %768 = arith.select %766, %764, %767 : vector<8x256xi1>, vector<8x256xf32>
    %769 = arith.addf %762, %768 : vector<8x256xf32>
    %c255_i32_742 = arith.constant 255 : i32
    %770 = tpu.dynamic_rotate %763 by %c255_i32_742 dim 1 : vector<8x256xf32>, i32 -> vector<8x256xf32>
    %cst_743 = arith.constant 0.000000e+00 : f32
    %771 = vector.shape_cast %6 : vector<1x256xi1> to vector<1x256xi1>
    %772 = vector.broadcast %771 : vector<1x256xi1> to vector<8x256xi1>
    %773 = vector.broadcast %cst_743 : f32 to vector<8x256xf32>
    %774 = arith.select %772, %770, %773 : vector<8x256xi1>, vector<8x256xf32>
    %775 = arith.addf %769, %774 : vector<8x256xf32>
    %776 = vector.broadcast %452 : vector<8x1xf32> to vector<8x256xf32>
    %777 = arith.addf %775, %776 : vector<8x256xf32>
    %cst_744 = arith.constant 0.000000e+00 : f32
    %778 = vector.broadcast %cst_744 : f32 to vector<8x256xf32>
    %779 = arith.maximumf %777, %778 : vector<8x256xf32>
    %c0_745 = arith.constant 0 : index
    %c4_746 = arith.constant 4 : index
    %c0_747 = arith.constant 0 : index
    %c0_748 = arith.constant 0 : index
    %780 = vector.load %arg6[%c0_745, %c4_746, %c0_747, %c0_748] : memref<1x6x8x256xf32, #tpu.memory_space<vmem>>, vector<1x1x8x256xf32>
    %781 = vector.shape_cast %780 : vector<1x1x8x256xf32> to vector<8x256xf32>
    %782 = vector.shape_cast %779 : vector<8x256xf32> to vector<1x1x8x256xf32>
    tpu.vector_store %arg6[%c0_745, %c4_746, %c0_747, %c0_748], %782 {strides = array<i32>} : memref<1x6x8x256xf32, #tpu.memory_space<vmem>>, vector<1x1x8x256xf32>,
    %c0_749 = arith.constant 0 : index
    %c2672_750 = arith.constant 2672 : index
    %783 = vector.load %arg8[%c0_749, %c2672_750] : memref<16x4096xf32, #tpu.memory_space<vmem>>, vector<16x256xf32>
    %c0_751 = arith.constant 0 : index
    %c0_752 = arith.constant 0 : index
    %c0_753 = arith.constant 0 : index
    %784 = vector.load %arg4[%c0_751, %c0_752, %c0_753] : memref<9x24x16xf32, #tpu.memory_space<vmem>>, vector<1x24x16xf32>
    %785 = vector.shape_cast %784 : vector<1x24x16xf32> to vector<24x16xf32>
    %cst_754 = arith.constant dense<0.000000e+00> : vector<24x256xf32>
    %786 = tpu.matmul %785, %783, %cst_754 {dimension_numbers = #tpu.dot_dimension_numbers<[1], [0], [0], [1], [0, 0, 1, 1], [], []>} : vector<24x16xf32>, vector<16x256xf32>, vector<24x256xf32> -> vector<24x256xf32>
    %c0_755 = arith.constant 0 : index
    %c2688_756 = arith.constant 2688 : index
    %787 = vector.load %arg8[%c0_755, %c2688_756] : memref<16x4096xf32, #tpu.memory_space<vmem>>, vector<16x256xf32>
    %c1_757 = arith.constant 1 : index
    %c0_758 = arith.constant 0 : index
    %c0_759 = arith.constant 0 : index
    %788 = vector.load %arg4[%c1_757, %c0_758, %c0_759] : memref<9x24x16xf32, #tpu.memory_space<vmem>>, vector<1x24x16xf32>
    %789 = vector.shape_cast %788 : vector<1x24x16xf32> to vector<24x16xf32>
    %cst_760 = arith.constant dense<0.000000e+00> : vector<24x256xf32>
    %790 = tpu.matmul %789, %787, %cst_760 {dimension_numbers = #tpu.dot_dimension_numbers<[1], [0], [0], [1], [0, 0, 1, 1], [], []>} : vector<24x16xf32>, vector<16x256xf32>, vector<24x256xf32> -> vector<24x256xf32>
    %791 = arith.addf %786, %790 : vector<24x256xf32>
    %c0_761 = arith.constant 0 : index
    %c2704_762 = arith.constant 2704 : index
    %792 = vector.load %arg8[%c0_761, %c2704_762] : memref<16x4096xf32, #tpu.memory_space<vmem>>, vector<16x256xf32>
    %c2_763 = arith.constant 2 : index
    %c0_764 = arith.constant 0 : index
    %c0_765 = arith.constant 0 : index
    %793 = vector.load %arg4[%c2_763, %c0_764, %c0_765] : memref<9x24x16xf32, #tpu.memory_space<vmem>>, vector<1x24x16xf32>
    %794 = vector.shape_cast %793 : vector<1x24x16xf32> to vector<24x16xf32>
    %cst_766 = arith.constant dense<0.000000e+00> : vector<24x256xf32>
    %795 = tpu.matmul %794, %792, %cst_766 {dimension_numbers = #tpu.dot_dimension_numbers<[1], [0], [0], [1], [0, 0, 1, 1], [], []>} : vector<24x16xf32>, vector<16x256xf32>, vector<24x256xf32> -> vector<24x256xf32>
    %796 = arith.addf %791, %795 : vector<24x256xf32>
    %c0_767 = arith.constant 0 : index
    %c3184_768 = arith.constant 3184 : index
    %797 = vector.load %arg8[%c0_767, %c3184_768] : memref<16x4096xf32, #tpu.memory_space<vmem>>, vector<16x256xf32>
    %c3_769 = arith.constant 3 : index
    %c0_770 = arith.constant 0 : index
    %c0_771 = arith.constant 0 : index
    %798 = vector.load %arg4[%c3_769, %c0_770, %c0_771] : memref<9x24x16xf32, #tpu.memory_space<vmem>>, vector<1x24x16xf32>
    %799 = vector.shape_cast %798 : vector<1x24x16xf32> to vector<24x16xf32>
    %cst_772 = arith.constant dense<0.000000e+00> : vector<24x256xf32>
    %800 = tpu.matmul %799, %797, %cst_772 {dimension_numbers = #tpu.dot_dimension_numbers<[1], [0], [0], [1], [0, 0, 1, 1], [], []>} : vector<24x16xf32>, vector<16x256xf32>, vector<24x256xf32> -> vector<24x256xf32>
    %801 = arith.addf %796, %800 : vector<24x256xf32>
    %c0_773 = arith.constant 0 : index
    %c3200_774 = arith.constant 3200 : index
    %802 = vector.load %arg8[%c0_773, %c3200_774] : memref<16x4096xf32, #tpu.memory_space<vmem>>, vector<16x256xf32>
    %c4_775 = arith.constant 4 : index
    %c0_776 = arith.constant 0 : index
    %c0_777 = arith.constant 0 : index
    %803 = vector.load %arg4[%c4_775, %c0_776, %c0_777] : memref<9x24x16xf32, #tpu.memory_space<vmem>>, vector<1x24x16xf32>
    %804 = vector.shape_cast %803 : vector<1x24x16xf32> to vector<24x16xf32>
    %cst_778 = arith.constant dense<0.000000e+00> : vector<24x256xf32>
    %805 = tpu.matmul %804, %802, %cst_778 {dimension_numbers = #tpu.dot_dimension_numbers<[1], [0], [0], [1], [0, 0, 1, 1], [], []>} : vector<24x16xf32>, vector<16x256xf32>, vector<24x256xf32> -> vector<24x256xf32>
    %806 = arith.addf %801, %805 : vector<24x256xf32>
    %c0_779 = arith.constant 0 : index
    %c3216_780 = arith.constant 3216 : index
    %807 = vector.load %arg8[%c0_779, %c3216_780] : memref<16x4096xf32, #tpu.memory_space<vmem>>, vector<16x256xf32>
    %c5_781 = arith.constant 5 : index
    %c0_782 = arith.constant 0 : index
    %c0_783 = arith.constant 0 : index
    %808 = vector.load %arg4[%c5_781, %c0_782, %c0_783] : memref<9x24x16xf32, #tpu.memory_space<vmem>>, vector<1x24x16xf32>
    %809 = vector.shape_cast %808 : vector<1x24x16xf32> to vector<24x16xf32>
    %cst_784 = arith.constant dense<0.000000e+00> : vector<24x256xf32>
    %810 = tpu.matmul %809, %807, %cst_784 {dimension_numbers = #tpu.dot_dimension_numbers<[1], [0], [0], [1], [0, 0, 1, 1], [], []>} : vector<24x16xf32>, vector<16x256xf32>, vector<24x256xf32> -> vector<24x256xf32>
    %811 = arith.addf %806, %810 : vector<24x256xf32>
    %c0_785 = arith.constant 0 : index
    %c3696_786 = arith.constant 3696 : index
    %812 = vector.load %arg8[%c0_785, %c3696_786] : memref<16x4096xf32, #tpu.memory_space<vmem>>, vector<16x256xf32>
    %c6_787 = arith.constant 6 : index
    %c0_788 = arith.constant 0 : index
    %c0_789 = arith.constant 0 : index
    %813 = vector.load %arg4[%c6_787, %c0_788, %c0_789] : memref<9x24x16xf32, #tpu.memory_space<vmem>>, vector<1x24x16xf32>
    %814 = vector.shape_cast %813 : vector<1x24x16xf32> to vector<24x16xf32>
    %cst_790 = arith.constant dense<0.000000e+00> : vector<24x256xf32>
    %815 = tpu.matmul %814, %812, %cst_790 {dimension_numbers = #tpu.dot_dimension_numbers<[1], [0], [0], [1], [0, 0, 1, 1], [], []>} : vector<24x16xf32>, vector<16x256xf32>, vector<24x256xf32> -> vector<24x256xf32>
    %816 = arith.addf %811, %815 : vector<24x256xf32>
    %c0_791 = arith.constant 0 : index
    %c3712_792 = arith.constant 3712 : index
    %817 = vector.load %arg8[%c0_791, %c3712_792] : memref<16x4096xf32, #tpu.memory_space<vmem>>, vector<16x256xf32>
    %c7_793 = arith.constant 7 : index
    %c0_794 = arith.constant 0 : index
    %c0_795 = arith.constant 0 : index
    %818 = vector.load %arg4[%c7_793, %c0_794, %c0_795] : memref<9x24x16xf32, #tpu.memory_space<vmem>>, vector<1x24x16xf32>
    %819 = vector.shape_cast %818 : vector<1x24x16xf32> to vector<24x16xf32>
    %cst_796 = arith.constant dense<0.000000e+00> : vector<24x256xf32>
    %820 = tpu.matmul %819, %817, %cst_796 {dimension_numbers = #tpu.dot_dimension_numbers<[1], [0], [0], [1], [0, 0, 1, 1], [], []>} : vector<24x16xf32>, vector<16x256xf32>, vector<24x256xf32> -> vector<24x256xf32>
    %821 = arith.addf %816, %820 : vector<24x256xf32>
    %c0_797 = arith.constant 0 : index
    %c3728_798 = arith.constant 3728 : index
    %822 = vector.load %arg8[%c0_797, %c3728_798] : memref<16x4096xf32, #tpu.memory_space<vmem>>, vector<16x256xf32>
    %c8_799 = arith.constant 8 : index
    %c0_800 = arith.constant 0 : index
    %c0_801 = arith.constant 0 : index
    %823 = vector.load %arg4[%c8_799, %c0_800, %c0_801] : memref<9x24x16xf32, #tpu.memory_space<vmem>>, vector<1x24x16xf32>
    %824 = vector.shape_cast %823 : vector<1x24x16xf32> to vector<24x16xf32>
    %cst_802 = arith.constant dense<0.000000e+00> : vector<24x256xf32>
    %825 = tpu.matmul %824, %822, %cst_802 {dimension_numbers = #tpu.dot_dimension_numbers<[1], [0], [0], [1], [0, 0, 1, 1], [], []>} : vector<24x16xf32>, vector<16x256xf32>, vector<24x256xf32> -> vector<24x256xf32>
    %826 = arith.addf %821, %825 : vector<24x256xf32>
    %827 = vector.extract_strided_slice %826 {offsets = [0, 0], sizes = [8, 256], strides = [1, 1]} : vector<24x256xf32> to vector<8x256xf32>
    %828 = vector.extract_strided_slice %826 {offsets = [8, 0], sizes = [8, 256], strides = [1, 1]} : vector<24x256xf32> to vector<8x256xf32>
    %829 = vector.extract_strided_slice %826 {offsets = [16, 0], sizes = [8, 256], strides = [1, 1]} : vector<24x256xf32> to vector<8x256xf32>
    %c1_i32_803 = arith.constant 1 : i32
    %830 = tpu.dynamic_rotate %827 by %c1_i32_803 dim 1 : vector<8x256xf32>, i32 -> vector<8x256xf32>
    %cst_804 = arith.constant 0.000000e+00 : f32
    %831 = vector.shape_cast %4 : vector<1x256xi1> to vector<1x256xi1>
    %832 = vector.broadcast %831 : vector<1x256xi1> to vector<8x256xi1>
    %833 = vector.broadcast %cst_804 : f32 to vector<8x256xf32>
    %834 = arith.select %832, %830, %833 : vector<8x256xi1>, vector<8x256xf32>
    %835 = arith.addf %828, %834 : vector<8x256xf32>
    %c255_i32_805 = arith.constant 255 : i32
    %836 = tpu.dynamic_rotate %829 by %c255_i32_805 dim 1 : vector<8x256xf32>, i32 -> vector<8x256xf32>
    %cst_806 = arith.constant 0.000000e+00 : f32
    %837 = vector.shape_cast %6 : vector<1x256xi1> to vector<1x256xi1>
    %838 = vector.broadcast %837 : vector<1x256xi1> to vector<8x256xi1>
    %839 = vector.broadcast %cst_806 : f32 to vector<8x256xf32>
    %840 = arith.select %838, %836, %839 : vector<8x256xi1>, vector<8x256xf32>
    %841 = arith.addf %835, %840 : vector<8x256xf32>
    %842 = vector.broadcast %452 : vector<8x1xf32> to vector<8x256xf32>
    %843 = arith.addf %841, %842 : vector<8x256xf32>
    %cst_807 = arith.constant 0.000000e+00 : f32
    %844 = vector.broadcast %cst_807 : f32 to vector<8x256xf32>
    %845 = arith.maximumf %843, %844 : vector<8x256xf32>
    %c0_808 = arith.constant 0 : index
    %c5_809 = arith.constant 5 : index
    %c0_810 = arith.constant 0 : index
    %c0_811 = arith.constant 0 : index
    %846 = vector.load %arg6[%c0_808, %c5_809, %c0_810, %c0_811] : memref<1x6x8x256xf32, #tpu.memory_space<vmem>>, vector<1x1x8x256xf32>
    %847 = vector.shape_cast %846 : vector<1x1x8x256xf32> to vector<8x256xf32>
    %848 = vector.shape_cast %845 : vector<8x256xf32> to vector<1x1x8x256xf32>
    tpu.vector_store %arg6[%c0_808, %c5_809, %c0_810, %c0_811], %848 {strides = array<i32>} : memref<1x6x8x256xf32, #tpu.memory_space<vmem>>, vector<1x1x8x256xf32>,
    return
  }
  func.func @transform_0(%arg0: i32) -> (i32, i32, i32, i32) {
    %c0_i32 = arith.constant 0 : i32
    %c0_i32_0 = arith.constant 0 : i32
    %c0_i32_1 = arith.constant 0 : i32
    %c0_i32_2 = arith.constant 0 : i32
    return %arg0, %c0_i32, %c0_i32_0, %c0_i32_1 : i32, i32, i32, i32
  }
  func.func @transform_1(%arg0: i32) -> (i32, i32, i32) {
    %c0_i32 = arith.constant 0 : i32
    %c0_i32_0 = arith.constant 0 : i32
    %c0_i32_1 = arith.constant 0 : i32
    %c0_i32_2 = arith.constant 0 : i32
    return %c0_i32, %c0_i32_0, %c0_i32_1 : i32, i32, i32
  }
  func.func @transform_2(%arg0: i32) -> (i32, i32) {
    %c0_i32 = arith.constant 0 : i32
    %c0_i32_0 = arith.constant 0 : i32
    %c0_i32_1 = arith.constant 0 : i32
    return %c0_i32, %c0_i32_0 : i32, i32
  }
  func.func @transform_3(%arg0: i32) -> (i32, i32, i32) {
    %c0_i32 = arith.constant 0 : i32
    %c0_i32_0 = arith.constant 0 : i32
    %c0_i32_1 = arith.constant 0 : i32
    %c0_i32_2 = arith.constant 0 : i32
    return %c0_i32, %c0_i32_0, %c0_i32_1 : i32, i32, i32
  }
  func.func @transform_4(%arg0: i32) -> (i32, i32) {
    %c0_i32 = arith.constant 0 : i32
    %c0_i32_0 = arith.constant 0 : i32
    %c0_i32_1 = arith.constant 0 : i32
    return %c0_i32, %c0_i32_0 : i32, i32
  }
  func.func @transform_5(%arg0: i32) -> (i32, i32, i32, i32) {
    %c0_i32 = arith.constant 0 : i32
    %c0_i32_0 = arith.constant 0 : i32
    %c0_i32_1 = arith.constant 0 : i32
    %c0_i32_2 = arith.constant 0 : i32
    return %arg0, %c0_i32, %c0_i32_0, %c0_i32_1 : i32, i32, i32, i32
  }
}

</mosaic_0001>

<bundles_post_ra>
// kernel: time_to_channel_3dconvnet.1
= control target key start
LH: loop header
LB: loop body
LE: loop exit
PB: predicated region body
PF: predicated region fallthrough
CT: control target
= control target key end

     0   :  { %s18404_s18 = smov 0   ;;  %s22273_s0 = inlined_call_operand.vmem [shape: f32[2,3,6,256], index: 0, kind: input, shape index: {}]   ;;  %s22274_s1 = inlined_call_operand.vmem [shape: f32[9,48,3], index: 1, kind: input, shape index: {}]   ;;  %s22275_s2 = inlined_call_operand.vmem [shape: f32[16,1], index: 2, kind: input, shape index: {}]   ;;  %s22276_s3 = inlined_call_operand.vmem [shape: f32[9,24,16], index: 3, kind: input, shape index: {}]   ;;  %s22277_s4 = inlined_call_operand.vmem [shape: f32[8,1], index: 4, kind: input, shape index: {}]   ;;  %s22278_s5 = inlined_call_operand.vmem [shape: f32[2,6,8,256], index: 5, kind: output, shape index: {}]  }
   0x1 LB: > { %s15597_s19 = sadd.s32 4294967295, %s18364_s18   ;;  %p15601_p0 = scmp.ge.s32.totalorder %s18364_s18, 1  ;;  %s18364_s18 = sphi %s18404_s18, %s15_s18  }
   0x2   : > { %p187_p1 = scmp.lt.s32.totalorder %s18364_s18, 3 }
   0x4   : > { %p188_p2 = pnand %p15601_p0, %p187_p1 }
   0x6   : > { %191 = sbr.rel (%p188_p2) target bundleno = 1719 (0x6b7), region = 40 }
   0xd   : > { %v225_v0 = vlaneseq  ;;  %v22280_v1 = vmov 0.0   ;;  %p215_p3 = scmp.lt.s32.totalorder %s15597_s19, 1  ;;  %v18367_v2 = vmov 1935823168   ;;  %s18368_s24 = smov 16   ;;  %vm534_vm0 = vcmask 1042432  }
   0xe   : > { %234 = vst [vmem:[#allocation2] sm:$0x7] %v22280_v1  ;;  %250 = vst [vmem:[#allocation2 + $0x4] sm:$0x77] %v22280_v1  ;;  %v302_v3 = vunpack.c.l.s4 %v18367_v2  ;;  %603 = vmatprep.mubr.f32.mxu0 %v22280_v1  ;;  %2150 = vmatprep.mubr.f32.mxu1 %v22280_v1  ;;  %s18369_s25 = smov 112   ;;  %v15627_v28 = vld [vmem:[%s22274_s1 + $0x30] sm:$0xff] }
   0xf   : > { %235 = vst [vmem:[#allocation2 + $0xc] sm:$0x7] %v22280_v1  ;;  %236 = vst [vmem:[#allocation2 + $0x10] sm:$0x7] %v22280_v1  ;;  %s22336_s19 = smov (!%p215_p3, %s15597_s19), 1  ;;  %v305_v5 = vshrl.u32 %v225_v0, 7 }
  0x10   : > { %237 = vst [vmem:[#allocation2 + $0x1c] sm:$0x7] %v22280_v1  ;;  %238 = vst [vmem:[#allocation2 + $0x20] sm:$0x7] %v22280_v1  ;;  %v303_v4 = vunpack.c.0.s8 %v302_v3  ;;  %s17707_s20 = smul.u32 48, %s22336_s19  ;;  %vm515_vm1 = vcmask 23552  }
  0x11   : > { %239 = vst [vmem:[#allocation2 + $0x2c] sm:$0x7] %v22280_v1  ;;  %240 = vst [vmem:[#allocation2 + $0x30] sm:$0x7] %v22280_v1  ;;  %v15628_v37 = vld [vmem:[%s22274_s1 + $0x38] sm:$0xff]  ;;  %v15629_v40 = vld [vmem:[%s22274_s1 + $0x40] sm:$0xff] }
  0x12   : > { %241 = vst [vmem:[#allocation2 + $0x3c] sm:$0x7] %v22280_v1  ;;  %242 = vst [vmem:[#allocation2 + $0x40] sm:$0x7] %v22280_v1  ;;  %s18443_s23 = scalar_lea.vmem %s22273_s0, %s17707_s20  ;;  %v18445_v6 = vsub.s32 %v303_v4, %v305_v5  ;;  %v15630_v46 = vld [vmem:[%s22274_s1 + $0x48] sm:$0xff]  ;;  %v15631_v47 = vld [vmem:[%s22274_s1 + $0x50] sm:$0xff] }
  0x13   : > { %243 = vst [vmem:[#allocation2 + $0x4c] sm:$0x7] %v22280_v1  ;;  %244 = vst [vmem:[#allocation2 + $0x50] sm:$0x7] %v22280_v1  ;;  %v15632_v52 = vld [vmem:[%s22274_s1 + $0x58] sm:$0xff]  ;;  %vm649_vm2 = vcmask 130048  }
  0x14   : > { %245 = vst [vmem:[#allocation2 + $0x5c] sm:$0x7] %v22280_v1  ;;  %246 = vst [vmem:[#allocation2 + $0x60] sm:$0x7] %v22280_v1  ;;  %vm793_vm3 = vcmask 916480   ;;  %s18371_s8 = smov 1  }
  0x15   : > { %247 = vst [vmem:[#allocation2 + $0x6c] sm:$0x7] %v22280_v1  ;;  %248 = vst [vmem:[#allocation2 + $0x70] sm:$0x7] %v22280_v1  ;;  %v497_v7 = vld [vmem:[#allocation2] sm:$0x77] }
  0x16   : > { %249 = vst [vmem:[#allocation2 + $0x7c] sm:$0x7] %v22280_v1  ;;  %251 = vst [vmem:[#allocation2 + $0x74] sm:$0x77] %v22280_v1  ;;  %v498_v8 = vld [vmem:[#allocation2 + $0x8] sm:$0x7]  ;;  %v642_v10 = vcombine.high %v497_v7, %v497_v7 }
  0x17   : > { %v775_v9 = vld [vmem:[#allocation2 + $0x4] sm:$0x77]  ;;  %v776_v12 = vld [vmem:[#allocation2 + $0xc] sm:$0x7]  ;;  %v17725_v14 = vpack.i.bf16 %v497_v7, %v498_v8  ;;  %v1232_v50 = vld [vmem:[#allocation2 + $0x1c] sm:$0x7] }
  0x18   : > { %v786_v11 = vcombine.high %v775_v9, %v775_v9  ;;  %v292_v13 = vld [vmem:[%s18443_s23] ss:$8 sm:$0x3]  ;;  %v15604_v15 = vld [vmem:[%s18443_s23 + $0x10] ss:$8 sm:$0x3]  ;;  %645 = vrot.lane.b32.xlu0 %v642_v10, %s18368_s24  ;;  %v17730_v17 = vpack.i.bf16 %v775_v9, %v776_v12 }
  0x19   : > { %v15605_v16 = vld [vmem:[%s18443_s23 + $0x20] ss:$8 sm:$0x3]  ;;  %v314_v19 = vrot.slane %v15604_v15, %v18445_v6  ;;  %v15607_v21 = vld [vmem:[%s18443_s23 + $0x1] ss:$8 sm:$0x3] }
  0x1a   : > { %789 = vrot.lane.b32.xlu1 %v786_v11, %s18369_s25  ;;  %v300_v18 = vcombine.low %v292_v13, %v15605_v16  ;;  %v505_v20 = vld [vmem:[#allocation2 + $0x4] sm:$0x77]  ;;  %v15608_v22 = vld [vmem:[%s18443_s23 + $0x11] ss:$8 sm:$0x3]  ;;  %s18372_s16 = smov 127  }
  0x1b   : > { %v514_v23 = vcombine.high %v505_v20, %v505_v20  ;;  %v15609_v25 = vld [vmem:[%s18443_s23 + $0x21] ss:$8 sm:$0x3]  ;;  %v348_v27 = vrot.slane %v15608_v22, %v18445_v6  ;;  %v15611_v29 = vld [vmem:[%s18443_s23 + $0x2] ss:$8 sm:$0x3] }
  0x1c   : > { %v307_v24 = vrot.slane %v300_v18, %v18445_v6  ;;  %v334_v26 = vcombine.low %v15607_v21, %v15609_v25  ;;  %17726 = vrot.lane.b32.xlu0 %v17725_v14, %s18368_s24  ;;  %v15612_v31 = vld [vmem:[%s18443_s23 + $0x12] ss:$8 sm:$0x3]  ;;  %v15613_v32 = vld [vmem:[%s18443_s23 + $0x22] ss:$8 sm:$0x3] }
  0x1d   : > { %15633 = vmatprep.subr.msk.mxu0 %vm534_vm0, %v514_v23  ;;  %v368_v34 = vcombine.low %v15611_v29, %v15613_v32  ;;  %v382_v35 = vrot.slane %v15612_v31, %v18445_v6  ;;  %v2188_v55 = vld [vmem:[#allocation2 + $0x1c] sm:$0x7]  ;;  %v1687_v63 = vld [vmem:[#allocation2 + $0x2c] sm:$0x7]  ;;  %vm18373_vm10 = vmmov 0   ;;  %s17708_s7 = smul.u32 96, %s22336_s19 }
  0x1e   : > { %17731 = vrot.lane.b32.xlu1 %v17730_v17, %s18369_s25  ;;  %v315_v30 = vcombine.low %v307_v24, %v314_v19  ;;  %v341_v33 = vrot.slane %v334_v26, %v18445_v6  ;;  %15634 = vmatpush1.msk.msra.mxu0 %vm534_vm0, %v505_v20  ;;  %v2640_v5 = vld [vmem:[#allocation2 + $0x2c] sm:$0x7]  ;;  %v3092_v14 = vld [vmem:[#allocation2 + $0x3c] sm:$0x7] }
  0x1f   : > { %15635 = vmatmul.mubr.msk.f32.vlgmr.msra.gmra.mrb[0].mxu0 %vm515_vm1, %v15627_v28  ;;  %v375_v38 = vrot.slane %v368_v34, %v18445_v6  ;;  %v3572_v18 = vld [vmem:[#allocation2 + $0x2c] sm:$0x7]  ;;  %s22120_s10 = scalar_lea.vmem %s22278_s5, %s17708_s7 }
  0x20   : > { %15606 = vst.sshfl [vmem:[#allocation2 + $0x14] sm:$0x5f pattern:$0x75316420] %v315_v30  ;;  %v349_v36 = vcombine.low %v341_v33, %v348_v27  ;;  %609 = vmatprep.mubr.f32.mxu0 %v22280_v1 }
  0x21   : > { %v383_v39 = vcombine.low %v375_v38, %v382_v35  ;;  %v499_v35 = vld [vmem:[%s22274_s1] sm:$0xff]  ;;  %v500_v38 = vld [vmem:[%s22274_s1 + $0x8] sm:$0xff] }
  0x22   : > { %15610 = vst.sshfl [vmem:[#allocation2 + $0x24] sm:$0x5f pattern:$0x75316420] %v349_v36 }
  0x23   : > { %15636 = vmatmul.mubr.msk.f32.gmra.mrb[2].mxu0 %vm515_vm1, %v15628_v37  ;;  %15614 = vst.sshfl [vmem:[#allocation2 + $0x34] sm:$0x5f pattern:$0x75316420] %v383_v39 }
  0x24   : > { %615 = vmatprep.mubr.f32.mxu0 %v22280_v1 }
  0x27   : > { %v931_v41 = vld [vmem:[#allocation2 + $0x10] sm:$0x77]  ;;  %v932_v42 = vld [vmem:[#allocation2 + $0x18] sm:$0x7]  ;;  %15637 = vmatmul.mubr.msk.f32.gmra.mrb[4].mxu0 %vm515_vm1, %v15629_v40 }
  0x28   : > { %v1913_v43 = vld [vmem:[#allocation2 + $0x10] sm:$0x77]  ;;  %v942_v44 = vcombine.high %v931_v41, %v931_v41  ;;  %947 = vrot.lane.b32.xlu1 %v932_v42, %s18368_s24  ;;  %621 = vmatprep.mubr.f32.mxu0 %v22280_v1  ;;  %v1914_v48 = vld [vmem:[#allocation2 + $0x18] sm:$0x7] }
  0x29   : > { %v2055_v45 = vcombine.high %v1913_v43, %v1913_v43  ;;  %v1231_v49 = vld [vmem:[#allocation2 + $0x14] sm:$0x77]  ;;  %v1386_v56 = vld [vmem:[#allocation2 + $0x20] sm:$0x77]  ;;  %v1387_v57 = vld [vmem:[#allocation2 + $0x28] sm:$0x7] }
  0x2a   : > { %945 = vrot.lane.b32.xlu0 %v942_v44, %s18368_s24  ;;  %v2187_v51 = vld [vmem:[#allocation2 + $0x14] sm:$0x77]  ;;  %v1242_v53 = vcombine.high %v1231_v49, %v1231_v49  ;;  %v2341_v58 = vld [vmem:[#allocation2 + $0x20] sm:$0x77]  ;;  %v1397_v59 = vcombine.high %v1386_v56, %v1386_v56  ;;  %v2342_v61 = vld [vmem:[#allocation2 + $0x28] sm:$0x7] }
  0x2b   : > { %15638 = vmatmul.mubr.msk.f32.gmra.mrb[6].mxu0 %vm515_vm1, %v15630_v46  ;;  %v2197_v54 = vcombine.high %v2187_v51, %v2187_v51  ;;  %v2351_v60 = vcombine.high %v2341_v58, %v2341_v58  ;;  %v1686_v62 = vld [vmem:[#allocation2 + $0x24] sm:$0x77]  ;;  %v2793_v7 = vld [vmem:[#allocation2 + $0x30] sm:$0x77]  ;;  %v2794_v8 = vld [vmem:[#allocation2 + $0x38] sm:$0x7] }
  0x2c   : > { %2058 = vrot.lane.b32.xlu1 %v2055_v45, %s18368_s24  ;;  %627 = vmatprep.mubr.f32.mxu0 %v22280_v1  ;;  %v2639_v2 = vld [vmem:[#allocation2 + $0x24] sm:$0x77]  ;;  %v1697_v3 = vcombine.high %v1686_v62, %v1686_v62  ;;  %v2803_v10 = vcombine.high %v2793_v7, %v2793_v7  ;;  %v3091_v13 = vld [vmem:[#allocation2 + $0x34] sm:$0x77] }
  0x2d   : > { %v2649_v4 = vcombine.high %v2639_v2, %v2639_v2  ;;  %v3297_v9 = vld [vmem:[#allocation2 + $0x20] sm:$0x77]  ;;  %v3298_v12 = vld [vmem:[#allocation2 + $0x28] sm:$0x7]  ;;  %v3101_v15 = vcombine.high %v3091_v13, %v3091_v13  ;;  %v3725_v19 = vld [vmem:[#allocation2 + $0x30] sm:$0x77] }
  0x2e   : > { %943 = vrot.lane.b32.xlu0 %v931_v41, %s18368_s24  ;;  %v3439_v11 = vcombine.high %v3297_v9, %v3297_v9  ;;  %v3571_v16 = vld [vmem:[#allocation2 + $0x24] sm:$0x77]  ;;  %v3735_v20 = vcombine.high %v3725_v19, %v3725_v19  ;;  %v3726_v21 = vld [vmem:[#allocation2 + $0x38] sm:$0x7]  ;;  %v4681_v22 = vld [vmem:[#allocation2 + $0x30] sm:$0x77] }
  0x2f   : > { %15639 = vmatmul.mubr.msk.f32.gmra.mrb[8].mxu0 %vm515_vm1, %v15631_v47  ;;  %v3581_v17 = vcombine.high %v3571_v16, %v3571_v16  ;;  %v4823_v23 = vcombine.high %v4681_v22, %v4681_v22  ;;  %v4682_v24 = vld [vmem:[#allocation2 + $0x38] sm:$0x7]  ;;  %v501_v40 = vld [vmem:[%s22274_s1 + $0x10] sm:$0xff] }
  0x30   : > { %2056 = vrot.lane.b32.xlu1 %v1913_v43, %s18368_s24  ;;  %633 = vmatprep.mubr.f32.mxu0 %v22280_v1  ;;  %v4955_v42 = vld [vmem:[#allocation2 + $0x34] sm:$0x77] }
  0x31   : > { %v4965_v44 = vcombine.high %v4955_v42, %v4955_v42  ;;  %v502_v46 = vld [vmem:[%s22274_s1 + $0x18] sm:$0xff] }
  0x32   : > { %2060 = vrot.lane.b32.xlu0 %v1914_v48, %s18368_s24  ;;  %v4956_v48 = vld [vmem:[#allocation2 + $0x3c] sm:$0x7] }
  0x33   : > { %15640 = vmatmul.mubr.msk.f32.gmra.mrb[10].mxu0 %vm515_vm1, %v15632_v52 }
  0x34   : > { %1247 = vrot.lane.b32.xlu1 %v1232_v50, %s18369_s25  ;;  %738 = vmatprep.mubr.f32.mxu0 %v22280_v1  ;;  %v18575_v50 = vld [vmem:[%s22274_s1 + $0x20] sm:$0xff] }
  0x36   : > { %1245 = vrot.lane.b32.xlu0 %v1242_v53, %s18369_s25 }
  0x38   : > { %2200 = vrot.lane.b32.xlu1 %v2197_v54, %s18369_s25 }
  0x3a   : > { %1243 = vrot.lane.b32.xlu0 %v1231_v49, %s18369_s25 }
  0x3c   : > { %2198 = vrot.lane.b32.xlu1 %v2187_v51, %s18369_s25 }
  0x3e   : > { %2202 = vrot.lane.b32.xlu0 %v2188_v55, %s18369_s25  ;;  %v15615_v55 = vld [vmem:[%s18443_s23 + $0x3] ss:$8 sm:$0x3] }
  0x40   : > { %1402 = vrot.lane.b32.xlu1 %v1387_v57, %s18368_s24  ;;  %v18592_v57 = vld [vmem:[%s22274_s1 + $0x28] sm:$0xff] }
  0x42   : > { %1400 = vrot.lane.b32.xlu0 %v1397_v59, %s18368_s24 }
  0x44   : > { %2354 = vrot.lane.b32.xlu1 %v2351_v60, %s18368_s24  ;;  %v15616_v60 = vld [vmem:[%s18443_s23 + $0x13] ss:$8 sm:$0x3] }
  0x46   : > { %1398 = vrot.lane.b32.xlu0 %v1386_v56, %s18368_s24  ;;  %v15617_v56 = vld [vmem:[%s18443_s23 + $0x23] ss:$8 sm:$0x3] }
  0x48   : > { %2352 = vrot.lane.b32.xlu1 %v2341_v58, %s18368_s24  ;;  %v402_v58 = vcombine.low %v15615_v55, %v15617_v56 }
  0x4a   : > { %2356 = vrot.lane.b32.xlu0 %v2342_v61, %s18368_s24  ;;  %v18599_v61 = vld [vmem:[#allocation2 + $0x14] sm:$0x77] }
  0x4c   : > { %1702 = vrot.lane.b32.xlu1 %v1687_v63, %s18369_s25  ;;  %v416_v63 = vrot.slane %v15616_v60, %v18445_v6  ;;  %v15681_v60 = vld [vmem:[%s22274_s1 + $0xe0] sm:$0xff] }
  0x4e   : > { %1700 = vrot.lane.b32.xlu0 %v1697_v3, %s18369_s25  ;;  %v15649_v3 = vld [vmem:[%s22274_s1 + $0x60] sm:$0xff] }
  0x50   : > { %2652 = vrot.lane.b32.xlu1 %v2649_v4, %s18369_s25 }
  0x52   : > { %1698 = vrot.lane.b32.xlu0 %v1686_v62, %s18369_s25  ;;  %v409_v62 = vrot.slane %v402_v58, %v18445_v6 }
  0x54   : > { %2650 = vrot.lane.b32.xlu1 %v2639_v2, %s18369_s25  ;;  %v417_v4 = vcombine.low %v409_v62, %v416_v63 }
  0x56   : > { %2654 = vrot.lane.b32.xlu0 %v2640_v5, %s18369_s25  ;;  %15618 = vst.sshfl [vmem:[#allocation2 + $0x44] sm:$0x5f pattern:$0x75316420] %v417_v4  ;;  %v15682_v4 = vld [vmem:[%s22274_s1 + $0xe8] sm:$0xff] }
  0x58   : > { %2808 = vrot.lane.b32.xlu1 %v2794_v8, %s18368_s24  ;;  %v1095_v8 = vcombine.high %v18599_v61, %v18599_v61 }
  0x5a   : > { %2806 = vrot.lane.b32.xlu0 %v2803_v10, %s18368_s24  ;;  %v15650_v10 = vld [vmem:[%s22274_s1 + $0x68] sm:$0xff] }
  0x5c   : > { %3442 = vrot.lane.b32.xlu1 %v3439_v11, %s18368_s24  ;;  %v4023_v11 = vld [vmem:[#allocation2 + $0x34] sm:$0x77] }
  0x5d   : > { %v5407_v55 = vld [vmem:[#allocation2 + $0x44] sm:$0x77] }
  0x5e   : > { %2804 = vrot.lane.b32.xlu0 %v2793_v7, %s18368_s24  ;;  %v5417_v56 = vcombine.high %v5407_v55, %v5407_v55 }
  0x60   : > { %3440 = vrot.lane.b32.xlu1 %v3297_v9, %s18368_s24 }
  0x62   : > { %3444 = vrot.lane.b32.xlu0 %v3298_v12, %s18368_s24 }
  0x64   : > { %3106 = vrot.lane.b32.xlu1 %v3092_v14, %s18369_s25  ;;  %v4033_v14 = vcombine.high %v4023_v11, %v4023_v11 }
  0x66   : > { %3104 = vrot.lane.b32.xlu0 %v3101_v15, %s18369_s25  ;;  %v4024_v15 = vld [vmem:[#allocation2 + $0x3c] sm:$0x7] }
  0x68   : > { %3584 = vrot.lane.b32.xlu1 %v3581_v17, %s18369_s25 }
  0x6a   : > { %3102 = vrot.lane.b32.xlu0 %v3091_v13, %s18369_s25 }
  0x6c   : > { %3582 = vrot.lane.b32.xlu1 %v3571_v16, %s18369_s25 }
  0x6e   : > { %3586 = vrot.lane.b32.xlu0 %v3572_v18, %s18369_s25  ;;  %v15651_v18 = vld [vmem:[%s22274_s1 + $0x70] sm:$0xff] }
  0x70   : > { %3740 = vrot.lane.b32.xlu1 %v3726_v21, %s18368_s24 }
  0x72   : > { %3738 = vrot.lane.b32.xlu0 %v3735_v20, %s18368_s24  ;;  %v5109_v20 = vld [vmem:[#allocation2 + $0x40] sm:$0x77] }
  0x73   : > { %v5119_v21 = vcombine.high %v5109_v20, %v5109_v20 }
  0x74   : > { %4826 = vrot.lane.b32.xlu1 %v4823_v23, %s18368_s24  ;;  %v15652_v23 = vld [vmem:[%s22274_s1 + $0x78] sm:$0xff] }
  0x76   : > { %3736 = vrot.lane.b32.xlu0 %v3725_v19, %s18368_s24 }
  0x78   : > { %4824 = vrot.lane.b32.xlu1 %v4681_v22, %s18368_s24 }
  0x7a   : > { %4828 = vrot.lane.b32.xlu0 %v4682_v24, %s18368_s24 }
  0x7c   : > { %4970 = vrot.lane.b32.xlu1 %v4956_v48, %s18369_s25 }
  0x7e   : > { %4968 = vrot.lane.b32.xlu0 %v4965_v44, %s18369_s25 }
  0x80   : > { %4036 = vrot.lane.b32.xlu1 %v4033_v14, %s18369_s25 }
  0x82   : > { %4966 = vrot.lane.b32.xlu0 %v4955_v42, %s18369_s25  ;;  %v15667_v42 = vld [vmem:[%s22274_s1 + $0xb0] sm:$0xff] }
  0x84   : > { %4034 = vrot.lane.b32.xlu1 %v4023_v11, %s18369_s25 }
  0x86   : > { %4038 = vrot.lane.b32.xlu0 %v4024_v15, %s18369_s25 }
  0x8a   : > { %v646_v25 = vpop.permute.xlu0 %645  ;;  %5122 = vrot.lane.b32.xlu0 %v5119_v21, %s18368_s24 }
  0x8c   : > { %v790_v26 = vpop.permute.xlu1 %789 }
  0x8e   : > { %v17727_v27 = vpop.permute.xlu0 %17726  ;;  %5120 = vrot.lane.b32.xlu0 %v5109_v20, %s18368_s24  ;;  %v15693_v20 = vld [vmem:[%s22274_s1 + $0x100] sm:$0xff] }
  0x8f   : > { %v17729_v29 = vunpack.i.h.bf16 %v17727_v27  ;;  %v17728_v30 = vunpack.i.l.bf16 %v17727_v27 }
  0x90   : > { %v17732_v28 = vpop.permute.xlu1 %17731 }
  0x91   : > { %v17734_v31 = vunpack.i.h.bf16 %v17732_v28  ;;  %v17733_v32 = vunpack.i.l.bf16 %v17732_v28  ;;  %v651_v33 = vsel %vm649_vm2, %v646_v25, %v17728_v30  ;;  %v650_v34 = vsel %vm649_vm2, %v17729_v29, %v646_v25  ;;  %v5110_v25 = vld [vmem:[#allocation2 + $0x48] sm:$0x7] }
  0x92   : > { %15641 = vmatprep.subr.msk.mxu0 %vm534_vm0, %v651_v33  ;;  %v2495_v28 = vld [vmem:[#allocation2 + $0x24] sm:$0x77]  ;;  %5124 = vrot.lane.b32.xlu1 %v5110_v25, %s18368_s24  ;;  %v15695_v25 = vld [vmem:[%s22274_s1 + $0x110] sm:$0xff] }
  0x93   : > { %v795_v36 = vsel %vm793_vm3, %v790_v26, %v17733_v32  ;;  %v794_v37 = vsel %vm793_vm3, %v17734_v31, %v790_v26  ;;  %15642 = vmatpush1.msk.msra.mxu0 %vm534_vm0, %v650_v34  ;;  %v15653_v26 = vld [vmem:[%s22274_s1 + $0x80] sm:$0xff]  ;;  %v2503_v32 = vcombine.high %v2495_v28, %v2495_v28  ;;  %v15654_v33 = vld [vmem:[%s22274_s1 + $0x88] sm:$0xff]  ;;  %v15663_v34 = vld [vmem:[%s22274_s1 + $0x90] sm:$0xff] }
  0x94   : > { %15643 = vmatmul.mubr.msk.f32.vlgmr.msra.gmra.mrb[0].mxu0 %vm515_vm1, %v499_v35  ;;  %15655 = vmatprep.subr.msk.mxu0 %vm534_vm0, %v795_v36  ;;  %v15664_v36 = vld [vmem:[%s22274_s1 + $0x98] sm:$0xff] }
  0x95   : > { %744 = vmatprep.mubr.f32.mxu0 %v22280_v1  ;;  %15656 = vmatpush1.msk.msra.mxu0 %vm534_vm0, %v794_v37 }
  0x98   : > { %15644 = vmatmul.mubr.msk.f32.gmra.mrb[2].mxu0 %vm515_vm1, %v500_v38 }
  0x99   : > { %750 = vmatprep.mubr.f32.mxu0 %v22280_v1 }
  0x9a   : > { %v948_v39 = vpop.permute.xlu1 %947 }
  0x9c   : > { %v946_v41 = vpop.permute.xlu0 %945  ;;  %15645 = vmatmul.mubr.msk.f32.gmra.mrb[4].mxu0 %vm515_vm1, %v501_v40 }
  0x9d   : > { %v950_v43 = vsel %vm649_vm2, %v946_v41, %v948_v39  ;;  %756 = vmatprep.mubr.f32.mxu0 %v22280_v1 }
  0x9e   : > { %v2059_v45 = vpop.permute.xlu1 %2058  ;;  %15669 = vmatprep.subr.msk.mxu0 %vm534_vm0, %v950_v43 }
  0xa0   : > { %v944_v47 = vpop.permute.xlu0 %943  ;;  %15646 = vmatmul.mubr.msk.f32.gmra.mrb[6].mxu0 %vm515_vm1, %v502_v46 }
  0xa1   : > { %762 = vmatprep.mubr.f32.mxu0 %v22280_v1  ;;  %v949_v5 = vsel %vm649_vm2, %v944_v47, %v946_v41  ;;  %v15677_v47 = vld [vmem:[%s22274_s1 + $0xc0] sm:$0xff] }
  0xa2   : > { %v2057_v49 = vpop.permute.xlu1 %2056 }
  0xa3   : > { %v2062_v52 = vsel %vm649_vm2, %v2057_v49, %v2059_v45 }
  0xa4   : > { %v2061_v51 = vpop.permute.xlu0 %2060  ;;  %15647 = vmatmul.mubr.msk.f32.gmra.mrb[8].mxu0 %vm515_vm1, %v18575_v50 }
  0xa5   : > { %v2063_v53 = vsel %vm649_vm2, %v2059_v45, %v2061_v51  ;;  %768 = vmatprep.mubr.f32.mxu0 %v22280_v1  ;;  %v15668_v45 = vld [vmem:[%s22274_s1 + $0xb8] sm:$0xff]  ;;  %v4177_v51 = vld [vmem:[#allocation2 + $0x40] sm:$0x77] }
  0xa6   : > { %15761 = vmatprep.subr.msk.mxu1 %vm534_vm0, %v2063_v53  ;;  %v18583_v54 = vpop.permute.xlu1 %1247  ;;  %v4178_v53 = vld [vmem:[#allocation2 + $0x48] sm:$0x7] }
  0xa7   : > { %15762 = vmatpush1.msk.msra.mxu1 %vm534_vm0, %v2062_v52  ;;  %v4187_v52 = vcombine.high %v4177_v51, %v4177_v51  ;;  %4192 = vrot.lane.b32.xlu0 %v4178_v53, %s18368_s24 }
  0xa8   : > { %15763 = vmatmul.mubr.msk.f32.vlgmr.msra.gmra.mrb[0].mxu1 %vm515_vm1, %v499_v35  ;;  %v18595_v59 = vpop.permute.xlu0 %1245  ;;  %15648 = vmatmul.mubr.msk.f32.gmra.mrb[10].mxu0 %vm515_vm1, %v18592_v57 }
  0xa9   : > { %2156 = vmatprep.mubr.f32.mxu1 %v22280_v1  ;;  %882 = vmatprep.mubr.f32.mxu0 %v22280_v1  ;;  %v1250_v35 = vsel %vm793_vm3, %v18595_v59, %v18583_v54  ;;  %v15679_v54 = vld [vmem:[%s22274_s1 + $0xd0] sm:$0xff] }
  0xaa   : > { %v2201_v2 = vpop.permute.xlu1 %2200  ;;  %4190 = vrot.lane.b32.xlu1 %v4187_v52, %s18368_s24  ;;  %v15721_v52 = vld [vmem:[%s22274_s1 + $0x160] sm:$0xff] }
  0xab   : > { %5420 = vrot.lane.b32.xlu0 %v5417_v56, %s18369_s25  ;;  %v5860_v56 = vld [vmem:[#allocation2 + $0x5c] sm:$0x7] }
  0xac   : > { %15764 = vmatmul.mubr.msk.f32.gmra.mrb[2].mxu1 %vm515_vm1, %v500_v38  ;;  %v18611_v7 = vpop.permute.xlu0 %1243  ;;  %15657 = vmatmul.mubr.msk.f32.vlgmr.msra.gmra.mrb[0].mxu0 %vm515_vm1, %v15649_v3  ;;  %v15665_v38 = vld [vmem:[%s22274_s1 + $0xa0] sm:$0xff] }
  0xad   : > { %2162 = vmatprep.mubr.f32.mxu1 %v22280_v1  ;;  %888 = vmatprep.mubr.f32.mxu0 %v22280_v1  ;;  %v1249_v48 = vsel %vm793_vm3, %v18611_v7, %v18595_v59  ;;  %v5408_v59 = vld [vmem:[#allocation2 + $0x4c] sm:$0x7] }
  0xae   : > { %v2199_v9 = vpop.permute.xlu1 %2198  ;;  %15670 = vmatpush1.msk.msra.mxu0 %vm534_vm0, %v949_v5  ;;  %4188 = vrot.lane.b32.xlu1 %v4177_v51, %s18368_s24  ;;  %v6065_v51 = vld [vmem:[#allocation2 + $0x40] sm:$0x77] }
  0xaf   : > { %v2204_v13 = vsel %vm793_vm3, %v2199_v9, %v2201_v2  ;;  %15683 = vmatprep.subr.msk.mxu0 %vm534_vm0, %v1095_v8  ;;  %5418 = vrot.lane.b32.xlu0 %v5407_v55, %s18369_s25  ;;  %v15620_v8 = vld [vmem:[%s18443_s23 + $0x14] ss:$8 sm:$0x3]  ;;  %v18795_v9 = vld [vmem:[#allocation2 + $0x24] sm:$0x77] }
  0xb0   : > { %15765 = vmatmul.mubr.msk.f32.gmra.mrb[4].mxu1 %vm515_vm1, %v501_v40  ;;  %v2203_v12 = vpop.permute.xlu0 %2202  ;;  %15658 = vmatmul.mubr.msk.f32.gmra.mrb[2].mxu0 %vm515_vm1, %v15650_v10  ;;  %v15666_v40 = vld [vmem:[%s22274_s1 + $0xa8] sm:$0xff]  ;;  %v450_v11 = vrot.slane %v15620_v8, %v18445_v6  ;;  %v1550_v15 = vcombine.high %v18795_v9, %v18795_v9 }
  0xb1   : > { %2168 = vmatprep.mubr.f32.mxu1 %v22280_v1  ;;  %v2205_v16 = vsel %vm793_vm3, %v2201_v2, %v2203_v12  ;;  %894 = vmatprep.mubr.f32.mxu0 %v22280_v1  ;;  %v15619_v2 = vld [vmem:[%s18443_s23 + $0x4] ss:$8 sm:$0x3]  ;;  %v15691_v12 = vld [vmem:[%s22274_s1 + $0xf0] sm:$0xff] }
  0xb2   : > { %15775 = vmatprep.subr.msk.mxu1 %vm534_vm0, %v2205_v16  ;;  %v18630_v17 = vpop.permute.xlu1 %1402  ;;  %5422 = vrot.lane.b32.xlu1 %v5408_v59, %s18369_s25  ;;  %v15692_v16 = vld [vmem:[%s22274_s1 + $0xf8] sm:$0xff]  ;;  %v15722_v55 = vld [vmem:[%s22274_s1 + $0x168] sm:$0xff] }
  0xb3   : > { %15776 = vmatpush1.msk.msra.mxu1 %vm534_vm0, %v2204_v13  ;;  %v18962_v59 = vld [vmem:[#allocation2 + $0x34] sm:$0x77] }
  0xb4   : > { %15766 = vmatmul.mubr.msk.f32.gmra.mrb[6].mxu1 %vm515_vm1, %v502_v46  ;;  %v18638_v19 = vpop.permute.xlu0 %1400  ;;  %15659 = vmatmul.mubr.msk.f32.gmra.mrb[4].mxu0 %vm515_vm1, %v15651_v18 }
  0xb5   : > { %2174 = vmatprep.mubr.f32.mxu1 %v22280_v1  ;;  %900 = vmatprep.mubr.f32.mxu0 %v22280_v1  ;;  %v1405_v49 = vsel %vm649_vm2, %v18638_v19, %v18630_v17  ;;  %v4475_v17 = vld [vmem:[#allocation2 + $0x44] sm:$0x77] }
  0xb6   : > { %v2355_v22 = vpop.permute.xlu1 %2354 }
  0xb8   : > { %15767 = vmatmul.mubr.msk.f32.gmra.mrb[8].mxu1 %vm515_vm1, %v18575_v50  ;;  %v18650_v24 = vpop.permute.xlu0 %1398  ;;  %15660 = vmatmul.mubr.msk.f32.gmra.mrb[6].mxu0 %vm515_vm1, %v15652_v23  ;;  %v15678_v50 = vld [vmem:[%s22274_s1 + $0xc8] sm:$0xff] }
  0xb9   : > { %2180 = vmatprep.mubr.f32.mxu1 %v22280_v1  ;;  %906 = vmatprep.mubr.f32.mxu0 %v22280_v1  ;;  %v1404_v14 = vsel %vm649_vm2, %v18650_v24, %v18638_v19  ;;  %v4476_v19 = vld [vmem:[#allocation2 + $0x4c] sm:$0x7] }
  0xba   : > { %v2353_v27 = vpop.permute.xlu1 %2352  ;;  %4490 = vrot.lane.b32.xlu0 %v4476_v19, %s18369_s25  ;;  %v6340_v19 = vld [vmem:[#allocation2 + $0x4c] sm:$0x7] }
  0xbb   : > { %v2358_v31 = vsel %vm649_vm2, %v2353_v27, %v2355_v22  ;;  %v2947_v27 = vld [vmem:[#allocation2 + $0x34] sm:$0x77] }
  0xbc   : > { %15768 = vmatmul.mubr.msk.f32.gmra.mrb[10].mxu1 %vm515_vm1, %v18592_v57  ;;  %v2357_v29 = vpop.permute.xlu0 %2356  ;;  %15661 = vmatmul.mubr.msk.f32.gmra.mrb[8].mxu0 %vm515_vm1, %v15653_v26  ;;  %v15680_v57 = vld [vmem:[%s22274_s1 + $0xd8] sm:$0xff] }
  0xbd   : > { %2292 = vmatprep.mubr.f32.mxu1 %v22280_v1  ;;  %v2359_v30 = vsel %vm649_vm2, %v2355_v22, %v2357_v29  ;;  %912 = vmatprep.mubr.f32.mxu0 %v22280_v1  ;;  %v2955_v29 = vcombine.high %v2947_v27, %v2947_v27 }
  0xbe   : > { %15789 = vmatprep.subr.msk.mxu1 %vm534_vm0, %v2359_v30  ;;  %v18713_v41 = vpop.permute.xlu1 %1702  ;;  %v15696_v30 = vld [vmem:[%s22274_s1 + $0x118] sm:$0xff] }
  0xc0   : > { %15777 = vmatmul.mubr.msk.f32.vlgmr.msra.gmra.mrb[0].mxu1 %vm515_vm1, %v15649_v3  ;;  %15662 = vmatmul.mubr.msk.f32.gmra.mrb[10].mxu0 %vm515_vm1, %v15654_v33  ;;  %v18695_v37 = vpop.permute.xlu0 %1700  ;;  %v15621_v3 = vld [vmem:[%s18443_s23 + $0x24] ss:$8 sm:$0x3] }
  0xc1   : > { %2298 = vmatprep.mubr.f32.mxu1 %v22280_v1  ;;  %15790 = vmatpush1.msk.msra.mxu1 %vm534_vm0, %v2358_v31  ;;  %v436_v7 = vcombine.low %v15619_v2, %v15621_v3  ;;  %v15705_v31 = vld [vmem:[%s22274_s1 + $0x120] sm:$0xff] }
  0xc2   : > { %15803 = vmatprep.subr.msk.mxu1 %vm534_vm0, %v2503_v32  ;;  %1037 = vmatprep.mubr.f32.mxu0 %v22280_v1  ;;  %v2653_v44 = vpop.permute.xlu1 %2652  ;;  %v1705_v32 = vsel %vm793_vm3, %v18695_v37, %v18713_v41  ;;  %v15709_v41 = vld [vmem:[%s22274_s1 + $0x140] sm:$0xff] }
  0xc3   : > { %v15733_v3 = vld [vmem:[%s22274_s1 + $0x180] sm:$0xff] }
  0xc4   : > { %15778 = vmatmul.mubr.msk.f32.gmra.mrb[2].mxu1 %vm515_vm1, %v15650_v10  ;;  %15671 = vmatmul.mubr.msk.f32.vlgmr.msra.gmra.mrb[0].mxu0 %vm515_vm1, %v15663_v34  ;;  %v18706_v39 = vpop.permute.xlu0 %1698  ;;  %v443_v10 = vrot.slane %v436_v7, %v18445_v6  ;;  %v15734_v7 = vld [vmem:[%s22274_s1 + $0x188] sm:$0xff] }
  0xc5   : > { %2304 = vmatprep.mubr.f32.mxu1 %v22280_v1  ;;  %1043 = vmatprep.mubr.f32.mxu0 %v22280_v1 }
  0xc6   : > { %15684 = vmatpush1.msk.msra.mxu0 %vm534_vm0, %v18599_v61  ;;  %v2651_v58 = vpop.permute.xlu1 %2650  ;;  %v451_v13 = vcombine.low %v443_v10, %v450_v11  ;;  %v15735_v10 = vld [vmem:[%s22274_s1 + $0x190] sm:$0xff]  ;;  %v6339_v11 = vld [vmem:[#allocation2 + $0x44] sm:$0x77] }
  0xc7   : > { %15697 = vmatprep.subr.msk.mxu0 %vm534_vm0, %v1250_v35  ;;  %v2656_v62 = vsel %vm793_vm3, %v2651_v58, %v2653_v44  ;;  %v15707_v35 = vld [vmem:[%s22274_s1 + $0x130] sm:$0xff] }
  0xc8   : > { %15779 = vmatmul.mubr.msk.f32.gmra.mrb[4].mxu1 %vm515_vm1, %v15651_v18  ;;  %15672 = vmatmul.mubr.msk.f32.gmra.mrb[2].mxu0 %vm515_vm1, %v15664_v36  ;;  %v2655_v43 = vpop.permute.xlu0 %2654  ;;  %15622 = vst.sshfl [vmem:[#allocation2 + $0x54] sm:$0x5f pattern:$0x75316420] %v451_v13  ;;  %v4485_v18 = vcombine.high %v4475_v17, %v4475_v17  ;;  %v6349_v13 = vcombine.high %v6339_v11, %v6339_v11 }
  0xc9   : > { %2310 = vmatprep.mubr.f32.mxu1 %v22280_v1  ;;  %1049 = vmatprep.mubr.f32.mxu0 %v22280_v1  ;;  %v2657_v46 = vsel %vm793_vm3, %v2653_v44, %v2655_v43  ;;  %v15710_v44 = vld [vmem:[%s22274_s1 + $0x148] sm:$0xff] }
  0xca   : > { %v2809_v61 = vpop.permute.xlu1 %2808  ;;  %4488 = vrot.lane.b32.xlu1 %v4485_v18, %s18369_s25 }
  0xcc   : > { %15780 = vmatmul.mubr.msk.f32.gmra.mrb[6].mxu1 %vm515_vm1, %v15652_v23  ;;  %15673 = vmatmul.mubr.msk.f32.gmra.mrb[4].mxu0 %vm515_vm1, %v15665_v38  ;;  %v2807_v63 = vpop.permute.xlu0 %2806  ;;  %v15694_v23 = vld [vmem:[%s22274_s1 + $0x108] sm:$0xff] }
  0xcd   : > { %2316 = vmatprep.mubr.f32.mxu1 %v22280_v1  ;;  %1055 = vmatprep.mubr.f32.mxu0 %v22280_v1  ;;  %v2811_v5 = vsel %vm649_vm2, %v2807_v63, %v2809_v61  ;;  %v4697_v61 = vcombine.high %v18962_v59, %v18962_v59 }
  0xce   : > { %4486 = vrot.lane.b32.xlu1 %v4475_v17, %s18369_s25 }
  0xcf   : > { %v5561_v21 = vld [vmem:[#allocation2 + $0x50] sm:$0x77]  ;;  %v5562_v24 = vld [vmem:[#allocation2 + $0x58] sm:$0x7] }
  0xd0   : > { %15781 = vmatmul.mubr.msk.f32.gmra.mrb[8].mxu1 %vm515_vm1, %v15653_v26  ;;  %15674 = vmatmul.mubr.msk.f32.gmra.mrb[6].mxu0 %vm515_vm1, %v15666_v40  ;;  %v5571_v22 = vcombine.high %v5561_v21, %v5561_v21  ;;  %v2805_v26 = vpop.permute.xlu0 %2804  ;;  %v5859_v53 = vld [vmem:[#allocation2 + $0x54] sm:$0x77] }
  0xd1   : > { %2322 = vmatprep.mubr.f32.mxu1 %v22280_v1  ;;  %1061 = vmatprep.mubr.f32.mxu0 %v22280_v1  ;;  %v6494_v18 = vld [vmem:[#allocation2 + $0x58] sm:$0x7] }
  0xd2   : > { %5574 = vrot.lane.b32.xlu0 %v5571_v22, %s18368_s24  ;;  %5576 = vrot.lane.b32.xlu1 %v5562_v24, %s18368_s24  ;;  %v6493_v24 = vld [vmem:[#allocation2 + $0x50] sm:$0x77] }
  0xd4   : > { %15782 = vmatmul.mubr.msk.f32.gmra.mrb[10].mxu1 %vm515_vm1, %v15654_v33  ;;  %15675 = vmatmul.mubr.msk.f32.gmra.mrb[8].mxu0 %vm515_vm1, %v15667_v42  ;;  %v15706_v33 = vld [vmem:[%s22274_s1 + $0x128] sm:$0xff] }
  0xd5   : > { %2446 = vmatprep.mubr.f32.mxu1 %v22280_v1  ;;  %1067 = vmatprep.mubr.f32.mxu0 %v22280_v1 }
  0xd6   : > { %5572 = vrot.lane.b32.xlu0 %v5561_v21, %s18368_s24  ;;  %v19046_v21 = vld [vmem:[%s22274_s1 + $0x1a8] sm:$0xff] }
  0xd8   : > { %15791 = vmatmul.mubr.msk.f32.vlgmr.msra.gmra.mrb[0].mxu1 %vm515_vm1, %v15663_v34  ;;  %15676 = vmatmul.mubr.msk.f32.gmra.mrb[10].mxu0 %vm515_vm1, %v15668_v45  ;;  %v18877_v34 = vpop.permute.xlu1 %3442 }
  0xd9   : > { %2452 = vmatprep.mubr.f32.mxu1 %v22280_v1  ;;  %15804 = vmatpush1.msk.msra.mxu1 %vm534_vm0, %v2495_v28  ;;  %v2810_v28 = vsel %vm649_vm2, %v2805_v26, %v2807_v63  ;;  %v18978_v63 = vld [vmem:[#allocation2 + $0x24] sm:$0x77]  ;;  %v6503_v26 = vcombine.high %v6493_v24, %v6493_v24 }
  0xda   : > { %15817 = vmatprep.subr.msk.mxu1 %vm534_vm0, %v2657_v46  ;;  %1182 = vmatprep.mubr.f32.mxu0 %v22280_v1  ;;  %v18914_v46 = vld [vmem:[#allocation2 + $0x14] sm:$0x77] }
  0xdc   : > { %15792 = vmatmul.mubr.msk.f32.gmra.mrb[2].mxu1 %vm515_vm1, %v15664_v36  ;;  %15685 = vmatmul.mubr.msk.f32.vlgmr.msra.gmra.mrb[0].mxu0 %vm515_vm1, %v15677_v47  ;;  %v18888_v36 = vpop.permute.xlu1 %3440 }
  0xdd   : > { %2458 = vmatprep.mubr.f32.mxu1 %v22280_v1  ;;  %1188 = vmatprep.mubr.f32.mxu0 %v22280_v1 }
  0xde   : > { %15698 = vmatpush1.msk.msra.mxu0 %vm534_vm0, %v1249_v48  ;;  %v1704_v48 = vsel %vm793_vm3, %v18706_v39, %v18695_v37  ;;  %v6207_v37 = vcombine.high %v6065_v51, %v6065_v51  ;;  %v6066_v39 = vld [vmem:[#allocation2 + $0x48] sm:$0x7] }
  0xdf   : > { %15711 = vmatprep.subr.msk.mxu0 %vm534_vm0, %v1405_v49  ;;  %v1929_v49 = vcombine.high %v18914_v46, %v18914_v46  ;;  %6212 = vrot.lane.b32.xlu0 %v6066_v39, %s18368_s24 }
  0xe0   : > { %15793 = vmatmul.mubr.msk.f32.gmra.mrb[4].mxu1 %vm515_vm1, %v15665_v38  ;;  %15686 = vmatmul.mubr.msk.f32.gmra.mrb[2].mxu0 %vm515_vm1, %v15678_v50  ;;  %v15708_v38 = vld [vmem:[%s22274_s1 + $0x138] sm:$0xff] }
  0xe1   : > { %2464 = vmatprep.mubr.f32.mxu1 %v22280_v1  ;;  %1194 = vmatprep.mubr.f32.mxu0 %v22280_v1 }
  0xe2   : > { %6210 = vrot.lane.b32.xlu1 %v6207_v37, %s18368_s24 }
  0xe4   : > { %15794 = vmatmul.mubr.msk.f32.gmra.mrb[6].mxu1 %vm515_vm1, %v15666_v40  ;;  %15687 = vmatmul.mubr.msk.f32.gmra.mrb[4].mxu0 %vm515_vm1, %v15679_v54  ;;  %v18895_v40 = vpop.permute.xlu0 %3444 }
  0xe5   : > { %2470 = vmatprep.mubr.f32.mxu1 %v22280_v1  ;;  %1200 = vmatprep.mubr.f32.mxu0 %v22280_v1 }
  0xe6   : > { %6208 = vrot.lane.b32.xlu1 %v6065_v51, %s18368_s24  ;;  %v18354_v51 = vld [vmem:[%s22274_s1 + $0x48] sm:$0xff] }
  0xe8   : > { %15795 = vmatmul.mubr.msk.f32.gmra.mrb[8].mxu1 %vm515_vm1, %v15667_v42  ;;  %15688 = vmatmul.mubr.msk.f32.gmra.mrb[6].mxu0 %vm515_vm1, %v15680_v57  ;;  %v3107_v42 = vpop.permute.xlu1 %3106  ;;  %v3105_v43 = vpop.permute.xlu0 %3104 }
  0xe9   : > { %2476 = vmatprep.mubr.f32.mxu1 %v22280_v1  ;;  %1206 = vmatprep.mubr.f32.mxu0 %v22280_v1 }
  0xea   : > { %5874 = vrot.lane.b32.xlu1 %v5860_v56, %s18369_s25 }
  0xec   : > { %15796 = vmatmul.mubr.msk.f32.gmra.mrb[10].mxu1 %vm515_vm1, %v15668_v45  ;;  %15689 = vmatmul.mubr.msk.f32.gmra.mrb[8].mxu0 %vm515_vm1, %v15681_v60  ;;  %v3109_v45 = vsel %vm793_vm3, %v3105_v43, %v3107_v42  ;;  %v3103_v58 = vpop.permute.xlu0 %3102 }
  0xed   : > { %2590 = vmatprep.mubr.f32.mxu1 %v22280_v1  ;;  %1212 = vmatprep.mubr.f32.mxu0 %v22280_v1 }
  0xee   : > { %6352 = vrot.lane.b32.xlu1 %v6349_v13, %s18369_s25 }
  0xf0   : > { %15805 = vmatmul.mubr.msk.f32.vlgmr.msra.gmra.mrb[0].mxu1 %vm515_vm1, %v15677_v47  ;;  %15690 = vmatmul.mubr.msk.f32.gmra.mrb[10].mxu0 %vm515_vm1, %v15682_v4  ;;  %v15719_v47 = vld [vmem:[%s22274_s1 + $0x150] sm:$0xff]  ;;  %v18982_v2 = vpop.permute.xlu0 %3586 }
  0xf1   : > { %2596 = vmatprep.mubr.f32.mxu1 %v22280_v1  ;;  %15818 = vmatpush1.msk.msra.mxu1 %vm534_vm0, %v2656_v62  ;;  %v15724_v62 = vld [vmem:[%s22274_s1 + $0x178] sm:$0xff] }
  0xf2   : > { %15831 = vmatprep.subr.msk.mxu1 %vm534_vm0, %v2811_v5  ;;  %1337 = vmatprep.mubr.f32.mxu0 %v22280_v1  ;;  %v3313_v5 = vcombine.high %v18978_v63, %v18978_v63 }
  0xf3   : > { %6350 = vrot.lane.b32.xlu1 %v6339_v11, %s18369_s25  ;;  %v15991_v11 = vld [vmem:[%s22274_s1 + $0x50] sm:$0xff] }
  0xf4   : > { %15806 = vmatmul.mubr.msk.f32.gmra.mrb[2].mxu1 %vm515_vm1, %v15678_v50  ;;  %15699 = vmatmul.mubr.msk.f32.vlgmr.msra.gmra.mrb[0].mxu0 %vm515_vm1, %v15691_v12  ;;  %v15720_v50 = vld [vmem:[%s22274_s1 + $0x158] sm:$0xff]  ;;  %v19003_v8 = vpop.permute.xlu0 %3738 }
  0xf5   : > { %2602 = vmatprep.mubr.f32.mxu1 %v22280_v1  ;;  %1343 = vmatprep.mubr.f32.mxu0 %v22280_v1 }
  0xf6   : > { %15712 = vmatpush1.msk.msra.mxu0 %vm534_vm0, %v1404_v14  ;;  %v15736_v14 = vld [vmem:[%s22274_s1 + $0x198] sm:$0xff] }
  0xf7   : > { %15725 = vmatprep.subr.msk.mxu0 %vm534_vm0, %v1550_v15  ;;  %6508 = vrot.lane.b32.xlu1 %v6494_v18, %s18368_s24  ;;  %v15992_v18 = vld [vmem:[%s22274_s1 + $0x58] sm:$0xff] }
  0xf8   : > { %15807 = vmatmul.mubr.msk.f32.gmra.mrb[4].mxu1 %vm515_vm1, %v15679_v54  ;;  %15700 = vmatmul.mubr.msk.f32.gmra.mrb[2].mxu0 %vm515_vm1, %v15692_v16  ;;  %v5869_v54 = vcombine.high %v5859_v53, %v5859_v53 }
  0xf9   : > { %2608 = vmatprep.mubr.f32.mxu1 %v22280_v1  ;;  %1349 = vmatprep.mubr.f32.mxu0 %v22280_v1 }
  0xfa   : > { %5872 = vrot.lane.b32.xlu0 %v5869_v54, %s18369_s25 }
  0xfc   : > { %15808 = vmatmul.mubr.msk.f32.gmra.mrb[6].mxu1 %vm515_vm1, %v15680_v57  ;;  %15701 = vmatmul.mubr.msk.f32.gmra.mrb[4].mxu0 %vm515_vm1, %v15693_v20  ;;  %v15723_v57 = vld [vmem:[%s22274_s1 + $0x170] sm:$0xff] }
  0xfd   : > { %2614 = vmatprep.mubr.f32.mxu1 %v22280_v1  ;;  %1355 = vmatprep.mubr.f32.mxu0 %v22280_v1 }
  0xfe   : > { %5870 = vrot.lane.b32.xlu0 %v5859_v53, %s18369_s25  ;;  %v18355_v53 = vld [vmem:[%s22274_s1 + $0x50] sm:$0xff] }
 0x100   : > { %15809 = vmatmul.mubr.msk.f32.gmra.mrb[8].mxu1 %vm515_vm1, %v15681_v60  ;;  %15702 = vmatmul.mubr.msk.f32.gmra.mrb[6].mxu0 %vm515_vm1, %v15694_v23  ;;  %v3108_v60 = vsel %vm793_vm3, %v3103_v58, %v3105_v43  ;;  %v7450_v43 = vld [vmem:[#allocation2 + $0x58] sm:$0x7] }
 0x101   : > { %2620 = vmatprep.mubr.f32.mxu1 %v22280_v1  ;;  %1361 = vmatprep.mubr.f32.mxu0 %v22280_v1  ;;  %v18356_v58 = vld [vmem:[%s22274_s1 + $0x58] sm:$0xff] }
 0x102   : > { %6354 = vrot.lane.b32.xlu0 %v6340_v19, %s18369_s25 }
 0x104   : > { %15810 = vmatmul.mubr.msk.f32.gmra.mrb[10].mxu1 %vm515_vm1, %v15682_v4  ;;  %15703 = vmatmul.mubr.msk.f32.gmra.mrb[8].mxu0 %vm515_vm1, %v15695_v25  ;;  %v18989_v4 = vpop.permute.xlu1 %3584 }
 0x105   : > { %2744 = vmatprep.mubr.f32.mxu1 %v22280_v1  ;;  %1367 = vmatprep.mubr.f32.mxu0 %v22280_v1 }
 0x106   : > { %6506 = vrot.lane.b32.xlu0 %v6503_v26, %s18368_s24 }
 0x108   : > { %15819 = vmatmul.mubr.msk.f32.vlgmr.msra.gmra.mrb[0].mxu1 %vm515_vm1, %v15691_v12  ;;  %15704 = vmatmul.mubr.msk.f32.gmra.mrb[10].mxu0 %vm515_vm1, %v15696_v30  ;;  %v19016_v12 = vpop.permute.xlu0 %3736 }
 0x109   : > { %2750 = vmatprep.mubr.f32.mxu1 %v22280_v1  ;;  %15832 = vmatpush1.msk.msra.mxu1 %vm534_vm0, %v2810_v28  ;;  %v15625_v28 = vld [vmem:[%s18443_s23 + $0x25] ss:$8 sm:$0x3] }
 0x10a   : > { %15845 = vmatprep.subr.msk.mxu1 %vm534_vm0, %v2955_v29  ;;  %1492 = vmatprep.mubr.f32.mxu0 %v22280_v1 }
 0x10b   : > { %6504 = vrot.lane.b32.xlu0 %v6493_v24, %s18368_s24  ;;  %v4683_v24 = vld [vmem:[%s22274_s1] sm:$0xff] }
 0x10c   : > { %15820 = vmatmul.mubr.msk.f32.gmra.mrb[2].mxu1 %vm515_vm1, %v15692_v16  ;;  %15713 = vmatmul.mubr.msk.f32.vlgmr.msra.gmra.mrb[0].mxu0 %vm515_vm1, %v15705_v31  ;;  %v19032_v16 = vld [vmem:[%s22274_s1 + $0x1a0] sm:$0xff]  ;;  %v4829_v17 = vpop.permute.xlu0 %4828 }
 0x10d   : > { %2756 = vmatprep.mubr.f32.mxu1 %v22280_v1  ;;  %1498 = vmatprep.mubr.f32.mxu0 %v22280_v1 }
 0x10e   : > { %15726 = vmatpush1.msk.msra.mxu0 %vm534_vm0, %v18795_v9  ;;  %v19007_v9 = vpop.permute.xlu1 %3582 }
 0x10f   : > { %15739 = vmatprep.subr.msk.mxu0 %vm534_vm0, %v1705_v32  ;;  %v18351_v32 = vld [vmem:[%s22274_s1 + $0x30] sm:$0xff]  ;;  %7596 = vrot.lane.b32.xlu0 %v7450_v43, %s18368_s24  ;;  %v495_v43 = vld [vmem:[%s22275_s2] sm:$0xff] }
 0x110   : > { %15821 = vmatmul.mubr.msk.f32.gmra.mrb[4].mxu1 %vm515_vm1, %v15693_v20  ;;  %15714 = vmatmul.mubr.msk.f32.gmra.mrb[2].mxu0 %vm515_vm1, %v15706_v33 }
 0x111   : > { %2762 = vmatprep.mubr.f32.mxu1 %v22280_v1  ;;  %1504 = vmatprep.mubr.f32.mxu0 %v22280_v1 }
 0x112   : > { %v19023_v15 = vpop.permute.xlu1 %3740 }
 0x114   : > { %15822 = vmatmul.mubr.msk.f32.gmra.mrb[6].mxu1 %vm515_vm1, %v15694_v23  ;;  %15715 = vmatmul.mubr.msk.f32.gmra.mrb[4].mxu0 %vm515_vm1, %v15707_v35  ;;  %v7449_v23 = vld [vmem:[#allocation2 + $0x50] sm:$0x77] }
 0x115   : > { %2768 = vmatprep.mubr.f32.mxu1 %v22280_v1  ;;  %1510 = vmatprep.mubr.f32.mxu0 %v22280_v1 }
 0x116   : > { %v19039_v20 = vpop.permute.xlu1 %4826 }
 0x117   : > { %v4831_v22 = vsel %vm649_vm2, %v19039_v20, %v4829_v17 }
 0x118   : > { %15823 = vmatmul.mubr.msk.f32.gmra.mrb[8].mxu1 %vm515_vm1, %v15695_v25  ;;  %15716 = vmatmul.mubr.msk.f32.gmra.mrb[6].mxu0 %vm515_vm1, %v15708_v38  ;;  %v7591_v25 = vcombine.high %v7449_v23, %v7449_v23 }
 0x119   : > { %2774 = vmatprep.mubr.f32.mxu1 %v22280_v1  ;;  %1516 = vmatprep.mubr.f32.mxu0 %v22280_v1 }
 0x11a   : > { %7594 = vrot.lane.b32.xlu1 %v7591_v25, %s18368_s24 }
 0x11c   : > { %15824 = vmatmul.mubr.msk.f32.gmra.mrb[10].mxu1 %vm515_vm1, %v15696_v30  ;;  %15717 = vmatmul.mubr.msk.f32.gmra.mrb[8].mxu0 %vm515_vm1, %v15709_v41  ;;  %v3447_v30 = vsel %vm649_vm2, %v18877_v34, %v18895_v40  ;;  %v6792_v40 = vld [vmem:[#allocation2 + $0x5c] sm:$0x7] }
 0x11d   : > { %2898 = vmatprep.mubr.f32.mxu1 %v22280_v1  ;;  %1522 = vmatprep.mubr.f32.mxu0 %v22280_v1 }
 0x11e   : > { %7592 = vrot.lane.b32.xlu1 %v7449_v23, %s18368_s24  ;;  %v8330_v23 = vld [vmem:[#allocation2 + $0x78] sm:$0x7] }
 0x120   : > { %15833 = vmatmul.mubr.msk.f32.vlgmr.msra.gmra.mrb[0].mxu1 %vm515_vm1, %v15705_v31  ;;  %15718 = vmatmul.mubr.msk.f32.gmra.mrb[10].mxu0 %vm515_vm1, %v15710_v44  ;;  %v15624_v31 = vld [vmem:[%s18443_s23 + $0x15] ss:$8 sm:$0x3] }
 0x121   : > { %2904 = vmatprep.mubr.f32.mxu1 %v22280_v1  ;;  %15846 = vmatpush1.msk.msra.mxu1 %vm534_vm0, %v2947_v27  ;;  %v15623_v27 = vld [vmem:[%s18443_s23 + $0x5] ss:$8 sm:$0x3] }
 0x122   : > { %15859 = vmatprep.subr.msk.mxu1 %vm534_vm0, %v3109_v45  ;;  %1637 = vmatprep.mubr.f32.mxu0 %v22280_v1  ;;  %v470_v29 = vcombine.low %v15623_v27, %v15625_v28  ;;  %v7723_v45 = vld [vmem:[#allocation2 + $0x54] sm:$0x77] }
 0x124   : > { %15834 = vmatmul.mubr.msk.f32.gmra.mrb[2].mxu1 %vm515_vm1, %v15706_v33  ;;  %15727 = vmatmul.mubr.msk.f32.vlgmr.msra.gmra.mrb[0].mxu0 %vm515_vm1, %v15719_v47  ;;  %v477_v33 = vrot.slane %v470_v29, %v18445_v6 }
 0x125   : > { %2910 = vmatprep.mubr.f32.mxu1 %v22280_v1  ;;  %1643 = vmatprep.mubr.f32.mxu0 %v22280_v1 }
 0x126   : > { %15740 = vmatpush1.msk.msra.mxu0 %vm534_vm0, %v1704_v48  ;;  %v7733_v48 = vcombine.high %v7723_v45, %v7723_v45 }
 0x127   : > { %15753 = vmatprep.subr.msk.mxu0 %vm534_vm0, %v1929_v49  ;;  %v4825_v49 = vpop.permute.xlu1 %4824 }
 0x128   : > { %15835 = vmatmul.mubr.msk.f32.gmra.mrb[4].mxu1 %vm515_vm1, %v15707_v35  ;;  %15728 = vmatmul.mubr.msk.f32.gmra.mrb[2].mxu0 %vm515_vm1, %v15720_v50  ;;  %v484_v35 = vrot.slane %v15624_v31, %v18445_v6  ;;  %v18352_v6 = vld [vmem:[%s22274_s1 + $0x38] sm:$0xff]  ;;  %v4830_v54 = vsel %vm649_vm2, %v4825_v49, %v19039_v20 }
 0x129   : > { %2916 = vmatprep.mubr.f32.mxu1 %v22280_v1  ;;  %1649 = vmatprep.mubr.f32.mxu0 %v22280_v1  ;;  %v8627_v31 = vld [vmem:[#allocation2 + $0x74] sm:$0x77] }
 0x12a   : > { %7736 = vrot.lane.b32.xlu0 %v7733_v48, %s18369_s25 }
 0x12b   : > { %v4971_v39 = vpop.permute.xlu1 %4970 }
 0x12c   : > { %15836 = vmatmul.mubr.msk.f32.gmra.mrb[6].mxu1 %vm515_vm1, %v15708_v38  ;;  %15729 = vmatmul.mubr.msk.f32.gmra.mrb[4].mxu0 %vm515_vm1, %v15721_v52  ;;  %v485_v38 = vcombine.low %v477_v33, %v484_v35  ;;  %v3588_v33 = vsel %vm793_vm3, %v19007_v9, %v18989_v4  ;;  %v3743_v35 = vsel %vm649_vm2, %v19003_v8, %v19023_v15  ;;  %v4686_v9 = vld [vmem:[%s22274_s1 + $0x18] sm:$0xff]  ;;  %v496_v15 = vld [vmem:[%s22275_s2 + $0x8] sm:$0xff] }
 0x12d   : > { %2922 = vmatprep.mubr.f32.mxu1 %v22280_v1  ;;  %1655 = vmatprep.mubr.f32.mxu0 %v22280_v1 }
 0x12e   : > { %15626 = vst.sshfl [vmem:[#allocation2 + $0x64] sm:$0x5f pattern:$0x75316420] %v485_v38  ;;  %7734 = vrot.lane.b32.xlu0 %v7723_v45, %s18369_s25  ;;  %v4685_v38 = vld [vmem:[%s22274_s1 + $0x10] sm:$0xff] }
 0x130   : > { %15837 = vmatmul.mubr.msk.f32.gmra.mrb[8].mxu1 %vm515_vm1, %v15709_v41  ;;  %15730 = vmatmul.mubr.msk.f32.gmra.mrb[6].mxu0 %vm515_vm1, %v15722_v55  ;;  %v7724_v41 = vld [vmem:[#allocation2 + $0x5c] sm:$0x7] }
 0x131   : > { %2928 = vmatprep.mubr.f32.mxu1 %v22280_v1  ;;  %1661 = vmatprep.mubr.f32.mxu0 %v22280_v1  ;;  %v17735_v42 = vpack.i.bf16 %v6792_v40, %v7724_v41  ;;  %v18370_v41 = vmov 0  }
 0x132   : > { %17756 = vset.pattern.permute.xlu1 %v18370_v41  ;;  %17755 = vset.pattern.permute.xlu0 %v18370_v41  ;;  %v16055_v41 = vld [vmem:[%s22274_s1 + $0x110] sm:$0xff] }
 0x133   : > { %17736 = vrot.lane.b32.xlu1 %v17735_v42, %s18369_s25  ;;  %v4687_v42 = vld [vmem:[%s22274_s1 + $0x20] sm:$0xff] }
 0x134   : > { %15838 = vmatmul.mubr.msk.f32.gmra.mrb[10].mxu1 %vm515_vm1, %v15710_v44  ;;  %15731 = vmatmul.mubr.msk.f32.gmra.mrb[8].mxu0 %vm515_vm1, %v15723_v57  ;;  %v6791_v44 = vld [vmem:[#allocation2 + $0x54] sm:$0x77] }
 0x135   : > { %3042 = vmatprep.mubr.f32.mxu1 %v22280_v1  ;;  %1667 = vmatprep.mubr.f32.mxu0 %v22280_v1  ;;  %v7243_v19 = vld [vmem:[#allocation2 + $0x64] sm:$0x77] }
 0x136   : > { %6802 = vrot.lane.b32.xlu0 %v6791_v44, %s18369_s25  ;;  %v7253_v29 = vcombine.high %v7243_v19, %v7243_v19 }
 0x138   : > { %15847 = vmatmul.mubr.msk.f32.vlgmr.msra.gmra.mrb[0].mxu1 %vm515_vm1, %v15719_v47  ;;  %15732 = vmatmul.mubr.msk.f32.gmra.mrb[10].mxu0 %vm515_vm1, %v15724_v62  ;;  %v6801_v47 = vcombine.high %v6791_v44, %v6791_v44  ;;  %v4688_v44 = vld [vmem:[%s22274_s1 + $0x28] sm:$0xff] }
 0x139   : > { %3048 = vmatprep.mubr.f32.mxu1 %v22280_v1  ;;  %15860 = vmatpush1.msk.msra.mxu1 %vm534_vm0, %v3108_v60  ;;  %v15989_v60 = vld [vmem:[%s22274_s1 + $0x40] sm:$0xff] }
 0x13a   : > { %15993 = vmatprep.subr.msk.mxu1 %vm534_vm0, %v4697_v61  ;;  %1792 = vmatprep.mubr.f32.mxu0 %v22280_v1  ;;  %v3589_v61 = vsel %vm793_vm3, %v18989_v4, %v18982_v2  ;;  %v15990_v2 = vld [vmem:[%s22274_s1 + $0x48] sm:$0xff] }
 0x13b   : > { %6804 = vrot.lane.b32.xlu1 %v6801_v47, %s18369_s25  ;;  %v16009_v47 = vld [vmem:[%s22274_s1 + $0x60] sm:$0xff] }
 0x13c   : > { %15848 = vmatmul.mubr.msk.f32.gmra.mrb[2].mxu1 %vm515_vm1, %v15720_v50  ;;  %15741 = vmatmul.mubr.msk.f32.vlgmr.msra.gmra.mrb[0].mxu0 %vm515_vm1, %v15733_v3  ;;  %v7877_v50 = vld [vmem:[#allocation2 + $0x60] sm:$0x77] }
 0x13d   : > { %3054 = vmatprep.mubr.f32.mxu1 %v22280_v1  ;;  %1798 = vmatprep.mubr.f32.mxu0 %v22280_v1  ;;  %v7887_v37 = vcombine.high %v7877_v50, %v7877_v50 }
 0x13e   : > { %15754 = vmatpush1.msk.msra.mxu0 %vm534_vm0, %v18914_v46  ;;  %v18353_v46 = vld [vmem:[%s22274_s1 + $0x40] sm:$0xff] }
 0x13f   : > { %15873 = vmatprep.subr.msk.mxu0 %vm534_vm0, %v3313_v5  ;;  %7890 = vrot.lane.b32.xlu1 %v7887_v37, %s18368_s24  ;;  %v3742_v37 = vsel %vm649_vm2, %v19016_v12, %v19003_v8  ;;  %v16012_v12 = vld [vmem:[%s22274_s1 + $0x78] sm:$0xff] }
 0x140   : > { %15849 = vmatmul.mubr.msk.f32.gmra.mrb[4].mxu1 %vm515_vm1, %v15721_v52  ;;  %15742 = vmatmul.mubr.msk.f32.gmra.mrb[2].mxu0 %vm515_vm1, %v15734_v7  ;;  %v15987_v52 = vld [vmem:[%s22274_s1 + $0x30] sm:$0xff] }
 0x141   : > { %3060 = vmatprep.mubr.f32.mxu1 %v22280_v1  ;;  %1804 = vmatprep.mubr.f32.mxu0 %v22280_v1 }
 0x143   : > { %7888 = vrot.lane.b32.xlu1 %v7877_v50, %s18368_s24  ;;  %v16010_v50 = vld [vmem:[%s22274_s1 + $0x68] sm:$0xff] }
 0x144   : > { %15850 = vmatmul.mubr.msk.f32.gmra.mrb[6].mxu1 %vm515_vm1, %v15722_v55  ;;  %15743 = vmatmul.mubr.msk.f32.gmra.mrb[4].mxu0 %vm515_vm1, %v15735_v10  ;;  %v19120_v55 = vpop.permute.xlu0 %4968 }
 0x145   : > { %3066 = vmatprep.mubr.f32.mxu1 %v22280_v1  ;;  %1810 = vmatprep.mubr.f32.mxu0 %v22280_v1  ;;  %v4973_v56 = vsel %vm793_vm3, %v19120_v55, %v4971_v39 }
 0x148   : > { %15851 = vmatmul.mubr.msk.f32.gmra.mrb[8].mxu1 %vm515_vm1, %v15723_v57  ;;  %15744 = vmatmul.mubr.msk.f32.gmra.mrb[6].mxu0 %vm515_vm1, %v15736_v14  ;;  %v15988_v57 = vld [vmem:[%s22274_s1 + $0x38] sm:$0xff] }
 0x149   : > { %3072 = vmatprep.mubr.f32.mxu1 %v22280_v1  ;;  %1816 = vmatprep.mubr.f32.mxu0 %v22280_v1 }
 0x14c   : > { %15852 = vmatmul.mubr.msk.f32.gmra.mrb[10].mxu1 %vm515_vm1, %v15724_v62  ;;  %15745 = vmatmul.mubr.msk.f32.gmra.mrb[8].mxu0 %vm515_vm1, %v19032_v16  ;;  %v6946_v62 = vld [vmem:[#allocation2 + $0x68] sm:$0x7] }
 0x14d   : > { %3196 = vmatprep.mubr.f32.mxu1 %v22280_v1  ;;  %1822 = vmatprep.mubr.f32.mxu0 %v22280_v1 }
 0x14e   : > { %6960 = vrot.lane.b32.xlu1 %v6946_v62, %s18368_s24 }
 0x150   : > { %15861 = vmatmul.mubr.msk.f32.vlgmr.msra.gmra.mrb[0].mxu1 %vm515_vm1, %v15733_v3  ;;  %15746 = vmatmul.mubr.msk.f32.gmra.mrb[10].mxu0 %vm515_vm1, %v19046_v21  ;;  %v19156_v3 = vpop.permute.xlu1 %4036 }
 0x151   : > { %3202 = vmatprep.mubr.f32.mxu1 %v22280_v1  ;;  %15994 = vmatpush1.msk.msra.mxu1 %vm534_vm0, %v18962_v59  ;;  %v3446_v59 = vsel %vm649_vm2, %v18888_v36, %v18877_v34  ;;  %v7878_v34 = vld [vmem:[#allocation2 + $0x68] sm:$0x7]  ;;  %v6945_v36 = vld [vmem:[#allocation2 + $0x60] sm:$0x77] }
 0x152   : > { %16001 = vmatprep.subr.msk.mxu1 %vm534_vm0, %v4831_v22  ;;  %2016 = vmatprep.mubr.f32.mxu0 %v22280_v1  ;;  %v8329_v22 = vld [vmem:[#allocation2 + $0x70] sm:$0x77] }
 0x153   : > { %7892 = vrot.lane.b32.xlu0 %v7878_v34, %s18368_s24  ;;  %v17745_v28 = vpack.i.bf16 %v8329_v22, %v8330_v23  ;;  %v8339_v4 = vcombine.high %v8329_v22, %v8329_v22  ;;  %v16039_v22 = vld [vmem:[%s22274_s1 + $0xd0] sm:$0xff] }
 0x154   : > { %15862 = vmatmul.mubr.msk.f32.gmra.mrb[2].mxu1 %vm515_vm1, %v15734_v7  ;;  %15755 = vmatmul.mubr.msk.f32.vlgmr.msra.gmra.mrb[12].mxu0 %vm515_vm1, %v18351_v32  ;;  %v6955_v7 = vcombine.high %v6945_v36, %v6945_v36  ;;  %v19173_v13 = vpop.permute.xlu1 %4034  ;;  %v8628_v32 = vld [vmem:[#allocation2 + $0x7c] sm:$0x7] }
 0x155   : > { %3208 = vmatprep.mubr.f32.mxu1 %v22280_v1  ;;  %2022 = vmatprep.mubr.f32.mxu0 %v22280_v1  ;;  %v17750_v40 = vpack.i.bf16 %v8627_v31, %v8628_v32 }
 0x156   : > { %15874 = vmatpush1.msk.msra.mxu0 %vm534_vm0, %v18978_v63  ;;  %v8175_v63 = vld [vmem:[#allocation2 + $0x64] sm:$0x77] }
 0x157   : > { %15881 = vmatprep.subr.msk.mxu0 %vm534_vm0, %v3447_v30  ;;  %v8185_v5 = vcombine.high %v8175_v63, %v8175_v63  ;;  %6958 = vrot.lane.b32.xlu0 %v6955_v7, %s18368_s24  ;;  %v4684_v30 = vld [vmem:[%s22274_s1 + $0x8] sm:$0xff] }
 0x158   : > { %15863 = vmatmul.mubr.msk.f32.gmra.mrb[4].mxu1 %vm515_vm1, %v15735_v10  ;;  %15756 = vmatmul.mubr.msk.f32.gmra.mrb[14].mxu0 %vm515_vm1, %v18352_v6  ;;  %v4967_v10 = vpop.permute.xlu0 %4966  ;;  %v8637_v6 = vcombine.high %v8627_v31, %v8627_v31  ;;  %v4331_v31 = vld [vmem:[#allocation2 + $0x44] sm:$0x77] }
 0x159   : > { %3214 = vmatprep.mubr.f32.mxu1 %v22280_v1  ;;  %2028 = vmatprep.mubr.f32.mxu0 %v22280_v1  ;;  %v4972_v25 = vsel %vm793_vm3, %v4967_v10, %v19120_v55 }
 0x15a   : > { %8188 = vrot.lane.b32.xlu1 %v8185_v5, %s18369_s25  ;;  %v16027_v5 = vld [vmem:[%s22274_s1 + $0xb0] sm:$0xff] }
 0x15b   : > { %6956 = vrot.lane.b32.xlu0 %v6945_v36, %s18368_s24  ;;  %v16026_v36 = vld [vmem:[%s22274_s1 + $0xa8] sm:$0xff] }
 0x15c   : > { %15864 = vmatmul.mubr.msk.f32.gmra.mrb[6].mxu1 %vm515_vm1, %v15736_v14  ;;  %15757 = vmatmul.mubr.msk.f32.gmra.mrb[16].mxu0 %vm515_vm1, %v18353_v46  ;;  %v7244_v14 = vld [vmem:[#allocation2 + $0x6c] sm:$0x7]  ;;  %v19178_v17 = vpop.permute.xlu0 %4038  ;;  %v5263_v46 = vld [vmem:[#allocation2 + $0x44] sm:$0x77] }
 0x15d   : > { %3220 = vmatprep.mubr.f32.mxu1 %v22280_v1  ;;  %2034 = vmatprep.mubr.f32.mxu0 %v22280_v1  ;;  %v5271_v49 = vcombine.high %v5263_v46, %v5263_v46  ;;  %v4041_v62 = vsel %vm793_vm3, %v19156_v3, %v19178_v17 }
 0x15e   : > { %8186 = vrot.lane.b32.xlu1 %v8175_v63, %s18369_s25  ;;  %v16025_v63 = vld [vmem:[%s22274_s1 + $0xa0] sm:$0xff] }
 0x160   : > { %15865 = vmatmul.mubr.msk.f32.gmra.mrb[8].mxu1 %vm515_vm1, %v19032_v16  ;;  %15758 = vmatmul.mubr.msk.f32.gmra.mrb[18].mxu0 %vm515_vm1, %v18354_v51  ;;  %v8176_v16 = vld [vmem:[#allocation2 + $0x6c] sm:$0x7]  ;;  %v5123_v26 = vpop.permute.xlu0 %5122  ;;  %v3879_v51 = vld [vmem:[#allocation2 + $0x34] sm:$0x77] }
 0x161   : > { %3226 = vmatprep.mubr.f32.mxu1 %v22280_v1  ;;  %2040 = vmatprep.mubr.f32.mxu0 %v22280_v1  ;;  %v17740_v20 = vpack.i.bf16 %v7244_v14, %v8176_v16  ;;  %v3887_v39 = vcombine.high %v3879_v51, %v3879_v51  ;;  %v16037_v16 = vld [vmem:[%s22274_s1 + $0xc0] sm:$0xff] }
 0x162   : > { %7254 = vrot.lane.b32.xlu1 %v7243_v19, %s18369_s25 }
 0x163   : > { %17741 = vrot.lane.b32.xlu0 %v17740_v20, %s18369_s25  ;;  %v16038_v20 = vld [vmem:[%s22274_s1 + $0xc8] sm:$0xff] }
 0x164   : > { %15866 = vmatmul.mubr.msk.f32.gmra.mrb[10].mxu1 %vm515_vm1, %v19046_v21  ;;  %15759 = vmatmul.mubr.msk.f32.gmra.mrb[20].mxu0 %vm515_vm1, %v18355_v53  ;;  %v5125_v21 = vpop.permute.xlu1 %5124  ;;  %v5121_v45 = vpop.permute.xlu0 %5120  ;;  %v16013_v53 = vld [vmem:[%s22274_s1 + $0x80] sm:$0xff] }
 0x165   : > { %4784 = vmatprep.mubr.f32.mxu1 %v22280_v1  ;;  %2046 = vmatprep.mubr.f32.mxu0 %v22280_v1  ;;  %v5127_v27 = vsel %vm649_vm2, %v5123_v26, %v5125_v21  ;;  %v5126_v48 = vsel %vm649_vm2, %v5121_v45, %v5123_v26  ;;  %v4040_v21 = vsel %vm793_vm3, %v19173_v13, %v19156_v3  ;;  %v16040_v3 = vld [vmem:[%s22274_s1 + $0xd8] sm:$0xff]  ;;  %v16041_v13 = vld [vmem:[%s22274_s1 + $0xe0] sm:$0xff]  ;;  %v16066_v45 = vld [vmem:[%s22274_s1 + $0x128] sm:$0xff] }
 0x166   : > { %17746 = vrot.lane.b32.xlu1 %v17745_v28, %s18368_s24  ;;  %v5715_v26 = vld [vmem:[#allocation2 + $0x54] sm:$0x77] }
 0x167   : > { %7256 = vrot.lane.b32.xlu0 %v7253_v29, %s18369_s25  ;;  %v5723_v29 = vcombine.high %v5715_v26, %v5715_v26 }
 0x168   : > { %15995 = vmatmul.mubr.msk.f32.vlgmr.msra.gmra.mrb[12].mxu1 %vm515_vm1, %v15987_v52  ;;  %15760 = vmatmul.mubr.msk.f32.gmra.mrb[22].mxu0 %vm515_vm1, %v18356_v58  ;;  %v19286_v8 = vpop.permute.xlu1 %4190  ;;  %v19304_v55 = vpop.permute.xlu0 %4192  ;;  %v16023_v58 = vld [vmem:[%s22274_s1 + $0x90] sm:$0xff] }
 0x169   : > { %4790 = vmatprep.mubr.f32.mxu1 %v22280_v1  ;;  %16002 = vmatpush1.msk.msra.mxu1 %vm534_vm0, %v4830_v54  ;;  %v4195_v23 = vsel %vm649_vm2, %v19286_v8, %v19304_v55  ;;  %v19550_v55 = vld [vmem:[#allocation2 + $0x44] sm:$0x77] }
 0x16a   : > { %16015 = vmatprep.subr.msk.mxu1 %vm534_vm0, %v4973_v56  ;;  %3400 = vmatprep.mubr.f32.mxu0 %v22280_v1  ;;  %v16014_v56 = vld [vmem:[%s22274_s1 + $0x88] sm:$0xff] }
 0x16b   : > { %17751 = vrot.lane.b32.xlu1 %v17750_v40, %s18369_s25  ;;  %8342 = vrot.lane.b32.xlu0 %v8339_v4, %s18368_s24  ;;  %v16054_v40 = vld [vmem:[%s22274_s1 + $0x108] sm:$0xff] }
 0x16c   : > { %15996 = vmatmul.mubr.msk.f32.gmra.mrb[14].mxu1 %vm515_vm1, %v15988_v57  ;;  %15875 = vmatmul.mubr.msk.f32.vlgmr.msra.gmra.mrb[24].mxu0 %vm515_vm1, %v15987_v52  ;;  %v16011_v52 = vld [vmem:[%s22274_s1 + $0x70] sm:$0xff]  ;;  %v19300_v54 = vpop.permute.xlu1 %4188 }
 0x16d   : > { %4796 = vmatprep.mubr.f32.mxu1 %v22280_v1  ;;  %3406 = vmatprep.mubr.f32.mxu0 %v22280_v1  ;;  %v4194_v32 = vsel %vm649_vm2, %v19300_v54, %v19286_v8 }
 0x16e   : > { %15882 = vmatpush1.msk.msra.mxu0 %vm534_vm0, %v3446_v59  ;;  %v5421_v59 = vpop.permute.xlu0 %5420 }
 0x16f   : > { %15895 = vmatprep.subr.msk.mxu0 %vm534_vm0, %v3589_v61  ;;  %1898 = vperm.xlu1 %17756, %v496_v15   ;;  %v16024_v61 = vld [vmem:[%s22274_s1 + $0x98] sm:$0xff] }
 0x170   : > { %15997 = vmatmul.mubr.msk.f32.gmra.mrb[16].mxu1 %vm515_vm1, %v15989_v60  ;;  %15876 = vmatmul.mubr.msk.f32.gmra.mrb[26].mxu0 %vm515_vm1, %v15988_v57  ;;  %v5423_v57 = vpop.permute.xlu1 %5422  ;;  %v16056_v15 = vld [vmem:[%s22274_s1 + $0x118] sm:$0xff] }
 0x171   : > { %4802 = vmatprep.mubr.f32.mxu1 %v22280_v1  ;;  %3412 = vmatprep.mubr.f32.mxu0 %v22280_v1 }
 0x172   : > { %8640 = vrot.lane.b32.xlu0 %v8637_v6, %s18369_s25 }
 0x174   : > { %15998 = vmatmul.mubr.msk.f32.gmra.mrb[18].mxu1 %vm515_vm1, %v15990_v2  ;;  %15877 = vmatmul.mubr.msk.f32.gmra.mrb[28].mxu0 %vm515_vm1, %v15989_v60  ;;  %v5425_v60 = vsel %vm793_vm3, %v5421_v59, %v5423_v57  ;;  %v19342_v34 = vpop.permute.xlu1 %4488 }
 0x175   : > { %4808 = vmatprep.mubr.f32.mxu1 %v22280_v1  ;;  %3418 = vmatprep.mubr.f32.mxu0 %v22280_v1 }
 0x176   : > { %1893 = vperm.xlu0 %17755, %v495_v43  }
 0x178   : > { %15999 = vmatmul.mubr.msk.f32.gmra.mrb[20].mxu1 %vm515_vm1, %v15991_v11  ;;  %15878 = vmatmul.mubr.msk.f32.gmra.mrb[30].mxu0 %vm515_vm1, %v15990_v2  ;;  %v5419_v2 = vpop.permute.xlu0 %5418  ;;  %v19356_v7 = vpop.permute.xlu1 %4486 }
 0x179   : > { %4814 = vmatprep.mubr.f32.mxu1 %v22280_v1  ;;  %3424 = vmatprep.mubr.f32.mxu0 %v22280_v1  ;;  %v5424_v17 = vsel %vm793_vm3, %v5419_v2, %v5421_v59 }
 0x17c   : > { %16000 = vmatmul.mubr.msk.f32.gmra.mrb[22].mxu1 %vm515_vm1, %v15992_v18  ;;  %15879 = vmatmul.mubr.msk.f32.gmra.mrb[32].mxu0 %vm515_vm1, %v15991_v11  ;;  %v19360_v10 = vpop.permute.xlu0 %4490  ;;  %v16028_v11 = vld [vmem:[%s22274_s1 + $0xb8] sm:$0xff]  ;;  %v5577_v14 = vpop.permute.xlu1 %5576 }
 0x17d   : > { %4918 = vmatprep.mubr.f32.mxu1 %v22280_v1  ;;  %3430 = vmatprep.mubr.f32.mxu0 %v22280_v1 }
 0x180   : > { %16003 = vmatmul.mubr.msk.f32.vlgmr.msra.gmra.mrb[12].mxu1 %vm515_vm1, %v4683_v24  ;;  %15880 = vmatmul.mubr.msk.f32.gmra.mrb[34].mxu0 %vm515_vm1, %v15992_v18  ;;  %v5575_v18 = vpop.permute.xlu0 %5574 }
 0x181   : > { %4924 = vmatprep.mubr.f32.mxu1 %v22280_v1  ;;  %16016 = vmatpush1.msk.msra.mxu1 %vm534_vm0, %v4972_v25  ;;  %v5579_v19 = vsel %vm649_vm2, %v5575_v18, %v5577_v14 }
 0x182   : > { %16029 = vmatprep.subr.msk.mxu1 %vm534_vm0, %v5127_v27  ;;  %3534 = vmatprep.mubr.f32.mxu0 %v22280_v1  ;;  %v16051_v27 = vld [vmem:[%s22274_s1 + $0xf0] sm:$0xff] }
 0x184   : > { %16004 = vmatmul.mubr.msk.f32.gmra.mrb[14].mxu1 %vm515_vm1, %v4684_v30  ;;  %15883 = vmatmul.mubr.msk.f32.vlgmr.msra.gmra.mrb[24].mxu0 %vm515_vm1, %v4683_v24  ;;  %v16042_v24 = vld [vmem:[%s22274_s1 + $0xe8] sm:$0xff]  ;;  %v5573_v25 = vpop.permute.xlu0 %5572 }
 0x185   : > { %4930 = vmatprep.mubr.f32.mxu1 %v22280_v1  ;;  %3540 = vmatprep.mubr.f32.mxu0 %v22280_v1  ;;  %v5578_v28 = vsel %vm649_vm2, %v5573_v25, %v5575_v18 }
 0x186   : > { %15896 = vmatpush1.msk.msra.mxu0 %vm534_vm0, %v3588_v33  ;;  %v4339_v33 = vcombine.high %v4331_v31, %v4331_v31 }
 0x187   : > { %15909 = vmatprep.subr.msk.mxu0 %vm534_vm0, %v3743_v35  ;;  %v16053_v35 = vld [vmem:[%s22274_s1 + $0x100] sm:$0xff] }
 0x188   : > { %16005 = vmatmul.mubr.msk.f32.gmra.mrb[16].mxu1 %vm515_vm1, %v4685_v38  ;;  %15884 = vmatmul.mubr.msk.f32.gmra.mrb[26].mxu0 %vm515_vm1, %v4684_v30  ;;  %v16052_v30 = vld [vmem:[%s22274_s1 + $0xf8] sm:$0xff] }
 0x189   : > { %4936 = vmatprep.mubr.f32.mxu1 %v22280_v1  ;;  %3546 = vmatprep.mubr.f32.mxu0 %v22280_v1 }
 0x18c   : > { %16006 = vmatmul.mubr.msk.f32.gmra.mrb[18].mxu1 %vm515_vm1, %v4686_v9  ;;  %15885 = vmatmul.mubr.msk.f32.gmra.mrb[28].mxu0 %vm515_vm1, %v4685_v38  ;;  %v19452_v38 = vpop.permute.xlu1 %6210 }
 0x18d   : > { %4942 = vmatprep.mubr.f32.mxu1 %v22280_v1  ;;  %3552 = vmatprep.mubr.f32.mxu0 %v22280_v1 }
 0x190   : > { %16007 = vmatmul.mubr.msk.f32.gmra.mrb[20].mxu1 %vm515_vm1, %v4687_v42  ;;  %15886 = vmatmul.mubr.msk.f32.gmra.mrb[30].mxu0 %vm515_vm1, %v4686_v9  ;;  %v19466_v4 = vpop.permute.xlu1 %6208  ;;  %v19470_v9 = vpop.permute.xlu0 %6212 }
 0x191   : > { %4948 = vmatprep.mubr.f32.mxu1 %v22280_v1  ;;  %3558 = vmatprep.mubr.f32.mxu0 %v22280_v1 }
 0x194   : > { %16008 = vmatmul.mubr.msk.f32.gmra.mrb[22].mxu1 %vm515_vm1, %v4688_v44  ;;  %15887 = vmatmul.mubr.msk.f32.gmra.mrb[32].mxu0 %vm515_vm1, %v4687_v42  ;;  %v5875_v6 = vpop.permute.xlu1 %5874  ;;  %v16065_v42 = vld [vmem:[%s22274_s1 + $0x120] sm:$0xff]  ;;  %v5873_v43 = vpop.permute.xlu0 %5872 }
 0x195   : > { %5060 = vmatprep.mubr.f32.mxu1 %v22280_v1  ;;  %3564 = vmatprep.mubr.f32.mxu0 %v22280_v1 }
 0x198   : > { %16017 = vmatmul.mubr.msk.f32.vlgmr.msra.gmra.mrb[12].mxu1 %vm515_vm1, %v16009_v47  ;;  %15888 = vmatmul.mubr.msk.f32.gmra.mrb[34].mxu0 %vm515_vm1, %v4688_v44  ;;  %v5877_v44 = vsel %vm793_vm3, %v5873_v43, %v5875_v6  ;;  %v19559_v59 = vpop.permute.xlu1 %6352 }
 0x199   : > { %5066 = vmatprep.mubr.f32.mxu1 %v22280_v1  ;;  %16030 = vmatpush1.msk.msra.mxu1 %vm534_vm0, %v5126_v48  ;;  %v16068_v48 = vld [vmem:[%s22274_s1 + $0x138] sm:$0xff] }
 0x19a   : > { %16043 = vmatprep.subr.msk.mxu1 %vm534_vm0, %v5271_v49  ;;  %3676 = vmatprep.mubr.f32.mxu0 %v22280_v1  ;;  %v16069_v49 = vld [vmem:[%s22274_s1 + $0x140] sm:$0xff] }
 0x19c   : > { %16018 = vmatmul.mubr.msk.f32.gmra.mrb[14].mxu1 %vm515_vm1, %v16010_v50  ;;  %15897 = vmatmul.mubr.msk.f32.vlgmr.msra.gmra.mrb[24].mxu0 %vm515_vm1, %v16009_v47  ;;  %v16067_v47 = vld [vmem:[%s22274_s1 + $0x130] sm:$0xff] }
 0x19d   : > { %5072 = vmatprep.mubr.f32.mxu1 %v22280_v1  ;;  %3682 = vmatprep.mubr.f32.mxu0 %v22280_v1 }
 0x19e   : > { %15910 = vmatpush1.msk.msra.mxu0 %vm534_vm0, %v3742_v37  ;;  %v19529_v37 = vld [vmem:[#allocation2 + $0x54] sm:$0x77] }
 0x19f   : > { %15923 = vmatprep.subr.msk.mxu0 %vm534_vm0, %v3887_v39  ;;  %v16079_v39 = vld [vmem:[%s22274_s1 + $0x150] sm:$0xff]  ;;  %v7465_v8 = vcombine.high %v19529_v37, %v19529_v37 }
 0x1a0   : > { %16019 = vmatmul.mubr.msk.f32.gmra.mrb[16].mxu1 %vm515_vm1, %v16011_v52  ;;  %15898 = vmatmul.mubr.msk.f32.gmra.mrb[26].mxu0 %vm515_vm1, %v16010_v50  ;;  %v16070_v50 = vld [vmem:[%s22274_s1 + $0x148] sm:$0xff] }
 0x1a1   : > { %5078 = vmatprep.mubr.f32.mxu1 %v22280_v1  ;;  %3688 = vmatprep.mubr.f32.mxu0 %v22280_v1 }
 0x1a4   : > { %16020 = vmatmul.mubr.msk.f32.gmra.mrb[18].mxu1 %vm515_vm1, %v16012_v12  ;;  %15899 = vmatmul.mubr.msk.f32.gmra.mrb[28].mxu0 %vm515_vm1, %v16011_v52 }
 0x1a5   : > { %5084 = vmatprep.mubr.f32.mxu1 %v22280_v1  ;;  %3694 = vmatprep.mubr.f32.mxu0 %v22280_v1 }
 0x1a8   : > { %16021 = vmatmul.mubr.msk.f32.gmra.mrb[20].mxu1 %vm515_vm1, %v16013_v53  ;;  %15900 = vmatmul.mubr.msk.f32.gmra.mrb[30].mxu0 %vm515_vm1, %v16012_v12 }
 0x1a9   : > { %5090 = vmatprep.mubr.f32.mxu1 %v22280_v1  ;;  %3700 = vmatprep.mubr.f32.mxu0 %v22280_v1 }
 0x1ac   : > { %16022 = vmatmul.mubr.msk.f32.gmra.mrb[22].mxu1 %vm515_vm1, %v16014_v56  ;;  %15901 = vmatmul.mubr.msk.f32.gmra.mrb[32].mxu0 %vm515_vm1, %v16013_v53  ;;  %v16080_v53 = vld [vmem:[%s22274_s1 + $0x158] sm:$0xff] }
 0x1ad   : > { %5214 = vmatprep.mubr.f32.mxu1 %v22280_v1  ;;  %3706 = vmatprep.mubr.f32.mxu0 %v22280_v1 }
 0x1b0   : > { %16031 = vmatmul.mubr.msk.f32.vlgmr.msra.gmra.mrb[12].mxu1 %vm515_vm1, %v16023_v58  ;;  %15902 = vmatmul.mubr.msk.f32.gmra.mrb[34].mxu0 %vm515_vm1, %v16014_v56 }
 0x1b1   : > { %5220 = vmatprep.mubr.f32.mxu1 %v22280_v1  ;;  %16044 = vmatpush1.msk.msra.mxu1 %vm534_vm0, %v5263_v46  ;;  %v4493_v46 = vsel %vm793_vm3, %v19342_v34, %v19360_v10  ;;  %v16083_v10 = vld [vmem:[%s22274_s1 + $0x170] sm:$0xff] }
 0x1b2   : > { %16057 = vmatprep.subr.msk.mxu1 %vm534_vm0, %v5425_v60  ;;  %3830 = vmatprep.mubr.f32.mxu0 %v22280_v1  ;;  %v4492_v60 = vsel %vm793_vm3, %v19356_v7, %v19342_v34  ;;  %v16082_v34 = vld [vmem:[%s22274_s1 + $0x168] sm:$0xff] }
 0x1b4   : > { %16032 = vmatmul.mubr.msk.f32.gmra.mrb[14].mxu1 %vm515_vm1, %v16024_v61  ;;  %15911 = vmatmul.mubr.msk.f32.vlgmr.msra.gmra.mrb[24].mxu0 %vm515_vm1, %v16023_v58  ;;  %v16081_v58 = vld [vmem:[%s22274_s1 + $0x160] sm:$0xff] }
 0x1b5   : > { %5226 = vmatprep.mubr.f32.mxu1 %v22280_v1  ;;  %3836 = vmatprep.mubr.f32.mxu0 %v22280_v1 }
 0x1b6   : > { %15924 = vmatpush1.msk.msra.mxu0 %vm534_vm0, %v3879_v51  ;;  %v5871_v51 = vpop.permute.xlu0 %5870 }
 0x1b7   : > { %15937 = vmatprep.subr.msk.mxu0 %vm534_vm0, %v4041_v62  ;;  %v5876_v52 = vsel %vm793_vm3, %v5871_v51, %v5873_v43  ;;  %v6081_v62 = vcombine.high %v19550_v55, %v19550_v55 }
 0x1b8   : > { %16033 = vmatmul.mubr.msk.f32.gmra.mrb[16].mxu1 %vm515_vm1, %v16025_v63  ;;  %15912 = vmatmul.mubr.msk.f32.gmra.mrb[26].mxu0 %vm515_vm1, %v16024_v61 }
 0x1b9   : > { %5232 = vmatprep.mubr.f32.mxu1 %v22280_v1  ;;  %3842 = vmatprep.mubr.f32.mxu0 %v22280_v1 }
 0x1ba   : > { %v19552_v56 = vpop.permute.xlu0 %6354 }
 0x1bc   : > { %16034 = vmatmul.mubr.msk.f32.gmra.mrb[18].mxu1 %vm515_vm1, %v16026_v36  ;;  %15913 = vmatmul.mubr.msk.f32.gmra.mrb[28].mxu0 %vm515_vm1, %v16025_v63 }
 0x1bd   : > { %5238 = vmatprep.mubr.f32.mxu1 %v22280_v1  ;;  %3848 = vmatprep.mubr.f32.mxu0 %v22280_v1 }
 0x1c0   : > { %16035 = vmatmul.mubr.msk.f32.gmra.mrb[20].mxu1 %vm515_vm1, %v16027_v5  ;;  %15914 = vmatmul.mubr.msk.f32.gmra.mrb[30].mxu0 %vm515_vm1, %v16026_v36  ;;  %v19578_v36 = vpop.permute.xlu0 %6506 }
 0x1c1   : > { %5244 = vmatprep.mubr.f32.mxu1 %v22280_v1  ;;  %3854 = vmatprep.mubr.f32.mxu0 %v22280_v1 }
 0x1c4   : > { %16036 = vmatmul.mubr.msk.f32.gmra.mrb[22].mxu1 %vm515_vm1, %v16028_v11  ;;  %15915 = vmatmul.mubr.msk.f32.gmra.mrb[32].mxu0 %vm515_vm1, %v16027_v5  ;;  %v19585_v5 = vpop.permute.xlu1 %6350  ;;  %v19598_v14 = vpop.permute.xlu0 %6504 }
 0x1c5   : > { %5358 = vmatprep.mubr.f32.mxu1 %v22280_v1  ;;  %3860 = vmatprep.mubr.f32.mxu0 %v22280_v1 }
 0x1c8   : > { %16045 = vmatmul.mubr.msk.f32.vlgmr.msra.gmra.mrb[12].mxu1 %vm515_vm1, %v16037_v16  ;;  %15916 = vmatmul.mubr.msk.f32.gmra.mrb[34].mxu0 %vm515_vm1, %v16028_v11  ;;  %v19606_v18 = vpop.permute.xlu1 %6508 }
 0x1c9   : > { %5364 = vmatprep.mubr.f32.mxu1 %v22280_v1  ;;  %16058 = vmatpush1.msk.msra.mxu1 %vm534_vm0, %v5424_v17  ;;  %v16084_v17 = vld [vmem:[%s22274_s1 + $0x178] sm:$0xff] }
 0x1ca   : > { %16071 = vmatprep.subr.msk.mxu1 %vm534_vm0, %v5579_v19  ;;  %3974 = vmatprep.mubr.f32.mxu0 %v22280_v1 }
 0x1cc   : > { %16046 = vmatmul.mubr.msk.f32.gmra.mrb[14].mxu1 %vm515_vm1, %v16038_v20  ;;  %15925 = vmatmul.mubr.msk.f32.vlgmr.msra.gmra.mrb[24].mxu0 %vm515_vm1, %v16037_v16  ;;  %v19619_v25 = vpop.permute.xlu1 %7594 }
 0x1cd   : > { %5370 = vmatprep.mubr.f32.mxu1 %v22280_v1  ;;  %3980 = vmatprep.mubr.f32.mxu0 %v22280_v1 }
 0x1ce   : > { %15938 = vmatpush1.msk.msra.mxu0 %vm534_vm0, %v4040_v21 }
 0x1cf   : > { %15951 = vmatprep.subr.msk.mxu0 %vm534_vm0, %v4195_v23  ;;  %v16093_v23 = vld [vmem:[%s22274_s1 + $0x180] sm:$0xff] }
 0x1d0   : > { %16047 = vmatmul.mubr.msk.f32.gmra.mrb[16].mxu1 %vm515_vm1, %v16039_v22  ;;  %15926 = vmatmul.mubr.msk.f32.gmra.mrb[26].mxu0 %vm515_vm1, %v16038_v20 }
 0x1d1   : > { %5376 = vmatprep.mubr.f32.mxu1 %v22280_v1  ;;  %3986 = vmatprep.mubr.f32.mxu0 %v22280_v1 }
 0x1d4   : > { %16048 = vmatmul.mubr.msk.f32.gmra.mrb[18].mxu1 %vm515_vm1, %v16040_v3  ;;  %15927 = vmatmul.mubr.msk.f32.gmra.mrb[28].mxu0 %vm515_vm1, %v16039_v22 }
 0x1d5   : > { %5382 = vmatprep.mubr.f32.mxu1 %v22280_v1  ;;  %3992 = vmatprep.mubr.f32.mxu0 %v22280_v1 }
 0x1d8   : > { %16049 = vmatmul.mubr.msk.f32.gmra.mrb[20].mxu1 %vm515_vm1, %v16041_v13  ;;  %15928 = vmatmul.mubr.msk.f32.gmra.mrb[30].mxu0 %vm515_vm1, %v16040_v3  ;;  %v7597_v3 = vpop.permute.xlu0 %7596 }
 0x1d9   : > { %5388 = vmatprep.mubr.f32.mxu1 %v22280_v1  ;;  %3998 = vmatprep.mubr.f32.mxu0 %v22280_v1 }
 0x1dc   : > { %16050 = vmatmul.mubr.msk.f32.gmra.mrb[22].mxu1 %vm515_vm1, %v16042_v24  ;;  %15929 = vmatmul.mubr.msk.f32.gmra.mrb[32].mxu0 %vm515_vm1, %v16041_v13 }
 0x1dd   : > { %5512 = vmatprep.mubr.f32.mxu1 %v22280_v1  ;;  %4004 = vmatprep.mubr.f32.mxu0 %v22280_v1 }
 0x1e0   : > { %16059 = vmatmul.mubr.msk.f32.vlgmr.msra.gmra.mrb[12].mxu1 %vm515_vm1, %v16051_v27  ;;  %15930 = vmatmul.mubr.msk.f32.gmra.mrb[34].mxu0 %vm515_vm1, %v16042_v24 }
 0x1e1   : > { %5518 = vmatprep.mubr.f32.mxu1 %v22280_v1  ;;  %16072 = vmatpush1.msk.msra.mxu1 %vm534_vm0, %v5578_v28 }
 0x1e2   : > { %16085 = vmatprep.subr.msk.mxu1 %vm534_vm0, %v5723_v29  ;;  %4128 = vmatprep.mubr.f32.mxu0 %v22280_v1  ;;  %v16094_v29 = vld [vmem:[%s22274_s1 + $0x188] sm:$0xff] }
 0x1e4   : > { %16060 = vmatmul.mubr.msk.f32.gmra.mrb[14].mxu1 %vm515_vm1, %v16052_v30  ;;  %15939 = vmatmul.mubr.msk.f32.vlgmr.msra.gmra.mrb[24].mxu0 %vm515_vm1, %v16051_v27  ;;  %v7599_v27 = vsel %vm649_vm2, %v19619_v25, %v7597_v3 }
 0x1e5   : > { %5524 = vmatprep.mubr.f32.mxu1 %v22280_v1  ;;  %4134 = vmatprep.mubr.f32.mxu0 %v22280_v1 }
 0x1e6   : > { %15952 = vmatpush1.msk.msra.mxu0 %vm534_vm0, %v4194_v32 }
 0x1e7   : > { %15965 = vmatprep.subr.msk.mxu0 %vm534_vm0, %v4339_v33 }
 0x1e8   : > { %16061 = vmatmul.mubr.msk.f32.gmra.mrb[16].mxu1 %vm515_vm1, %v16053_v35  ;;  %15940 = vmatmul.mubr.msk.f32.gmra.mrb[26].mxu0 %vm515_vm1, %v16052_v30 }
 0x1e9   : > { %5530 = vmatprep.mubr.f32.mxu1 %v22280_v1  ;;  %4140 = vmatprep.mubr.f32.mxu0 %v22280_v1 }
 0x1ec   : > { %16062 = vmatmul.mubr.msk.f32.gmra.mrb[18].mxu1 %vm515_vm1, %v16054_v40  ;;  %15941 = vmatmul.mubr.msk.f32.gmra.mrb[28].mxu0 %vm515_vm1, %v16053_v35 }
 0x1ed   : > { %5536 = vmatprep.mubr.f32.mxu1 %v22280_v1  ;;  %4146 = vmatprep.mubr.f32.mxu0 %v22280_v1 }
 0x1f0   : > { %16063 = vmatmul.mubr.msk.f32.gmra.mrb[20].mxu1 %vm515_vm1, %v16055_v41  ;;  %15942 = vmatmul.mubr.msk.f32.gmra.mrb[30].mxu0 %vm515_vm1, %v16054_v40 }
 0x1f1   : > { %5542 = vmatprep.mubr.f32.mxu1 %v22280_v1  ;;  %4152 = vmatprep.mubr.f32.mxu0 %v22280_v1 }
 0x1f4   : > { %16064 = vmatmul.mubr.msk.f32.gmra.mrb[22].mxu1 %vm515_vm1, %v16056_v15  ;;  %15943 = vmatmul.mubr.msk.f32.gmra.mrb[32].mxu0 %vm515_vm1, %v16055_v41  ;;  %v16095_v41 = vld [vmem:[%s22274_s1 + $0x190] sm:$0xff] }
 0x1f5   : > { %5666 = vmatprep.mubr.f32.mxu1 %v22280_v1  ;;  %4158 = vmatprep.mubr.f32.mxu0 %v22280_v1 }
 0x1f8   : > { %16073 = vmatmul.mubr.msk.f32.vlgmr.msra.gmra.mrb[12].mxu1 %vm515_vm1, %v16065_v42  ;;  %15944 = vmatmul.mubr.msk.f32.gmra.mrb[34].mxu0 %vm515_vm1, %v16056_v15 }
 0x1f9   : > { %5672 = vmatprep.mubr.f32.mxu1 %v22280_v1  ;;  %16086 = vmatpush1.msk.msra.mxu1 %vm534_vm0, %v5715_v26 }
 0x1fa   : > { %16099 = vmatprep.subr.msk.mxu1 %vm534_vm0, %v5877_v44  ;;  %4282 = vmatprep.mubr.f32.mxu0 %v22280_v1  ;;  %v6215_v44 = vsel %vm649_vm2, %v19452_v38, %v19470_v9 }
 0x1fc   : > { %16074 = vmatmul.mubr.msk.f32.gmra.mrb[14].mxu1 %vm515_vm1, %v16066_v45  ;;  %15953 = vmatmul.mubr.msk.f32.vlgmr.msra.gmra.mrb[24].mxu0 %vm515_vm1, %v16065_v42 }
 0x1fd   : > { %5678 = vmatprep.mubr.f32.mxu1 %v22280_v1  ;;  %4288 = vmatprep.mubr.f32.mxu0 %v22280_v1 }
 0x1fe   : > { %15966 = vmatpush1.msk.msra.mxu0 %vm534_vm0, %v4331_v31 }
 0x1ff   : > { %15979 = vmatprep.subr.msk.mxu0 %vm534_vm0, %v4493_v46 }
 0x200   : > { %16075 = vmatmul.mubr.msk.f32.gmra.mrb[16].mxu1 %vm515_vm1, %v16067_v47  ;;  %15954 = vmatmul.mubr.msk.f32.gmra.mrb[26].mxu0 %vm515_vm1, %v16066_v45 }
 0x201   : > { %5684 = vmatprep.mubr.f32.mxu1 %v22280_v1  ;;  %4294 = vmatprep.mubr.f32.mxu0 %v22280_v1 }
 0x204   : > { %16076 = vmatmul.mubr.msk.f32.gmra.mrb[18].mxu1 %vm515_vm1, %v16068_v48  ;;  %15955 = vmatmul.mubr.msk.f32.gmra.mrb[28].mxu0 %vm515_vm1, %v16067_v47  ;;  %v16096_v47 = vld [vmem:[%s22274_s1 + $0x198] sm:$0xff] }
 0x205   : > { %5690 = vmatprep.mubr.f32.mxu1 %v22280_v1  ;;  %4300 = vmatprep.mubr.f32.mxu0 %v22280_v1 }
 0x208   : > { %16077 = vmatmul.mubr.msk.f32.gmra.mrb[20].mxu1 %vm515_vm1, %v16069_v49  ;;  %15956 = vmatmul.mubr.msk.f32.gmra.mrb[30].mxu0 %vm515_vm1, %v16068_v48 }
 0x209   : > { %5696 = vmatprep.mubr.f32.mxu1 %v22280_v1  ;;  %4306 = vmatprep.mubr.f32.mxu0 %v22280_v1 }
 0x20c   : > { %16078 = vmatmul.mubr.msk.f32.gmra.mrb[22].mxu1 %vm515_vm1, %v16070_v50  ;;  %15957 = vmatmul.mubr.msk.f32.gmra.mrb[32].mxu0 %vm515_vm1, %v16069_v49 }
 0x20d   : > { %5810 = vmatprep.mubr.f32.mxu1 %v22280_v1  ;;  %4312 = vmatprep.mubr.f32.mxu0 %v22280_v1 }
 0x20f   : > { %v1794_v12 = vpop.f32.mrb[0].mxu0 }
 0x210   : > { %16087 = vmatmul.mubr.msk.f32.vlgmr.msra.gmra.mrb[12].mxu1 %vm515_vm1, %v16079_v39  ;;  %1841 = vrot.lane.b32.xlu1 %v1794_v12, %s18371_s8  ;;  %v1796_v54 = vpop.f32.mrb[1].mxu0  ;;  %v7593_v12 = vpop.permute.xlu1 %7592 }
 0x211   : > { %5816 = vmatprep.mubr.f32.mxu1 %v22280_v1  ;;  %16100 = vmatpush1.msk.msra.mxu1 %vm534_vm0, %v5876_v52 }
 0x212   : > { %15958 = vmatmul.mubr.msk.f32.gmra.mrb[34].mxu0 %vm515_vm1, %v16070_v50  ;;  %16233 = vmatprep.subr.msk.mxu1 %vm534_vm0, %v7465_v8 }
 0x213   : > { %4426 = vmatprep.mubr.f32.mxu0 %v22280_v1  ;;  %v1800_v57 = vpop.f32.mrb[2].mxu0 }
 0x214   : > { %16088 = vmatmul.mubr.msk.f32.gmra.mrb[14].mxu1 %vm515_vm1, %v16080_v53  ;;  %1845 = vrot.lane.b32.xlu1 %v1796_v54, %s18371_s8  ;;  %v1802_v61 = vpop.f32.mrb[3].mxu0 }
 0x215   : > { %5822 = vmatprep.mubr.f32.mxu1 %v22280_v1  ;;  %1843 = vrot.lane.b32.xlu0 %v1800_v57, %s18371_s8 }
 0x216   : > { %15967 = vmatmul.mubr.msk.f32.vlgmr.msra.gmra.mrb[24].mxu0 %vm515_vm1, %v16079_v39  ;;  %v16097_v39 = vld [vmem:[%s22274_s1 + $0x1a0] sm:$0xff] }
 0x217   : > { %4432 = vmatprep.mubr.f32.mxu0 %v22280_v1  ;;  %v19572_v63 = vpop.f32.mrb[4].mxu0  ;;  %15980 = vmatpush1.msk.msra.mxu0 %vm534_vm0, %v4492_v60 }
 0x218   : > { %16089 = vmatmul.mubr.msk.f32.gmra.mrb[16].mxu1 %vm515_vm1, %v16081_v58  ;;  %v19581_v2 = vpop.f32.mrb[5].mxu0  ;;  %16113 = vmatprep.subr.msk.mxu0 %vm534_vm0, %v6081_v62  ;;  %v19689_v62 = vpop.permute.xlu1 %17736 }
 0x219   : > { %5828 = vmatprep.mubr.f32.mxu1 %v22280_v1  ;;  %1847 = vrot.lane.b32.xlu0 %v1802_v61, %s18371_s8 }
 0x21a   : > { %15968 = vmatmul.mubr.msk.f32.gmra.mrb[26].mxu0 %vm515_vm1, %v16080_v53 }
 0x21b   : > { %4438 = vmatprep.mubr.f32.mxu0 %v22280_v1  ;;  %v19590_v7 = vpop.f32.mrb[6].mxu0 }
 0x21c   : > { %16090 = vmatmul.mubr.msk.f32.gmra.mrb[18].mxu1 %vm515_vm1, %v16082_v34  ;;  %v19595_v11 = vpop.f32.mrb[7].mxu0 }
 0x21d   : > { %5834 = vmatprep.mubr.f32.mxu1 %v22280_v1 }
 0x21e   : > { %15969 = vmatmul.mubr.msk.f32.gmra.mrb[28].mxu0 %vm515_vm1, %v16081_v58  ;;  %v16098_v58 = vld [vmem:[%s22274_s1 + $0x1a8] sm:$0xff] }
 0x21f   : > { %4444 = vmatprep.mubr.f32.mxu0 %v22280_v1  ;;  %v1818_v16 = vpop.f32.mrb[8].mxu0 }
 0x220   : > { %16091 = vmatmul.mubr.msk.f32.gmra.mrb[20].mxu1 %vm515_vm1, %v16083_v10  ;;  %1866 = vrot.lane.b32.xlu1 %v1818_v16, %s18372_s16  ;;  %v1820_v19 = vpop.f32.mrb[9].mxu0 }
 0x221   : > { %5840 = vmatprep.mubr.f32.mxu1 %v22280_v1 }
 0x222   : > { %15970 = vmatmul.mubr.msk.f32.gmra.mrb[30].mxu0 %vm515_vm1, %v16082_v34 }
 0x223   : > { %v3198_v20 = vpop.f32.mrb[0].mxu1  ;;  %4450 = vmatprep.mubr.f32.mxu0 %v22280_v1  ;;  %v1824_v22 = vpop.f32.mrb[10].mxu0 }
 0x224   : > { %v3200_v21 = vpop.f32.mrb[1].mxu1  ;;  %16092 = vmatmul.mubr.msk.f32.gmra.mrb[22].mxu1 %vm515_vm1, %v16084_v17  ;;  %1870 = vrot.lane.b32.xlu1 %v1820_v19, %s18372_s16  ;;  %v1826_v13 = vpop.f32.mrb[11].mxu0 }
 0x225   : > { %5964 = vmatprep.mubr.f32.mxu1 %v22280_v1  ;;  %1868 = vrot.lane.b32.xlu0 %v1824_v22, %s18372_s16  ;;  %v7737_v22 = vpop.permute.xlu0 %7736 }
 0x226   : > { %15971 = vmatmul.mubr.msk.f32.gmra.mrb[32].mxu0 %vm515_vm1, %v16083_v10  ;;  %v17738_v10 = vunpack.i.l.bf16 %v19689_v62 }
 0x227   : > { %v3204_v24 = vpop.f32.mrb[2].mxu1  ;;  %4456 = vmatprep.mubr.f32.mxu0 %v22280_v1  ;;  %v2018_v28 = vpop.f32.mrb[12].mxu0 }
 0x228   : > { %v3206_v26 = vpop.f32.mrb[3].mxu1  ;;  %16101 = vmatmul.mubr.msk.f32.vlgmr.msra.gmra.mrb[12].mxu1 %vm515_vm1, %v16093_v23  ;;  %v16903_v30 = vadd.f32 %v3198_v20, %v2018_v28  ;;  %17758 = vrot.lane.b32.xlu1 %v22280_v1, %s18368_s24  ;;  %v2020_v31 = vpop.f32.mrb[13].mxu0  ;;  %v7741_v3 = vsel %vm793_vm3, %v7737_v22, %v17738_v10 }
 0x229   : > { %5970 = vmatprep.mubr.f32.mxu1 %v22280_v1  ;;  %16234 = vmatpush1.msk.msra.mxu1 %vm534_vm0, %v19529_v37  ;;  %v16904_v33 = vadd.f32 %v3200_v21, %v2020_v31  ;;  %v7598_v21 = vsel %vm649_vm2, %v7593_v12, %v19619_v25  ;;  %v6214_v25 = vsel %vm649_vm2, %v19466_v4, %v19452_v38  ;;  %v7735_v28 = vpop.permute.xlu0 %7734  ;;  %v16231_v38 = vld [vmem:[%s22274_s1 + $0x50] sm:$0xff]  ;;  %v19746_v4 = vpop.permute.xlu1 %6804  ;;  %v7451_v31 = vld [vmem:[%s22274_s1] sm:$0xff] }
 0x22a   : > { %1872 = vrot.lane.b32.xlu0 %v1826_v13, %s18372_s16  ;;  %15972 = vmatmul.mubr.msk.f32.gmra.mrb[34].mxu0 %vm515_vm1, %v16084_v17  ;;  %v16227_v17 = vld [vmem:[%s22274_s1 + $0x30] sm:$0xff]  ;;  %v16228_v13 = vld [vmem:[%s22274_s1 + $0x38] sm:$0xff] }
 0x22b   : > { %v3210_v32 = vpop.f32.mrb[4].mxu1  ;;  %16241 = vmatprep.subr.msk.mxu1 %vm534_vm0, %v7599_v27  ;;  %4580 = vmatprep.mubr.f32.mxu0 %v22280_v1  ;;  %v2024_v40 = vpop.f32.mrb[14].mxu0  ;;  %v16230_v27 = vld [vmem:[%s22274_s1 + $0x48] sm:$0xff] }
 0x22c   : > { %v3212_v35 = vpop.f32.mrb[5].mxu1  ;;  %16102 = vmatmul.mubr.msk.f32.gmra.mrb[14].mxu1 %vm515_vm1, %v16094_v29  ;;  %v16905_v15 = vadd.f32 %v3204_v24, %v2024_v40  ;;  %17768 = vrot.lane.b32.xlu1 %v22280_v1, %s18368_s24  ;;  %v2026_v6 = vpop.f32.mrb[15].mxu0  ;;  %v16229_v24 = vld [vmem:[%s22274_s1 + $0x40] sm:$0xff]  ;;  %v7452_v40 = vld [vmem:[%s22274_s1 + $0x8] sm:$0xff] }
 0x22d   : > { %5976 = vmatprep.mubr.f32.mxu1 %v22280_v1  ;;  %v16906_v43 = vadd.f32 %v3206_v26, %v2026_v6  ;;  %v6357_v26 = vsel %vm793_vm3, %v19559_v59, %v19552_v56  ;;  %v19751_v56 = vpop.permute.xlu0 %6802  ;;  %v6356_v6 = vsel %vm793_vm3, %v19585_v5, %v19559_v59  ;;  %v7455_v5 = vld [vmem:[%s22274_s1 + $0x20] sm:$0xff] }
 0x22e   : > { %17763 = vrot.lane.b32.xlu0 %v22280_v1, %s18368_s24  ;;  %15981 = vmatmul.mubr.msk.f32.vlgmr.msra.gmra.mrb[24].mxu0 %vm515_vm1, %v16093_v23 }
 0x22f   : > { %v3216_v42 = vpop.f32.mrb[6].mxu1  ;;  %4586 = vmatprep.mubr.f32.mxu0 %v22280_v1  ;;  %v2030_v46 = vpop.f32.mrb[16].mxu0  ;;  %16114 = vmatpush1.msk.msra.mxu0 %vm534_vm0, %v19550_v55 }
 0x230   : > { %v3218_v45 = vpop.f32.mrb[7].mxu1  ;;  %16103 = vmatmul.mubr.msk.f32.gmra.mrb[16].mxu1 %vm515_vm1, %v16095_v41  ;;  %v19658_v48 = vadd.f32 %v3210_v32, %v2030_v46  ;;  %v2032_v9 = vpop.f32.mrb[17].mxu0  ;;  %3245 = vrot.lane.b32.xlu1 %v16903_v30, %s18371_s8  ;;  %v7740_v32 = vsel %vm793_vm3, %v7735_v28, %v7737_v22 }
 0x231   : > { %5982 = vmatprep.mubr.f32.mxu1 %v22280_v1  ;;  %v19663_v50 = vadd.f32 %v3212_v35, %v2032_v9  ;;  %16121 = vmatprep.subr.msk.mxu0 %vm534_vm0, %v6215_v44  ;;  %v7891_v30 = vpop.permute.xlu1 %7890  ;;  %v7454_v44 = vld [vmem:[%s22274_s1 + $0x18] sm:$0xff] }
 0x232   : > { %17773 = vrot.lane.b32.xlu0 %v22280_v1, %s18368_s24  ;;  %15982 = vmatmul.mubr.msk.f32.gmra.mrb[26].mxu0 %vm515_vm1, %v16094_v29  ;;  %v16232_v29 = vld [vmem:[%s22274_s1 + $0x58] sm:$0xff] }
 0x233   : > { %v3222_v49 = vpop.f32.mrb[8].mxu1  ;;  %4592 = vmatprep.mubr.f32.mxu0 %v22280_v1  ;;  %v2036_v37 = vpop.f32.mrb[18].mxu0 }
 0x234   : > { %v3224_v51 = vpop.f32.mrb[9].mxu1  ;;  %16104 = vmatmul.mubr.msk.f32.gmra.mrb[18].mxu1 %vm515_vm1, %v16096_v47  ;;  %v19673_v52 = vadd.f32 %v3216_v42, %v2036_v37  ;;  %v2038_v8 = vpop.f32.mrb[19].mxu0  ;;  %3249 = vrot.lane.b32.xlu1 %v16904_v33, %s18371_s8  ;;  %v6511_v42 = vsel %vm649_vm2, %v19578_v36, %v19606_v18 }
 0x235   : > { %5988 = vmatprep.mubr.f32.mxu1 %v22280_v1  ;;  %v19677_v54 = vadd.f32 %v3218_v45, %v2038_v8  ;;  %v7893_v33 = vpop.permute.xlu0 %7892  ;;  %v7456_v45 = vld [vmem:[%s22274_s1 + $0x28] sm:$0xff] }
 0x236   : > { %3247 = vrot.lane.b32.xlu0 %v16905_v15, %s18371_s8  ;;  %15983 = vmatmul.mubr.msk.f32.gmra.mrb[28].mxu0 %vm515_vm1, %v16095_v41  ;;  %v7895_v35 = vsel %vm649_vm2, %v7891_v30, %v7893_v33  ;;  %v7889_v41 = vpop.permute.xlu1 %7888  ;;  %v7453_v15 = vld [vmem:[%s22274_s1 + $0x10] sm:$0xff]  ;;  %v16250_v8 = vld [vmem:[%s22274_s1 + $0x68] sm:$0xff] }
 0x237   : > { %v3228_v53 = vpop.f32.mrb[10].mxu1  ;;  %4598 = vmatprep.mubr.f32.mxu0 %v22280_v1  ;;  %v2042_v57 = vpop.f32.mrb[20].mxu0 }
 0x238   : > { %v3230_v55 = vpop.f32.mrb[11].mxu1  ;;  %16105 = vmatmul.mubr.msk.f32.gmra.mrb[20].mxu1 %vm515_vm1, %v16097_v39  ;;  %v19686_v60 = vadd.f32 %v3222_v49, %v2042_v57  ;;  %v2044_v61 = vpop.f32.mrb[21].mxu0  ;;  %v16249_v49 = vld [vmem:[%s22274_s1 + $0x60] sm:$0xff]  ;;  %v6510_v57 = vsel %vm649_vm2, %v19598_v14, %v19578_v36 }
 0x239   : > { %5994 = vmatprep.mubr.f32.mxu1 %v22280_v1  ;;  %v19691_v34 = vadd.f32 %v3224_v51, %v2044_v61  ;;  %v19802_v59 = vpop.permute.xlu0 %6958  ;;  %v7894_v51 = vsel %vm649_vm2, %v7889_v41, %v7891_v30  ;;  %v16253_v14 = vld [vmem:[%s22274_s1 + $0x80] sm:$0xff]  ;;  %v22300_v41 = vmov 0 }
 0x23a   : > { %3251 = vrot.lane.b32.xlu0 %v16906_v43, %s18371_s8  ;;  %15984 = vmatmul.mubr.msk.f32.gmra.mrb[30].mxu0 %vm515_vm1, %v16096_v47  ;;  %v19791_v43 = vpop.permute.xlu1 %6960  ;;  %v8031_v47 = vld [vmem:[#allocation2 + $0x64] sm:$0x77] }
 0x23b   : > { %4604 = vmatprep.mubr.f32.mxu0 %v22280_v1  ;;  %v2048_v16 = vpop.f32.mrb[22].mxu0  ;;  %v8039_v37 = vcombine.high %v8031_v47, %v8031_v47 }
 0x23c   : > { %16106 = vmatmul.mubr.msk.f32.gmra.mrb[22].mxu1 %vm515_vm1, %v16098_v58  ;;  %v19701_v19 = vadd.f32 %v3228_v53, %v2048_v16  ;;  %v2050_v20 = vpop.f32.mrb[23].mxu0  ;;  %v19843_v53 = vld [vmem:[#allocation2 + $0x54] sm:$0x77] }
 0x23d   : > { %7552 = vmatprep.mubr.f32.mxu1 %v22280_v1  ;;  %v19705_v23 = vadd.f32 %v3230_v55, %v2050_v20  ;;  %v19817_v46 = vpop.permute.xlu0 %6956  ;;  %v16251_v55 = vld [vmem:[%s22274_s1 + $0x70] sm:$0xff]  ;;  %v6655_v61 = vcombine.high %v19843_v53, %v19843_v53  ;;  %v16252_v16 = vld [vmem:[%s22274_s1 + $0x78] sm:$0xff]  ;;  %v16254_v20 = vld [vmem:[%s22274_s1 + $0x88] sm:$0xff] }
 0x23e   : > { %15985 = vmatmul.mubr.msk.f32.gmra.mrb[32].mxu0 %vm515_vm1, %v16097_v39  ;;  %v19808_v18 = vpop.permute.xlu1 %8188 }
 0x23f   : > { %4610 = vmatprep.mubr.f32.mxu0 %v22280_v1 }
 0x240   : > { %16235 = vmatmul.mubr.msk.f32.vlgmr.msra.gmra.mrb[24].mxu1 %vm515_vm1, %v16227_v17 }
 0x241   : > { %7558 = vmatprep.mubr.f32.mxu1 %v22280_v1  ;;  %16242 = vmatpush1.msk.msra.mxu1 %vm534_vm0, %v7598_v21  ;;  %v19832_v39 = vpop.permute.xlu0 %17741 }
 0x242   : > { %16255 = vmatprep.subr.msk.mxu1 %vm534_vm0, %v7741_v3  ;;  %15986 = vmatmul.mubr.msk.f32.gmra.mrb[34].mxu0 %vm515_vm1, %v16098_v58  ;;  %v19822_v9 = vpop.permute.xlu1 %8186  ;;  %v17743_v22 = vunpack.i.l.bf16 %v19832_v39 }
 0x243   : > { %6168 = vmatprep.mubr.f32.mxu0 %v22280_v1 }
 0x244   : > { %16236 = vmatmul.mubr.msk.f32.gmra.mrb[26].mxu1 %vm515_vm1, %v16228_v13 }
 0x245   : > { %7564 = vmatprep.mubr.f32.mxu1 %v22280_v1  ;;  %v19854_v58 = vpop.permute.xlu0 %7256 }
 0x246   : > { %16115 = vmatmul.mubr.msk.f32.vlgmr.msra.gmra.mrb[36].mxu0 %vm515_vm1, %v16227_v17  ;;  %v19839_v12 = vpop.permute.xlu1 %7254 }
 0x247   : > { %6174 = vmatprep.mubr.f32.mxu0 %v22280_v1  ;;  %16122 = vmatpush1.msk.msra.mxu0 %vm534_vm0, %v6214_v25  ;;  %v8193_v25 = vsel %vm793_vm3, %v19808_v18, %v17743_v22  ;;  %v16268_v22 = vld [vmem:[%s22274_s1 + $0xb8] sm:$0xff] }
 0x248   : > { %16237 = vmatmul.mubr.msk.f32.gmra.mrb[28].mxu1 %vm515_vm1, %v16229_v24  ;;  %16135 = vmatprep.subr.msk.mxu0 %vm534_vm0, %v6357_v26 }
 0x249   : > { %7570 = vmatprep.mubr.f32.mxu1 %v22280_v1  ;;  %v19871_v36 = vpop.permute.xlu0 %8342 }
 0x24a   : > { %16116 = vmatmul.mubr.msk.f32.gmra.mrb[38].mxu0 %vm515_vm1, %v16228_v13  ;;  %v19860_v10 = vpop.permute.xlu1 %17746  ;;  %v16263_v13 = vld [vmem:[%s22274_s1 + $0x90] sm:$0xff] }
 0x24b   : > { %6180 = vmatprep.mubr.f32.mxu0 %v22280_v1 }
 0x24c   : > { %16238 = vmatmul.mubr.msk.f32.gmra.mrb[30].mxu1 %vm515_vm1, %v16230_v27 }
 0x24d   : > { %7576 = vmatprep.mubr.f32.mxu1 %v22280_v1  ;;  %v19887_v21 = vpop.permute.xlu0 %8640 }
 0x24e   : > { %16117 = vmatmul.mubr.msk.f32.gmra.mrb[40].mxu0 %vm515_vm1, %v16229_v24  ;;  %v19878_v17 = vpop.permute.xlu1 %17751  ;;  %v19901_v24 = vand.u32 127, %v225_v0  ;;  %v17739_v0 = vunpack.i.h.bf16 %v19689_v62 }
 0x24f   : > { %6186 = vmatprep.mubr.f32.mxu0 %v22280_v1 }
 0x250   : > { %16239 = vmatmul.mubr.msk.f32.gmra.mrb[32].mxu1 %vm515_vm1, %v16231_v38  ;;  %v6809_v62 = vsel %vm793_vm3, %v19746_v4, %v17739_v0  ;;  %vm1849_vm4 = vcmp.lt.s32.totalorder %v19901_v24, 1  ;;  %vm1874_vm7 = vcmp.lt.s32.totalorder %v19901_v24, 127 }
 0x251   : > { %7582 = vmatprep.mubr.f32.mxu1 %v22280_v1  ;;  %v19905_v26 = vpop.permute.xlu0 %1893 }
 0x252   : > { %16118 = vmatmul.mubr.msk.f32.gmra.mrb[42].mxu0 %vm515_vm1, %v16230_v27  ;;  %v19891_v3 = vpop.permute.xlu1 %1898  ;;  %22297 = vst [vmem:[#allocation5_spill] sm:$0xff] %v19905_v26  ;;  %v16264_v27 = vld [vmem:[%s22274_s1 + $0x98] sm:$0xff] }
 0x253   : > { %6192 = vmatprep.mubr.f32.mxu0 %v22280_v1  ;;  %22296 = vst [vmem:[#allocation4_spill] sm:$0xff] %v19891_v3 }
 0x254   : > { %16240 = vmatmul.mubr.msk.f32.gmra.mrb[34].mxu1 %vm515_vm1, %v16232_v29 }
 0x255   : > { %7686 = vmatprep.mubr.f32.mxu1 %v22280_v1 }
 0x256   : > { %16119 = vmatmul.mubr.msk.f32.gmra.mrb[44].mxu0 %vm515_vm1, %v16231_v38  ;;  %v227_v38 = vadd.s32 128, %v19901_v24 }
 0x257   : > { %6198 = vmatprep.mubr.f32.mxu0 %v22280_v1 }
 0x258   : > { %16243 = vmatmul.mubr.msk.f32.vlgmr.msra.gmra.mrb[24].mxu1 %vm515_vm1, %v7451_v31 }
 0x259   : > { %7692 = vmatprep.mubr.f32.mxu1 %v22280_v1  ;;  %16256 = vmatpush1.msk.msra.mxu1 %vm534_vm0, %v7740_v32  ;;  %v229_v32 = vand.u32 15, %v227_v38  ;;  %v8192_v38 = vsel %vm793_vm3, %v19822_v9, %v19808_v18 }
 0x25a   : > { %16269 = vmatprep.subr.msk.mxu1 %vm534_vm0, %v7895_v35  ;;  %16120 = vmatmul.mubr.msk.f32.gmra.mrb[46].mxu0 %vm515_vm1, %v16232_v29  ;;  %v16265_v29 = vld [vmem:[%s22274_s1 + $0xa0] sm:$0xff]  ;;  %v16266_v35 = vld [vmem:[%s22274_s1 + $0xa8] sm:$0xff] }
 0x25b   : > { %6302 = vmatprep.mubr.f32.mxu0 %v22280_v1  ;;  %vm19942_vm6 = vcmp.ne.s32.totalorder %v229_v32, 0  ;;  %vm19967_vm9 = vcmp.ne.s32.totalorder %v229_v32, 15 }
 0x25c   : > { %16244 = vmatmul.mubr.msk.f32.gmra.mrb[26].mxu1 %vm515_vm1, %v7452_v40  ;;  %v22301_v41 = vsel %vm19942_vm6, 4294967295, %v22300_v41 }
 0x25d   : > { %7698 = vmatprep.mubr.f32.mxu1 %v22280_v1  ;;  %22302 = vst [vmem:[#allocation6_spill] sm:$0xff] %v22301_v41 }
 0x25e   : > { %16123 = vmatmul.mubr.msk.f32.vlgmr.msra.gmra.mrb[36].mxu0 %vm515_vm1, %v7451_v31  ;;  %v228_v31 = vand.u32 15, %v19901_v24 }
 0x25f   : > { %6308 = vmatprep.mubr.f32.mxu0 %v22280_v1  ;;  %16136 = vmatpush1.msk.msra.mxu0 %vm534_vm0, %v6356_v6 }
 0x260   : > { %16245 = vmatmul.mubr.msk.f32.gmra.mrb[28].mxu1 %vm515_vm1, %v7453_v15  ;;  %16149 = vmatprep.subr.msk.mxu0 %vm534_vm0, %v6511_v42  ;;  %vm19938_vm5 = vcmp.ne.s32.totalorder %v228_v31, 0  ;;  %vm19963_vm8 = vcmp.ne.s32.totalorder %v228_v31, 15  ;;  %v16277_v31 = vld [vmem:[%s22274_s1 + $0xc0] sm:$0xff] }
 0x261   : > { %7704 = vmatprep.mubr.f32.mxu1 %v22280_v1 }
 0x262   : > { %16124 = vmatmul.mubr.msk.f32.gmra.mrb[38].mxu0 %vm515_vm1, %v7452_v40 }
 0x263   : > { %6314 = vmatprep.mubr.f32.mxu0 %v22280_v1 }
 0x264   : > { %16246 = vmatmul.mubr.msk.f32.gmra.mrb[30].mxu1 %vm515_vm1, %v7454_v44 }
 0x265   : > { %7710 = vmatprep.mubr.f32.mxu1 %v22280_v1 }
 0x266   : > { %16125 = vmatmul.mubr.msk.f32.gmra.mrb[40].mxu0 %vm515_vm1, %v7453_v15 }
 0x267   : > { %6320 = vmatprep.mubr.f32.mxu0 %v22280_v1 }
 0x268   : > { %16247 = vmatmul.mubr.msk.f32.gmra.mrb[32].mxu1 %vm515_vm1, %v7455_v5 }
 0x269   : > { %7716 = vmatprep.mubr.f32.mxu1 %v22280_v1 }
 0x26a   : > { %16126 = vmatmul.mubr.msk.f32.gmra.mrb[42].mxu0 %vm515_vm1, %v7454_v44 }
 0x26b   : > { %6326 = vmatprep.mubr.f32.mxu0 %v22280_v1 }
 0x26c   : > { %16248 = vmatmul.mubr.msk.f32.gmra.mrb[34].mxu1 %vm515_vm1, %v7456_v45 }
 0x26d   : > { %7828 = vmatprep.mubr.f32.mxu1 %v22280_v1 }
 0x26e   : > { %16127 = vmatmul.mubr.msk.f32.gmra.mrb[44].mxu0 %vm515_vm1, %v7455_v5  ;;  %v16267_v5 = vld [vmem:[%s22274_s1 + $0xb0] sm:$0xff] }
 0x26f   : > { %6332 = vmatprep.mubr.f32.mxu0 %v22280_v1 }
 0x270   : > { %16257 = vmatmul.mubr.msk.f32.vlgmr.msra.gmra.mrb[24].mxu1 %vm515_vm1, %v16249_v49 }
 0x271   : > { %7834 = vmatprep.mubr.f32.mxu1 %v22280_v1  ;;  %16270 = vmatpush1.msk.msra.mxu1 %vm534_vm0, %v7894_v51  ;;  %v22305_v51 = vmov 0 }
 0x272   : > { %16283 = vmatprep.subr.msk.mxu1 %vm534_vm0, %v8039_v37  ;;  %16128 = vmatmul.mubr.msk.f32.gmra.mrb[46].mxu0 %vm515_vm1, %v7456_v45  ;;  %v22306_v51 = vsel %vm19967_vm9, 4294967295, %v22305_v51  ;;  %v17748_v37 = vunpack.i.l.bf16 %v19860_v10 }
 0x273   : > { %6444 = vmatprep.mubr.f32.mxu0 %v22280_v1  ;;  %22307 = vst [vmem:[#allocation7_spill] sm:$0xff] %v22306_v51 }
 0x274   : > { %16258 = vmatmul.mubr.msk.f32.gmra.mrb[26].mxu1 %vm515_vm1, %v16250_v8  ;;  %v8347_v32 = vsel %vm649_vm2, %v19871_v36, %v17748_v37 }
 0x275   : > { %7840 = vmatprep.mubr.f32.mxu1 %v22280_v1 }
 0x276   : > { %16137 = vmatmul.mubr.msk.f32.vlgmr.msra.gmra.mrb[36].mxu0 %vm515_vm1, %v16249_v49 }
 0x277   : > { %6450 = vmatprep.mubr.f32.mxu0 %v22280_v1  ;;  %16150 = vmatpush1.msk.msra.mxu0 %vm534_vm0, %v6510_v57 }
 0x278   : > { %16259 = vmatmul.mubr.msk.f32.gmra.mrb[28].mxu1 %vm515_vm1, %v16251_v55  ;;  %16163 = vmatprep.subr.msk.mxu0 %vm534_vm0, %v6655_v61 }
 0x279   : > { %7846 = vmatprep.mubr.f32.mxu1 %v22280_v1 }
 0x27a   : > { %16138 = vmatmul.mubr.msk.f32.gmra.mrb[38].mxu0 %vm515_vm1, %v16250_v8 }
 0x27b   : > { %6456 = vmatprep.mubr.f32.mxu0 %v22280_v1 }
 0x27c   : > { %16260 = vmatmul.mubr.msk.f32.gmra.mrb[30].mxu1 %vm515_vm1, %v16252_v16 }
 0x27d   : > { %7852 = vmatprep.mubr.f32.mxu1 %v22280_v1 }
 0x27e   : > { %16139 = vmatmul.mubr.msk.f32.gmra.mrb[40].mxu0 %vm515_vm1, %v16251_v55 }
 0x27f   : > { %6462 = vmatprep.mubr.f32.mxu0 %v22280_v1 }
 0x280   : > { %16261 = vmatmul.mubr.msk.f32.gmra.mrb[32].mxu1 %vm515_vm1, %v16253_v14 }
 0x281   : > { %7858 = vmatprep.mubr.f32.mxu1 %v22280_v1 }
 0x282   : > { %16140 = vmatmul.mubr.msk.f32.gmra.mrb[42].mxu0 %vm515_vm1, %v16252_v16  ;;  %v1842_v28 = vpop.permute.xlu1 %1841 }
 0x283   : > { %6468 = vmatprep.mubr.f32.mxu0 %v22280_v1 }
 0x284   : > { %16262 = vmatmul.mubr.msk.f32.gmra.mrb[34].mxu1 %vm515_vm1, %v16254_v20 }
 0x285   : > { %7982 = vmatprep.mubr.f32.mxu1 %v22280_v1 }
 0x286   : > { %16141 = vmatmul.mubr.msk.f32.gmra.mrb[44].mxu0 %vm515_vm1, %v16253_v14  ;;  %v1846_v33 = vpop.permute.xlu1 %1845 }
 0x287   : > { %6474 = vmatprep.mubr.f32.mxu0 %v22280_v1  ;;  %v1844_v30 = vpop.permute.xlu0 %1843  ;;  %v1850_v15 = vsel %vm1849_vm4, %v1842_v28, %v1846_v33  ;;  %v1852_v6 = vsel %vm1849_vm4, %v1846_v33, %v1842_v28 }
 0x288   : > { %16271 = vmatmul.mubr.msk.f32.vlgmr.msra.gmra.mrb[24].mxu1 %vm515_vm1, %v16263_v13  ;;  %v1858_v45 = vsel %vm19938_vm5, %v1852_v6, 0.0 }
 0x289   : > { %7988 = vmatprep.mubr.f32.mxu1 %v22280_v1  ;;  %16284 = vmatpush1.msk.msra.mxu1 %vm534_vm0, %v8031_v47  ;;  %v1859_v47 = vsel %vm19942_vm6, %v1850_v15, 0.0  ;;  %v1862_v61 = vadd.f32 %v1858_v45, %v19572_v63 }
 0x28a   : > { %16297 = vmatprep.subr.msk.mxu1 %vm534_vm0, %v8193_v25  ;;  %16142 = vmatmul.mubr.msk.f32.gmra.mrb[46].mxu0 %vm515_vm1, %v16254_v20  ;;  %v1863_v16 = vadd.f32 %v1859_v47, %v19581_v2 }
 0x28b   : > { %6598 = vmatprep.mubr.f32.mxu0 %v22280_v1  ;;  %v1848_v42 = vpop.permute.xlu0 %1847 }
 0x28c   : > { %16272 = vmatmul.mubr.msk.f32.gmra.mrb[26].mxu1 %vm515_vm1, %v16264_v27  ;;  %v1851_v8 = vsel %vm1849_vm4, %v1844_v30, %v1848_v42 }
 0x28d   : > { %7994 = vmatprep.mubr.f32.mxu1 %v22280_v1  ;;  %v1861_v25 = vsel %vm19942_vm6, %v1851_v8, 0.0 }
 0x28e   : > { %16151 = vmatmul.mubr.msk.f32.vlgmr.msra.gmra.mrb[36].mxu0 %vm515_vm1, %v16263_v13  ;;  %v1865_v33 = vadd.f32 %v1861_v25, %v19595_v11  ;;  %v16278_v11 = vld [vmem:[%s22274_s1 + $0xc8] sm:$0xff] }
 0x28f   : > { %6604 = vmatprep.mubr.f32.mxu0 %v22280_v1  ;;  %16164 = vmatpush1.msk.msra.mxu0 %vm534_vm0, %v19843_v53  ;;  %v1853_v53 = vsel %vm1849_vm4, %v1848_v42, %v1844_v30 }
 0x290   : > { %16273 = vmatmul.mubr.msk.f32.gmra.mrb[28].mxu1 %vm515_vm1, %v16265_v29  ;;  %16177 = vmatprep.subr.msk.mxu0 %vm534_vm0, %v6809_v62  ;;  %v1860_v2 = vsel %vm19938_vm5, %v1853_v53, 0.0  ;;  %v16279_v53 = vld [vmem:[%s22274_s1 + $0xd0] sm:$0xff] }
 0x291   : > { %8000 = vmatprep.mubr.f32.mxu1 %v22280_v1  ;;  %v1864_v62 = vadd.f32 %v1860_v2, %v19590_v7  ;;  %v7099_v2 = vld [vmem:[#allocation2 + $0x64] sm:$0x77] }
 0x292   : > { %16152 = vmatmul.mubr.msk.f32.gmra.mrb[38].mxu0 %vm515_vm1, %v16264_v27  ;;  %v1867_v44 = vpop.permute.xlu1 %1866  ;;  %v7107_v25 = vcombine.high %v7099_v2, %v7099_v2 }
 0x293   : > { %6610 = vmatprep.mubr.f32.mxu0 %v22280_v1 }
 0x294   : > { %16274 = vmatmul.mubr.msk.f32.gmra.mrb[30].mxu1 %vm515_vm1, %v16266_v35 }
 0x295   : > { %8006 = vmatprep.mubr.f32.mxu1 %v22280_v1 }
 0x296   : > { %16153 = vmatmul.mubr.msk.f32.gmra.mrb[40].mxu0 %vm515_vm1, %v16265_v29  ;;  %v1871_v55 = vpop.permute.xlu1 %1870 }
 0x297   : > { %v1869_v57 = vpop.permute.xlu0 %1868  ;;  %6616 = vmatprep.mubr.f32.mxu0 %v22280_v1  ;;  %v1875_v14 = vsel %vm1874_vm7, %v1867_v44, %v1871_v55  ;;  %v1877_v20 = vsel %vm1874_vm7, %v1871_v55, %v1867_v44 }
 0x298   : > { %16275 = vmatmul.mubr.msk.f32.gmra.mrb[32].mxu1 %vm515_vm1, %v16267_v5  ;;  %v1883_v13 = vsel %vm19963_vm8, %v1875_v14, 0.0  ;;  %v1884_v63 = vsel %vm19967_vm9, %v1877_v20, 0.0  ;;  %v16280_v20 = vld [vmem:[%s22274_s1 + $0xd8] sm:$0xff] }
 0x299   : > { %8012 = vmatprep.mubr.f32.mxu1 %v22280_v1  ;;  %v1887_v27 = vadd.f32 %v1883_v13, %v1862_v61  ;;  %v1888_v28 = vadd.f32 %v1884_v63, %v1863_v16  ;;  %v6808_v61 = vsel %vm793_vm3, %v19751_v56, %v19746_v4  ;;  %v6963_v4 = vsel %vm649_vm2, %v19802_v59, %v19791_v43  ;;  %v8483_v43 = vld [vmem:[#allocation2 + $0x74] sm:$0x77] }
 0x29a   : > { %16154 = vmatmul.mubr.msk.f32.gmra.mrb[42].mxu0 %vm515_vm1, %v16266_v35  ;;  %v8491_v13 = vcombine.high %v8483_v43, %v8483_v43  ;;  %v16292_v63 = vld [vmem:[%s22274_s1 + $0xf8] sm:$0xff] }
 0x29b   : > { %6622 = vmatprep.mubr.f32.mxu0 %v22280_v1  ;;  %v1901_v29 = vadd.f32 %v19905_v26, %v1887_v27  ;;  %v1902_v30 = vadd.f32 %v19905_v26, %v1888_v28  ;;  %v6962_v27 = vsel %vm649_vm2, %v19817_v46, %v19802_v59  ;;  %v16294_v28 = vld [vmem:[%s22274_s1 + $0x108] sm:$0xff]  ;;  %v16295_v59 = vld [vmem:[%s22274_s1 + $0x110] sm:$0xff]  ;;  %v16296_v46 = vld [vmem:[%s22274_s1 + $0x118] sm:$0xff] }
 0x29c   : > { %16276 = vmatmul.mubr.msk.f32.gmra.mrb[34].mxu1 %vm515_vm1, %v16268_v22  ;;  %v1873_v0 = vpop.permute.xlu0 %1872 }
 0x29d   : > { %8126 = vmatprep.mubr.f32.mxu1 %v22280_v1  ;;  %v1876_v18 = vsel %vm1874_vm7, %v1869_v57, %v1873_v0  ;;  %v1878_v9 = vsel %vm1874_vm7, %v1873_v0, %v1869_v57  ;;  %v1905_v35 = vmax.f32 %v1901_v29, 0.0  ;;  %v1906_v15 = vmax.f32 %v1902_v30, 0.0  ;;  %v16306_v30 = vld [vmem:[%s22274_s1 + $0x128] sm:$0xff] }
 0x29e   : > { %v1885_v6 = vsel %vm19963_vm8, %v1876_v18, 0.0  ;;  %v1886_v42 = vsel %vm19967_vm9, %v1878_v9, 0.0  ;;  %16155 = vmatmul.mubr.msk.f32.gmra.mrb[44].mxu0 %vm515_vm1, %v16267_v5  ;;  %v17753_v0 = vunpack.i.l.bf16 %v19878_v17  ;;  %v17759_v18 = vpop.permute.xlu1 %17758 }
 0x29f   : > { %v1889_v44 = vadd.f32 %v1885_v6, %v1864_v62  ;;  %v1890_v7 = vadd.f32 %v1886_v42, %v1865_v33  ;;  %6628 = vmatprep.mubr.f32.mxu0 %v22280_v1  ;;  %v17777_v37 = vpack.i.bf16 %v1906_v15, %v1905_v35  ;;  %v16309_v33 = vld [vmem:[%s22274_s1 + $0x140] sm:$0xff] }
 0x2a0   : > { %16285 = vmatmul.mubr.msk.f32.vlgmr.msra.gmra.mrb[24].mxu1 %vm515_vm1, %v16277_v31  ;;  %v8645_v29 = vsel %vm793_vm3, %v19887_v21, %v17753_v0  ;;  %v17764_v9 = vpop.permute.xlu0 %17763 }
 0x2a1   : > { %8132 = vmatprep.mubr.f32.mxu1 %v22280_v1  ;;  %16298 = vmatpush1.msk.msra.mxu1 %vm534_vm0, %v8192_v38  ;;  %v1903_v45 = vadd.f32 %v19891_v3, %v1889_v44  ;;  %v1904_v47 = vadd.f32 %v19891_v3, %v1890_v7  ;;  %v16305_v38 = vld [vmem:[%s22274_s1 + $0x120] sm:$0xff]  ;;  %v17766_v6 = vunpack.i.h.bf16 %v17764_v9  ;;  %v17765_v42 = vunpack.i.l.bf16 %v17764_v9  ;;  %v16310_v44 = vld [vmem:[%s22274_s1 + $0x148] sm:$0xff] }
 0x2a2   : > { %16311 = vmatprep.subr.msk.mxu1 %vm534_vm0, %v8347_v32  ;;  %16156 = vmatmul.mubr.msk.f32.gmra.mrb[46].mxu0 %vm515_vm1, %v16268_v22  ;;  %v17749_v22 = vunpack.i.h.bf16 %v19860_v10  ;;  %v16307_v32 = vld [vmem:[%s22274_s1 + $0x130] sm:$0xff] }
 0x2a3   : > { %v1907_v5 = vmax.f32 %v1903_v45, 0.0  ;;  %v1908_v8 = vmax.f32 %v1904_v47, 0.0  ;;  %17778 = vrot.lane.b32.xlu0 %v17777_v37, %s18368_s24  ;;  %6742 = vmatprep.mubr.f32.mxu0 %v22280_v1  ;;  %v17754_v45 = vunpack.i.h.bf16 %v19878_v17  ;;  %v16319_v47 = vld [vmem:[%s22274_s1 + $0x150] sm:$0xff]  ;;  %v16320_v17 = vld [vmem:[%s22274_s1 + $0x158] sm:$0xff] }
 0x2a4   : > { %16286 = vmatmul.mubr.msk.f32.gmra.mrb[26].mxu1 %vm515_vm1, %v16278_v11  ;;  %v8346_v10 = vsel %vm649_vm2, %v17749_v22, %v19871_v36  ;;  %v16293_v36 = vld [vmem:[%s22274_s1 + $0x100] sm:$0xff] }
 0x2a5   : > { %8138 = vmatprep.mubr.f32.mxu1 %v22280_v1  ;;  %v17782_v55 = vpack.i.bf16 %v1908_v8, %v1907_v5  ;;  %v20039_v57 = vpack.i.bf16 %v1907_v5, %v1905_v35  ;;  %v20047_v16 = vpack.c.bf16 %v1908_v8, %v1906_v15  ;;  %v20049_v14 = vpack.c.bf16 %v1907_v5, %v1905_v35  ;;  %v16333_v22 = vld [vmem:[%s22274_s1 + $0x180] sm:$0xff] }
 0x2a6   : > { %16165 = vmatmul.mubr.msk.f32.vlgmr.msra.gmra.mrb[36].mxu0 %vm515_vm1, %v16277_v31  ;;  %v20076_v56 = vpack.i.bf16 %v22280_v1, %v1908_v8  ;;  %v17744_v31 = vunpack.i.h.bf16 %v19832_v39  ;;  %v16308_v39 = vld [vmem:[%s22274_s1 + $0x138] sm:$0xff]  ;;  %v17761_v35 = vunpack.i.h.bf16 %v17759_v18  ;;  %v8644_v5 = vsel %vm793_vm3, %v17754_v45, %v19887_v21  ;;  %v16321_v21 = vld [vmem:[%s22274_s1 + $0x160] sm:$0xff] }
 0x2a7   : > { %16178 = vmatpush1.msk.msra.mxu0 %vm534_vm0, %v6808_v61  ;;  %3267 = vrot.lane.b32.xlu0 %v19701_v19, %s18372_s16  ;;  %v16281_v19 = vld [vmem:[%s22274_s1 + $0xe0] sm:$0xff]  ;;  %v7260_v8 = vsel %vm793_vm3, %v19839_v12, %v19854_v58  ;;  %v17769_v12 = vpop.permute.xlu1 %17768 }
 0x2a8   : > { %16287 = vmatmul.mubr.msk.f32.gmra.mrb[28].mxu1 %vm515_vm1, %v16279_v53  ;;  %17783 = vrot.lane.b32.xlu1 %v17782_v55, %s18368_s24  ;;  %v7261_v62 = vsel %vm793_vm3, %v19854_v58, %v17744_v31  ;;  %v16323_v58 = vld [vmem:[%s22274_s1 + $0x170] sm:$0xff]  ;;  %v17770_v61 = vunpack.i.l.bf16 %v17769_v12 }
 0x2a9   : > { %8144 = vmatprep.mubr.f32.mxu1 %v22280_v1  ;;  %6748 = vmatprep.mubr.f32.mxu0 %v22280_v1 }
 0x2aa   : > { %16166 = vmatmul.mubr.msk.f32.gmra.mrb[38].mxu0 %vm515_vm1, %v16278_v11  ;;  %16191 = vmatprep.subr.msk.mxu0 %vm534_vm0, %v6963_v4  ;;  %v8960_v11 = vsel %vm649_vm2, %v17765_v42, %v17766_v6 }
 0x2ab   : > { %6754 = vmatprep.mubr.f32.mxu0 %v22280_v1  ;;  %3271 = vrot.lane.b32.xlu0 %v19705_v23, %s18372_s16  ;;  %v20090_v23 = vpack.i.bf16 %v22280_v1, %v1906_v15  ;;  %v17760_v15 = vunpack.i.l.bf16 %v17759_v18  ;;  %v16337_v18 = vld [vmem:[%s22274_s1 + $0x1a0] sm:$0xff] }
 0x2ac   : > { %16288 = vmatmul.mubr.msk.f32.gmra.mrb[30].mxu1 %vm515_vm1, %v16280_v20  ;;  %3265 = vrot.lane.b32.xlu1 %v19686_v60, %s18372_s16  ;;  %v16282_v60 = vld [vmem:[%s22274_s1 + $0xe8] sm:$0xff] }
 0x2ad   : > { %8150 = vmatprep.mubr.f32.mxu1 %v22280_v1  ;;  %v8958_v7 = vsel %vm649_vm2, %v17760_v15, %v17761_v35  ;;  %v8957_v4 = vsel %vm649_vm2, %v17770_v61, %v17760_v15 }
 0x2ae   : > { %16167 = vmatmul.mubr.msk.f32.gmra.mrb[40].mxu0 %vm515_vm1, %v16279_v53  ;;  %v16322_v53 = vld [vmem:[%s22274_s1 + $0x168] sm:$0xff] }
 0x2af   : > { %6760 = vmatprep.mubr.f32.mxu0 %v22280_v1  ;;  %17793 = vrot.lane.b32.xlu0 %v20076_v56, %s18369_s25 }
 0x2b0   : > { %16289 = vmatmul.mubr.msk.f32.gmra.mrb[32].mxu1 %vm515_vm1, %v16281_v19  ;;  %3269 = vrot.lane.b32.xlu1 %v19691_v34, %s18372_s16  ;;  %v16291_v34 = vld [vmem:[%s22274_s1 + $0xf0] sm:$0xff] }
 0x2b1   : > { %8156 = vmatprep.mubr.f32.mxu1 %v22280_v1 }
 0x2b2   : > { %16168 = vmatmul.mubr.msk.f32.gmra.mrb[42].mxu0 %vm515_vm1, %v16280_v20  ;;  %v16324_v20 = vld [vmem:[%s22274_s1 + $0x178] sm:$0xff] }
 0x2b3   : > { %6766 = vmatprep.mubr.f32.mxu0 %v22280_v1  ;;  %17803 = vrot.lane.b32.xlu0 %v17777_v37, %s18368_s24  ;;  %v16695_v37 = vpack.c.bf16 %v8960_v11, %v8958_v7 }
 0x2b4   : > { %16290 = vmatmul.mubr.msk.f32.gmra.mrb[34].mxu1 %vm515_vm1, %v16282_v60  ;;  %17788 = vrot.lane.b32.xlu1 %v20090_v23, %s18369_s25 }
 0x2b5   : > { %8280 = vmatprep.mubr.f32.mxu1 %v22280_v1 }
 0x2b6   : > { %16169 = vmatmul.mubr.msk.f32.gmra.mrb[44].mxu0 %vm515_vm1, %v16281_v19 }
 0x2b7   : > { %6772 = vmatprep.mubr.f32.mxu0 %v22280_v1 }
 0x2b8   : > { %16299 = vmatmul.mubr.msk.f32.vlgmr.msra.gmra.mrb[24].mxu1 %vm515_vm1, %v16291_v34  ;;  %17798 = vrot.lane.b32.xlu1 %v20039_v57, %s18369_s25 }
 0x2b9   : > { %8286 = vmatprep.mubr.f32.mxu1 %v22280_v1  ;;  %16312 = vmatpush1.msk.msra.mxu1 %vm534_vm0, %v8346_v10 }
 0x2ba   : > { %16170 = vmatmul.mubr.msk.f32.gmra.mrb[46].mxu0 %vm515_vm1, %v16282_v60  ;;  %16325 = vmatprep.subr.msk.mxu1 %vm534_vm0, %v8491_v13 }
 0x2bb   : > { %6896 = vmatprep.mubr.f32.mxu0 %v22280_v1 }
 0x2bc   : > { %16300 = vmatmul.mubr.msk.f32.gmra.mrb[26].mxu1 %vm515_vm1, %v16292_v63  ;;  %17808 = vrot.lane.b32.xlu1 %v17782_v55, %s18368_s24  ;;  %v17771_v55 = vunpack.i.h.bf16 %v17769_v12 }
 0x2bd   : > { %8292 = vmatprep.mubr.f32.mxu1 %v22280_v1 }
 0x2be   : > { %16179 = vmatmul.mubr.msk.f32.vlgmr.msra.gmra.mrb[36].mxu0 %vm515_vm1, %v16291_v34  ;;  %v8959_v19 = vsel %vm649_vm2, %v17771_v55, %v17765_v42  ;;  %v3246_v42 = vpop.permute.xlu1 %3245 }
 0x2bf   : > { %16192 = vmatpush1.msk.msra.mxu0 %vm534_vm0, %v6962_v27  ;;  %6902 = vmatprep.mubr.f32.mxu0 %v22280_v1  ;;  %v16697_v34 = vpack.c.bf16 %v8959_v19, %v8957_v4 }
 0x2c0   : > { %16301 = vmatmul.mubr.msk.f32.gmra.mrb[28].mxu1 %vm515_vm1, %v16293_v36  ;;  %16205 = vmatprep.subr.msk.mxu0 %vm534_vm0, %v7107_v25 }
 0x2c1   : > { %8298 = vmatprep.mubr.f32.mxu1 %v22280_v1 }
 0x2c2   : > { %16180 = vmatmul.mubr.msk.f32.gmra.mrb[38].mxu0 %vm515_vm1, %v16292_v63  ;;  %v16334_v63 = vld [vmem:[%s22274_s1 + $0x188] sm:$0xff] }
 0x2c3   : > { %6908 = vmatprep.mubr.f32.mxu0 %v22280_v1 }
 0x2c4   : > { %16302 = vmatmul.mubr.msk.f32.gmra.mrb[30].mxu1 %vm515_vm1, %v16294_v28 }
 0x2c5   : > { %8304 = vmatprep.mubr.f32.mxu1 %v22280_v1 }
 0x2c6   : > { %16181 = vmatmul.mubr.msk.f32.gmra.mrb[40].mxu0 %vm515_vm1, %v16293_v36 }
 0x2c7   : > { %6914 = vmatprep.mubr.f32.mxu0 %v22280_v1 }
 0x2c8   : > { %16303 = vmatmul.mubr.msk.f32.gmra.mrb[32].mxu1 %vm515_vm1, %v16295_v59 }
 0x2c9   : > { %8310 = vmatprep.mubr.f32.mxu1 %v22280_v1 }
 0x2ca   : > { %16182 = vmatmul.mubr.msk.f32.gmra.mrb[42].mxu0 %vm515_vm1, %v16294_v28  ;;  %v16335_v28 = vld [vmem:[%s22274_s1 + $0x190] sm:$0xff] }
 0x2cb   : > { %6920 = vmatprep.mubr.f32.mxu0 %v22280_v1 }
 0x2cc   : > { %16304 = vmatmul.mubr.msk.f32.gmra.mrb[34].mxu1 %vm515_vm1, %v16296_v46 }
 0x2cd   : > { %8434 = vmatprep.mubr.f32.mxu1 %v22280_v1 }
 0x2ce   : > { %16183 = vmatmul.mubr.msk.f32.gmra.mrb[44].mxu0 %vm515_vm1, %v16295_v59  ;;  %v20290_v59 = vpop.permute.xlu0 %17773 }
 0x2cf   : > { %6926 = vmatprep.mubr.f32.mxu0 %v22280_v1 }
 0x2d0   : > { %16313 = vmatmul.mubr.msk.f32.vlgmr.msra.gmra.mrb[24].mxu1 %vm515_vm1, %v16305_v38 }
 0x2d1   : > { %16326 = vmatpush1.msk.msra.mxu1 %vm534_vm0, %v8483_v43  ;;  %8440 = vmatprep.mubr.f32.mxu1 %v22280_v1 }
 0x2d2   : > { %16339 = vmatprep.subr.msk.mxu1 %vm534_vm0, %v8645_v29  ;;  %16184 = vmatmul.mubr.msk.f32.gmra.mrb[46].mxu0 %vm515_vm1, %v16296_v46 }
 0x2d3   : > { %7050 = vmatprep.mubr.f32.mxu0 %v22280_v1 }
 0x2d4   : > { %16314 = vmatmul.mubr.msk.f32.gmra.mrb[26].mxu1 %vm515_vm1, %v16306_v30 }
 0x2d5   : > { %8446 = vmatprep.mubr.f32.mxu1 %v22280_v1 }
 0x2d6   : > { %16193 = vmatmul.mubr.msk.f32.vlgmr.msra.gmra.mrb[36].mxu0 %vm515_vm1, %v16305_v38 }
 0x2d7   : > { %16206 = vmatpush1.msk.msra.mxu0 %vm534_vm0, %v7099_v2  ;;  %7056 = vmatprep.mubr.f32.mxu0 %v22280_v1 }
 0x2d8   : > { %16315 = vmatmul.mubr.msk.f32.gmra.mrb[28].mxu1 %vm515_vm1, %v16307_v32  ;;  %16219 = vmatprep.subr.msk.mxu0 %vm534_vm0, %v7261_v62 }
 0x2d9   : > { %8452 = vmatprep.mubr.f32.mxu1 %v22280_v1 }
 0x2da   : > { %16194 = vmatmul.mubr.msk.f32.gmra.mrb[38].mxu0 %vm515_vm1, %v16306_v30  ;;  %v16336_v30 = vld [vmem:[%s22274_s1 + $0x198] sm:$0xff] }
 0x2db   : > { %7062 = vmatprep.mubr.f32.mxu0 %v22280_v1 }
 0x2dc   : > { %16316 = vmatmul.mubr.msk.f32.gmra.mrb[30].mxu1 %vm515_vm1, %v16308_v39 }
 0x2dd   : > { %8458 = vmatprep.mubr.f32.mxu1 %v22280_v1 }
 0x2de   : > { %16195 = vmatmul.mubr.msk.f32.gmra.mrb[40].mxu0 %vm515_vm1, %v16307_v32 }
 0x2df   : > { %7068 = vmatprep.mubr.f32.mxu0 %v22280_v1 }
 0x2e0   : > { %16317 = vmatmul.mubr.msk.f32.gmra.mrb[32].mxu1 %vm515_vm1, %v16309_v33 }
 0x2e1   : > { %8464 = vmatprep.mubr.f32.mxu1 %v22280_v1 }
 0x2e2   : > { %16196 = vmatmul.mubr.msk.f32.gmra.mrb[42].mxu0 %vm515_vm1, %v16308_v39  ;;  %v3248_v39 = vpop.permute.xlu0 %3247 }
 0x2e3   : > { %7074 = vmatprep.mubr.f32.mxu0 %v22280_v1 }
 0x2e4   : > { %16318 = vmatmul.mubr.msk.f32.gmra.mrb[34].mxu1 %vm515_vm1, %v16310_v44 }
 0x2e5   : > { %8578 = vmatprep.mubr.f32.mxu1 %v22280_v1 }
 0x2e6   : > { %16197 = vmatmul.mubr.msk.f32.gmra.mrb[44].mxu0 %vm515_vm1, %v16309_v33  ;;  %v3252_v7 = vpop.permute.xlu0 %3251 }
 0x2e7   : > { %7080 = vmatprep.mubr.f32.mxu0 %v22280_v1  ;;  %v3256_v12 = vsel %vm1849_vm4, %v3252_v7, %v3248_v39  ;;  %v3254_v55 = vsel %vm1849_vm4, %v3248_v39, %v3252_v7 }
 0x2e8   : > { %16327 = vmatmul.mubr.msk.f32.vlgmr.msra.gmra.mrb[24].mxu1 %vm515_vm1, %v16319_v47 }
 0x2e9   : > { %16340 = vmatpush1.msk.msra.mxu1 %vm534_vm0, %v8644_v5  ;;  %8584 = vmatprep.mubr.f32.mxu1 %v22280_v1 }
 0x2ea   : > { %16696 = vmatprep.subr.bf16.mxu1 %v16695_v37  ;;  %16198 = vmatmul.mubr.msk.f32.gmra.mrb[46].mxu0 %vm515_vm1, %v16310_v44  ;;  %v16338_v44 = vld [vmem:[%s22274_s1 + $0x1a8] sm:$0xff] }
 0x2eb   : > { %7194 = vmatprep.mubr.f32.mxu0 %v22280_v1 }
 0x2ec   : > { %16328 = vmatmul.mubr.msk.f32.gmra.mrb[26].mxu1 %vm515_vm1, %v16320_v17 }
 0x2ed   : > { %8590 = vmatprep.mubr.f32.mxu1 %v22280_v1 }
 0x2ee   : > { %16207 = vmatmul.mubr.msk.f32.vlgmr.msra.gmra.mrb[36].mxu0 %vm515_vm1, %v16319_v47  ;;  %v20345_v47 = vld [vmem:[%s22276_s3] sm:$0xff] }
 0x2ef   : > { %16220 = vmatpush1.msk.msra.mxu0 %vm534_vm0, %v7260_v8  ;;  %7200 = vmatprep.mubr.f32.mxu0 %v22280_v1  ;;  %v17776_v8 = vunpack.i.h.bf16 %v20290_v59 }
 0x2f0   : > { %16329 = vmatmul.mubr.msk.f32.gmra.mrb[28].mxu1 %vm515_vm1, %v16321_v21  ;;  %16673 = vmatprep.subr.mxu0 %v22280_v1 }
 0x2f1   : > { %8596 = vmatprep.mubr.f32.mxu1 %v22280_v1 }
 0x2f2   : > { %16208 = vmatmul.mubr.msk.f32.gmra.mrb[38].mxu0 %vm515_vm1, %v16320_v17  ;;  %v3250_v17 = vpop.permute.xlu1 %3249 }
 0x2f3   : > { %7206 = vmatprep.mubr.f32.mxu0 %v22280_v1 }
 0x2f4   : > { %16330 = vmatmul.mubr.msk.f32.gmra.mrb[30].mxu1 %vm515_vm1, %v16322_v53 }
 0x2f5   : > { %8602 = vmatprep.mubr.f32.mxu1 %v22280_v1 }
 0x2f6   : > { %16209 = vmatmul.mubr.msk.f32.gmra.mrb[40].mxu0 %vm515_vm1, %v16321_v21 }
 0x2f7   : > { %7212 = vmatprep.mubr.f32.mxu0 %v22280_v1 }
 0x2f8   : > { %16331 = vmatmul.mubr.msk.f32.gmra.mrb[32].mxu1 %vm515_vm1, %v16323_v58 }
 0x2f9   : > { %8608 = vmatprep.mubr.f32.mxu1 %v22280_v1 }
 0x2fa   : > { %16210 = vmatmul.mubr.msk.f32.gmra.mrb[42].mxu0 %vm515_vm1, %v16322_v53  ;;  %v17775_v53 = vunpack.i.l.bf16 %v20290_v59  ;;  %v20383_v59 = vld [vmem:[%s22276_s3 + $0x10] sm:$0xff] }
 0x2fb   : > { %v20256_v60 = vpop.f32.mrb[12].mxu1  ;;  %7218 = vmatprep.mubr.f32.mxu0 %v22280_v1 }
 0x2fc   : > { %v20259_v43 = vpop.f32.mrb[13].mxu1  ;;  %16332 = vmatmul.mubr.msk.f32.gmra.mrb[34].mxu1 %vm515_vm1, %v16324_v20 }
 0x2fd   : > { %8732 = vmatprep.mubr.f32.mxu1 %v22280_v1 }
 0x2fe   : > { %16211 = vmatmul.mubr.msk.f32.gmra.mrb[44].mxu0 %vm515_vm1, %v16323_v58  ;;  %v20361_v58 = vld [vmem:[%s22276_s3 + $0x8] sm:$0xff] }
 0x2ff   : > { %v20267_v13 = vpop.f32.mrb[14].mxu1  ;;  %7224 = vmatprep.mubr.f32.mxu0 %v22280_v1 }
 0x300   : > { %v20270_v10 = vpop.f32.mrb[15].mxu1  ;;  %16341 = vmatmul.mubr.msk.f32.vlgmr.msra.gmra.mrb[24].mxu1 %vm515_vm1, %v16333_v22 }
 0x301   : > { %8738 = vmatprep.mubr.f32.mxu1 %v22280_v1  ;;  %16698 = vmatpush1.bf16.msra.mxu1 %v16697_v34  ;;  %v4582_v2 = vpop.f32.mrb[24].mxu0  ;;  %v3259_v34 = vsel %vm19938_vm5, %v3256_v12, 0.0 }
 0x302   : > { %v4584_v25 = vpop.f32.mrb[25].mxu0  ;;  %16212 = vmatmul.mubr.msk.f32.gmra.mrb[46].mxu0 %vm515_vm1, %v16324_v20  ;;  %4629 = vrot.lane.b32.xlu0 %v4582_v2, %s18371_s8 }
 0x303   : > { %v20278_v36 = vpop.f32.mrb[16].mxu1  ;;  %7348 = vmatprep.mubr.f32.mxu0 %v22280_v1 }
 0x304   : > { %v20282_v27 = vpop.f32.mrb[17].mxu1  ;;  %16342 = vmatmul.mubr.msk.f32.gmra.mrb[26].mxu1 %vm515_vm1, %v16334_v63 }
 0x305   : > { %8744 = vmatprep.mubr.f32.mxu1 %v22280_v1  ;;  %v4588_v46 = vpop.f32.mrb[26].mxu0 }
 0x306   : > { %v4590_v38 = vpop.f32.mrb[27].mxu0  ;;  %4633 = vrot.lane.b32.xlu0 %v4584_v25, %s18371_s8  ;;  %4631 = vrot.lane.b32.xlu1 %v4588_v46, %s18371_s8  ;;  %v3253_v25 = vsel %vm1849_vm4, %v3246_v42, %v3250_v17 }
 0x307   : > { %v20292_v0 = vpop.f32.mrb[18].mxu1  ;;  %16221 = vmatmul.mubr.msk.f32.vlgmr.msra.gmra.mrb[36].mxu0 %vm515_vm1, %v16333_v22  ;;  %v3255_v22 = vsel %vm1849_vm4, %v3250_v17, %v3246_v42  ;;  %v3263_v42 = vadd.f32 %v19673_v52, %v3259_v34 }
 0x308   : > { %v20296_v29 = vpop.f32.mrb[19].mxu1  ;;  %16343 = vmatmul.mubr.msk.f32.gmra.mrb[28].mxu1 %vm515_vm1, %v16335_v28  ;;  %7354 = vmatprep.mubr.f32.mxu0 %v22280_v1 }
 0x309   : > { %8750 = vmatprep.mubr.f32.mxu1 %v22280_v1  ;;  %v20305_v31 = vpop.f32.mrb[28].mxu0  ;;  %16674 = vmatpush3.msra.mxu0 %v22280_v1 }
 0x30a   : > { %v20310_v62 = vpop.f32.mrb[29].mxu0  ;;  %4635 = vrot.lane.b32.xlu1 %v4590_v38, %s18371_s8 }
 0x30b   : > { %v20308_v32 = vpop.f32.mrb[20].mxu1  ;;  %16222 = vmatmul.mubr.msk.f32.gmra.mrb[38].mxu0 %vm515_vm1, %v16334_v63 }
 0x30c   : > { %v20313_v33 = vpop.f32.mrb[21].mxu1  ;;  %16344 = vmatmul.mubr.msk.f32.gmra.mrb[30].mxu1 %vm515_vm1, %v16336_v30  ;;  %7360 = vmatprep.mubr.f32.mxu0 %v22280_v1 }
 0x30d   : > { %8756 = vmatprep.mubr.f32.mxu1 %v22280_v1  ;;  %v20322_v9 = vpop.f32.mrb[30].mxu0 }
 0x30e   : > { %v20326_v15 = vpop.f32.mrb[31].mxu0 }
 0x30f   : > { %v20324_v35 = vpop.f32.mrb[22].mxu1  ;;  %16223 = vmatmul.mubr.msk.f32.gmra.mrb[40].mxu0 %vm515_vm1, %v16335_v28  ;;  %v3260_v28 = vsel %vm19942_vm6, %v3254_v55, 0.0  ;;  %v20422_v55 = vld [vmem:[%s22276_s3 + $0x48] sm:$0xff] }
 0x310   : > { %v20328_v6 = vpop.f32.mrb[23].mxu1  ;;  %16345 = vmatmul.mubr.msk.f32.gmra.mrb[32].mxu1 %vm515_vm1, %v16337_v18  ;;  %7366 = vmatprep.mubr.f32.mxu0 %v22280_v1  ;;  %v3264_v52 = vadd.f32 %v19677_v54, %v3260_v28 }
 0x311   : > { %8762 = vmatprep.mubr.f32.mxu1 %v22280_v1  ;;  %v4606_v11 = vpop.f32.mrb[32].mxu0 }
 0x312   : > { %v4608_v45 = vpop.f32.mrb[33].mxu0  ;;  %4649 = vrot.lane.b32.xlu0 %v4606_v11, %s18372_s16 }
 0x313   : > { %16224 = vmatmul.mubr.msk.f32.gmra.mrb[42].mxu0 %vm515_vm1, %v16336_v30 }
 0x314   : > { %16346 = vmatmul.mubr.msk.f32.gmra.mrb[34].mxu1 %vm515_vm1, %v16338_v44  ;;  %7372 = vmatprep.mubr.f32.mxu0 %v22280_v1 }
 0x315   : > { %9038 = vmatprep.mubr.f32.mxu1 %v22280_v1  ;;  %v4612_v37 = vpop.f32.mrb[34].mxu0  ;;  %v17779_v5 = vpop.permute.xlu0 %17778 }
 0x316   : > { %v4614_v21 = vpop.f32.mrb[35].mxu0  ;;  %4653 = vrot.lane.b32.xlu0 %v4608_v45, %s18372_s16  ;;  %4651 = vrot.lane.b32.xlu1 %v4612_v37, %s18372_s16  ;;  %v17781_v61 = vunpack.i.h.bf16 %v17779_v5  ;;  %v17780_v20 = vunpack.i.l.bf16 %v17779_v5  ;;  %v20401_v37 = vld [vmem:[%s22276_s3 + $0x18] sm:$0xff]  ;;  %v3258_v5 = vsel %vm19942_vm6, %v3253_v25, 0.0 }
 0x317   : > { %16225 = vmatmul.mubr.msk.f32.gmra.mrb[44].mxu0 %vm515_vm1, %v16337_v18  ;;  %v3257_v18 = vsel %vm19938_vm5, %v3255_v22, 0.0  ;;  %v20435_v22 = vld [vmem:[%s22276_s3 + $0x20] sm:$0xff] }
 0x318   : > { %16353 = vmatmul.mubr.msk.f32.vlgmr.msra.gmra.mrb[36].mxu1 %vm649_vm2, %v20345_v47  ;;  %7378 = vmatprep.mubr.f32.mxu0 %v22280_v1  ;;  %v9219_v46 = vsel %vm649_vm2, %v17775_v53, %v17780_v20  ;;  %v9220_v30 = vsel %vm649_vm2, %v17780_v20, %v17781_v61  ;;  %v3261_v61 = vadd.f32 %v19658_v48, %v3257_v18  ;;  %v20457_v18 = vld [vmem:[%s22276_s3 + $0x50] sm:$0xff] }
 0x319   : > { %9044 = vmatprep.mubr.f32.mxu1 %v22280_v1  ;;  %v3268_v19 = vpop.permute.xlu0 %3267  ;;  %v3262_v20 = vadd.f32 %v19663_v50, %v3258_v5 }
 0x31a   : > { %v17784_v4 = vpop.permute.xlu1 %17783  ;;  %17813 = vrot.lane.b32.xlu0 %v22280_v1, %s18369_s25  ;;  %4655 = vrot.lane.b32.xlu1 %v4614_v21, %s18372_s16 }
 0x31b   : > { %v17786_v63 = vunpack.i.h.bf16 %v17784_v4  ;;  %v17785_v2 = vunpack.i.l.bf16 %v17784_v4  ;;  %16226 = vmatmul.mubr.msk.f32.gmra.mrb[46].mxu0 %vm515_vm1, %v16338_v44 }
 0x31c   : > { %16354 = vmatmul.mubr.msk.f32.gmra.mrb[38].mxu1 %vm649_vm2, %v20361_v58  ;;  %16675 = vmatprep.mubr.msk.f32.mxu0 %vm18373_vm10, %v22280_v1 }
 0x31d   : > { %9050 = vmatprep.mubr.f32.mxu1 %v22280_v1  ;;  %v9221_v38 = vsel %vm649_vm2, %v17776_v8, %v17785_v2  ;;  %v9222_v39 = vsel %vm649_vm2, %v17785_v2, %v17786_v63  ;;  %v3272_v7 = vpop.permute.xlu0 %3271 }
 0x31e   : > { %v3266_v44 = vpop.permute.xlu1 %3265  ;;  %17823 = vrot.lane.b32.xlu0 %v22280_v1, %s18368_s24  ;;  %17818 = vrot.lane.b32.xlu1 %v22280_v1, %s18369_s25  ;;  %v16703_v11 = vpack.c.bf16 %v9222_v39, %v9220_v30  ;;  %v16705_v45 = vpack.c.bf16 %v9221_v38, %v9219_v46  ;;  %v3274_v17 = vsel %vm1874_vm7, %v3268_v19, %v3272_v7 }
 0x31f   : > { %v3276_v21 = vsel %vm1874_vm7, %v3272_v7, %v3268_v19  ;;  %16676 = vmatmul.mubr.msk.f32.vlgmr.msra.gmra.mrb[48].mxu0 %vm649_vm2, %v20401_v37  ;;  %v3279_v8 = vsel %vm19963_vm8, %v3274_v17, 0.0 }
 0x320   : > { %16355 = vmatmul.mubr.msk.f32.gmra.mrb[40].mxu1 %vm649_vm2, %v20383_v59  ;;  %v3280_v53 = vsel %vm19967_vm9, %v3276_v21, 0.0  ;;  %16704 = vmatprep.subr.bf16.mxu1 %v16703_v11  ;;  %v3283_v54 = vadd.f32 %v3279_v8, %v3263_v42  ;;  %v20483_v8 = vld [vmem:[%s22276_s3 + $0x58] sm:$0xff] }
 0x321   : > { %9300 = vmatprep.mubr.f32.mxu1 %v22280_v1  ;;  %v3284_v12 = vadd.f32 %v3280_v53, %v3264_v52  ;;  %16706 = vmatpush1.bf16.msra.mxu1 %v16705_v45  ;;  %v17794_v19 = vpop.permute.xlu0 %17793 }
 0x322   : > { %16678 = vmatprep.mubr.msk.f32.mxu0 %vm18373_vm10, %v22280_v1  ;;  %v3270_v4 = vpop.permute.xlu1 %3269  ;;  %17833 = vrot.lane.b32.xlu0 %v20090_v23, %s18369_s25  ;;  %v3287_v34 = vadd.f32 %v3283_v54, %v19891_v3  ;;  %v17796_v25 = vunpack.i.h.bf16 %v17794_v19  ;;  %v17795_v28 = vunpack.i.l.bf16 %v17794_v19 }
 0x323   : > { %17828 = vrot.lane.b32.xlu1 %v22280_v1, %s18369_s25  ;;  %v3288_v63 = vadd.f32 %v3284_v12, %v19891_v3  ;;  %v3273_v48 = vsel %vm1874_vm7, %v3266_v44, %v3270_v4  ;;  %v3275_v50 = vsel %vm1874_vm7, %v3270_v4, %v3266_v44  ;;  %16679 = vmatmul.mubr.msk.f32.gmra.mrb[50].mxu0 %vm649_vm2, %v20435_v22  ;;  %v20466_v44 = vld [vmem:[%s22276_s3 + $0x28] sm:$0xff] }
 0x324   : > { %v3277_v23 = vsel %vm19963_vm8, %v3273_v48, 0.0  ;;  %v3278_v2 = vsel %vm19967_vm9, %v3275_v50, 0.0  ;;  %16365 = vmatmul.mubr.msk.f32.vlgmr.msra.gmra.mrb[42].mxu1 %vm649_vm2, %v20422_v55  ;;  %16681 = vmatprep.mubr.msk.f32.mxu0 %vm18373_vm10, %v22280_v1  ;;  %v3291_v46 = vmax.f32 %v3287_v34, 0.0  ;;  %v9458_v21 = vsel %vm793_vm3, %v17795_v28, %v17796_v25  ;;  %v20524_v25 = vld [vmem:[%s22276_s3 + $0x80] sm:$0xff] }
 0x325   : > { %v3292_v38 = vmax.f32 %v3288_v63, 0.0  ;;  %v3281_v30 = vadd.f32 %v3277_v23, %v3261_v61  ;;  %v3282_v39 = vadd.f32 %v3278_v2, %v3262_v20  ;;  %9306 = vmatprep.mubr.f32.mxu1 %v22280_v1  ;;  %v20507_v23 = vld [vmem:[%s22276_s3 + $0x78] sm:$0xff] }
 0x326   : > { %v17789_v42 = vpop.permute.xlu1 %17788  ;;  %17843 = vrot.lane.b32.xlu0 %v20039_v57, %s18369_s25 }
 0x327   : > { %17838 = vrot.lane.b32.xlu1 %v20076_v56, %s18369_s25  ;;  %v3285_v7 = vadd.f32 %v3281_v30, %v19905_v26  ;;  %v3286_v11 = vadd.f32 %v3282_v39, %v19905_v26  ;;  %v17791_v45 = vunpack.i.h.bf16 %v17789_v42  ;;  %v17790_v5 = vunpack.i.l.bf16 %v17789_v42  ;;  %16682 = vmatmul.mubr.msk.f32.gmra.mrb[52].mxu0 %vm649_vm2, %v20466_v44  ;;  %v20546_v42 = vld [vmem:[%s22276_s3 + $0x88] sm:$0xff] }
 0x328   : > { %v20472_v52 = vpack.i.bf16 %v3292_v38, %v3291_v46  ;;  %16366 = vmatmul.mubr.msk.f32.gmra.mrb[44].mxu1 %vm649_vm2, %v20457_v18  ;;  %9166 = vmatprep.mubr.f32.mxu0 %v22280_v1  ;;  %v20519_v2 = vpack.i.bf16 %v22280_v1, %v3292_v38 }
 0x329   : > { %v3289_v57 = vmax.f32 %v3285_v7, 0.0  ;;  %v3290_v56 = vmax.f32 %v3286_v11, 0.0  ;;  %v9456_v17 = vsel %vm793_vm3, %v17790_v5, %v17791_v45  ;;  %9312 = vmatprep.mubr.f32.mxu1 %v22280_v1  ;;  %v16386_v45 = vld [vmem:[%s22276_s3 + $0xa8] sm:$0xff] }
 0x32a   : > { %v17799_v53 = vpop.permute.xlu1 %17798  ;;  %17853 = vrot.lane.b32.xlu0 %v20472_v52, %s18368_s24  ;;  %v16711_v54 = vpack.c.bf16 %v9458_v21, %v9456_v17  ;;  %v20576_v17 = vld [vmem:[%s22276_s3 + $0xb0] sm:$0xff]  ;;  %v16388_v21 = vld [vmem:[%s22276_s3 + $0xb8] sm:$0xff] }
 0x32b   : > { %v17801_v12 = vunpack.i.h.bf16 %v17799_v53  ;;  %v17800_v61 = vunpack.i.l.bf16 %v17799_v53  ;;  %v20487_v20 = vpack.i.bf16 %v3290_v56, %v3289_v57  ;;  %v20491_v4 = vpack.c.bf16 %v3292_v38, %v3290_v56 }
 0x32c   : > { %16712 = vmatprep.subr.bf16.mxu1 %v16711_v54  ;;  %16367 = vmatmul.mubr.msk.f32.gmra.mrb[46].mxu1 %vm649_vm2, %v20483_v8  ;;  %v20493_v19 = vpack.c.bf16 %v3291_v46, %v3289_v57  ;;  %v20502_v50 = vpack.i.bf16 %v3291_v46, %v3289_v57  ;;  %v20533_v46 = vpop.permute.xlu0 %17803  ;;  %v20538_v38 = vpack.i.bf16 %v22280_v1, %v3290_v56 }
 0x32d   : > { %v9455_v34 = vsel %vm793_vm3, %v17800_v61, %v17790_v5  ;;  %v9457_v63 = vsel %vm793_vm3, %v17801_v12, %v17795_v28  ;;  %17848 = vrot.lane.b32.xlu1 %v20487_v20, %s18368_s24  ;;  %9536 = vmatprep.mubr.f32.mxu1 %v22280_v1  ;;  %v17806_v7 = vunpack.i.h.bf16 %v20533_v46  ;;  %v17805_v11 = vunpack.i.l.bf16 %v20533_v46 }
 0x32e   : > { %17863 = vrot.lane.b32.xlu0 %v20472_v52, %s18368_s24  ;;  %v16713_v48 = vpack.c.bf16 %v9457_v63, %v9455_v34  ;;  %v20526_v28 = vpop.permute.xlu1 %17808 }
 0x32f   : > { %v17811_v30 = vunpack.i.h.bf16 %v20526_v28  ;;  %v17810_v39 = vunpack.i.l.bf16 %v20526_v28  ;;  %v10085_v57 = vsel %vm649_vm2, %v17805_v11, %v17806_v7 }
 0x330   : > { %16714 = vmatpush1.bf16.msra.mxu1 %v16713_v48 }
 0x331   : > { %17858 = vrot.lane.b32.xlu1 %v20487_v20, %s18368_s24  ;;  %16720 = vmatprep.subr.bf16.mxu1 %v20491_v4  ;;  %v10087_v5 = vsel %vm649_vm2, %v17810_v39, %v17811_v30 }
 0x332   : > { %17873 = vrot.lane.b32.xlu0 %v22280_v1, %s18368_s24  ;;  %v16731_v56 = vpack.c.bf16 %v10087_v5, %v10085_v57 }
 0x333   : > { %16377 = vmatmul.mubr.msk.f32.vlgmr.msra.gmra.mrb[48].mxu1 %vm649_vm2, %v20507_v23 }
 0x334   : > { %16722 = vmatpush1.bf16.msra.mxu1 %v20493_v19  ;;  %9542 = vmatprep.mubr.f32.mxu1 %v22280_v1 }
 0x335   : > { %17868 = vrot.lane.b32.xlu1 %v22280_v1, %s18368_s24  ;;  %16728 = vmatprep.subr.bf16.mxu1 %v20047_v16 }
 0x336   : > { %17883 = vrot.lane.b32.xlu0 %v20519_v2, %s18369_s25 }
 0x337   : > { %16378 = vmatmul.mubr.msk.f32.gmra.mrb[50].mxu1 %vm649_vm2, %v20524_v25 }
 0x338   : > { %9548 = vmatprep.mubr.f32.mxu1 %v22280_v1 }
 0x339   : > { %17878 = vrot.lane.b32.xlu1 %v20538_v38, %s18369_s25 }
 0x33a   : > { %17893 = vrot.lane.b32.xlu0 %v20538_v38, %s18369_s25 }
 0x33b   : > { %16379 = vmatmul.mubr.msk.f32.gmra.mrb[52].mxu1 %vm649_vm2, %v20546_v42 }
 0x33c   : > { %9772 = vmatprep.mubr.f32.mxu1 %v22280_v1 }
 0x33d   : > { %17888 = vrot.lane.b32.xlu1 %v20502_v50, %s18369_s25 }
 0x33e   : > { %17903 = vrot.lane.b32.xlu0 %v20502_v50, %s18369_s25 }
 0x33f   : > { %16389 = vmatmul.mubr.msk.f32.vlgmr.msra.gmra.mrb[54].mxu1 %vm649_vm2, %v16386_v45 }
 0x340   : > { %16730 = vmatpush1.bf16.msra.mxu1 %v20049_v14  ;;  %9778 = vmatprep.mubr.f32.mxu1 %v22280_v1 }
 0x341   : > { %16732 = vmatprep.subr.bf16.mxu1 %v16731_v56  ;;  %17898 = vrot.lane.b32.xlu1 %v20519_v2, %s18369_s25 }
 0x342   : > { %6015 = vrot.lane.b32.xlu0 %v20267_v13, %s18371_s8 }
 0x343   : > { %16390 = vmatmul.mubr.msk.f32.gmra.mrb[56].mxu1 %vm649_vm2, %v20576_v17 }
 0x344   : > { %9784 = vmatprep.mubr.f32.mxu1 %v22280_v1 }
 0x345   : > { %6013 = vrot.lane.b32.xlu1 %v20256_v60, %s18371_s8 }
 0x346   : > { %6019 = vrot.lane.b32.xlu0 %v20270_v10, %s18371_s8 }
 0x347   : > { %16391 = vmatmul.mubr.msk.f32.gmra.mrb[58].mxu1 %vm649_vm2, %v16388_v21 }
 0x348   : > { %10047 = vmatprep.mubr.f32.mxu1 %v22280_v1 }
 0x349   : > { %6017 = vrot.lane.b32.xlu1 %v20259_v43, %s18371_s8 }
 0x34a   : > { %6035 = vrot.lane.b32.xlu0 %v20324_v35, %s18372_s16 }
 0x34b   : > { %16401 = vmatmul.mubr.msk.f32.vlgmr.msra.gmra.mrb[60].mxu1 %vm649_vm2, %v20401_v37 }
 0x34c   : > { %10053 = vmatprep.mubr.f32.mxu1 %v22280_v1 }
 0x34d   : > { %6033 = vrot.lane.b32.xlu1 %v20308_v32, %s18372_s16 }
 0x34e   : > { %6039 = vrot.lane.b32.xlu0 %v20328_v6, %s18372_s16 }
 0x34f   : > { %16402 = vmatmul.mubr.msk.f32.gmra.mrb[62].mxu1 %vm649_vm2, %v20435_v22 }
 0x350   : > { %10059 = vmatprep.mubr.f32.mxu1 %v22280_v1 }
 0x351   : > { %6037 = vrot.lane.b32.xlu1 %v20313_v33, %s18372_s16 }
 0x352   : > { %17913 = vrot.lane.b32.xlu0 %v20487_v20, %s18368_s24 }
 0x353   : > { %16403 = vmatmul.mubr.msk.f32.gmra.mrb[64].mxu1 %vm649_vm2, %v20466_v44 }
 0x354   : > { %10165 = vmatprep.mubr.f32.mxu1 %v22280_v1 }
 0x355   : > { %17908 = vrot.lane.b32.xlu1 %v22280_v1, %s18368_s24 }
 0x374   : > { %v4630_v60 = vpop.permute.xlu0 %4629 }
 0x378   : > { %v4632_v43 = vpop.permute.xlu1 %4631  ;;  %v4634_v13 = vpop.permute.xlu0 %4633 }
 0x379   : > { %v4637_v10 = vsel %vm1849_vm4, %v4630_v60, %v4634_v13  ;;  %v4639_v32 = vsel %vm1849_vm4, %v4634_v13, %v4630_v60 }
 0x37a   : > { %v4641_v6 = vsel %vm19938_vm5, %v4639_v32, 0.0  ;;  %v4642_v53 = vsel %vm19942_vm6, %v4637_v10, 0.0 }
 0x37b   : > { %v4645_v61 = vadd.f32 %v4641_v6, %v20305_v31  ;;  %v4646_v20 = vadd.f32 %v4642_v53, %v20310_v62 }
 0x37c   : > { %v4636_v33 = vpop.permute.xlu1 %4635 }
 0x37d   : > { %v4638_v54 = vsel %vm1849_vm4, %v4632_v43, %v4636_v33  ;;  %v4640_v12 = vsel %vm1849_vm4, %v4636_v33, %v4632_v43 }
 0x37e   : > { %v4643_v48 = vsel %vm19938_vm5, %v4640_v12, 0.0  ;;  %v4644_v30 = vsel %vm19942_vm6, %v4638_v54, 0.0 }
 0x37f   : > { %v4647_v56 = vadd.f32 %v4643_v48, %v20322_v9  ;;  %v4648_v21 = vadd.f32 %v4644_v30, %v20326_v15 }
 0x384   : > { %v4650_v35 = vpop.permute.xlu0 %4649 }
 0x388   : > { %v4652_v34 = vpop.permute.xlu1 %4651  ;;  %v4654_v63 = vpop.permute.xlu0 %4653 }
 0x389   : > { %v4657_v7 = vsel %vm1874_vm7, %v4650_v35, %v4654_v63  ;;  %v4659_v45 = vsel %vm1874_vm7, %v4654_v63, %v4650_v35 }
 0x38a   : > { %v4661_v5 = vsel %vm19963_vm8, %v4657_v7, 0.0  ;;  %v4662_v31 = vsel %vm19967_vm9, %v4659_v45, 0.0 }
 0x38b   : > { %v4665_v62 = vadd.f32 %v4661_v5, %v4645_v61  ;;  %v4666_v57 = vadd.f32 %v4662_v31, %v4646_v20 }
 0x38c   : > { %v4656_v60 = vpop.permute.xlu1 %4655  ;;  %v17814_v43 = vpop.permute.xlu0 %17813 }
 0x38d   : > { %v4669_v13 = vadd.f32 %v4665_v62, %v19905_v26  ;;  %v4670_v10 = vadd.f32 %v4666_v57, %v19905_v26  ;;  %v4658_v32 = vsel %vm1874_vm7, %v4652_v34, %v4656_v60  ;;  %v4660_v33 = vsel %vm1874_vm7, %v4656_v60, %v4652_v34 }
 0x38e   : > { %v4663_v35 = vsel %vm19963_vm8, %v4658_v32, 0.0  ;;  %v4664_v9 = vsel %vm19967_vm9, %v4660_v33, 0.0  ;;  %v17816_v6 = vunpack.i.h.bf16 %v17814_v43  ;;  %v17815_v15 = vunpack.i.l.bf16 %v17814_v43 }
 0x38f   : > { %v4673_v53 = vmax.f32 %v4669_v13, 0.0  ;;  %v20655_v54 = vmax.f32 %v4670_v10, 0.0  ;;  %v4667_v12 = vadd.f32 %v4663_v35, %v4647_v56  ;;  %v4668_v61 = vadd.f32 %v4664_v9, %v4648_v21 }
 0x390   : > { %v17819_v20 = vpop.permute.xlu1 %17818  ;;  %v17824_v63 = vpop.permute.xlu0 %17823  ;;  %v9086_v48 = vsel %vm793_vm3, %v17815_v15, %v17816_v6 }
 0x391   : > { %v4671_v30 = vadd.f32 %v4667_v12, %v19891_v3  ;;  %v4672_v34 = vadd.f32 %v4668_v61, %v19891_v3  ;;  %v17821_v7 = vunpack.i.h.bf16 %v17819_v20  ;;  %v17820_v45 = vunpack.i.l.bf16 %v17819_v20 }
 0x392   : > { %v17826_v5 = vunpack.i.h.bf16 %v17824_v63  ;;  %v17825_v31 = vunpack.i.l.bf16 %v17824_v63  ;;  %v20661_v62 = vpack.i.bf16 %v20655_v54, %v4673_v53 }
 0x393   : > { %v4675_v57 = vmax.f32 %v4671_v30, 0.0  ;;  %v20663_v60 = vmax.f32 %v4672_v34, 0.0  ;;  %v9088_v56 = vsel %vm793_vm3, %v17820_v45, %v17821_v7 }
 0x394   : > { %v10086_v21 = vsel %vm649_vm2, %v17826_v5, %v17810_v39  ;;  %v10084_v43 = vsel %vm649_vm2, %v17825_v31, %v17805_v11  ;;  %17918 = vrot.lane.b32.xlu1 %v20661_v62, %s18368_s24  ;;  %v17834_v10 = vpop.permute.xlu0 %17833  ;;  %v16699_v32 = vpack.c.bf16 %v9088_v56, %v9086_v48 }
 0x395   : > { %v17829_v13 = vpop.permute.xlu1 %17828  ;;  %v17836_v9 = vunpack.i.h.bf16 %v17834_v10  ;;  %v17835_v6 = vunpack.i.l.bf16 %v17834_v10  ;;  %v16733_v12 = vpack.c.bf16 %v10086_v21, %v10084_v43  ;;  %v20675_v61 = vpack.i.bf16 %v20663_v60, %v4675_v57 }
 0x396   : > { %v17831_v33 = vunpack.i.h.bf16 %v17829_v13  ;;  %v17830_v35 = vunpack.i.l.bf16 %v17829_v13  ;;  %16700 = vmatprep.subr.bf16.mxu0 %v16699_v32  ;;  %v20677_v28 = vpack.i.bf16 %v4675_v57, %v4673_v53  ;;  %v20721_v32 = vld [vmem:[%s22276_s3 + $0x38] sm:$0xff] }
 0x397   : > { %16734 = vmatpush1.bf16.msra.mxu1 %v16733_v12  ;;  %17928 = vrot.lane.b32.xlu0 %v20675_v61, %s18368_s24 }
 0x398   : > { %v9085_v46 = vsel %vm793_vm3, %v17830_v35, %v17815_v15  ;;  %v9087_v39 = vsel %vm793_vm3, %v17831_v33, %v17820_v45  ;;  %v17844_v20 = vpop.permute.xlu0 %17843  ;;  %17923 = vrot.lane.b32.xlu1 %v20472_v52, %s18368_s24  ;;  %v20688_v15 = vld [vmem:[%s22276_s3 + $0x30] sm:$0xff]  ;;  %v10212_v45 = vsel %vm793_vm3, %v17835_v6, %v17836_v9 }
 0x399   : > { %v17839_v11 = vpop.permute.xlu1 %17838  ;;  %v16701_v63 = vpack.c.bf16 %v9087_v39, %v9085_v46  ;;  %v17846_v34 = vunpack.i.h.bf16 %v17844_v20  ;;  %v17845_v7 = vunpack.i.l.bf16 %v17844_v20 }
 0x39a   : > { %v17841_v48 = vunpack.i.h.bf16 %v17839_v11  ;;  %v17840_v30 = vunpack.i.l.bf16 %v17839_v11  ;;  %16404 = vmatmul.mubr.msk.f32.vlgmr.msra.gmra.mrb[60].mxu1 %vm649_vm2, %v20345_v47  ;;  %v20710_v47 = vpack.c.bf16 %v4675_v57, %v4673_v53 }
 0x39b   : > { %16702 = vmatpush1.bf16.msra.mxu0 %v16701_v63  ;;  %v10211_v31 = vsel %vm793_vm3, %v17845_v7, %v17835_v6  ;;  %17933 = vrot.lane.b32.xlu0 %v22280_v1, %s18368_s24 }
 0x39c   : > { %v10213_v5 = vsel %vm793_vm3, %v17846_v34, %v17840_v30  ;;  %16708 = vmatprep.subr.bf16.mxu0 %v20047_v16  ;;  %v10214_v52 = vsel %vm793_vm3, %v17840_v30, %v17841_v48  ;;  %v20699_v56 = vpop.permute.xlu0 %17853  ;;  %10171 = vmatprep.mubr.f32.mxu1 %v22280_v1  ;;  %v20708_v16 = vpack.c.bf16 %v20663_v60, %v20655_v54 }
 0x39d   : > { %v16735_v21 = vpack.c.bf16 %v10214_v52, %v10212_v45  ;;  %v16737_v43 = vpack.c.bf16 %v10213_v5, %v10211_v31  ;;  %17938 = vrot.lane.b32.xlu1 %v20538_v38, %s18369_s25  ;;  %v17856_v13 = vunpack.i.h.bf16 %v20699_v56  ;;  %v17855_v10 = vunpack.i.l.bf16 %v20699_v56  ;;  %v20761_v45 = vld [vmem:[%s22276_s3 + $0x60] sm:$0xff] }
 0x39e   : > { %16359 = vmatmul.mubr.msk.f32.vlgmr.msra.gmra.mrb[54].mxu0 %vm649_vm2, %v20688_v15  ;;  %16405 = vmatmul.mubr.msk.f32.gmra.mrb[62].mxu1 %vm649_vm2, %v20361_v58 }
 0x39f   : > { %16710 = vmatpush1.bf16.msra.mxu0 %v20049_v14  ;;  %16736 = vmatprep.subr.bf16.mxu1 %v16735_v21  ;;  %v17849_v38 = vpop.permute.xlu1 %17848  ;;  %v20730_v14 = vpack.i.bf16 %v22280_v1, %v20655_v54  ;;  %v20742_v54 = vld [vmem:[%s22276_s3 + $0x40] sm:$0xff] }
 0x3a0   : > { %9172 = vmatprep.mubr.f32.mxu0 %v22280_v1  ;;  %v17851_v53 = vunpack.i.h.bf16 %v17849_v38  ;;  %v17850_v57 = vunpack.i.l.bf16 %v17849_v38  ;;  %17943 = vrot.lane.b32.xlu0 %v20519_v2, %s18369_s25  ;;  %v17864_v33 = vpop.permute.xlu0 %17863  ;;  %v10347_v2 = vsel %vm649_vm2, %v17855_v10, %v17856_v13 }
 0x3a1   : > { %16738 = vmatpush1.bf16.msra.mxu1 %v16737_v43  ;;  %17948 = vrot.lane.b32.xlu1 %v20502_v50, %s18369_s25  ;;  %v17866_v58 = vunpack.i.h.bf16 %v17864_v33  ;;  %v17865_v35 = vunpack.i.l.bf16 %v17864_v33 }
 0x3a2   : > { %10177 = vmatprep.mubr.f32.mxu1 %v22280_v1  ;;  %16360 = vmatmul.mubr.msk.f32.gmra.mrb[56].mxu0 %vm649_vm2, %v20721_v32  ;;  %v10345_v9 = vsel %vm649_vm2, %v17850_v57, %v17851_v53  ;;  %v20776_v53 = vpack.i.bf16 %v22280_v1, %v20663_v60 }
 0x3a3   : > { %16406 = vmatmul.mubr.msk.f32.gmra.mrb[64].mxu1 %vm649_vm2, %v20383_v59  ;;  %v17859_v6 = vpop.permute.xlu1 %17858  ;;  %9178 = vmatprep.mubr.f32.mxu0 %v22280_v1  ;;  %v16739_v50 = vpack.c.bf16 %v10347_v2, %v10345_v9  ;;  %v9592_v63 = vsel %vm649_vm2, %v17865_v35, %v17866_v58 }
 0x3a4   : > { %v17861_v12 = vunpack.i.h.bf16 %v17859_v6  ;;  %v17860_v46 = vunpack.i.l.bf16 %v17859_v6  ;;  %17953 = vrot.lane.b32.xlu0 %v20730_v14, %s18369_s25  ;;  %v17874_v39 = vpop.permute.xlu0 %17873  ;;  %10292 = vmatprep.mubr.f32.mxu1 %v22280_v1 }
 0x3a5   : > { %17958 = vrot.lane.b32.xlu1 %v20661_v62, %s18368_s24  ;;  %v17876_v59 = vunpack.i.h.bf16 %v17874_v39  ;;  %v17875_v11 = vunpack.i.l.bf16 %v17874_v39  ;;  %16740 = vmatprep.subr.bf16.mxu1 %v16739_v50  ;;  %v20801_v50 = vld [vmem:[%s22276_s3 + $0x70] sm:$0xff] }
 0x3a6   : > { %16361 = vmatmul.mubr.msk.f32.gmra.mrb[58].mxu0 %vm649_vm2, %v20742_v54  ;;  %v9590_v20 = vsel %vm649_vm2, %v17860_v46, %v17861_v12 }
 0x3a7   : > { %v9589_v48 = vsel %vm649_vm2, %v17875_v11, %v17860_v46  ;;  %v9591_v30 = vsel %vm649_vm2, %v17876_v59, %v17865_v35  ;;  %16410 = vmatmul.mubr.msk.f32.vlgmr.msra.gmra.mrb[60].mxu1 %vm649_vm2, %v20688_v15  ;;  %v17869_v34 = vpop.permute.xlu1 %17868  ;;  %9402 = vmatprep.mubr.f32.mxu0 %v22280_v1  ;;  %v16715_v7 = vpack.c.bf16 %v9592_v63, %v9590_v20 }
 0x3a8   : > { %v17871_v5 = vunpack.i.h.bf16 %v17869_v34  ;;  %v17870_v31 = vunpack.i.l.bf16 %v17869_v34  ;;  %17968 = vrot.lane.b32.xlu0 %v20661_v62, %s18368_s24  ;;  %v17884_v52 = vpop.permute.xlu0 %17883  ;;  %10298 = vmatprep.mubr.f32.mxu1 %v22280_v1  ;;  %v16717_v56 = vpack.c.bf16 %v9591_v30, %v9589_v48 }
 0x3a9   : > { %17963 = vrot.lane.b32.xlu1 %v22280_v1, %s18368_s24  ;;  %16716 = vmatprep.subr.bf16.mxu0 %v16715_v7  ;;  %v17886_v13 = vunpack.i.h.bf16 %v17884_v52  ;;  %v17885_v38 = vunpack.i.l.bf16 %v17884_v52 }
 0x3aa   : > { %v10344_v21 = vsel %vm649_vm2, %v17870_v31, %v17850_v57  ;;  %v10346_v43 = vsel %vm649_vm2, %v17871_v5, %v17855_v10  ;;  %16371 = vmatmul.mubr.msk.f32.vlgmr.msra.gmra.mrb[60].mxu0 %vm649_vm2, %v20761_v45  ;;  %v20781_v57 = vld [vmem:[%s22276_s3 + $0x68] sm:$0xff] }
 0x3ab   : > { %16411 = vmatmul.mubr.msk.f32.gmra.mrb[62].mxu1 %vm649_vm2, %v20721_v32  ;;  %v17879_v62 = vpop.permute.xlu1 %17878  ;;  %16718 = vmatpush1.bf16.msra.mxu0 %v16717_v56  ;;  %v16741_v33 = vpack.c.bf16 %v10346_v43, %v10344_v21  ;;  %v9828_v9 = vsel %vm793_vm3, %v17885_v38, %v17886_v13  ;;  %v20834_v21 = vld [vmem:[%s22276_s3 + $0x98] sm:$0xff] }
 0x3ac   : > { %v17881_v10 = vunpack.i.h.bf16 %v17879_v62  ;;  %v17880_v58 = vunpack.i.l.bf16 %v17879_v62  ;;  %17978 = vrot.lane.b32.xlu0 %v20677_v28, %s18369_s25  ;;  %v20785_v35 = vpop.permute.xlu0 %17893  ;;  %9408 = vmatprep.mubr.f32.mxu0 %v22280_v1 }
 0x3ad   : > { %17973 = vrot.lane.b32.xlu1 %v20776_v53, %s18369_s25  ;;  %10304 = vmatprep.mubr.f32.mxu1 %v22280_v1  ;;  %v17896_v59 = vunpack.i.h.bf16 %v20785_v35  ;;  %v17895_v11 = vunpack.i.l.bf16 %v20785_v35 }
 0x3ae   : > { %16742 = vmatpush1.bf16.msra.mxu1 %v16741_v33  ;;  %16372 = vmatmul.mubr.msk.f32.gmra.mrb[62].mxu0 %vm649_vm2, %v20781_v57  ;;  %v9826_v60 = vsel %vm793_vm3, %v17880_v58, %v17881_v10  ;;  %v20852_v10 = vld [vmem:[%s22276_s3 + $0xa0] sm:$0xff] }
 0x3af   : > { %16412 = vmatmul.mubr.msk.f32.gmra.mrb[64].mxu1 %vm649_vm2, %v20742_v54  ;;  %16744 = vmatprep.subr.bf16.mxu1 %v20491_v4  ;;  %v17889_v2 = vpop.permute.xlu1 %17888  ;;  %v16723_v6 = vpack.c.bf16 %v9828_v9, %v9826_v60 }
 0x3b0   : > { %v17891_v12 = vunpack.i.h.bf16 %v17889_v2  ;;  %v17890_v46 = vunpack.i.l.bf16 %v17889_v2  ;;  %17983 = vrot.lane.b32.xlu0 %v20675_v61, %s18368_s24  ;;  %v17904_v39 = vpop.permute.xlu0 %17903  ;;  %9414 = vmatprep.mubr.f32.mxu0 %v22280_v1 }
 0x3b1   : > { %17988 = vrot.lane.b32.xlu1 %v20675_v61, %s18368_s24  ;;  %16724 = vmatprep.subr.bf16.mxu0 %v16723_v6  ;;  %v20821_v61 = vld [vmem:[%s22276_s3 + $0x90] sm:$0xff]  ;;  %v17906_v13 = vunpack.i.h.bf16 %v17904_v39 }
 0x3b2   : > { %v9825_v20 = vsel %vm793_vm3, %v17890_v46, %v17880_v58  ;;  %v9827_v63 = vsel %vm793_vm3, %v17891_v12, %v17885_v38  ;;  %10425 = vmatprep.mubr.f32.mxu1 %v22280_v1  ;;  %16373 = vmatmul.mubr.msk.f32.gmra.mrb[64].mxu0 %vm649_vm2, %v20801_v50  ;;  %v17905_v38 = vunpack.i.l.bf16 %v17904_v39  ;;  %v20872_v46 = vld [vmem:[%s22276_s3 + $0xc0] sm:$0xff] }
 0x3b3   : > { %16416 = vmatmul.mubr.msk.f32.vlgmr.msra.gmra.mrb[60].mxu1 %vm649_vm2, %v20422_v55  ;;  %v17899_v48 = vpop.permute.xlu1 %17898  ;;  %9670 = vmatprep.mubr.f32.mxu0 %v22280_v1  ;;  %v16725_v30 = vpack.c.bf16 %v9827_v63, %v9825_v20  ;;  %v10579_v55 = vsel %vm793_vm3, %v17895_v11, %v17896_v59 }
 0x3b4   : > { %16746 = vmatpush1.bf16.msra.mxu1 %v20493_v19  ;;  %v17901_v34 = vunpack.i.h.bf16 %v17899_v48  ;;  %v17900_v7 = vunpack.i.l.bf16 %v17899_v48  ;;  %v6016_v5 = vpop.permute.xlu0 %6015  ;;  %10431 = vmatprep.mubr.f32.mxu1 %v22280_v1  ;;  %v10578_v35 = vsel %vm793_vm3, %v17905_v38, %v17895_v11 }
 0x3b6   : > { %16383 = vmatmul.mubr.msk.f32.vlgmr.msra.gmra.mrb[66].mxu0 %vm649_vm2, %v20821_v61  ;;  %v10581_v31 = vsel %vm793_vm3, %v17900_v7, %v17901_v34  ;;  %v10580_v62 = vsel %vm793_vm3, %v17906_v13, %v17900_v7 }
 0x3b7   : > { %16726 = vmatpush1.bf16.msra.mxu0 %v16725_v30  ;;  %16417 = vmatmul.mubr.msk.f32.gmra.mrb[62].mxu1 %vm649_vm2, %v20457_v18  ;;  %v6014_v52 = vpop.permute.xlu1 %6013  ;;  %v16747_v56 = vpack.c.bf16 %v10581_v31, %v10579_v55  ;;  %v16749_v6 = vpack.c.bf16 %v10580_v62, %v10578_v35  ;;  %v20898_v31 = vld [vmem:[%s22276_s3 + $0xc8] sm:$0xff] }
 0x3b8   : > { %16764 = vmatprep.subr.bf16.mxu0 %v20491_v4  ;;  %v6020_v43 = vpop.permute.xlu0 %6019  ;;  %9676 = vmatprep.mubr.f32.mxu0 %v22280_v1 }
 0x3b9   : > { %10437 = vmatprep.mubr.f32.mxu1 %v22280_v1  ;;  %16748 = vmatprep.subr.bf16.mxu1 %v16747_v56  ;;  %v6024_v18 = vsel %vm1849_vm4, %v6020_v43, %v6016_v5  ;;  %v6022_v33 = vsel %vm1849_vm4, %v6016_v5, %v6020_v43 }
 0x3ba   : > { %16384 = vmatmul.mubr.msk.f32.gmra.mrb[68].mxu0 %vm649_vm2, %v20834_v21  ;;  %v6027_v60 = vsel %vm19938_vm5, %v6024_v18, 0.0 }
 0x3bb   : > { %16418 = vmatmul.mubr.msk.f32.gmra.mrb[64].mxu1 %vm649_vm2, %v20483_v8  ;;  %v6018_v4 = vpop.permute.xlu1 %6017  ;;  %9682 = vmatprep.mubr.f32.mxu0 %v22280_v1  ;;  %v6028_v8 = vsel %vm19942_vm6, %v6022_v33, 0.0  ;;  %v6031_v39 = vadd.f32 %v6027_v60, %v20292_v0 }
 0x3bc   : > { %v6036_v58 = vpop.permute.xlu0 %6035  ;;  %10526 = vmatprep.mubr.f32.mxu1 %v22280_v1  ;;  %v6023_v9 = vsel %vm1849_vm4, %v6018_v4, %v6014_v52  ;;  %v6021_v2 = vsel %vm1849_vm4, %v6014_v52, %v6018_v4  ;;  %v6032_v20 = vadd.f32 %v6028_v8, %v20296_v29  ;;  %v20923_v4 = vld [vmem:[%s22276_s3 + $0xd0] sm:$0xff] }
 0x3bd   : > { %v6025_v59 = vsel %vm19938_vm5, %v6023_v9, 0.0  ;;  %v6026_v63 = vsel %vm19942_vm6, %v6021_v2, 0.0 }
 0x3be   : > { %16385 = vmatmul.mubr.msk.f32.gmra.mrb[70].mxu0 %vm649_vm2, %v20852_v10  ;;  %v6029_v29 = vadd.f32 %v6025_v59, %v20278_v36  ;;  %v6030_v52 = vadd.f32 %v6026_v63, %v20282_v27 }
 0x3bf   : > { %16422 = vmatmul.mubr.msk.f32.vlgmr.msra.gmra.mrb[60].mxu1 %vm649_vm2, %v20761_v45  ;;  %v6034_v12 = vpop.permute.xlu1 %6033  ;;  %9906 = vmatprep.mubr.f32.mxu0 %v22280_v1 }
 0x3c0   : > { %16750 = vmatpush1.bf16.msra.mxu1 %v16749_v6  ;;  %v6040_v11 = vpop.permute.xlu0 %6039  ;;  %10532 = vmatprep.mubr.f32.mxu1 %v22280_v1 }
 0x3c1   : > { %v6042_v48 = vsel %vm1874_vm7, %v6036_v58, %v6040_v11  ;;  %v6044_v30 = vsel %vm1874_vm7, %v6040_v11, %v6036_v58 }
 0x3c2   : > { %v6047_v0 = vsel %vm19963_vm8, %v6042_v48, 0.0  ;;  %v6048_v34 = vsel %vm19967_vm9, %v6044_v30, 0.0  ;;  %16395 = vmatmul.mubr.msk.f32.vlgmr.msra.gmra.mrb[72].mxu0 %vm649_vm2, %v20872_v46 }
 0x3c3   : > { %v6051_v7 = vadd.f32 %v6047_v0, %v6031_v39  ;;  %v6052_v5 = vadd.f32 %v6048_v34, %v6032_v20  ;;  %16766 = vmatpush1.bf16.msra.mxu0 %v20493_v19  ;;  %v6038_v55 = vpop.permute.xlu1 %6037  ;;  %16423 = vmatmul.mubr.msk.f32.gmra.mrb[62].mxu1 %vm649_vm2, %v20781_v57 }
 0x3c4   : > { %v6041_v56 = vsel %vm1874_vm7, %v6034_v12, %v6038_v55  ;;  %v6043_v36 = vsel %vm1874_vm7, %v6038_v55, %v6034_v12  ;;  %9912 = vmatprep.mubr.f32.mxu0 %v22280_v1  ;;  %10538 = vmatprep.mubr.f32.mxu1 %v22280_v1 }
 0x3c5   : > { %v6055_v19 = vadd.f32 %v6051_v7, %v19891_v3  ;;  %v6056_v43 = vadd.f32 %v6052_v5, %v19891_v3  ;;  %v6045_v13 = vsel %vm19963_vm8, %v6041_v56, 0.0  ;;  %v6046_v27 = vsel %vm19967_vm9, %v6043_v36, 0.0 }
 0x3c6   : > { %v6049_v38 = vadd.f32 %v6045_v13, %v6029_v29  ;;  %v6050_v18 = vadd.f32 %v6046_v27, %v6030_v52  ;;  %16396 = vmatmul.mubr.msk.f32.gmra.mrb[74].mxu0 %vm649_vm2, %v20898_v31 }
 0x3c7   : > { %v6059_v62 = vmax.f32 %v6055_v19, 0.0  ;;  %v20915_v33 = vmax.f32 %v6056_v43, 0.0  ;;  %16424 = vmatmul.mubr.msk.f32.gmra.mrb[64].mxu1 %vm649_vm2, %v20801_v50  ;;  %9918 = vmatprep.mubr.f32.mxu0 %v22280_v1  ;;  %v17909_v27 = vpop.permute.xlu1 %17908 }
 0x3c8   : > { %v6053_v58 = vadd.f32 %v6049_v38, %v19905_v26  ;;  %v6054_v35 = vadd.f32 %v6050_v18, %v19905_v26  ;;  %10659 = vmatprep.mubr.f32.mxu1 %v22280_v1  ;;  %v17914_v38 = vpop.permute.xlu0 %17913 }
 0x3c9   : > { %v20929_v60 = vpack.i.bf16 %v20915_v33, %v6059_v62 }
 0x3ca   : > { %v6057_v9 = vmax.f32 %v6053_v58, 0.0  ;;  %v20931_v8 = vmax.f32 %v6054_v35, 0.0  ;;  %16397 = vmatmul.mubr.msk.f32.gmra.mrb[76].mxu0 %vm649_vm2, %v20923_v4 }
 0x3cb   : > { %16428 = vmatmul.mubr.msk.f32.vlgmr.msra.gmra.mrb[60].mxu1 %vm649_vm2, %v20507_v23  ;;  %11163 = vmatprep.mubr.f32.mxu0 %v22280_v1 }
 0x3cc   : > { %v20939_v2 = vpack.i.bf16 %v20931_v8, %v6057_v9  ;;  %10665 = vmatprep.mubr.f32.mxu1 %v22280_v1  ;;  %v20942_v6 = vpack.i.bf16 %v6059_v62, %v6057_v9  ;;  %v20948_v12 = vpack.c.bf16 %v20915_v33, %v20931_v8  ;;  %v20950_v39 = vpack.c.bf16 %v6059_v62, %v6057_v9 }
 0x3cd   : > { %v17910_v62 = vunpack.i.l.bf16 %v17909_v27  ;;  %v17915_v9 = vunpack.i.l.bf16 %v17914_v38 }
 0x3ce   : > { %16454 = vmatmul.mubr.msk.f32.vlgmr.msra.gmra.mrb[78].mxu0 %vm649_vm2, %v20401_v37  ;;  %22308 = vst [vmem:[#allocation8_spill] sm:$0xff] %v20950_v39 }
 0x3cf   : > { %16429 = vmatmul.mubr.msk.f32.gmra.mrb[62].mxu1 %vm649_vm2, %v20524_v25  ;;  %11169 = vmatprep.mubr.f32.mxu0 %v22280_v1 }
 0x3d0   : > { %10671 = vmatprep.mubr.f32.mxu1 %v22280_v1 }
 0x3d2   : > { %16455 = vmatmul.mubr.msk.f32.gmra.mrb[80].mxu0 %vm649_vm2, %v20435_v22 }
 0x3d3   : > { %v20956_v23 = vpop.f32.mrb[24].mxu1  ;;  %16430 = vmatmul.mubr.msk.f32.gmra.mrb[64].mxu1 %vm649_vm2, %v20546_v42  ;;  %11175 = vmatprep.mubr.f32.mxu0 %v22280_v1 }
 0x3d4   : > { %v20960_v59 = vpop.f32.mrb[25].mxu1  ;;  %10792 = vmatprep.mubr.f32.mxu1 %v22280_v1 }
 0x3d6   : > { %16456 = vmatmul.mubr.msk.f32.gmra.mrb[82].mxu0 %vm649_vm2, %v20466_v44 }
 0x3d7   : > { %v20966_v37 = vpop.f32.mrb[26].mxu1  ;;  %11281 = vmatprep.mubr.f32.mxu0 %v22280_v1 }
 0x3d8   : > { %v20970_v25 = vpop.f32.mrb[27].mxu1 }
 0x3da   : > { %v7350_v22 = vpop.f32.mrb[36].mxu0 }
 0x3db   : > { %v20973_v11 = vpop.f32.mrb[28].mxu1  ;;  %7397 = vrot.lane.b32.xlu0 %v7350_v22, %s18371_s8  ;;  %v7352_v42 = vpop.f32.mrb[37].mxu0 }
 0x3dc   : > { %22309 = vst [vmem:[#allocation9_spill] sm:$0xff] %v20973_v11  ;;  %v20975_v20 = vpop.f32.mrb[29].mxu1 }
 0x3dd   : > { %22310 = vst [vmem:[#allocation10_spill] sm:$0xff] %v20975_v20 }
 0x3de   : > { %v7356_v48 = vpop.f32.mrb[38].mxu0 }
 0x3df   : > { %v20978_v63 = vpop.f32.mrb[30].mxu1  ;;  %7401 = vrot.lane.b32.xlu0 %v7352_v42, %s18371_s8  ;;  %7399 = vrot.lane.b32.xlu1 %v7356_v48, %s18371_s8  ;;  %v7358_v44 = vpop.f32.mrb[39].mxu0 }
 0x3e0   : > { %22311 = vst [vmem:[#allocation11_spill] sm:$0xff] %v20978_v63  ;;  %v20980_v30 = vpop.f32.mrb[31].mxu1 }
 0x3e1   : > { %22312 = vst [vmem:[#allocation12_spill] sm:$0xff] %v20980_v30 }
 0x3e2   : > { %v20986_v34 = vpop.f32.mrb[40].mxu0 }
 0x3e3   : > { %v20984_v0 = vpop.f32.mrb[32].mxu1  ;;  %7403 = vrot.lane.b32.xlu1 %v7358_v44, %s18371_s8  ;;  %v20991_v7 = vpop.f32.mrb[41].mxu0 }
 0x3e4   : > { %v20988_v29 = vpop.f32.mrb[33].mxu1 }
 0x3e6   : > { %v20995_v55 = vpop.f32.mrb[42].mxu0 }
 0x3e7   : > { %v20993_v5 = vpop.f32.mrb[34].mxu1  ;;  %v20999_v56 = vpop.f32.mrb[43].mxu0 }
 0x3e8   : > { %v20997_v52 = vpop.f32.mrb[35].mxu1 }
 0x3ea   : > { %v7374_v36 = vpop.f32.mrb[44].mxu0 }
 0x3eb   : > { %7417 = vrot.lane.b32.xlu0 %v7374_v36, %s18372_s16  ;;  %v7376_v19 = vpop.f32.mrb[45].mxu0 }
 0x3ee   : > { %v7380_v43 = vpop.f32.mrb[46].mxu0 }
 0x3ef   : > { %7421 = vrot.lane.b32.xlu0 %v7376_v19, %s18372_s16  ;;  %7419 = vrot.lane.b32.xlu1 %v7380_v43, %s18372_s16  ;;  %v7382_v13 = vpop.f32.mrb[47].mxu0  ;;  %v21033_v19 = vpack.i.bf16 %v22280_v1, %v20915_v33  ;;  %v21037_v43 = vpack.i.bf16 %v22280_v1, %v20931_v8 }
 0x3f3   : > { %17993 = vrot.lane.b32.xlu0 %v20730_v14, %s18369_s25  ;;  %7423 = vrot.lane.b32.xlu1 %v7382_v13, %s18372_s16 }
 0x3f7   : > { %18003 = vrot.lane.b32.xlu0 %v22280_v1, %s18368_s24  ;;  %17998 = vrot.lane.b32.xlu1 %v20776_v53, %s18369_s25 }
 0x3fb   : > { %18013 = vrot.lane.b32.xlu0 %v20730_v14, %s18369_s25  ;;  %18008 = vrot.lane.b32.xlu1 %v20677_v28, %s18369_s25  ;;  %v17911_v14 = vunpack.i.h.bf16 %v17909_v27 }
 0x3ff   : > { %18023 = vrot.lane.b32.xlu0 %v20939_v2, %s18368_s24  ;;  %18018 = vrot.lane.b32.xlu1 %v20776_v53, %s18369_s25  ;;  %v17916_v53 = vunpack.i.h.bf16 %v17914_v38 }
 0x403   : > { %18033 = vrot.lane.b32.xlu0 %v20677_v28, %s18369_s25  ;;  %18028 = vrot.lane.b32.xlu1 %v20929_v60, %s18368_s24 }
 0x406   : > { %v17919_v18 = vpop.permute.xlu1 %17918 }
 0x407   : > { %18043 = vrot.lane.b32.xlu0 %v20939_v2, %s18368_s24  ;;  %18038 = vrot.lane.b32.xlu1 %v22280_v1, %s18368_s24  ;;  %v17921_v58 = vunpack.i.h.bf16 %v17919_v18  ;;  %v17920_v35 = vunpack.i.l.bf16 %v17919_v18 }
 0x409   : > { %v17929_v22 = vpop.permute.xlu0 %17928  ;;  %v10711_v13 = vsel %vm649_vm2, %v17910_v62, %v17920_v35  ;;  %v10712_v38 = vsel %vm649_vm2, %v17920_v35, %v17921_v58 }
 0x40a   : > { %v17924_v42 = vpop.permute.xlu1 %17923  ;;  %v17931_v28 = vunpack.i.h.bf16 %v17929_v22  ;;  %v17930_v48 = vunpack.i.l.bf16 %v17929_v22 }
 0x40b   : > { %18053 = vrot.lane.b32.xlu0 %v22280_v1, %s18368_s24  ;;  %18048 = vrot.lane.b32.xlu1 %v20929_v60, %s18368_s24  ;;  %v17926_v44 = vunpack.i.h.bf16 %v17924_v42  ;;  %v17925_v36 = vunpack.i.l.bf16 %v17924_v42  ;;  %v11201_v42 = vsel %vm649_vm2, %v17915_v9, %v17916_v53 }
 0x40c   : > { %v10713_v27 = vsel %vm649_vm2, %v17911_v14, %v17930_v48  ;;  %v10714_v18 = vsel %vm649_vm2, %v17930_v48, %v17931_v28 }
 0x40d   : > { %v17934_v22 = vpop.permute.xlu0 %17933  ;;  %v16751_v30 = vpack.c.bf16 %v10714_v18, %v10712_v38  ;;  %v11203_v20 = vsel %vm649_vm2, %v17925_v36, %v17926_v44  ;;  %v16753_v33 = vpack.c.bf16 %v10713_v27, %v10711_v13 }
 0x40e   : > { %v17936_v63 = vunpack.i.h.bf16 %v17934_v22  ;;  %v17935_v39 = vunpack.i.l.bf16 %v17934_v22  ;;  %v16767_v8 = vpack.c.bf16 %v11203_v20, %v11201_v42  ;;  %v21080_v22 = vld [vmem:[%s22276_s3 + $0x8] sm:$0xff] }
 0x40f   : > { %v17939_v11 = vpop.permute.xlu1 %17938  ;;  %18063 = vrot.lane.b32.xlu0 %v21033_v19, %s18369_s25  ;;  %18058 = vrot.lane.b32.xlu1 %v21037_v43, %s18369_s25 }
 0x410   : > { %16752 = vmatprep.subr.bf16.mxu1 %v16751_v30  ;;  %v17941_v14 = vunpack.i.h.bf16 %v17939_v11  ;;  %v17940_v62 = vunpack.i.l.bf16 %v17939_v11  ;;  %v11202_v58 = vsel %vm649_vm2, %v17936_v63, %v17925_v36  ;;  %v11200_v35 = vsel %vm649_vm2, %v17935_v39, %v17915_v9  ;;  %16768 = vmatprep.subr.bf16.mxu0 %v16767_v8  ;;  %v21061_v39 = vld [vmem:[%s22276_s3] sm:$0xff]  ;;  %v21104_v8 = vld [vmem:[%s22276_s3 + $0xa8] sm:$0xff] }
 0x411   : > { %16754 = vmatpush1.bf16.msra.mxu1 %v16753_v33  ;;  %v16769_v28 = vpack.c.bf16 %v11202_v58, %v11200_v35 }
 0x412   : > { %v17944_v53 = vpop.permute.xlu0 %17943  ;;  %16756 = vmatprep.subr.bf16.mxu1 %v20708_v16  ;;  %v11328_v63 = vsel %vm793_vm3, %v17940_v62, %v17941_v14 }
 0x413   : > { %v17949_v48 = vpop.permute.xlu1 %17948  ;;  %v17946_v44 = vunpack.i.h.bf16 %v17944_v53  ;;  %v17945_v13 = vunpack.i.l.bf16 %v17944_v53  ;;  %18073 = vrot.lane.b32.xlu0 %v21037_v43, %s18369_s25  ;;  %18068 = vrot.lane.b32.xlu1 %v20942_v6, %s18369_s25 }
 0x414   : > { %v17951_v11 = vunpack.i.h.bf16 %v17949_v48  ;;  %v17950_v20 = vunpack.i.l.bf16 %v17949_v48  ;;  %16434 = vmatmul.mubr.msk.f32.vlgmr.msra.gmra.mrb[60].mxu1 %vm649_vm2, %v20821_v61  ;;  %16770 = vmatpush1.bf16.msra.mxu0 %v16769_v28 }
 0x415   : > { %16758 = vmatpush1.bf16.msra.mxu1 %v20710_v47  ;;  %10798 = vmatprep.mubr.f32.mxu1 %v22280_v1  ;;  %v11330_v30 = vsel %vm793_vm3, %v17945_v13, %v17946_v44 }
 0x416   : > { %v11327_v9 = vsel %vm793_vm3, %v17950_v20, %v17940_v62  ;;  %v11329_v36 = vsel %vm793_vm3, %v17951_v11, %v17945_v13  ;;  %v17954_v27 = vpop.permute.xlu0 %17953  ;;  %v16771_v61 = vpack.c.bf16 %v11330_v30, %v11328_v63 }
 0x417   : > { %v17959_v38 = vpop.permute.xlu1 %17958  ;;  %16457 = vmatmul.mubr.msk.f32.vlgmr.msra.gmra.mrb[78].mxu0 %vm649_vm2, %v21061_v39  ;;  %18083 = vrot.lane.b32.xlu0 %v20942_v6, %s18369_s25  ;;  %v16773_v18 = vpack.c.bf16 %v11329_v36, %v11327_v9  ;;  %v17955_v14 = vunpack.i.l.bf16 %v17954_v27 }
 0x418   : > { %18078 = vrot.lane.b32.xlu1 %v21033_v19, %s18369_s25  ;;  %16435 = vmatmul.mubr.msk.f32.gmra.mrb[62].mxu1 %vm649_vm2, %v20834_v21  ;;  %v21097_v21 = vld [vmem:[%s22276_s3 + $0x10] sm:$0xff]  ;;  %v17961_v35 = vunpack.i.h.bf16 %v17959_v38  ;;  %v17960_v53 = vunpack.i.l.bf16 %v17959_v38 }
 0x419   : > { %16772 = vmatprep.subr.bf16.mxu0 %v16771_v61  ;;  %11287 = vmatprep.mubr.f32.mxu0 %v22280_v1 }
 0x41a   : > { %16774 = vmatpush1.bf16.msra.mxu0 %v16773_v18  ;;  %v21083_v42 = vpop.permute.xlu0 %17968  ;;  %10804 = vmatprep.mubr.f32.mxu1 %v22280_v1  ;;  %v11461_v38 = vsel %vm649_vm2, %v17960_v53, %v17961_v35 }
 0x41b   : > { %v17964_v33 = vpop.permute.xlu1 %17963  ;;  %16458 = vmatmul.mubr.msk.f32.gmra.mrb[80].mxu0 %vm649_vm2, %v21080_v22  ;;  %8783 = vrot.lane.b32.xlu0 %v20966_v37, %s18371_s8  ;;  %v17956_v37 = vunpack.i.h.bf16 %v17954_v27 }
 0x41c   : > { %8781 = vrot.lane.b32.xlu1 %v20956_v23, %s18371_s8  ;;  %16436 = vmatmul.mubr.msk.f32.gmra.mrb[64].mxu1 %vm649_vm2, %v20852_v10  ;;  %v17966_v44 = vunpack.i.h.bf16 %v17964_v33  ;;  %v17965_v13 = vunpack.i.l.bf16 %v17964_v33 }
 0x41d   : > { %11293 = vmatprep.mubr.f32.mxu0 %v22280_v1  ;;  %10893 = vmatprep.mubr.f32.mxu1 %v22280_v1  ;;  %v10946_v63 = vsel %vm793_vm3, %v17955_v14, %v17956_v37 }
 0x41e   : > { %v17979_v23 = vpop.permute.xlu0 %17978  ;;  %v11460_v18 = vsel %vm649_vm2, %v17965_v13, %v17960_v53  ;;  %v9040_v53 = vpop.f32.mrb[36].mxu1 }
 0x41f   : > { %v17974_v62 = vpop.permute.xlu1 %17973  ;;  %v17981_v58 = vunpack.i.h.bf16 %v17979_v23  ;;  %v17980_v10 = vunpack.i.l.bf16 %v17979_v23  ;;  %16459 = vmatmul.mubr.msk.f32.gmra.mrb[82].mxu0 %vm649_vm2, %v21097_v21  ;;  %8787 = vrot.lane.b32.xlu0 %v20970_v25, %s18371_s8  ;;  %v22282_v23 = vunpack.i.l.bf16 %v21083_v42 }
 0x420   : > { %v17976_v28 = vunpack.i.h.bf16 %v17974_v62  ;;  %v17975_v48 = vunpack.i.l.bf16 %v17974_v62  ;;  %8785 = vrot.lane.b32.xlu1 %v20960_v59, %s18371_s8  ;;  %16440 = vmatmul.mubr.msk.f32.vlgmr.msra.gmra.mrb[60].mxu1 %vm649_vm2, %v21104_v8  ;;  %v18357_v62 = vld [vmem:[%s22276_s3 + $0xb8] sm:$0xff] }
 0x421   : > { %v10945_v11 = vsel %vm793_vm3, %v17980_v10, %v17955_v14  ;;  %11408 = vmatprep.mubr.f32.mxu0 %v22280_v1  ;;  %10899 = vmatprep.mubr.f32.mxu1 %v22280_v1  ;;  %v17971_v14 = vunpack.i.h.bf16 %v21083_v42 }
 0x422   : > { %v10947_v25 = vsel %vm793_vm3, %v17981_v58, %v17975_v48  ;;  %v17984_v20 = vpop.permute.xlu0 %17983  ;;  %v10948_v30 = vsel %vm793_vm3, %v17975_v48, %v17976_v28  ;;  %v21237_v48 = vpop.f32.mrb[37].mxu1 }
 0x423   : > { %v21120_v9 = vpop.permute.xlu1 %17988  ;;  %v17986_v59 = vunpack.i.h.bf16 %v17984_v20  ;;  %v17985_v36 = vunpack.i.l.bf16 %v17984_v20  ;;  %16463 = vmatmul.mubr.msk.f32.vlgmr.msra.gmra.mrb[78].mxu0 %vm649_vm2, %v20688_v15  ;;  %8803 = vrot.lane.b32.xlu0 %v20993_v5, %s18372_s16  ;;  %v16759_v27 = vpack.c.bf16 %v10948_v30, %v10946_v63  ;;  %v16761_v61 = vpack.c.bf16 %v10947_v25, %v10945_v11 }
 0x424   : > { %8801 = vrot.lane.b32.xlu1 %v20984_v0, %s18372_s16  ;;  %16441 = vmatmul.mubr.msk.f32.gmra.mrb[62].mxu1 %vm649_vm2, %v20576_v17  ;;  %v17991_v5 = vunpack.i.h.bf16 %v21120_v9  ;;  %v22283_v37 = vunpack.i.l.bf16 %v21120_v9 }
 0x425   : > { %v11462_v33 = vsel %vm649_vm2, %v17966_v44, %v17985_v36  ;;  %16760 = vmatprep.subr.bf16.mxu1 %v16759_v27  ;;  %11414 = vmatprep.mubr.f32.mxu0 %v22280_v1  ;;  %v11463_v15 = vsel %vm649_vm2, %v17985_v36, %v17986_v59  ;;  %v9046_v44 = vpop.f32.mrb[38].mxu1 }
 0x426   : > { %16762 = vmatpush1.bf16.msra.mxu1 %v16761_v61  ;;  %10905 = vmatprep.mubr.f32.mxu1 %v22280_v1  ;;  %v16775_v0 = vpack.c.bf16 %v11463_v15, %v11461_v38  ;;  %v16777_v17 = vpack.c.bf16 %v11462_v33, %v11460_v18  ;;  %v21241_v11 = vpop.f32.mrb[39].mxu1 }
 0x427   : > { %16800 = vmatprep.subr.bf16.mxu1 %v20708_v16  ;;  %16464 = vmatmul.mubr.msk.f32.gmra.mrb[80].mxu0 %vm649_vm2, %v20721_v32  ;;  %v12319_v32 = vsel %vm649_vm2, %v22283_v37, %v17991_v5  ;;  %v9052_v25 = vpop.f32.mrb[40].mxu1 }
 0x428   : > { %8805 = vrot.lane.b32.xlu1 %v20988_v29, %s18372_s16  ;;  %8807 = vrot.lane.b32.xlu0 %v20997_v52, %s18372_s16  ;;  %v12317_v29 = vsel %vm649_vm2, %v22282_v23, %v17971_v14  ;;  %v21245_v63 = vpop.f32.mrb[41].mxu1 }
 0x429   : > { %16442 = vmatmul.mubr.msk.f32.gmra.mrb[64].mxu1 %vm649_vm2, %v18357_v62  ;;  %16776 = vmatprep.subr.bf16.mxu0 %v16775_v0  ;;  %v16803_v52 = vpack.c.bf16 %v12319_v32, %v12317_v29 }
 0x42a   : > { %16778 = vmatpush1.bf16.msra.mxu0 %v16777_v17  ;;  %11420 = vmatprep.mubr.f32.mxu0 %v22280_v1 }
 0x42b   : > { %16780 = vmatprep.subr.bf16.mxu0 %v20708_v16  ;;  %11026 = vmatprep.mubr.f32.mxu1 %v22280_v1  ;;  %v21170_v16 = vld [vmem:[%s22276_s3 + $0x48] sm:$0xff] }
 0x42c   : > { %16465 = vmatmul.mubr.msk.f32.gmra.mrb[82].mxu0 %vm649_vm2, %v20742_v54  ;;  %18093 = vrot.lane.b32.xlu0 %v20939_v2, %s18368_s24  ;;  %v21184_v54 = vld [vmem:[%s22276_s3 + $0x50] sm:$0xff] }
 0x42d   : > { %16446 = vmatmul.mubr.msk.f32.vlgmr.msra.gmra.mrb[60].mxu1 %vm649_vm2, %v20872_v46  ;;  %11541 = vmatprep.mubr.f32.mxu0 %v22280_v1  ;;  %v21202_v46 = vld [vmem:[%s22276_s3 + $0x18] sm:$0xff] }
 0x42e   : > { %16802 = vmatpush1.bf16.msra.mxu1 %v20710_v47  ;;  %11032 = vmatprep.mubr.f32.mxu1 %v22280_v1  ;;  %22313 = vst [vmem:[#allocation13_spill] sm:$0xff] %v21202_v46 }
 0x42f   : > { %16804 = vmatprep.subr.bf16.mxu1 %v16803_v52  ;;  %18088 = vrot.lane.b32.xlu1 %v22280_v1, %s18368_s24 }
 0x430   : > { %16469 = vmatmul.mubr.msk.f32.vlgmr.msra.gmra.mrb[78].mxu0 %vm649_vm2, %v21170_v16 }
 0x431   : > { %16782 = vmatpush1.bf16.msra.mxu0 %v20710_v47  ;;  %16447 = vmatmul.mubr.msk.f32.gmra.mrb[62].mxu1 %vm649_vm2, %v20898_v31  ;;  %v21196_v47 = vld [vmem:[%s22276_s3 + $0x58] sm:$0xff]  ;;  %v21213_v31 = vld [vmem:[%s22276_s3 + $0x20] sm:$0xff] }
 0x432   : > { %11038 = vmatprep.mubr.f32.mxu1 %v22280_v1  ;;  %11547 = vmatprep.mubr.f32.mxu0 %v22280_v1  ;;  %22314 = vst [vmem:[#allocation14_spill] sm:$0xff] %v21213_v31 }
 0x434   : > { %16470 = vmatmul.mubr.msk.f32.gmra.mrb[80].mxu0 %vm649_vm2, %v21184_v54 }
 0x435   : > { %16448 = vmatmul.mubr.msk.f32.gmra.mrb[64].mxu1 %vm649_vm2, %v20923_v4  ;;  %11553 = vmatprep.mubr.f32.mxu0 %v22280_v1  ;;  %v21224_v4 = vld [vmem:[%s22276_s3 + $0x28] sm:$0xff] }
 0x436   : > { %12279 = vmatprep.mubr.f32.mxu1 %v22280_v1  ;;  %22315 = vst [vmem:[#allocation15_spill] sm:$0xff] %v21224_v4 }
 0x438   : > { %16471 = vmatmul.mubr.msk.f32.gmra.mrb[82].mxu0 %vm649_vm2, %v21196_v47 }
 0x439   : > { %16507 = vmatmul.mubr.msk.f32.vlgmr.msra.gmra.mrb[66].mxu1 %vm649_vm2, %v21202_v46  ;;  %11642 = vmatprep.mubr.f32.mxu0 %v22280_v1 }
 0x43a   : > { %12285 = vmatprep.mubr.f32.mxu1 %v22280_v1 }
 0x43c   : > { %16475 = vmatmul.mubr.msk.f32.vlgmr.msra.gmra.mrb[78].mxu0 %vm649_vm2, %v20761_v45  ;;  %v8922_v45 = vpop.f32.mrb[48].mxu0 }
 0x43d   : > { %16508 = vmatmul.mubr.msk.f32.gmra.mrb[68].mxu1 %vm649_vm2, %v21213_v31  ;;  %11648 = vmatprep.mubr.f32.mxu0 %v22280_v1  ;;  %v16677_v2 = vpop.f32.mrb[49].mxu0  ;;  %v21235_v28 = vadd.f32 %v9040_v53, %v8922_v45 }
 0x43e   : > { %12291 = vmatprep.mubr.f32.mxu1 %v22280_v1  ;;  %v8928_v58 = vpop.f32.mrb[50].mxu0 }
 0x43f   : > { %v16680_v10 = vpop.f32.mrb[51].mxu0  ;;  %v21239_v13 = vadd.f32 %v9046_v44, %v8928_v58 }
 0x440   : > { %16476 = vmatmul.mubr.msk.f32.gmra.mrb[80].mxu0 %vm649_vm2, %v20781_v57  ;;  %v8934_v35 = vpop.f32.mrb[52].mxu0 }
 0x441   : > { %16509 = vmatmul.mubr.msk.f32.gmra.mrb[70].mxu1 %vm649_vm2, %v21224_v4  ;;  %11654 = vmatprep.mubr.f32.mxu0 %v22280_v1  ;;  %v16683_v57 = vpop.f32.mrb[53].mxu0  ;;  %v21243_v20 = vadd.f32 %v9052_v25, %v8934_v35 }
 0x442   : > { %12397 = vmatprep.mubr.f32.mxu1 %v22280_v1 }
 0x444   : > { %16477 = vmatmul.mubr.msk.f32.gmra.mrb[82].mxu0 %vm649_vm2, %v20801_v50  ;;  %v21247_v50 = vpop.f32.mrb[42].mxu1 }
 0x445   : > { %11775 = vmatprep.mubr.f32.mxu0 %v22280_v1  ;;  %v21249_v30 = vpop.f32.mrb[43].mxu1 }
 0x446   : > { %v21251_v59 = vpop.f32.mrb[44].mxu1 }
 0x447   : > { %v21253_v36 = vpop.f32.mrb[45].mxu1 }
 0x448   : > { %v21255_v27 = vpop.f32.mrb[46].mxu1 }
 0x449   : > { %v21257_v61 = vpop.f32.mrb[47].mxu1 }
 0x44a   : > { %v21259_v18 = vpop.f32.mrb[48].mxu1 }
 0x44b   : > { %v21261_v33 = vpop.f32.mrb[49].mxu1 }
 0x44c   : > { %v21263_v15 = vpop.f32.mrb[50].mxu1 }
 0x44d   : > { %v7398_v38 = vpop.permute.xlu0 %7397  ;;  %v21265_v0 = vpop.f32.mrb[51].mxu1 }
 0x44e   : > { %v21267_v17 = vpop.f32.mrb[52].mxu1 }
 0x44f   : > { %v21269_v14 = vpop.f32.mrb[53].mxu1 }
 0x450   : > { %v21271_v32 = vpop.f32.mrb[54].mxu1 }
 0x451   : > { %v7400_v5 = vpop.permute.xlu1 %7399  ;;  %v7402_v62 = vpop.permute.xlu0 %7401 }
 0x452   : > { %v21273_v29 = vpop.f32.mrb[55].mxu1  ;;  %v7405_v45 = vsel %vm1849_vm4, %v7398_v38, %v7402_v62  ;;  %v7407_v2 = vsel %vm1849_vm4, %v7402_v62, %v7398_v38 }
 0x453   : > { %v21275_v52 = vpop.f32.mrb[56].mxu1  ;;  %v7409_v44 = vsel %vm19938_vm5, %v7407_v2, 0.0  ;;  %v7410_v25 = vsel %vm19942_vm6, %v7405_v45, 0.0 }
 0x454   : > { %v21281_v10 = vpop.f32.mrb[57].mxu1  ;;  %v7413_v37 = vadd.f32 %v7409_v44, %v20986_v34  ;;  %v7414_v4 = vadd.f32 %v7410_v25, %v20991_v7 }
 0x455   : > { %v7404_v58 = vpop.permute.xlu1 %7403  ;;  %v21283_v53 = vpop.f32.mrb[58].mxu1 }
 0x456   : > { %v21285_v57 = vpop.f32.mrb[59].mxu1  ;;  %v7406_v1 = vsel %vm1849_vm4, %v7400_v5, %v7404_v58  ;;  %v7408_v38 = vsel %vm1849_vm4, %v7404_v58, %v7400_v5 }
 0x457   : > { %22316 = vst [vmem:[#allocation16_spill] sm:$0xff] %v21285_v57  ;;  %v7411_v45 = vsel %vm19938_vm5, %v7408_v38, 0.0  ;;  %v7412_v46 = vsel %vm19942_vm6, %v7406_v1, 0.0 }
 0x458   : > { %v7415_v57 = vadd.f32 %v7411_v45, %v20995_v55 }
 0x45d   : > { %v7418_v35 = vpop.permute.xlu0 %7417 }
 0x461   : > { %v7422_v62 = vpop.permute.xlu0 %7421  ;;  %v7420_v23 = vpop.permute.xlu1 %7419 }
 0x462   : > { %v7425_v31 = vsel %vm1874_vm7, %v7418_v35, %v7422_v62  ;;  %v7427_v2 = vsel %vm1874_vm7, %v7422_v62, %v7418_v35  ;;  %v7416_v35 = vadd.f32 %v7412_v46, %v20999_v56 }
 0x463   : > { %v7429_v5 = vsel %vm19963_vm8, %v7425_v31, 0.0  ;;  %v7430_v34 = vsel %vm19967_vm9, %v7427_v2, 0.0 }
 0x464   : > { %v7433_v58 = vadd.f32 %v7429_v5, %v7413_v37  ;;  %v7434_v7 = vadd.f32 %v7430_v34, %v7414_v4 }
 0x465   : > { %v17994_v44 = vpop.permute.xlu0 %17993  ;;  %v7424_v25 = vpop.permute.xlu1 %7423 }
 0x466   : > { %v7437_v62 = vadd.f32 %v7433_v58, %v19905_v26  ;;  %v7438_v38 = vadd.f32 %v7434_v7, %v19905_v26  ;;  %v17996_v41 = vunpack.i.h.bf16 %v17994_v44  ;;  %v17995_v1 = vunpack.i.l.bf16 %v17994_v44 }
 0x467   : > { %v7426_v31 = vsel %vm1874_vm7, %v7420_v23, %v7424_v25  ;;  %v7428_v2 = vsel %vm1874_vm7, %v7424_v25, %v7420_v23 }
 0x468   : > { %v21317_v37 = vmax.f32 %v7437_v62, 0.0  ;;  %v21319_v4 = vmax.f32 %v7438_v38, 0.0  ;;  %v7431_v55 = vsel %vm19963_vm8, %v7426_v31, 0.0  ;;  %v7432_v56 = vsel %vm19967_vm9, %v7428_v2, 0.0 }
 0x469   : > { %v7435_v46 = vadd.f32 %v7431_v55, %v7415_v57  ;;  %v7436_v45 = vadd.f32 %v7432_v56, %v7416_v35  ;;  %v18004_v5 = vpop.permute.xlu0 %18003  ;;  %v17999_v34 = vpop.permute.xlu1 %17998  ;;  %v22317_v38 = vunpack.i.l.bf16 %v21120_v9  ;;  %v22318_v57 = vunpack.i.l.bf16 %v21083_v42 }
 0x46a   : > { %v18006_v58 = vunpack.i.h.bf16 %v18004_v5  ;;  %v18005_v7 = vunpack.i.l.bf16 %v18004_v5  ;;  %v18001_v44 = vunpack.i.h.bf16 %v17999_v34  ;;  %v18000_v26 = vunpack.i.l.bf16 %v17999_v34 }
 0x46b   : > { %v7439_v23 = vadd.f32 %v7435_v46, %v19891_v3  ;;  %v7440_v25 = vadd.f32 %v7436_v45, %v19891_v3  ;;  %v21329_v62 = vpack.i.bf16 %v21319_v4, %v21317_v37  ;;  %v11695_v2 = vsel %vm793_vm3, %v17995_v1, %v17996_v41 }
 0x46c   : > { %v12318_v31 = vsel %vm649_vm2, %v18006_v58, %v22317_v38  ;;  %v12316_v35 = vsel %vm649_vm2, %v18005_v7, %v22318_v57  ;;  %v11697_v55 = vsel %vm793_vm3, %v18000_v26, %v18001_v44 }
 0x46d   : > { %v21339_v56 = vmax.f32 %v7439_v23, 0.0  ;;  %v21341_v46 = vmax.f32 %v7440_v25, 0.0  ;;  %v16805_v45 = vpack.c.bf16 %v12318_v31, %v12316_v35  ;;  %18098 = vrot.lane.b32.xlu1 %v21329_v62, %s18368_s24  ;;  %v18014_v5 = vpop.permute.xlu0 %18013  ;;  %v18009_v9 = vpop.permute.xlu1 %18008  ;;  %v16783_v34 = vpack.c.bf16 %v11697_v55, %v11695_v2 }
 0x46e   : > { %v18011_v58 = vunpack.i.h.bf16 %v18009_v9  ;;  %v18010_v38 = vunpack.i.l.bf16 %v18009_v9  ;;  %v18016_v42 = vunpack.i.h.bf16 %v18014_v5  ;;  %v18015_v44 = vunpack.i.l.bf16 %v18014_v5 }
 0x46f   : > { %16784 = vmatprep.subr.bf16.mxu0 %v16783_v34  ;;  %16806 = vmatpush1.bf16.msra.mxu1 %v16805_v45  ;;  %v21347_v41 = vpack.i.bf16 %v21341_v46, %v21339_v56  ;;  %v21351_v7 = vpack.i.bf16 %v21339_v56, %v21317_v37 }
 0x470   : > { %v11694_v23 = vsel %vm793_vm3, %v18010_v38, %v17995_v1  ;;  %v11696_v25 = vsel %vm793_vm3, %v18011_v58, %v18000_v26  ;;  %v22319_v1 = vmov 0.0   ;;  %v12444_v58 = vsel %vm793_vm3, %v18015_v44, %v18016_v42 }
 0x471   : > { %v9168_v31 = vpop.f32.mrb[54].mxu0  ;;  %v16785_v57 = vpack.c.bf16 %v11696_v25, %v11694_v23  ;;  %18103 = vrot.lane.b32.xlu1 %v20929_v60, %s18368_s24  ;;  %18108 = vrot.lane.b32.xlu0 %v21347_v41, %s18368_s24  ;;  %v21359_v35 = vpop.permute.xlu0 %18023  ;;  %v21369_v60 = vld [vmem:[%s22276_s3 + $0x78] sm:$0xff]  ;;  %v21373_v34 = vpack.i.bf16 %v22319_v1, %v21319_v4 }
 0x472   : > { %v18019_v2 = vpop.permute.xlu1 %18018  ;;  %v18026_v55 = vunpack.i.h.bf16 %v21359_v35  ;;  %v18025_v45 = vunpack.i.l.bf16 %v21359_v35  ;;  %16510 = vmatmul.mubr.msk.f32.vlgmr.msra.gmra.mrb[66].mxu1 %vm649_vm2, %v21061_v39  ;;  %v9170_v26 = vpop.f32.mrb[55].mxu0  ;;  %22320 = vst [vmem:[#allocation17_spill] sm:$0xff] %v21369_v60  ;;  %v21379_v39 = vpack.i.bf16 %v22319_v1, %v21341_v46 }
 0x473   : > { %v18021_v5 = vunpack.i.h.bf16 %v18019_v2  ;;  %v18020_v9 = vunpack.i.l.bf16 %v18019_v2  ;;  %16786 = vmatpush1.bf16.msra.mxu0 %v16785_v57  ;;  %12403 = vmatprep.mubr.f32.mxu1 %v22319_v1  ;;  %v9185_v2 = vadd.f32 %v9168_v31, %v21235_v28  ;;  %v9186_v28 = vadd.f32 %v9170_v26, %v21237_v48 }
 0x474   : > { %v11828_v35 = vsel %vm649_vm2, %v18025_v45, %v18026_v55  ;;  %v21395_v55 = vld [vmem:[%s22276_s3 + $0x80] sm:$0xff] }
 0x475   : > { %v12446_v38 = vsel %vm793_vm3, %v18020_v9, %v18021_v5  ;;  %18118 = vrot.lane.b32.xlu1 %v21037_v43, %s18369_s25  ;;  %18113 = vrot.lane.b32.xlu0 %v22319_v1, %s18368_s24  ;;  %v18034_v23 = vpop.permute.xlu0 %18033  ;;  %v9174_v43 = vpop.f32.mrb[56].mxu0 }
 0x476   : > { %v18029_v25 = vpop.permute.xlu1 %18028  ;;  %v16807_v57 = vpack.c.bf16 %v12446_v38, %v12444_v58  ;;  %v18036_v42 = vunpack.i.h.bf16 %v18034_v23  ;;  %v18035_v3 = vunpack.i.l.bf16 %v18034_v23  ;;  %16481 = vmatmul.mubr.msk.f32.vlgmr.msra.gmra.mrb[78].mxu0 %vm649_vm2, %v21369_v60  ;;  %16511 = vmatmul.mubr.msk.f32.gmra.mrb[68].mxu1 %vm649_vm2, %v21080_v22  ;;  %v9187_v31 = vadd.f32 %v9174_v43, %v21239_v13  ;;  %v9176_v58 = vpop.f32.mrb[57].mxu0 }
 0x477   : > { %v18031_v5 = vunpack.i.h.bf16 %v18029_v25  ;;  %v18030_v51 = vunpack.i.l.bf16 %v18029_v25  ;;  %11781 = vmatprep.mubr.f32.mxu0 %v22319_v1  ;;  %v9319_v38 = vadd.f32 %v21247_v50, %v9185_v2  ;;  %12409 = vmatprep.mubr.f32.mxu1 %v22319_v1 }
 0x478   : > { %16808 = vmatprep.subr.bf16.mxu1 %v16807_v57  ;;  %v12443_v23 = vsel %vm793_vm3, %v18035_v3, %v18015_v44  ;;  %v12445_v22 = vsel %vm793_vm3, %v18036_v42, %v18020_v9  ;;  %v9188_v57 = vadd.f32 %v9176_v58, %v21241_v11  ;;  %v9320_v3 = vadd.f32 %v21249_v30, %v9186_v28 }
 0x479   : > { %v11830_v25 = vsel %vm649_vm2, %v18030_v51, %v18031_v5  ;;  %v16809_v60 = vpack.c.bf16 %v12445_v22, %v12443_v23  ;;  %18128 = vrot.lane.b32.xlu1 %v20942_v6, %s18369_s25  ;;  %18123 = vrot.lane.b32.xlu0 %v21033_v19, %s18369_s25  ;;  %v18044_v48 = vpop.permute.xlu0 %18043  ;;  %v9180_v11 = vpop.f32.mrb[58].mxu0  ;;  %v21417_v6 = vld [vmem:[%s22276_s3 + $0x88] sm:$0xff]  ;;  %v21422_v19 = vld [vmem:[%s22276_s3 + $0x30] sm:$0xff]  ;;  %v9321_v42 = vadd.f32 %v21251_v59, %v9187_v31 }
 0x47a   : > { %v18039_v13 = vpop.permute.xlu1 %18038  ;;  %v16787_v50 = vpack.c.bf16 %v11830_v25, %v11828_v35  ;;  %v18046_v44 = vunpack.i.h.bf16 %v18044_v48  ;;  %v18045_v9 = vunpack.i.l.bf16 %v18044_v48  ;;  %16482 = vmatmul.mubr.msk.f32.gmra.mrb[80].mxu0 %vm649_vm2, %v21395_v55  ;;  %16512 = vmatmul.mubr.msk.f32.gmra.mrb[70].mxu1 %vm649_vm2, %v21097_v21  ;;  %v9189_v30 = vadd.f32 %v9180_v11, %v21243_v20  ;;  %v9182_v35 = vpop.f32.mrb[59].mxu0 }
 0x47b   : > { %v18041_v26 = vunpack.i.h.bf16 %v18039_v13  ;;  %v18040_v2 = vunpack.i.l.bf16 %v18039_v13  ;;  %16810 = vmatpush1.bf16.msra.mxu1 %v16809_v60  ;;  %v9322_v21 = vadd.f32 %v21253_v36, %v9188_v57  ;;  %11787 = vmatprep.mubr.f32.mxu0 %v22319_v1  ;;  %v9190_v36 = vadd.f32 %v9182_v35, %v21245_v63  ;;  %v21446_v63 = vld [vmem:[%s22276_s3 + $0x90] sm:$0xff] }
 0x47c   : > { %16788 = vmatprep.subr.bf16.mxu0 %v16787_v50  ;;  %12524 = vmatprep.mubr.f32.mxu1 %v22319_v1  ;;  %v12577_v43 = vsel %vm649_vm2, %v18045_v9, %v18046_v44  ;;  %v21456_v13 = vpack.c.bf16 %v21341_v46, %v21319_v4 }
 0x47d   : > { %v11827_v5 = vsel %vm649_vm2, %v18040_v2, %v18025_v45  ;;  %v11829_v60 = vsel %vm649_vm2, %v18041_v26, %v18030_v51  ;;  %18138 = vrot.lane.b32.xlu1 %v21329_v62, %s18368_s24  ;;  %18133 = vrot.lane.b32.xlu0 %v21373_v34, %s18369_s25  ;;  %v18054_v20 = vpop.permute.xlu0 %18053  ;;  %v9323_v45 = vadd.f32 %v21255_v27, %v9189_v30  ;;  %v9404_v22 = vpop.f32.mrb[60].mxu0  ;;  %v21451_v27 = vld [vmem:[%s22276_s3 + $0x38] sm:$0xff] }
 0x47e   : > { %v16789_v28 = vpack.c.bf16 %v11829_v60, %v11827_v5  ;;  %v18049_v59 = vpop.permute.xlu1 %18048  ;;  %v18056_v51 = vunpack.i.h.bf16 %v18054_v20  ;;  %v18055_v31 = vunpack.i.l.bf16 %v18054_v20  ;;  %16483 = vmatmul.mubr.msk.f32.gmra.mrb[82].mxu0 %vm649_vm2, %v21417_v6  ;;  %16516 = vmatmul.mubr.msk.f32.vlgmr.msra.gmra.mrb[66].mxu1 %vm649_vm2, %v21422_v19  ;;  %v9421_v25 = vadd.f32 %v9404_v22, %v9319_v38  ;;  %v9406_v57 = vpop.f32.mrb[61].mxu0  ;;  %v22321_v60 = vld [vmem:[#allocation8_spill] sm:$0xff] }
 0x47f   : > { %v18051_v58 = vunpack.i.h.bf16 %v18049_v59  ;;  %v18050_v23 = vunpack.i.l.bf16 %v18049_v59  ;;  %11908 = vmatprep.mubr.f32.mxu0 %v22319_v1  ;;  %v9324_v48 = vadd.f32 %v21257_v61, %v9190_v36  ;;  %12530 = vmatprep.mubr.f32.mxu1 %v22319_v1  ;;  %v9422_v38 = vadd.f32 %v9406_v57, %v9320_v3  ;;  %v21483_v36 = vld [vmem:[%s22276_s3 + $0x40] sm:$0xff] }
 0x480   : > { %16790 = vmatpush1.bf16.msra.mxu0 %v16789_v28  ;;  %v12576_v50 = vsel %vm649_vm2, %v18055_v31, %v18045_v9  ;;  %v9555_v59 = vadd.f32 %v21259_v18, %v9421_v25  ;;  %v21496_v22 = vpack.c.bf16 %v21339_v56, %v21317_v37  ;;  %v21509_v37 = vld [vmem:[%s22276_s3 + $0xa0] sm:$0xff] }
 0x481   : > { %v12578_v44 = vsel %vm649_vm2, %v18056_v51, %v18050_v23  ;;  %16792 = vmatprep.subr.bf16.mxu0 %v20948_v12  ;;  %v12579_v26 = vsel %vm649_vm2, %v18050_v23, %v18051_v58  ;;  %18143 = vrot.lane.b32.xlu1 %v21379_v39, %s18369_s25  ;;  %v18064_v61 = vpop.permute.xlu0 %18063  ;;  %v9410_v5 = vpop.f32.mrb[62].mxu0  ;;  %v9556_v3 = vadd.f32 %v21261_v33, %v9422_v38 }
 0x482   : > { %v16813_v2 = vpack.c.bf16 %v12578_v44, %v12576_v50  ;;  %18148 = vrot.lane.b32.xlu0 %v21351_v7, %s18369_s25  ;;  %v18059_v4 = vpop.permute.xlu1 %18058  ;;  %v16811_v46 = vpack.c.bf16 %v12579_v26, %v12577_v43  ;;  %v18066_v9 = vunpack.i.h.bf16 %v18064_v61  ;;  %v18065_v11 = vunpack.i.l.bf16 %v18064_v61  ;;  %16517 = vmatmul.mubr.msk.f32.gmra.mrb[68].mxu1 %vm649_vm2, %v21451_v27  ;;  %v9412_v20 = vpop.f32.mrb[63].mxu0  ;;  %v21478_v43 = vld [vmem:[%s22276_s3 + $0x98] sm:$0xff] }
 0x483   : > { %v18061_v30 = vunpack.i.h.bf16 %v18059_v4  ;;  %v18060_v35 = vunpack.i.l.bf16 %v18059_v4  ;;  %16487 = vmatmul.mubr.msk.f32.vlgmr.msra.gmra.mrb[78].mxu0 %vm649_vm2, %v21446_v63  ;;  %v9423_v28 = vadd.f32 %v9410_v5, %v9321_v42  ;;  %v9424_v18 = vadd.f32 %v9412_v20, %v9322_v21  ;;  %12536 = vmatprep.mubr.f32.mxu1 %v22319_v1 }
 0x484   : > { %16794 = vmatpush1.bf16.msra.mxu0 %v22321_v60  ;;  %16812 = vmatprep.subr.bf16.mxu1 %v16811_v46  ;;  %v12064_v51 = vsel %vm793_vm3, %v18065_v11, %v18066_v9 }
 0x485   : > { %16814 = vmatpush1.bf16.msra.mxu1 %v16813_v2  ;;  %11914 = vmatprep.mubr.f32.mxu0 %v22319_v1  ;;  %v12062_v42 = vsel %vm793_vm3, %v18060_v35, %v18061_v30  ;;  %v21491_v33 = vpop.permute.xlu0 %18073  ;;  %v9557_v23 = vadd.f32 %v21263_v15, %v9423_v28  ;;  %v9416_v21 = vpop.f32.mrb[64].mxu0  ;;  %v9558_v15 = vadd.f32 %v21265_v0, %v9424_v18 }
 0x486   : > { %18158 = vrot.lane.b32.xlu1 %v22319_v1, %s18368_s24  ;;  %18153 = vrot.lane.b32.xlu0 %v21347_v41, %s18368_s24  ;;  %v18069_v31 = vpop.permute.xlu1 %18068  ;;  %v16795_v58 = vpack.c.bf16 %v12064_v51, %v12062_v42  ;;  %v9425_v50 = vadd.f32 %v9416_v21, %v9323_v45  ;;  %v9418_v44 = vpop.f32.mrb[65].mxu0  ;;  %v18076_v56 = vunpack.i.h.bf16 %v21491_v33  ;;  %v18075_v26 = vunpack.i.l.bf16 %v21491_v33 }
 0x487   : > { %v18071_v25 = vunpack.i.h.bf16 %v18069_v31  ;;  %v18070_v57 = vunpack.i.l.bf16 %v18069_v31  ;;  %16816 = vmatprep.subr.bf16.mxu1 %v20948_v12  ;;  %16488 = vmatmul.mubr.msk.f32.gmra.mrb[80].mxu0 %vm649_vm2, %v21478_v43  ;;  %v9426_v0 = vadd.f32 %v9418_v44, %v9324_v48 }
 0x488   : > { %16518 = vmatmul.mubr.msk.f32.gmra.mrb[70].mxu1 %vm649_vm2, %v21483_v36  ;;  %16796 = vmatprep.subr.bf16.mxu0 %v16795_v58  ;;  %v9559_v61 = vadd.f32 %v21267_v17, %v9425_v50 }
 0x489   : > { %11920 = vmatprep.mubr.f32.mxu0 %v22319_v1  ;;  %v18084_v45 = vpop.permute.xlu0 %18083  ;;  %v9672_v2 = vpop.f32.mrb[66].mxu0  ;;  %v12063_v4 = vsel %vm793_vm3, %v18071_v25, %v18065_v11  ;;  %v12061_v46 = vsel %vm793_vm3, %v18070_v57, %v18060_v35  ;;  %12657 = vmatprep.mubr.f32.mxu1 %v22319_v1  ;;  %v9560_v17 = vadd.f32 %v21269_v14, %v9426_v0 }
 0x48a   : > { %18188 = vrot.lane.b32.xlu1 %v21347_v41, %s18368_s24  ;;  %18163 = vrot.lane.b32.xlu0 %v21329_v62, %s18368_s24  ;;  %v18079_v38 = vpop.permute.xlu1 %18078  ;;  %v9689_v9 = vadd.f32 %v9672_v2, %v9555_v59  ;;  %v9674_v30 = vpop.f32.mrb[67].mxu0  ;;  %v12811_v11 = vsel %vm793_vm3, %v18075_v26, %v18076_v56  ;;  %v16797_v20 = vpack.c.bf16 %v12063_v4, %v12061_v46  ;;  %v18085_v59 = vunpack.i.l.bf16 %v18084_v45 }
 0x48b   : > { %v18081_v5 = vunpack.i.h.bf16 %v18079_v38  ;;  %v18080_v28 = vunpack.i.l.bf16 %v18079_v38  ;;  %16489 = vmatmul.mubr.msk.f32.gmra.mrb[82].mxu0 %vm649_vm2, %v21509_v37  ;;  %v9690_v62 = vadd.f32 %v9674_v30, %v9556_v3  ;;  %v18086_v18 = vunpack.i.h.bf16 %v18084_v45 }
 0x48c   : > { %16522 = vmatmul.mubr.msk.f32.vlgmr.msra.gmra.mrb[66].mxu1 %vm649_vm2, %v21170_v16  ;;  %12009 = vmatprep.mubr.f32.mxu0 %v22319_v1  ;;  %v9791_v41 = vadd.f32 %v21271_v32, %v9689_v9 }
 0x48d   : > { %16818 = vmatpush1.bf16.msra.mxu1 %v22321_v60  ;;  %v8784_v48 = vpop.permute.xlu0 %8783  ;;  %v12813_v16 = vsel %vm793_vm3, %v18080_v28, %v18081_v5  ;;  %v9678_v35 = vpop.f32.mrb[68].mxu0  ;;  %v9792_v14 = vadd.f32 %v21273_v29, %v9690_v62  ;;  %12663 = vmatprep.mubr.f32.mxu1 %v22319_v1  ;;  %v21544_v29 = vld [vmem:[%s22276_s3 + $0xb0] sm:$0xff]  ;;  %v22323_v62 = vld [vmem:[#allocation16_spill] sm:$0xff] }
 0x48e   : > { %18193 = vrot.lane.b32.xlu1 %v21379_v39, %s18369_s25  ;;  %18168 = vrot.lane.b32.xlu0 %v21373_v34, %s18369_s25  ;;  %v8782_v3 = vpop.permute.xlu1 %8781  ;;  %v16819_v32 = vpack.c.bf16 %v12813_v16, %v12811_v11  ;;  %v9691_v42 = vadd.f32 %v9678_v35, %v9557_v23  ;;  %v9680_v51 = vpop.f32.mrb[69].mxu0  ;;  %v22325_v16 = vld [vmem:[#allocation9_spill] sm:$0xff] }
 0x48f   : > { %16493 = vmatmul.mubr.msk.f32.vlgmr.msra.gmra.mrb[78].mxu0 %vm649_vm2, %v21104_v8  ;;  %v9692_v33 = vadd.f32 %v9680_v51, %v9558_v15  ;;  %v21575_v15 = vld [vmem:[%s22276_s3 + $0xb8] sm:$0xff]  ;;  %v21617_v51 = vld [vmem:[%s22276_s3 + $0x68] sm:$0xff] }
 0x490   : > { %16523 = vmatmul.mubr.msk.f32.gmra.mrb[68].mxu1 %vm649_vm2, %v21184_v54  ;;  %16798 = vmatpush1.bf16.msra.mxu0 %v16797_v20  ;;  %v9793_v31 = vadd.f32 %v21275_v52, %v9691_v42  ;;  %v12810_v54 = vsel %vm793_vm3, %v18085_v59, %v18075_v26  ;;  %v21581_v26 = vld [vmem:[%s22276_s3 + $0x60] sm:$0xff] }
 0x491   : > { %16820 = vmatprep.subr.bf16.mxu1 %v16819_v32  ;;  %16836 = vmatprep.subr.bf16.mxu0 %v20948_v12  ;;  %v8788_v58 = vpop.permute.xlu0 %8787  ;;  %v9684_v8 = vpop.f32.mrb[70].mxu0  ;;  %v21551_v23 = vadd.f32 %v21281_v10, %v9692_v33  ;;  %v12812_v12 = vsel %vm793_vm3, %v18086_v18, %v18080_v28  ;;  %v22327_v59 = vld [vmem:[#allocation12_spill] sm:$0xff] }
 0x492   : > { %18198 = vrot.lane.b32.xlu1 %v21351_v7, %s18369_s25  ;;  %18173 = vrot.lane.b32.xlu0 %v22319_v1, %s18368_s24  ;;  %v8786_v25 = vpop.permute.xlu1 %8785  ;;  %v9693_v57 = vadd.f32 %v9684_v8, %v9559_v61  ;;  %v9686_v52 = vpop.f32.mrb[71].mxu0  ;;  %v8790_v21 = vsel %vm1849_vm4, %v8784_v48, %v8788_v58  ;;  %v8792_v10 = vsel %vm1849_vm4, %v8788_v58, %v8784_v48 }
 0x493   : > { %12015 = vmatprep.mubr.f32.mxu0 %v22319_v1  ;;  %12669 = vmatprep.mubr.f32.mxu1 %v22319_v1  ;;  %v8789_v50 = vsel %vm1849_vm4, %v8782_v3, %v8786_v25  ;;  %v8791_v44 = vsel %vm1849_vm4, %v8786_v25, %v8782_v3  ;;  %v9694_v45 = vadd.f32 %v9686_v52, %v9560_v17  ;;  %v8795_v61 = vsel %vm19938_vm5, %v8792_v10, 0.0  ;;  %v21644_v10 = vld [vmem:[%s22276_s3 + $0xc8] sm:$0xff] }
 0x494   : > { %16494 = vmatmul.mubr.msk.f32.gmra.mrb[80].mxu0 %vm649_vm2, %v21544_v29  ;;  %16524 = vmatmul.mubr.msk.f32.gmra.mrb[70].mxu1 %vm649_vm2, %v21196_v47  ;;  %v9795_v2 = vadd.f32 %v21283_v53, %v9693_v57  ;;  %v16821_v47 = vpack.c.bf16 %v12812_v12, %v12810_v54  ;;  %v8796_v46 = vsel %vm19942_vm6, %v8790_v21, 0.0  ;;  %v8793_v5 = vsel %vm19938_vm5, %v8791_v44, 0.0 }
 0x495   : > { %12021 = vmatprep.mubr.f32.mxu0 %v22319_v1  ;;  %12758 = vmatprep.mubr.f32.mxu1 %v22319_v1  ;;  %v8804_v56 = vpop.permute.xlu0 %8803  ;;  %v9908_v0 = vpop.f32.mrb[72].mxu0  ;;  %v8794_v53 = vsel %vm19942_vm6, %v8789_v50, 0.0  ;;  %v9796_v17 = vadd.f32 %v22323_v62, %v9694_v45  ;;  %v8797_v35 = vadd.f32 %v8793_v5, %v22325_v16  ;;  %v8800_v3 = vadd.f32 %v8796_v46, %v22327_v59 }
 0x496   : > { %18178 = vrot.lane.b32.xlu0 %v21373_v34, %s18369_s25  ;;  %v8802_v38 = vpop.permute.xlu1 %8801  ;;  %v21590_v9 = vadd.f32 %v9908_v0, %v9791_v41  ;;  %v9910_v30 = vpop.f32.mrb[73].mxu0  ;;  %v21607_v34 = vld [vmem:[%s22276_s3 + $0xc0] sm:$0xff]  ;;  %v22324_v41 = vld [vmem:[#allocation11_spill] sm:$0xff] }
 0x497   : > { %v21598_v28 = vadd.f32 %v9910_v30, %v9792_v14  ;;  %v8799_v48 = vadd.f32 %v8795_v61, %v22324_v41  ;;  %v22326_v14 = vld [vmem:[#allocation10_spill] sm:$0xff] }
 0x498   : > { %16495 = vmatmul.mubr.msk.f32.gmra.mrb[82].mxu0 %vm649_vm2, %v21575_v15  ;;  %16528 = vmatmul.mubr.msk.f32.vlgmr.msra.gmra.mrb[66].mxu1 %vm649_vm2, %v21581_v26  ;;  %v8798_v20 = vadd.f32 %v8794_v53, %v22326_v14  ;;  %v22330_v53 = vld [vmem:[#allocation4_spill] sm:$0xff] }
 0x499   : > { %12142 = vmatprep.mubr.f32.mxu0 %v22319_v1  ;;  %16822 = vmatpush1.bf16.msra.mxu1 %v16821_v47  ;;  %v9914_v11 = vpop.f32.mrb[74].mxu0 }
 0x49a   : > { %12764 = vmatprep.mubr.f32.mxu1 %v22319_v1  ;;  %v8806_v32 = vpop.permute.xlu1 %8805  ;;  %v8808_v42 = vpop.permute.xlu0 %8807  ;;  %v21619_v18 = vadd.f32 %v9914_v11, %v9793_v31 }
 0x49b   : > { %v8809_v33 = vsel %vm1874_vm7, %v8802_v38, %v8806_v32  ;;  %v8811_v58 = vsel %vm1874_vm7, %v8806_v32, %v8802_v38  ;;  %v8810_v8 = vsel %vm1874_vm7, %v8804_v56, %v8808_v42  ;;  %v8812_v54 = vsel %vm1874_vm7, %v8808_v42, %v8804_v56  ;;  %v9916_v25 = vpop.f32.mrb[75].mxu0  ;;  %v22329_v38 = vld [vmem:[#allocation5_spill] sm:$0xff] }
 0x49c   : > { %16499 = vmatmul.mubr.msk.f32.vlgmr.msra.gmra.mrb[78].mxu0 %vm649_vm2, %v21607_v34  ;;  %v8813_v31 = vsel %vm19963_vm8, %v8809_v33, 0.0  ;;  %v8814_v52 = vsel %vm19967_vm9, %v8811_v58, 0.0  ;;  %v8815_v12 = vsel %vm19963_vm8, %v8810_v8, 0.0  ;;  %v8816_v21 = vsel %vm19967_vm9, %v8812_v54, 0.0  ;;  %16529 = vmatmul.mubr.msk.f32.gmra.mrb[68].mxu1 %vm649_vm2, %v21617_v51  ;;  %v22332_v42 = vld [vmem:[#allocation13_spill] sm:$0xff]  ;;  %v22333_v33 = vld [vmem:[#allocation14_spill] sm:$0xff] }
 0x49d   : > { %16838 = vmatpush1.bf16.msra.mxu0 %v22321_v60  ;;  %12148 = vmatprep.mubr.f32.mxu0 %v22319_v1  ;;  %v8817_v50 = vadd.f32 %v8813_v31, %v8797_v35  ;;  %v8818_v44 = vadd.f32 %v8814_v52, %v8798_v20  ;;  %v8819_v56 = vadd.f32 %v8815_v12, %v8799_v48  ;;  %v9920_v0 = vpop.f32.mrb[76].mxu0  ;;  %v21655_v60 = vld [vmem:[%s22276_s3 + $0x70] sm:$0xff] }
 0x49e   : > { %v8820_v45 = vadd.f32 %v8816_v21, %v8800_v3  ;;  %12770 = vmatprep.mubr.f32.mxu1 %v22319_v1  ;;  %v21650_v47 = vadd.f32 %v9916_v25, %v21551_v23  ;;  %v9929_v61 = vadd.f32 %v9920_v0, %v9795_v2  ;;  %v9922_v46 = vpop.f32.mrb[77].mxu0  ;;  %v21667_v23 = vld [vmem:[%s22276_s3 + $0xd0] sm:$0xff]  ;;  %v22331_v3 = vld [vmem:[#allocation17_spill] sm:$0xff]  ;;  %v18094_v8 = vpop.permute.xlu0 %18093 }
 0x49f   : > { %v8821_v30 = vadd.f32 %v8817_v50, %v22329_v38  ;;  %v8822_v5 = vadd.f32 %v8818_v44, %v22329_v38  ;;  %v8823_v62 = vadd.f32 %v8819_v56, %v22330_v53  ;;  %v9930_v2 = vadd.f32 %v9922_v46, %v9796_v17 }
 0x4a0   : > { %v8824_v41 = vadd.f32 %v8820_v45, %v22330_v53  ;;  %16500 = vmatmul.mubr.msk.f32.gmra.mrb[80].mxu0 %vm649_vm2, %v21644_v10  ;;  %16530 = vmatmul.mubr.msk.f32.gmra.mrb[70].mxu1 %vm649_vm2, %v21655_v60  ;;  %v18096_v25 = vunpack.i.h.bf16 %v18094_v8  ;;  %v18095_v31 = vunpack.i.l.bf16 %v18094_v8  ;;  %v21752_v8 = vld [vmem:[%s22276_s3] sm:$0xff] }
 0x4a1   : > { %12154 = vmatprep.mubr.f32.mxu0 %v22319_v1  ;;  %v8825_v48 = vmax.f32 %v8821_v30, 0.0  ;;  %v8826_v11 = vmax.f32 %v8822_v5, 0.0  ;;  %v8827_v16 = vmax.f32 %v8823_v62, 0.0  ;;  %12891 = vmatprep.mubr.f32.mxu1 %v22319_v1  ;;  %v18089_v58 = vpop.permute.xlu1 %18088 }
 0x4a2   : > { %v8828_v35 = vmax.f32 %v8824_v41, 0.0  ;;  %v18090_v52 = vunpack.i.l.bf16 %v18089_v58  ;;  %v18091_v50 = vunpack.i.h.bf16 %v18089_v58 }
 0x4a3   : > { %v18182_v14 = vpack.i.bf16 %v8826_v11, %v8825_v48  ;;  %v18247_v59 = vpack.i.bf16 %v8827_v16, %v8825_v48  ;;  %v21681_v32 = vpack.c.bf16 %v8827_v16, %v8825_v48 }
 0x4a4   : > { %16501 = vmatmul.mubr.msk.f32.gmra.mrb[82].mxu0 %vm649_vm2, %v21667_v23  ;;  %v18202_v20 = vpack.i.bf16 %v8828_v35, %v8827_v16  ;;  %v21677_v17 = vpack.c.bf16 %v8828_v35, %v8826_v11  ;;  %16534 = vmatmul.mubr.msk.f32.vlgmr.msra.gmra.mrb[66].mxu1 %vm649_vm2, %v22331_v3 }
 0x4a5   : > { %13395 = vmatprep.mubr.f32.mxu0 %v22319_v1  ;;  %18183 = vrot.lane.b32.xlu0 %v18182_v14, %s18368_s24 }
 0x4a6   : > { %18203 = vrot.lane.b32.xlu1 %v18202_v20, %s18368_s24  ;;  %12897 = vmatprep.mubr.f32.mxu1 %v22319_v1 }
 0x4a8   : > { %16560 = vmatmul.mubr.msk.f32.vlgmr.msra.gmra.mrb[84].mxu0 %vm649_vm2, %v22332_v42  ;;  %16535 = vmatmul.mubr.msk.f32.gmra.mrb[68].mxu1 %vm649_vm2, %v21395_v55  ;;  %v18237_v55 = vpack.i.bf16 %v22319_v1, %v8826_v11 }
 0x4a9   : > { %13401 = vmatprep.mubr.f32.mxu0 %v22319_v1  ;;  %18213 = vrot.lane.b32.xlu0 %v21351_v7, %s18369_s25  ;;  %v22334_v7 = vld [vmem:[#allocation15_spill] sm:$0xff] }
 0x4aa   : > { %18208 = vrot.lane.b32.xlu1 %v21379_v39, %s18369_s25  ;;  %12903 = vmatprep.mubr.f32.mxu1 %v22319_v1  ;;  %v18242_v39 = vpack.i.bf16 %v22319_v1, %v8828_v35 }
 0x4ac   : > { %16561 = vmatmul.mubr.msk.f32.gmra.mrb[86].mxu0 %vm649_vm2, %v22333_v33  ;;  %16536 = vmatmul.mubr.msk.f32.gmra.mrb[70].mxu1 %vm649_vm2, %v21417_v6  ;;  %v8833_v6 = vld [vmem:[%s22277_s4] sm:$0xff] }
 0x4ad   : > { %13407 = vmatprep.mubr.f32.mxu0 %v22319_v1  ;;  %18223 = vrot.lane.b32.xlu0 %v18182_v14, %s18368_s24 }
 0x4ae   : > { %18218 = vrot.lane.b32.xlu1 %v22319_v1, %s18368_s24  ;;  %13024 = vmatprep.mubr.f32.mxu1 %v22319_v1 }
 0x4b0   : > { %16562 = vmatmul.mubr.msk.f32.gmra.mrb[88].mxu0 %vm649_vm2, %v22334_v7 }
 0x4b1   : > { %13513 = vmatprep.mubr.f32.mxu0 %v22319_v1  ;;  %18233 = vrot.lane.b32.xlu0 %v22319_v1, %s18368_s24 }
 0x4b2   : > { %18228 = vrot.lane.b32.xlu1 %v18202_v20, %s18368_s24 }
 0x4b5   : > { %18243 = vrot.lane.b32.xlu0 %v18242_v39, %s18369_s25 }
 0x4b6   : > { %18238 = vrot.lane.b32.xlu1 %v18237_v55, %s18369_s25 }
 0x4b9   : > { %18253 = vrot.lane.b32.xlu0 %v18237_v55, %s18369_s25 }
 0x4ba   : > { %18248 = vrot.lane.b32.xlu1 %v18247_v59, %s18369_s25 }
 0x4bd   : > { %18263 = vrot.lane.b32.xlu0 %v18247_v59, %s18369_s25 }
 0x4be   : > { %18258 = vrot.lane.b32.xlu1 %v18242_v39, %s18369_s25 }
 0x4c1   : > { %18273 = vrot.lane.b32.xlu0 %v22319_v1, %s18368_s24 }
 0x4c2   : > { %18268 = vrot.lane.b32.xlu1 %v22319_v1, %s18368_s24 }
 0x4c5   : > { %18283 = vrot.lane.b32.xlu0 %v22319_v1, %s18369_s25 }
 0x4c6   : > { %18278 = vrot.lane.b32.xlu1 %v22319_v1, %s18368_s24 }
 0x4c9   : > { %18293 = vrot.lane.b32.xlu0 %v22319_v1, %s18369_s25 }
 0x4ca   : > { %18288 = vrot.lane.b32.xlu1 %v22319_v1, %s18369_s25 }
 0x4cd   : > { %9931 = vrot.lane.b32.xlu0 %v21590_v9, %s18371_s8 }
 0x4ce   : > { %9953 = vperm.xlu1 %17756, %v8833_v6  }
 0x4d1   : > { %9941 = vrot.lane.b32.xlu0 %v9929_v61, %s18372_s16  ;;  %v13433_v61 = vsel %vm649_vm2, %v18095_v31, %v18096_v25 }
 0x4d2   : > { %9933 = vrot.lane.b32.xlu1 %v21598_v28, %s18371_s8 }
 0x4d6   : > { %9943 = vrot.lane.b32.xlu1 %v9930_v2, %s18372_s16 }
 0x4df   : > { %v18099_v54 = vpop.permute.xlu1 %18098 }
 0x4e0   : > { %v18100_v12 = vunpack.i.l.bf16 %v18099_v54  ;;  %v18101_v21 = vunpack.i.h.bf16 %v18099_v54 }
 0x4e2   : > { %v12943_v28 = vsel %vm649_vm2, %v18090_v52, %v18100_v12  ;;  %v12944_v30 = vsel %vm649_vm2, %v18100_v12, %v18101_v21 }
 0x4e3   : > { %v18104_v44 = vpop.permute.xlu1 %18103  ;;  %v18109_v56 = vpop.permute.xlu0 %18108 }
 0x4e4   : > { %v18106_v45 = vunpack.i.h.bf16 %v18104_v44  ;;  %v18105_v9 = vunpack.i.l.bf16 %v18104_v44  ;;  %v18111_v0 = vunpack.i.h.bf16 %v18109_v56  ;;  %v18110_v46 = vunpack.i.l.bf16 %v18109_v56  ;;  %v21767_v44 = vld [vmem:[%s22276_s3 + $0x8] sm:$0xff] }
 0x4e6   : > { %v12945_v38 = vsel %vm649_vm2, %v18091_v50, %v18110_v46  ;;  %v12946_v5 = vsel %vm649_vm2, %v18110_v46, %v18111_v0  ;;  %v13435_v53 = vsel %vm649_vm2, %v18105_v9, %v18106_v45 }
 0x4e7   : > { %v16825_v62 = vpack.c.bf16 %v12945_v38, %v12943_v28  ;;  %v18119_v41 = vpop.permute.xlu1 %18118  ;;  %v18114_v2 = vpop.permute.xlu0 %18113  ;;  %v16823_v48 = vpack.c.bf16 %v12946_v5, %v12944_v30  ;;  %v16839_v11 = vpack.c.bf16 %v13435_v53, %v13433_v61  ;;  %v21779_v5 = vld [vmem:[%s22276_s3 + $0x10] sm:$0xff] }
 0x4e8   : > { %v18116_v16 = vunpack.i.h.bf16 %v18114_v2  ;;  %v18115_v35 = vunpack.i.l.bf16 %v18114_v2  ;;  %v18121_v14 = vunpack.i.h.bf16 %v18119_v41  ;;  %v18120_v20 = vunpack.i.l.bf16 %v18119_v41  ;;  %v21787_v41 = vld [vmem:[%s22276_s3 + $0xa8] sm:$0xff] }
 0x4e9   : > { %16824 = vmatprep.subr.bf16.mxu1 %v16823_v48  ;;  %16840 = vmatprep.subr.bf16.mxu0 %v16839_v11 }
 0x4ea   : > { %v13434_v59 = vsel %vm649_vm2, %v18116_v16, %v18105_v9  ;;  %v13432_v3 = vsel %vm649_vm2, %v18115_v35, %v18095_v31  ;;  %16826 = vmatpush1.bf16.msra.mxu1 %v16825_v62  ;;  %v13560_v54 = vsel %vm793_vm3, %v18120_v20, %v18121_v14 }
 0x4eb   : > { %v16841_v42 = vpack.c.bf16 %v13434_v59, %v13432_v3  ;;  %v18129_v33 = vpop.permute.xlu1 %18128  ;;  %v18124_v7 = vpop.permute.xlu0 %18123  ;;  %16828 = vmatprep.subr.bf16.mxu1 %v21456_v13 }
 0x4ec   : > { %v18131_v39 = vunpack.i.h.bf16 %v18129_v33  ;;  %v18130_v55 = vunpack.i.l.bf16 %v18129_v33  ;;  %v18126_v6 = vunpack.i.h.bf16 %v18124_v7  ;;  %v18125_v58 = vunpack.i.l.bf16 %v18124_v7 }
 0x4ed   : > { %16540 = vmatmul.mubr.msk.f32.vlgmr.msra.gmra.mrb[66].mxu1 %vm649_vm2, %v21446_v63  ;;  %16842 = vmatpush1.bf16.msra.mxu0 %v16841_v42 }
 0x4ee   : > { %v13559_v25 = vsel %vm793_vm3, %v18130_v55, %v18120_v20  ;;  %v13561_v31 = vsel %vm793_vm3, %v18131_v39, %v18125_v58  ;;  %16830 = vmatpush1.bf16.msra.mxu1 %v21496_v22  ;;  %13030 = vmatprep.mubr.f32.mxu1 %v22319_v1  ;;  %v13562_v52 = vsel %vm793_vm3, %v18125_v58, %v18126_v6 }
 0x4ef   : > { %v16845_v12 = vpack.c.bf16 %v13561_v31, %v13559_v25  ;;  %v18139_v63 = vpop.permute.xlu1 %18138  ;;  %v18134_v21 = vpop.permute.xlu0 %18133  ;;  %v16843_v50 = vpack.c.bf16 %v13562_v52, %v13560_v54 }
 0x4f0   : > { %16563 = vmatmul.mubr.msk.f32.vlgmr.msra.gmra.mrb[84].mxu0 %vm649_vm2, %v21752_v8  ;;  %v18136_v56 = vunpack.i.h.bf16 %v18134_v21  ;;  %v18135_v45 = vunpack.i.l.bf16 %v18134_v21  ;;  %v18140_v30 = vunpack.i.l.bf16 %v18139_v63 }
 0x4f1   : > { %16541 = vmatmul.mubr.msk.f32.gmra.mrb[68].mxu1 %vm649_vm2, %v21478_v43  ;;  %16844 = vmatprep.subr.bf16.mxu0 %v16843_v50  ;;  %v18141_v43 = vunpack.i.h.bf16 %v18139_v63 }
 0x4f2   : > { %16846 = vmatpush1.bf16.msra.mxu0 %v16845_v12  ;;  %13519 = vmatprep.mubr.f32.mxu0 %v22319_v1 }
 0x4f3   : > { %v18144_v9 = vpop.permute.xlu1 %18143  ;;  %13036 = vmatprep.mubr.f32.mxu1 %v22319_v1  ;;  %v13693_v42 = vsel %vm649_vm2, %v18140_v30, %v18141_v43 }
 0x4f4   : > { %v18149_v0 = vpop.permute.xlu0 %18148  ;;  %v18146_v46 = vunpack.i.h.bf16 %v18144_v9  ;;  %v18145_v28 = vunpack.i.l.bf16 %v18144_v9  ;;  %16564 = vmatmul.mubr.msk.f32.gmra.mrb[86].mxu0 %vm649_vm2, %v21767_v44 }
 0x4f5   : > { %v18151_v61 = vunpack.i.h.bf16 %v18149_v0  ;;  %v18150_v38 = vunpack.i.l.bf16 %v18149_v0  ;;  %16542 = vmatmul.mubr.msk.f32.gmra.mrb[70].mxu1 %vm649_vm2, %v21509_v37  ;;  %13525 = vmatprep.mubr.f32.mxu0 %v22319_v1  ;;  %v13178_v37 = vsel %vm793_vm3, %v18135_v45, %v18136_v56 }
 0x4f6   : > { %13125 = vmatprep.mubr.f32.mxu1 %v22319_v1  ;;  %v13180_v2 = vsel %vm793_vm3, %v18145_v28, %v18146_v46 }
 0x4f7   : > { %v13179_v53 = vsel %vm793_vm3, %v18151_v61, %v18145_v28  ;;  %v13177_v62 = vsel %vm793_vm3, %v18150_v38, %v18135_v45  ;;  %v16831_v35 = vpack.c.bf16 %v13180_v2, %v13178_v37  ;;  %v21839_v28 = vld [vmem:[%s22276_s3 + $0x48] sm:$0xff]  ;;  %v21853_v2 = vld [vmem:[%s22276_s3 + $0x50] sm:$0xff] }
 0x4f8   : > { %v16833_v48 = vpack.c.bf16 %v13179_v53, %v13177_v62  ;;  %v18159_v11 = vpop.permute.xlu1 %18158  ;;  %v18154_v16 = vpop.permute.xlu0 %18153  ;;  %16565 = vmatmul.mubr.msk.f32.gmra.mrb[88].mxu0 %vm649_vm2, %v21779_v5 }
 0x4f9   : > { %v18161_v14 = vunpack.i.h.bf16 %v18159_v11  ;;  %v18160_v20 = vunpack.i.l.bf16 %v18159_v11  ;;  %v18156_v59 = vunpack.i.h.bf16 %v18154_v16  ;;  %v18155_v3 = vunpack.i.l.bf16 %v18154_v16  ;;  %16546 = vmatmul.mubr.msk.f32.vlgmr.msra.gmra.mrb[66].mxu1 %vm649_vm2, %v21787_v41  ;;  %16832 = vmatprep.subr.bf16.mxu1 %v16831_v35  ;;  %v21869_v16 = vld [vmem:[%s22276_s3 + $0x58] sm:$0xff] }
 0x4fa   : > { %16834 = vmatpush1.bf16.msra.mxu1 %v16833_v48  ;;  %13640 = vmatprep.mubr.f32.mxu0 %v22319_v1  ;;  %v16610_v35 = vld [vmem:[%s22276_s3 + $0x18] sm:$0xff] }
 0x4fb   : > { %v13692_v33 = vsel %vm649_vm2, %v18160_v20, %v18140_v30  ;;  %v13694_v7 = vsel %vm649_vm2, %v18161_v14, %v18155_v3  ;;  %v13695_v39 = vsel %vm649_vm2, %v18155_v3, %v18156_v59  ;;  %16872 = vmatprep.subr.bf16.mxu1 %v21456_v13  ;;  %13131 = vmatprep.mubr.f32.mxu1 %v22319_v1 }
 0x4fc   : > { %v16849_v55 = vpack.c.bf16 %v13694_v7, %v13692_v33  ;;  %v21800_v6 = vpop.permute.xlu1 %18188  ;;  %v21802_v58 = vpop.permute.xlu0 %18163  ;;  %v16847_v54 = vpack.c.bf16 %v13695_v39, %v13693_v42  ;;  %16569 = vmatmul.mubr.msk.f32.vlgmr.msra.gmra.mrb[84].mxu0 %vm649_vm2, %v21422_v19  ;;  %v16612_v33 = vld [vmem:[%s22276_s3 + $0x28] sm:$0xff] }
 0x4fd   : > { %16547 = vmatmul.mubr.msk.f32.gmra.mrb[68].mxu1 %vm649_vm2, %v21544_v29  ;;  %v18191_v25 = vunpack.i.h.bf16 %v21800_v6  ;;  %v18190_v31 = vunpack.i.l.bf16 %v21800_v6  ;;  %v18166_v52 = vunpack.i.h.bf16 %v21802_v58  ;;  %v18165_v12 = vunpack.i.l.bf16 %v21802_v58  ;;  %13646 = vmatprep.mubr.f32.mxu0 %v22319_v1 }
 0x4fe   : > { %16848 = vmatprep.subr.bf16.mxu0 %v16847_v54  ;;  %13137 = vmatprep.mubr.f32.mxu1 %v22319_v1 }
 0x4ff   : > { %16850 = vmatpush1.bf16.msra.mxu0 %v16849_v55  ;;  %v14551_v0 = vsel %vm649_vm2, %v18190_v31, %v18191_v25 }
 0x500   : > { %v18194_v63 = vpop.permute.xlu1 %18193  ;;  %v18169_v21 = vpop.permute.xlu0 %18168  ;;  %16852 = vmatprep.subr.bf16.mxu0 %v21456_v13  ;;  %16570 = vmatmul.mubr.msk.f32.gmra.mrb[86].mxu0 %vm649_vm2, %v21451_v27  ;;  %v14549_v13 = vsel %vm649_vm2, %v18165_v12, %v18166_v52 }
 0x501   : > { %v11028_v19 = vpop.f32.mrb[60].mxu1  ;;  %v18196_v29 = vunpack.i.h.bf16 %v18194_v63  ;;  %v18195_v50 = vunpack.i.l.bf16 %v18194_v63  ;;  %v18171_v56 = vunpack.i.h.bf16 %v18169_v21  ;;  %v18170_v45 = vunpack.i.l.bf16 %v18169_v21  ;;  %16548 = vmatmul.mubr.msk.f32.gmra.mrb[70].mxu1 %vm649_vm2, %v21575_v15  ;;  %13652 = vmatprep.mubr.f32.mxu0 %v22319_v1 }
 0x502   : > { %v11030_v9 = vpop.f32.mrb[61].mxu1  ;;  %11051 = vrot.lane.b32.xlu0 %v11028_v19, %s18371_s8  ;;  %13258 = vmatprep.mubr.f32.mxu1 %v22319_v1  ;;  %v16875_v15 = vpack.c.bf16 %v14551_v0, %v14549_v13 }
 0x503   : > { %11053 = vrot.lane.b32.xlu1 %v11030_v9, %s18371_s8  ;;  %v13927_v61 = vsel %vm793_vm3, %v18170_v45, %v18171_v56  ;;  %v13929_v38 = vsel %vm793_vm3, %v18195_v50, %v18196_v29 }
 0x504   : > { %16571 = vmatmul.mubr.msk.f32.gmra.mrb[88].mxu0 %vm649_vm2, %v21483_v36  ;;  %v21829_v27 = vpop.f32.mrb[62].mxu1  ;;  %v18174_v36 = vpop.permute.xlu0 %18173  ;;  %v16855_v43 = vpack.c.bf16 %v13929_v38, %v13927_v61 }
 0x505   : > { %16552 = vmatmul.mubr.msk.f32.vlgmr.msra.gmra.mrb[66].mxu1 %vm649_vm2, %v21607_v34  ;;  %v21833_v46 = vpop.f32.mrb[63].mxu1  ;;  %13773 = vmatprep.mubr.f32.mxu0 %v22319_v1  ;;  %v18199_v30 = vpop.permute.xlu1 %18198  ;;  %v18176_v53 = vunpack.i.h.bf16 %v18174_v36  ;;  %v18175_v62 = vunpack.i.l.bf16 %v18174_v36 }
 0x506   : > { %16874 = vmatpush1.bf16.msra.mxu1 %v21496_v22  ;;  %13264 = vmatprep.mubr.f32.mxu1 %v22319_v1  ;;  %v18201_v48 = vunpack.i.h.bf16 %v18199_v30  ;;  %v18200_v11 = vunpack.i.l.bf16 %v18199_v30 }
 0x507   : > { %16876 = vmatprep.subr.bf16.mxu1 %v16875_v15 }
 0x508   : > { %v11040_v34 = vpop.f32.mrb[64].mxu1  ;;  %16575 = vmatmul.mubr.msk.f32.vlgmr.msra.gmra.mrb[84].mxu0 %vm649_vm2, %v21839_v28  ;;  %v13926_v14 = vsel %vm793_vm3, %v18200_v11, %v18170_v45  ;;  %v13928_v20 = vsel %vm793_vm3, %v18201_v48, %v18195_v50  ;;  %v18179_v42 = vpop.permute.xlu0 %18178  ;;  %v21907_v45 = vld [vmem:[%s22276_s3 + $0x78] sm:$0xff] }
 0x509   : > { %16854 = vmatpush1.bf16.msra.mxu0 %v21496_v22  ;;  %v11042_v37 = vpop.f32.mrb[65].mxu1  ;;  %16553 = vmatmul.mubr.msk.f32.gmra.mrb[68].mxu1 %vm649_vm2, %v21644_v10  ;;  %v14550_v22 = vsel %vm649_vm2, %v18176_v53, %v18190_v31  ;;  %v14548_v10 = vsel %vm649_vm2, %v18175_v62, %v18165_v12  ;;  %v16857_v3 = vpack.c.bf16 %v13928_v20, %v13926_v14  ;;  %v18180_v25 = vunpack.i.l.bf16 %v18179_v42  ;;  %v21922_v62 = vld [vmem:[%s22276_s3 + $0x80] sm:$0xff] }
 0x50a   : > { %16856 = vmatprep.subr.bf16.mxu0 %v16855_v43  ;;  %11063 = vrot.lane.b32.xlu1 %v11042_v37, %s18372_s16  ;;  %v16877_v59 = vpack.c.bf16 %v14550_v22, %v14548_v10 }
 0x50b   : > { %11061 = vrot.lane.b32.xlu0 %v11040_v34, %s18372_s16  ;;  %13779 = vmatprep.mubr.f32.mxu0 %v22319_v1 }
 0x50c   : > { %13270 = vmatprep.mubr.f32.mxu1 %v22319_v1  ;;  %16576 = vmatmul.mubr.msk.f32.gmra.mrb[86].mxu0 %vm649_vm2, %v21853_v2 }
 0x50d   : > { %16554 = vmatmul.mubr.msk.f32.gmra.mrb[70].mxu1 %vm649_vm2, %v21667_v23  ;;  %13785 = vmatprep.mubr.f32.mxu0 %v22319_v1  ;;  %v16611_v23 = vld [vmem:[%s22276_s3 + $0x20] sm:$0xff] }
 0x50e   : > { %14511 = vmatprep.mubr.f32.mxu1 %v22319_v1 }
 0x510   : > { %16577 = vmatmul.mubr.msk.f32.gmra.mrb[88].mxu0 %vm649_vm2, %v21869_v16 }
 0x511   : > { %16613 = vmatmul.mubr.msk.f32.vlgmr.msra.gmra.mrb[72].mxu1 %vm649_vm2, %v16610_v35  ;;  %13874 = vmatprep.mubr.f32.mxu0 %v22319_v1 }
 0x512   : > { %16878 = vmatpush1.bf16.msra.mxu1 %v16877_v59  ;;  %14517 = vmatprep.mubr.f32.mxu1 %v22319_v1  ;;  %v21935_v59 = vld [vmem:[%s22276_s3 + $0x88] sm:$0xff] }
 0x514   : > { %16581 = vmatmul.mubr.msk.f32.vlgmr.msra.gmra.mrb[84].mxu0 %vm649_vm2, %v21581_v26  ;;  %v18181_v26 = vunpack.i.h.bf16 %v18179_v42 }
 0x515   : > { %16858 = vmatpush1.bf16.msra.mxu0 %v16857_v3  ;;  %16614 = vmatmul.mubr.msk.f32.gmra.mrb[74].mxu1 %vm649_vm2, %v16611_v23 }
 0x516   : > { %13880 = vmatprep.mubr.f32.mxu0 %v22319_v1  ;;  %14523 = vmatprep.mubr.f32.mxu1 %v22319_v1  ;;  %v14676_v9 = vsel %vm793_vm3, %v18180_v25, %v18181_v26 }
 0x517   : > { %v18184_v39 = vpop.permute.xlu0 %18183 }
 0x518   : > { %v18204_v7 = vpop.permute.xlu1 %18203  ;;  %v18186_v58 = vunpack.i.h.bf16 %v18184_v39  ;;  %v18185_v54 = vunpack.i.l.bf16 %v18184_v39  ;;  %16582 = vmatmul.mubr.msk.f32.gmra.mrb[86].mxu0 %vm649_vm2, %v21617_v51 }
 0x519   : > { %v18206_v55 = vunpack.i.h.bf16 %v18204_v7  ;;  %v18205_v6 = vunpack.i.l.bf16 %v18204_v7  ;;  %16615 = vmatmul.mubr.msk.f32.gmra.mrb[76].mxu1 %vm649_vm2, %v16612_v33  ;;  %13886 = vmatprep.mubr.f32.mxu0 %v22319_v1  ;;  %v16619_v33 = vld [vmem:[%s22276_s3 + $0x30] sm:$0xff] }
 0x51a   : > { %14629 = vmatprep.mubr.f32.mxu1 %v22319_v1  ;;  %v14060_v31 = vsel %vm649_vm2, %v18185_v54, %v18186_v58 }
 0x51b   : > { %v14062_v52 = vsel %vm649_vm2, %v18205_v6, %v18206_v55  ;;  %v18214_v63 = vpop.permute.xlu0 %18213 }
 0x51c   : > { %v18209_v12 = vpop.permute.xlu1 %18208  ;;  %v16859_v21 = vpack.c.bf16 %v14062_v52, %v14060_v31  ;;  %v18216_v50 = vunpack.i.h.bf16 %v18214_v63  ;;  %v18215_v56 = vunpack.i.l.bf16 %v18214_v63  ;;  %16583 = vmatmul.mubr.msk.f32.gmra.mrb[88].mxu0 %vm649_vm2, %v21655_v60  ;;  %v21953_v31 = vld [vmem:[%s22276_s3 + $0x90] sm:$0xff]  ;;  %v16620_v63 = vld [vmem:[%s22276_s3 + $0x38] sm:$0xff] }
 0x51d   : > { %v18211_v19 = vunpack.i.h.bf16 %v18209_v12  ;;  %v18210_v29 = vunpack.i.l.bf16 %v18209_v12  ;;  %16616 = vmatmul.mubr.msk.f32.vlgmr.msra.gmra.mrb[72].mxu1 %vm649_vm2, %v21752_v8  ;;  %14007 = vmatprep.mubr.f32.mxu0 %v22319_v1 }
 0x51e   : > { %16860 = vmatprep.subr.bf16.mxu0 %v16859_v21  ;;  %v14675_v0 = vsel %vm793_vm3, %v18215_v56, %v18180_v25  ;;  %14635 = vmatprep.mubr.f32.mxu1 %v22319_v1 }
 0x51f   : > { %v14677_v13 = vsel %vm793_vm3, %v18216_v50, %v18210_v29  ;;  %v14678_v15 = vsel %vm793_vm3, %v18210_v29, %v18211_v19  ;;  %v18224_v8 = vpop.permute.xlu0 %18223  ;;  %v21972_v50 = vld [vmem:[%s22276_s3 + $0x98] sm:$0xff] }
 0x520   : > { %v16881_v61 = vpack.c.bf16 %v14677_v13, %v14675_v0  ;;  %v18219_v38 = vpop.permute.xlu1 %18218  ;;  %v16879_v36 = vpack.c.bf16 %v14678_v15, %v14676_v9  ;;  %16587 = vmatmul.mubr.msk.f32.vlgmr.msra.gmra.mrb[84].mxu0 %vm649_vm2, %v21907_v45  ;;  %v18226_v30 = vunpack.i.h.bf16 %v18224_v8  ;;  %v18225_v53 = vunpack.i.l.bf16 %v18224_v8 }
 0x521   : > { %v18221_v34 = vunpack.i.h.bf16 %v18219_v38  ;;  %v18220_v43 = vunpack.i.l.bf16 %v18219_v38  ;;  %16617 = vmatmul.mubr.msk.f32.gmra.mrb[74].mxu1 %vm649_vm2, %v21767_v44  ;;  %14013 = vmatprep.mubr.f32.mxu0 %v22319_v1 }
 0x522   : > { %16880 = vmatprep.subr.bf16.mxu1 %v16879_v36  ;;  %14641 = vmatprep.mubr.f32.mxu1 %v22319_v1  ;;  %v14809_v23 = vsel %vm649_vm2, %v18225_v53, %v18226_v30  ;;  %v21988_v36 = vld [vmem:[%s22276_s3 + $0xa0] sm:$0xff] }
 0x523   : > { %v14059_v37 = vsel %vm649_vm2, %v18220_v43, %v18185_v54  ;;  %v14061_v48 = vsel %vm649_vm2, %v18221_v34, %v18205_v6  ;;  %16882 = vmatpush1.bf16.msra.mxu1 %v16881_v61  ;;  %v18234_v10 = vpop.permute.xlu0 %18233 }
 0x524   : > { %v16861_v11 = vpack.c.bf16 %v14061_v48, %v14059_v37  ;;  %v18229_v22 = vpop.permute.xlu1 %18228  ;;  %v18236_v14 = vunpack.i.h.bf16 %v18234_v10  ;;  %v18235_v20 = vunpack.i.l.bf16 %v18234_v10  ;;  %16588 = vmatmul.mubr.msk.f32.gmra.mrb[86].mxu0 %vm649_vm2, %v21922_v62 }
 0x525   : > { %v18231_v35 = vunpack.i.h.bf16 %v18229_v22  ;;  %v18230_v44 = vunpack.i.l.bf16 %v18229_v22  ;;  %16618 = vmatmul.mubr.msk.f32.gmra.mrb[76].mxu1 %vm649_vm2, %v21779_v5  ;;  %14019 = vmatprep.mubr.f32.mxu0 %v22319_v1 }
 0x526   : > { %16862 = vmatpush1.bf16.msra.mxu0 %v16861_v11  ;;  %v14808_v42 = vsel %vm649_vm2, %v18235_v20, %v18225_v53  ;;  %14756 = vmatprep.mubr.f32.mxu1 %v22319_v1 }
 0x527   : > { %v14810_v3 = vsel %vm649_vm2, %v18236_v14, %v18230_v44  ;;  %16864 = vmatprep.subr.bf16.mxu0 %v21677_v17  ;;  %v14811_v5 = vsel %vm649_vm2, %v18230_v44, %v18231_v35  ;;  %v18244_v55 = vpop.permute.xlu0 %18243 }
 0x528   : > { %v16885_v7 = vpack.c.bf16 %v14810_v3, %v14808_v42  ;;  %v18239_v39 = vpop.permute.xlu1 %18238  ;;  %v16883_v6 = vpack.c.bf16 %v14811_v5, %v14809_v23  ;;  %v18246_v26 = vunpack.i.h.bf16 %v18244_v55  ;;  %v18245_v25 = vunpack.i.l.bf16 %v18244_v55  ;;  %16589 = vmatmul.mubr.msk.f32.gmra.mrb[88].mxu0 %vm649_vm2, %v21935_v59 }
 0x529   : > { %v18241_v58 = vunpack.i.h.bf16 %v18239_v39  ;;  %v18240_v54 = vunpack.i.l.bf16 %v18239_v39  ;;  %16622 = vmatmul.mubr.msk.f32.vlgmr.msra.gmra.mrb[72].mxu1 %vm649_vm2, %v16619_v33  ;;  %14140 = vmatprep.mubr.f32.mxu0 %v22319_v1 }
 0x52a   : > { %16884 = vmatprep.subr.bf16.mxu1 %v16883_v6  ;;  %v14296_v12 = vsel %vm793_vm3, %v18245_v25, %v18246_v26  ;;  %14762 = vmatprep.mubr.f32.mxu1 %v22319_v1  ;;  %v16631_v26 = vld [vmem:[%s22276_s3 + $0x60] sm:$0xff] }
 0x52b   : > { %16886 = vmatpush1.bf16.msra.mxu1 %v16885_v7  ;;  %v14294_v52 = vsel %vm793_vm3, %v18240_v54, %v18241_v58  ;;  %v21961_v19 = vpop.permute.xlu0 %18253 }
 0x52c   : > { %v18249_v21 = vpop.permute.xlu1 %18248  ;;  %16888 = vmatprep.subr.bf16.mxu1 %v21677_v17  ;;  %v16867_v29 = vpack.c.bf16 %v14296_v12, %v14294_v52  ;;  %16593 = vmatmul.mubr.msk.f32.vlgmr.msra.gmra.mrb[84].mxu0 %vm649_vm2, %v21953_v31  ;;  %v18256_v56 = vunpack.i.h.bf16 %v21961_v19  ;;  %v18255_v9 = vunpack.i.l.bf16 %v21961_v19  ;;  %v16621_v17 = vld [vmem:[%s22276_s3 + $0x40] sm:$0xff] }
 0x52d   : > { %16866 = vmatpush1.bf16.msra.mxu0 %v21681_v32  ;;  %16623 = vmatmul.mubr.msk.f32.gmra.mrb[74].mxu1 %vm649_vm2, %v16620_v63  ;;  %v18251_v13 = vunpack.i.h.bf16 %v18249_v21  ;;  %v18250_v0 = vunpack.i.l.bf16 %v18249_v21  ;;  %v22041_v63 = vld [vmem:[%s22276_s3 + $0xc0] sm:$0xff] }
 0x52e   : > { %16868 = vmatprep.subr.bf16.mxu0 %v16867_v29  ;;  %14146 = vmatprep.mubr.f32.mxu0 %v22319_v1  ;;  %v15043_v34 = vsel %vm793_vm3, %v18255_v9, %v18256_v56  ;;  %v22052_v56 = vld [vmem:[%s22276_s3 + $0xc8] sm:$0xff] }
 0x52f   : > { %14768 = vmatprep.mubr.f32.mxu1 %v22319_v1  ;;  %v18264_v8 = vpop.permute.xlu0 %18263  ;;  %v14293_v30 = vsel %vm793_vm3, %v18250_v0, %v18240_v54  ;;  %v14295_v53 = vsel %vm793_vm3, %v18251_v13, %v18245_v25  ;;  %v22026_v54 = vld [vmem:[%s22276_s3 + $0xb8] sm:$0xff] }
 0x530   : > { %v18259_v15 = vpop.permute.xlu1 %18258  ;;  %16594 = vmatmul.mubr.msk.f32.gmra.mrb[86].mxu0 %vm649_vm2, %v21972_v50  ;;  %v16869_v22 = vpack.c.bf16 %v14295_v53, %v14293_v30  ;;  %v18266_v23 = vunpack.i.h.bf16 %v18264_v8  ;;  %v18265_v3 = vunpack.i.l.bf16 %v18264_v8 }
 0x531   : > { %v18261_v61 = vunpack.i.h.bf16 %v18259_v15  ;;  %v18260_v38 = vunpack.i.l.bf16 %v18259_v15  ;;  %16624 = vmatmul.mubr.msk.f32.gmra.mrb[76].mxu1 %vm649_vm2, %v16621_v17  ;;  %14152 = vmatprep.mubr.f32.mxu0 %v22319_v1 }
 0x532   : > { %14889 = vmatprep.mubr.f32.mxu1 %v22319_v1  ;;  %v15042_v58 = vsel %vm793_vm3, %v18265_v3, %v18255_v9 }
 0x533   : > { %v15045_v43 = vsel %vm793_vm3, %v18260_v38, %v18261_v61  ;;  %v18274_v11 = vpop.permute.xlu0 %18273  ;;  %v15044_v6 = vsel %vm793_vm3, %v18266_v23, %v18260_v38 }
 0x534   : > { %v16891_v37 = vpack.c.bf16 %v15045_v43, %v15043_v34  ;;  %v18269_v48 = vpop.permute.xlu1 %18268  ;;  %16595 = vmatmul.mubr.msk.f32.gmra.mrb[88].mxu0 %vm649_vm2, %v21988_v36  ;;  %v18276_v14 = vunpack.i.h.bf16 %v18274_v11  ;;  %v18275_v20 = vunpack.i.l.bf16 %v18274_v11  ;;  %v16893_v52 = vpack.c.bf16 %v15044_v6, %v15042_v58 }
 0x535   : > { %16628 = vmatmul.mubr.msk.f32.vlgmr.msra.gmra.mrb[72].mxu1 %vm649_vm2, %v21839_v28  ;;  %14241 = vmatprep.mubr.f32.mxu0 %v22319_v1  ;;  %v18271_v10 = vunpack.i.h.bf16 %v18269_v48  ;;  %v18270_v35 = vunpack.i.l.bf16 %v18269_v48 }
 0x536   : > { %16890 = vmatpush1.bf16.msra.mxu1 %v21681_v32  ;;  %14895 = vmatprep.mubr.f32.mxu1 %v22319_v1  ;;  %v22009_v32 = vld [vmem:[%s22276_s3 + $0xb0] sm:$0xff]  ;;  %v15178_v5 = vsel %vm649_vm2, %v18275_v20, %v18276_v14 }
 0x537   : > { %16892 = vmatprep.subr.bf16.mxu1 %v16891_v37  ;;  %v18284_v42 = vpop.permute.xlu0 %18283  ;;  %v15176_v33 = vsel %vm649_vm2, %v18270_v35, %v18271_v10 }
 0x538   : > { %v18279_v44 = vpop.permute.xlu1 %18278  ;;  %16599 = vmatmul.mubr.msk.f32.vlgmr.msra.gmra.mrb[84].mxu0 %vm649_vm2, %v21787_v41  ;;  %v18286_v39 = vunpack.i.h.bf16 %v18284_v42  ;;  %v18285_v55 = vunpack.i.l.bf16 %v18284_v42  ;;  %v16895_v25 = vpack.c.bf16 %v15178_v5, %v15176_v33 }
 0x539   : > { %16870 = vmatpush1.bf16.msra.mxu0 %v16869_v22  ;;  %16629 = vmatmul.mubr.msk.f32.gmra.mrb[74].mxu1 %vm649_vm2, %v21853_v2  ;;  %v18281_v21 = vunpack.i.h.bf16 %v18279_v44  ;;  %v18280_v19 = vunpack.i.l.bf16 %v18279_v44 }
 0x53a   : > { %14247 = vmatprep.mubr.f32.mxu0 %v22319_v1  ;;  %14901 = vmatprep.mubr.f32.mxu1 %v22319_v1 }
 0x53b   : > { %16684 = vmatprep.subr.mxu0 %v22319_v1  ;;  %v18294_v9 = vpop.permute.xlu0 %18293  ;;  %v15175_v17 = vsel %vm649_vm2, %v18280_v19, %v18270_v35  ;;  %v15177_v13 = vsel %vm649_vm2, %v18281_v21, %v18275_v20 }
 0x53c   : > { %v18289_v28 = vpop.permute.xlu1 %18288  ;;  %16600 = vmatmul.mubr.msk.f32.gmra.mrb[86].mxu0 %vm649_vm2, %v22009_v32  ;;  %v18296_v0 = vunpack.i.h.bf16 %v18294_v9  ;;  %v18295_v15 = vunpack.i.l.bf16 %v18294_v9  ;;  %v16897_v61 = vpack.c.bf16 %v15177_v13, %v15175_v17 }
 0x53d   : > { %v18291_v2 = vunpack.i.h.bf16 %v18289_v28  ;;  %v18290_v7 = vunpack.i.l.bf16 %v18289_v28  ;;  %16630 = vmatmul.mubr.msk.f32.gmra.mrb[76].mxu1 %vm649_vm2, %v21869_v16  ;;  %14253 = vmatprep.mubr.f32.mxu0 %v22319_v1  ;;  %v15410_v16 = vsel %vm793_vm3, %v18285_v55, %v18286_v39 }
 0x53e   : > { %14990 = vmatprep.mubr.f32.mxu1 %v22319_v1  ;;  %v15409_v8 = vsel %vm793_vm3, %v18295_v15, %v18285_v55 }
 0x53f   : > { %v15412_v12 = vsel %vm793_vm3, %v18290_v7, %v18291_v2  ;;  %v15411_v38 = vsel %vm793_vm3, %v18296_v0, %v18290_v7  ;;  %v9932_v43 = vpop.permute.xlu0 %9931 }
 0x540   : > { %16601 = vmatmul.mubr.msk.f32.gmra.mrb[88].mxu0 %vm649_vm2, %v22026_v54  ;;  %v16899_v29 = vpack.c.bf16 %v15412_v12, %v15410_v16 }
 0x541   : > { %16634 = vmatmul.mubr.msk.f32.vlgmr.msra.gmra.mrb[72].mxu1 %vm649_vm2, %v16631_v26  ;;  %14374 = vmatprep.mubr.f32.mxu0 %v22319_v1 }
 0x542   : > { %16894 = vmatpush1.bf16.msra.mxu1 %v16893_v52  ;;  %14996 = vmatprep.mubr.f32.mxu1 %v22319_v1 }
 0x543   : > { %16896 = vmatprep.subr.bf16.mxu1 %v16895_v25  ;;  %v9942_v48 = vpop.permute.xlu0 %9941 }
 0x544   : > { %16605 = vmatmul.mubr.msk.f32.vlgmr.msra.gmra.mrb[84].mxu0 %vm649_vm2, %v22041_v63 }
 0x545   : > { %16635 = vmatmul.mubr.msk.f32.gmra.mrb[74].mxu1 %vm649_vm2, %v21617_v51  ;;  %14380 = vmatprep.mubr.f32.mxu0 %v22319_v1  ;;  %v16604_v51 = vld [vmem:[%s22276_s3 + $0xd0] sm:$0xff] }
 0x546   : > { %15002 = vmatprep.mubr.f32.mxu1 %v22319_v1  ;;  %16685 = vmatpush3.msra.mxu0 %v22319_v1 }
 0x547   : > { %16900 = vmatprep.subr.bf16.mxu0 %v16899_v29 }
 0x548   : > { %16606 = vmatmul.mubr.msk.f32.gmra.mrb[86].mxu0 %vm649_vm2, %v22052_v56 }
 0x549   : > { %16636 = vmatmul.mubr.msk.f32.gmra.mrb[76].mxu1 %vm649_vm2, %v21655_v60  ;;  %14386 = vmatprep.mubr.f32.mxu0 %v22319_v1  ;;  %v16901_v60 = vpack.c.bf16 %v15411_v38, %v15409_v8 }
 0x54a   : > { %15123 = vmatprep.mubr.f32.mxu1 %v22319_v1 }
 0x54c   : > { %16607 = vmatmul.mubr.msk.f32.gmra.mrb[88].mxu0 %vm649_vm2, %v16604_v51 }
 0x54d   : > { %v22069_v34 = vpop.permute.xlu1 %9953  ;;  %16640 = vmatmul.mubr.msk.f32.vlgmr.msra.gmra.mrb[72].mxu1 %vm649_vm2, %v21907_v45  ;;  %16686 = vmatprep.mubr.msk.f32.mxu0 %vm18373_vm10, %v22319_v1 }
 0x54e   : > { %15129 = vmatprep.mubr.f32.mxu1 %v22319_v1  ;;  %16898 = vmatpush1.bf16.msra.mxu1 %v16897_v61 }
 0x550   : > { %16687 = vmatmul.mubr.msk.f32.vlgmr.msra.gmra.mrb[90].mxu0 %vm649_vm2, %v21787_v41 }
 0x551   : > { %v9934_v30 = vpop.permute.xlu1 %9933  ;;  %16641 = vmatmul.mubr.msk.f32.gmra.mrb[74].mxu1 %vm649_vm2, %v21922_v62  ;;  %16689 = vmatprep.mubr.msk.f32.mxu0 %vm18373_vm10, %v22319_v1 }
 0x552   : > { %v9935_v53 = vsel %vm1849_vm4, %v9932_v43, %v9934_v30  ;;  %v9936_v37 = vsel %vm1849_vm4, %v9934_v30, %v9932_v43  ;;  %15135 = vmatprep.mubr.f32.mxu1 %v22319_v1  ;;  %16902 = vmatpush1.bf16.msra.mxu0 %v16901_v60 }
 0x553   : > { %v9937_v45 = vsel %vm19938_vm5, %v9936_v37, 0.0  ;;  %v9938_v41 = vsel %vm19942_vm6, %v9935_v53, 0.0 }
 0x554   : > { %v9939_v11 = vadd.f32 %v9937_v45, %v21619_v18  ;;  %16690 = vmatmul.mubr.msk.f32.gmra.mrb[92].mxu0 %vm649_vm2, %v22009_v32  ;;  %v9940_v62 = vadd.f32 %v9938_v41, %v21650_v47 }
 0x555   : > { %v9944_v22 = vpop.permute.xlu1 %9943  ;;  %16642 = vmatmul.mubr.msk.f32.gmra.mrb[76].mxu1 %vm649_vm2, %v21935_v59  ;;  %16692 = vmatprep.mubr.msk.f32.mxu0 %vm18373_vm10, %v22319_v1 }
 0x556   : > { %v9945_v10 = vsel %vm1874_vm7, %v9942_v48, %v9944_v22  ;;  %v9946_v35 = vsel %vm1874_vm7, %v9944_v22, %v9942_v48  ;;  %15256 = vmatprep.mubr.f32.mxu1 %v22319_v1 }
 0x557   : > { %v9947_v18 = vsel %vm19963_vm8, %v9945_v10, 0.0  ;;  %v9948_v44 = vsel %vm19967_vm9, %v9946_v35, 0.0 }
 0x558   : > { %v9949_v47 = vadd.f32 %v9947_v18, %v9939_v11  ;;  %v9950_v14 = vadd.f32 %v9948_v44, %v9940_v62  ;;  %16693 = vmatmul.mubr.msk.f32.gmra.mrb[94].mxu0 %vm649_vm2, %v22026_v54 }
 0x559   : > { %16646 = vmatmul.mubr.msk.f32.vlgmr.msra.gmra.mrb[72].mxu1 %vm649_vm2, %v21953_v31  ;;  %15490 = vmatprep.mubr.f32.mxu0 %v22319_v1 }
 0x55a   : > { %v9956_v20 = vadd.f32 %v22069_v34, %v9949_v47  ;;  %v9957_v59 = vadd.f32 %v22069_v34, %v9950_v14  ;;  %15262 = vmatprep.mubr.f32.mxu1 %v22319_v1 }
 0x55c   : > { %v9958_v23 = vmax.f32 %v9956_v20, 0.0  ;;  %v9959_v3 = vmax.f32 %v9957_v59, 0.0  ;;  %16658 = vmatmul.mubr.msk.f32.vlgmr.msra.gmra.mrb[96].mxu0 %vm649_vm2, %v22041_v63 }
 0x55d   : > { %16647 = vmatmul.mubr.msk.f32.gmra.mrb[74].mxu1 %vm649_vm2, %v21972_v50  ;;  %15496 = vmatprep.mubr.f32.mxu0 %v22319_v1 }
 0x55e   : > { %9960 = vst [vmem:[%s22120_s10] sm:$0xff] %v9958_v23  ;;  %9961 = vst [vmem:[%s22120_s10 + $0x8] sm:$0xff] %v9959_v3  ;;  %15268 = vmatprep.mubr.f32.mxu1 %v22319_v1 }
 0x560   : > { %16659 = vmatmul.mubr.msk.f32.gmra.mrb[98].mxu0 %vm649_vm2, %v22052_v56 }
 0x561   : > { %16648 = vmatmul.mubr.msk.f32.gmra.mrb[76].mxu1 %vm649_vm2, %v21988_v36  ;;  %15502 = vmatprep.mubr.f32.mxu0 %v22319_v1 }
 0x564   : > { %16660 = vmatmul.mubr.msk.f32.gmra.mrb[100].mxu0 %vm649_vm2, %v16604_v51 }
 0x56f   : > { %v12144_v31 = vpop.f32.mrb[78].mxu0 }
 0x570   : > { %v12146_v32 = vpop.f32.mrb[79].mxu0  ;;  %12167 = vrot.lane.b32.xlu0 %v12144_v31, %s18371_s8 }
 0x571   : > { %12169 = vrot.lane.b32.xlu1 %v12146_v32, %s18371_s8 }
 0x573   : > { %v12150_v50 = vpop.f32.mrb[80].mxu0 }
 0x574   : > { %v12152_v28 = vpop.f32.mrb[81].mxu0  ;;  %v11052_v33 = vpop.permute.xlu0 %11051 }
 0x575   : > { %v11054_v42 = vpop.permute.xlu1 %11053 }
 0x576   : > { %v11055_v36 = vsel %vm1849_vm4, %v11052_v33, %v11054_v42  ;;  %v11056_v1 = vsel %vm1849_vm4, %v11054_v42, %v11052_v33 }
 0x577   : > { %v12156_v5 = vpop.f32.mrb[82].mxu0  ;;  %v11057_v7 = vsel %vm19938_vm5, %v11056_v1, 0.0  ;;  %v11058_v39 = vsel %vm19942_vm6, %v11055_v36, 0.0 }
 0x578   : > { %v12158_v2 = vpop.f32.mrb[83].mxu0  ;;  %12177 = vrot.lane.b32.xlu0 %v12156_v5, %s18372_s16  ;;  %v11059_v58 = vadd.f32 %v11057_v7, %v21829_v27  ;;  %v11060_v54 = vadd.f32 %v11058_v39, %v21833_v46 }
 0x579   : > { %12179 = vrot.lane.b32.xlu1 %v12158_v2, %s18372_s16 }
 0x57c   : > { %v11064_v55 = vpop.permute.xlu1 %11063 }
 0x57d   : > { %v11062_v6 = vpop.permute.xlu0 %11061 }
 0x57e   : > { %v11065_v26 = vsel %vm1874_vm7, %v11062_v6, %v11064_v55  ;;  %v11066_v25 = vsel %vm1874_vm7, %v11064_v55, %v11062_v6 }
 0x57f   : > { %v11067_v52 = vsel %vm19963_vm8, %v11065_v26, 0.0  ;;  %v11068_v16 = vsel %vm19967_vm9, %v11066_v25, 0.0 }
 0x580   : > { %v11069_v12 = vadd.f32 %v11067_v52, %v11059_v58  ;;  %v11070_v63 = vadd.f32 %v11068_v16, %v11060_v54 }
 0x582   : > { %v11071_v21 = vadd.f32 %v11069_v12, %v22069_v34  ;;  %v11072_v27 = vadd.f32 %v11070_v63, %v22069_v34 }
 0x584   : > { %v11073_v19 = vmax.f32 %v11071_v21, 0.0  ;;  %v11074_v46 = vmax.f32 %v11072_v27, 0.0 }
 0x586   : > { %16449 = vst [vmem:[%s22120_s10 + $0x10] sm:$0xff] %v11073_v19  ;;  %16450 = vst [vmem:[%s22120_s10 + $0x18] sm:$0xff] %v11074_v46 }
 0x5d8   : > { %v13260_v29 = vpop.f32.mrb[66].mxu1 }
 0x5d9   : > { %v13262_v56 = vpop.f32.mrb[67].mxu1  ;;  %13283 = vrot.lane.b32.xlu0 %v13260_v29, %s18371_s8 }
 0x5da   : > { %13285 = vrot.lane.b32.xlu1 %v13262_v56, %s18371_s8 }
 0x5dc   : > { %v22165_v9 = vpop.f32.mrb[68].mxu1 }
 0x5dd   : > { %v22167_v17 = vpop.f32.mrb[69].mxu1 }
 0x5e0   : > { %v13272_v13 = vpop.f32.mrb[70].mxu1 }
 0x5e1   : > { %v13274_v0 = vpop.f32.mrb[71].mxu1  ;;  %13293 = vrot.lane.b32.xlu0 %v13272_v13, %s18372_s16 }
 0x5e2   : > { %v12168_v15 = vpop.permute.xlu0 %12167  ;;  %13295 = vrot.lane.b32.xlu1 %v13274_v0, %s18372_s16 }
 0x5e3   : > { %v12170_v51 = vpop.permute.xlu1 %12169 }
 0x5e4   : > { %v12171_v61 = vsel %vm1849_vm4, %v12168_v15, %v12170_v51  ;;  %v12172_v38 = vsel %vm1849_vm4, %v12170_v51, %v12168_v15 }
 0x5e5   : > { %v12173_v8 = vsel %vm19938_vm5, %v12172_v38, 0.0  ;;  %v12174_v43 = vsel %vm19942_vm6, %v12171_v61, 0.0 }
 0x5e6   : > { %v12175_v53 = vadd.f32 %v12173_v8, %v12150_v50  ;;  %v12176_v37 = vadd.f32 %v12174_v43, %v12152_v28 }
 0x5ea   : > { %v12178_v60 = vpop.permute.xlu0 %12177 }
 0x5eb   : > { %v12180_v30 = vpop.permute.xlu1 %12179 }
 0x5ec   : > { %v12181_v45 = vsel %vm1874_vm7, %v12178_v60, %v12180_v30  ;;  %v12182_v41 = vsel %vm1874_vm7, %v12180_v30, %v12178_v60 }
 0x5ed   : > { %v12183_v48 = vsel %vm19963_vm8, %v12181_v45, 0.0  ;;  %v12184_v11 = vsel %vm19967_vm9, %v12182_v41, 0.0 }
 0x5ee   : > { %v12185_v22 = vadd.f32 %v12183_v48, %v12175_v53  ;;  %v12186_v62 = vadd.f32 %v12184_v11, %v12176_v37 }
 0x5f0   : > { %v12187_v10 = vadd.f32 %v12185_v22, %v22069_v34  ;;  %v12188_v35 = vadd.f32 %v12186_v62, %v22069_v34 }
 0x5f2   : > { %v12189_v18 = vmax.f32 %v12187_v10, 0.0  ;;  %v12190_v44 = vmax.f32 %v12188_v35, 0.0 }
 0x5f4   : > { %16502 = vst [vmem:[%s22120_s10 + $0x20] sm:$0xff] %v12189_v18  ;;  %16503 = vst [vmem:[%s22120_s10 + $0x28] sm:$0xff] %v12190_v44 }
 0x617   : > { %v14376_v47 = vpop.f32.mrb[84].mxu0 }
 0x618   : > { %v14378_v14 = vpop.f32.mrb[85].mxu0  ;;  %14399 = vrot.lane.b32.xlu0 %v14376_v47, %s18371_s8 }
 0x619   : > { %14401 = vrot.lane.b32.xlu1 %v14378_v14, %s18371_s8 }
 0x61b   : > { %v22193_v20 = vpop.f32.mrb[86].mxu0 }
 0x61c   : > { %v22195_v59 = vpop.f32.mrb[87].mxu0 }
 0x61f   : > { %v14388_v23 = vpop.f32.mrb[88].mxu0 }
 0x620   : > { %v14390_v3 = vpop.f32.mrb[89].mxu0  ;;  %14409 = vrot.lane.b32.xlu0 %v14388_v23, %s18372_s16 }
 0x621   : > { %14411 = vrot.lane.b32.xlu1 %v14390_v3, %s18372_s16 }
 0x623   : > { %v15359_v31 = vpop.f32.mrb[90].mxu0 }
 0x624   : > { %v16688_v32 = vpop.f32.mrb[91].mxu0 }
 0x627   : > { %v15365_v50 = vpop.f32.mrb[92].mxu0 }
 0x628   : > { %v16691_v28 = vpop.f32.mrb[93].mxu0 }
 0x62b   : > { %v15371_v42 = vpop.f32.mrb[94].mxu0 }
 0x62c   : > { %v15258_v33 = vpop.f32.mrb[72].mxu1  ;;  %v16694_v5 = vpop.f32.mrb[95].mxu0 }
 0x62d   : > { %v15376_v2 = vadd.f32 %v15359_v31, %v15258_v33  ;;  %v15260_v36 = vpop.f32.mrb[73].mxu1 }
 0x62f   : > { %v15492_v1 = vpop.f32.mrb[96].mxu0 }
 0x630   : > { %v15509_v7 = vadd.f32 %v15492_v1, %v15376_v2  ;;  %v15264_v39 = vpop.f32.mrb[74].mxu1  ;;  %v15494_v55 = vpop.f32.mrb[97].mxu0 }
 0x631   : > { %v15378_v6 = vadd.f32 %v15365_v50, %v15264_v39  ;;  %v15510_v58 = vadd.f32 %v15494_v55, %v15260_v36  ;;  %v15266_v54 = vpop.f32.mrb[75].mxu1 }
 0x632   : > { %15515 = vrot.lane.b32.xlu0 %v15509_v7, %s18371_s8 }
 0x633   : > { %v15498_v26 = vpop.f32.mrb[98].mxu0  ;;  %15517 = vrot.lane.b32.xlu1 %v15510_v58, %s18371_s8 }
 0x634   : > { %v22201_v25 = vadd.f32 %v15498_v26, %v15378_v6  ;;  %v15270_v52 = vpop.f32.mrb[76].mxu1  ;;  %v15500_v16 = vpop.f32.mrb[99].mxu0 }
 0x635   : > { %v15380_v12 = vadd.f32 %v15371_v42, %v15270_v52  ;;  %v15512_v63 = vadd.f32 %v15500_v16, %v15266_v54  ;;  %v15272_v21 = vpop.f32.mrb[77].mxu1 }
 0x637   : > { %v15504_v27 = vpop.f32.mrb[100].mxu0 }
 0x638   : > { %v15513_v19 = vadd.f32 %v15504_v27, %v15380_v12  ;;  %v15506_v46 = vpop.f32.mrb[101].mxu0 }
 0x639   : > { %v15514_v29 = vadd.f32 %v15506_v46, %v15272_v21 }
 0x63a   : > { %15525 = vrot.lane.b32.xlu0 %v15513_v19, %s18372_s16 }
 0x63b   : > { %15527 = vrot.lane.b32.xlu1 %v15514_v29, %s18372_s16 }
 0x64b   : > { %v13284_v56 = vpop.permute.xlu0 %13283 }
 0x64c   : > { %v13286_v13 = vpop.permute.xlu1 %13285 }
 0x64d   : > { %v13287_v0 = vsel %vm1849_vm4, %v13284_v56, %v13286_v13  ;;  %v13288_v15 = vsel %vm1849_vm4, %v13286_v13, %v13284_v56 }
 0x64e   : > { %v13289_v51 = vsel %vm19938_vm5, %v13288_v15, 0.0  ;;  %v13290_v61 = vsel %vm19942_vm6, %v13287_v0, 0.0 }
 0x64f   : > { %v13291_v43 = vadd.f32 %v13289_v51, %v22165_v9  ;;  %v13292_v60 = vadd.f32 %v13290_v61, %v22167_v17 }
 0x653   : > { %v13294_v38 = vpop.permute.xlu0 %13293 }
 0x654   : > { %v13296_v8 = vpop.permute.xlu1 %13295 }
 0x655   : > { %v13297_v30 = vsel %vm1874_vm7, %v13294_v38, %v13296_v8  ;;  %v13298_v53 = vsel %vm1874_vm7, %v13296_v8, %v13294_v38 }
 0x656   : > { %v13299_v37 = vsel %vm19963_vm8, %v13297_v30, 0.0  ;;  %v13300_v45 = vsel %vm19967_vm9, %v13298_v53, 0.0 }
 0x657   : > { %v13301_v41 = vadd.f32 %v13299_v37, %v13291_v43  ;;  %v13302_v48 = vadd.f32 %v13300_v45, %v13292_v60 }
 0x659   : > { %v13303_v11 = vadd.f32 %v13301_v41, %v22069_v34  ;;  %v13304_v9 = vadd.f32 %v13302_v48, %v22069_v34 }
 0x65b   : > { %v13305_v22 = vmax.f32 %v13303_v11, 0.0  ;;  %v13306_v17 = vmax.f32 %v13304_v9, 0.0 }
 0x65d   : > { %16555 = vst [vmem:[%s22120_s10 + $0x30] sm:$0xff] %v13305_v22  ;;  %16556 = vst [vmem:[%s22120_s10 + $0x38] sm:$0xff] %v13306_v17 }
 0x68a   : > { %v14400_v62 = vpop.permute.xlu0 %14399 }
 0x68b   : > { %v14402_v10 = vpop.permute.xlu1 %14401 }
 0x68c   : > { %v14403_v35 = vsel %vm1849_vm4, %v14400_v62, %v14402_v10  ;;  %v14404_v18 = vsel %vm1849_vm4, %v14402_v10, %v14400_v62 }
 0x68d   : > { %v14405_v44 = vsel %vm19938_vm5, %v14404_v18, 0.0  ;;  %v14406_v47 = vsel %vm19942_vm6, %v14403_v35, 0.0 }
 0x68e   : > { %v14407_v3 = vadd.f32 %v14405_v44, %v22193_v20  ;;  %v14408_v31 = vadd.f32 %v14406_v47, %v22195_v59 }
 0x692   : > { %v14410_v14 = vpop.permute.xlu0 %14409 }
 0x693   : > { %v14412_v23 = vpop.permute.xlu1 %14411 }
 0x694   : > { %v14413_v32 = vsel %vm1874_vm7, %v14410_v14, %v14412_v23  ;;  %v14414_v50 = vsel %vm1874_vm7, %v14412_v23, %v14410_v14 }
 0x695   : > { %v14415_v28 = vsel %vm19963_vm8, %v14413_v32, 0.0  ;;  %v14416_v42 = vsel %vm19967_vm9, %v14414_v50, 0.0 }
 0x696   : > { %v14417_v33 = vadd.f32 %v14415_v28, %v14407_v3  ;;  %v14418_v5 = vadd.f32 %v14416_v42, %v14408_v31 }
 0x698   : > { %v14419_v2 = vadd.f32 %v14417_v33, %v22069_v34  ;;  %v14420_v20 = vadd.f32 %v14418_v5, %v22069_v34 }
 0x69a   : > { %v14421_v36 = vmax.f32 %v14419_v2, 0.0  ;;  %v14422_v59 = vmax.f32 %v14420_v20, 0.0 }
 0x69c   : > { %16608 = vst [vmem:[%s22120_s10 + $0x40] sm:$0xff] %v14421_v36  ;;  %16609 = vst [vmem:[%s22120_s10 + $0x48] sm:$0xff] %v14422_v59 }
 0x6a4   : > { %v15516_v1 = vpop.permute.xlu0 %15515 }
 0x6a5   : > { %v15518_v7 = vpop.permute.xlu1 %15517 }
 0x6a6   : > { %v15519_v39 = vsel %vm1849_vm4, %v15516_v1, %v15518_v7  ;;  %v15520_v55 = vsel %vm1849_vm4, %v15518_v7, %v15516_v1 }
 0x6a7   : > { %v15521_v6 = vsel %vm19938_vm5, %v15520_v55, 0.0  ;;  %v15522_v58 = vsel %vm19942_vm6, %v15519_v39, 0.0 }
 0x6a8   : > { %v15523_v52 = vadd.f32 %v15521_v6, %v22201_v25  ;;  %v15524_v16 = vadd.f32 %v15522_v58, %v15512_v63 }
 0x6ac   : > { %v15526_v54 = vpop.permute.xlu0 %15525 }
 0x6ad   : > { %v15528_v26 = vpop.permute.xlu1 %15527 }
 0x6ae   : > { %v15529_v12 = vsel %vm1874_vm7, %v15526_v54, %v15528_v26  ;;  %v15530_v21 = vsel %vm1874_vm7, %v15528_v26, %v15526_v54 }
 0x6af   : > { %v15531_v40 = vsel %vm19963_vm8, %v15529_v12, 0.0  ;;  %v15532_v4 = vsel %vm19967_vm9, %v15530_v21, 0.0 }
 0x6b0   : > { %v15533_v27 = vadd.f32 %v15531_v40, %v15523_v52  ;;  %v15534_v19 = vadd.f32 %v15532_v4, %v15524_v16 }
 0x6b2   : > { %v15535_v46 = vadd.f32 %v15533_v27, %v22069_v34  ;;  %v15536_v29 = vadd.f32 %v15534_v19, %v22069_v34 }
 0x6b4   : > { %v15537_v25 = vmax.f32 %v15535_v46, 0.0  ;;  %v15538_v63 = vmax.f32 %v15536_v29, 0.0 }
 0x6b6   : > { %16661 = vst [vmem:[%s22120_s10 + $0x50] sm:$0xff] %v15537_v25  ;;  %16662 = vst [vmem:[%s22120_s10 + $0x58] sm:$0xff] %v15538_v63 }
 0x6b7 PF: > { %s15_s18 = sadd.s32 1, %s18364_s18  }
 0x6b8   : > { %p12_p4 = scmp.ge.s32.totalorder %s15_s18, 4  }
 0x6ba   :  { %14 = sbr.rel (!%p12_p4) target bundleno = 1 (0x1), region = 108 }

</bundles_post_ra>
